<compile_context>
chip_gen: v5e
topology: v5e:2x2
jax: 0.10.0
libtpu: 0.0.40
codegen_flags: <defaults>
</compile_context>

<pallas_src>
import math
from functools import partial

import jax
import jax.numpy as jnp
from jax import lax
from jax.experimental import pallas as pl
from jax.experimental.pallas import tpu as pltpu


def _round_up(n, m):
    return (n + m - 1) // m * m


# ----------------------------------------------------------------------------
# Fused HeadCNN kernel (one batch block per grid step)
# ----------------------------------------------------------------------------

def _headcnn_kernel(x_ref, w_ref, b_ref, o_ref, act_ref, s_ref, *,
                    H, W, C, bb, num_layers, dot_dtype):
    """Layouts (channel-major, flat spatial g = h*W + w on the lane axis):

      x_ref  : (bb, C, H*W)            f32        input block
      w_ref  : (num_layers, C, 9C)     dot_dtype  tap-packed weights,
               w_ref[l, co, (3i+j)*C + ci] = conv_w[l][co, ci, i, j]
      b_ref  : (num_layers, C, 1)      f32        biases
      o_ref  : (bb, C, Ho*W)           f32        stride-W flat output
      act_ref: (C, >= bb*(H-2)*W + 2)  f32        inter-layer activations,
                                                  packed per-element stride L
      s_ref  : (9C, >= bb*(H-2)*W)     dot_dtype  tap-stacked (im2col) slab
    """
    HW = x_ref.shape[-1]                       # == H * W (static)
    cur_h = H
    for layer in range(num_layers):
        ho = cur_h - 2
        L = ho * W                             # per-element output slab width
        L_prev = cur_h * W                     # per-element input slab width
        last = (layer + 1 == num_layers)

        # ---- im2col: ReLU'd, tap-stacked activations  S : (9C, bb*L) ------
        for b in range(bb):
            for t in range(9):
                i, j = divmod(t, 3)
                s = i * W + j
                if layer == 0:
                    # Read straight from the input block.  The <=2 columns
                    # that would fall past H*W only feed wrap-around outputs;
                    # clamp the read and zero-fill them (tiny masked store).
                    avail = min(L, HW - s)
                    src = x_ref[b, :, s:s + avail]
                else:
                    avail = L                  # act_ref has >=2 slack columns
                    src = act_ref[:, b * L_prev + s: b * L_prev + s + L]
                s_ref[t * C:(t + 1) * C, b * L: b * L + avail] = (
                    jnp.maximum(src, 0.0).astype(dot_dtype))
                if avail < L:
                    s_ref[t * C:(t + 1) * C, b * L + avail: b * L + L] = (
                        jnp.zeros((C, L - avail), dot_dtype))

        # ---- one MXU matmul per layer: (C, 9C) @ (9C, bb*L), f32 accum ----
        acc = jnp.dot(w_ref[layer], s_ref[:, :bb * L],
                      preferred_element_type=jnp.float32)
        acc = acc + b_ref[layer]               # (C, 1) lane-broadcast bias

        if not last:
            act_ref[:, :bb * L] = acc
            # Keep the 2 slack columns the next layer may read deterministic.
            act_ref[:, bb * L: bb * L + 2] = jnp.zeros((C, 2), jnp.float32)
        else:
            for b in range(bb):                # lane-dense per-element stores
                o_ref[b] = acc[:, b * L:(b + 1) * L].astype(o_ref.dtype)
        cur_h = ho


# ----------------------------------------------------------------------------
# Wrapper
# ----------------------------------------------------------------------------

def headcnn_forward(params, x, *, num_layers, num_filters,
                    batch_block=8, dot_dtype=jnp.bfloat16):
    """x: (B, C, H, W) float32 (PyTorch NCHW). Returns (B, C*Ho*Wo) float32.

    dot_dtype=jnp.bfloat16 is the v6e/v7x fast path (f32 accumulation is
    always kept); pass jnp.float32 for bit-closeness / v5e.
    """
    B, C, H, W = x.shape
    if num_layers == 0:
        # HeadCNN(num_layers=0) is just Flatten -> pure view, no kernel needed.
        return x.reshape(B, -1)
    assert C == num_filters, "HeadCNN convs are (num_filters -> num_filters)"

    Ho, Wo = H - 2 * num_layers, W - 2 * num_layers
    HW, L_out = H * W, Ho * W

    bb = max(1, min(batch_block, B))           # batch elements per grid step
    Bp = _round_up(B, bb)

    # NCHW is already channel-major: flat spatial goes straight onto the lane
    # axis with NO transpose.  Only a (rare) batch pad if B % bb != 0.
    xf = x.reshape(B, C, HW).astype(jnp.float32)
    if Bp != B:
        xf = jnp.pad(xf, ((0, Bp - B), (0, 0), (0, 0)))

    # Tap-packed weights, all layers stacked, pre-cast once to the dot dtype.
    w_stack = jnp.stack([
        jnp.transpose(w, (0, 2, 3, 1)).reshape(C, 9 * C)
        for w in params["conv_w"]]).astype(dot_dtype)
    b_stack = jnp.stack([b.reshape(C, 1) for b in params["conv_b"]]
                        ).astype(jnp.float32)

    # Scratch sizing.  The "+2 readable columns past each slab" invariant:
    # layer l+1's shifted tap slices read at most 2 columns past layer l's
    # packed slab of width bb*L_l  (and those reads only feed wrap-around
    # output columns, which the final slice below discards).
    act_cols = _round_up(bb * (H - 2) * W + 2, 128)
    s_cols = _round_up(bb * (H - 2) * W, 128)
    assert act_cols >= bb * (H - 2) * W + 2
    assert s_cols >= bb * (H - 2) * W

    kernel = partial(_headcnn_kernel, H=H, W=W, C=C, bb=bb,
                     num_layers=num_layers, dot_dtype=dot_dtype)

    flops = 2 * Bp * sum(9 * C * C * (H - 2 * (l + 1)) * W
                         for l in range(num_layers))
    bytes_accessed = (4 * Bp * C * (HW + L_out)
                      + w_stack.size * w_stack.dtype.itemsize
                      + b_stack.size * 4)

    out = pl.pallas_call(
        kernel,
        out_shape=jax.ShapeDtypeStruct((Bp, C, L_out), jnp.float32),
        grid=(Bp // bb,),
        in_specs=[
            pl.BlockSpec((bb, C, HW), lambda g: (g, 0, 0)),
            pl.BlockSpec((num_layers, C, 9 * C), lambda g: (0, 0, 0)),
            pl.BlockSpec((num_layers, C, 1), lambda g: (0, 0, 0)),
        ],
        out_specs=pl.BlockSpec((bb, C, L_out), lambda g: (g, 0, 0)),
        scratch_shapes=[
            pltpu.VMEM((C, act_cols), jnp.float32),   # inter-layer activations
            pltpu.VMEM((9 * C, s_cols), dot_dtype),   # tap-stacked im2col slab
        ],
        compiler_params=pltpu.CompilerParams(
            dimension_semantics=("parallel",)),
        cost_estimate=pl.CostEstimate(
            flops=flops, transcendentals=0, bytes_accessed=bytes_accessed),
    )(xf, w_stack, b_stack)

    # Valid region + torch (C, Ho, Wo) flatten order; channel-major output
    # means no transpose is needed here either.
    out = out[:B].reshape(B, C, Ho, W)[:, :, :, :Wo]
    return out.reshape(B, -1)


# ----------------------------------------------------------------------------
# Deterministic parameter init (mirrors weight_init)
# ----------------------------------------------------------------------------

def _orthogonal(key, shape, gain=1.0):
    return gain * jax.nn.initializers.orthogonal()(key, shape, jnp.float32)


def init_headcnn_params(key, num_layers, num_filters):
    ws, bs = [], []
    keys = jax.random.split(key, max(num_layers, 1))
    for layer in range(num_layers):
        w = jnp.zeros((num_filters, num_filters, 3, 3), jnp.float32)
        center = _orthogonal(keys[layer], (num_filters, num_filters),
                             gain=math.sqrt(2.0))          # relu gain
        w = w.at[:, :, 1, 1].set(center)                   # center tap only
        ws.append(w)
        bs.append(jnp.zeros((num_filters,), jnp.float32))
    return {"conv_w": ws, "conv_b": bs}


# ----------------------------------------------------------------------------
# Pure-JAX reference (for correctness check)
# ----------------------------------------------------------------------------

def headcnn_reference(params, x, *, num_layers):
    h = x
    for layer in range(num_layers):
        h = jnp.maximum(h, 0.0)
        h = lax.conv_general_dilated(
            h, params["conv_w"][layer], window_strides=(1, 1), padding="VALID",
            dimension_numbers=("NCHW", "OIHW", "NCHW"),
            precision=lax.Precision.HIGHEST)
        h = h + params["conv_b"][layer].reshape(1, -1, 1, 1)
    return h.reshape(h.shape[0], -1)


# ----------------------------------------------------------------------------

if __name__ == "__main__":
    key = jax.random.PRNGKey(0)
    kx, kp = jax.random.split(key)

    B, num_filters, H, W = 8, 32, 16, 16   # in_shape=(32,16,16) as convs imply
    num_layers = 2

    x = jax.random.normal(kx, (B, num_filters, H, W), jnp.float32)
    params = init_headcnn_params(kp, num_layers, num_filters)

    Ho, Wo = H - 2 * num_layers, W - 2 * num_layers
    ref = headcnn_reference(params, x, num_layers=num_layers)

    # f32 MXU path (bit-close to the XLA/PyTorch reference).
    out_f32 = jax.block_until_ready(
        headcnn_forward(params, x, num_layers=num_layers,
                        num_filters=num_filters, batch_block=4,
                        dot_dtype=jnp.float32))
    assert out_f32.shape == (B, num_filters * Ho * Wo)
    assert out_f32.dtype == jnp.float32
    err32 = float(jnp.max(jnp.abs(out_f32 - ref)))
    assert jnp.allclose(out_f32, ref, rtol=5e-3, atol=5e-3), err32

    # bf16-MXU fast path (v6e/v7x), f32 accumulation -> relaxed tolerance.
    out_bf16 = jax.block_until_ready(
        headcnn_forward(params, x, num_layers=num_layers,
                        num_filters=num_filters, batch_block=4,
                        dot_dtype=jnp.bfloat16))
    errbf = float(jnp.max(jnp.abs(out_bf16 - ref)))
    assert jnp.allclose(out_bf16, ref, rtol=5e-2, atol=1e-1), errbf

    print("KERNEL_OK")
</pallas_src>

<mosaic_0001>
module attributes {stable_mosaic.version = 11 : i64} {
  func.func @_headcnn_kernel(%arg0: i32, %arg1: memref<4x32x256xf32, #tpu.memory_space<vmem>>, %arg2: memref<2x32x288xf32, #tpu.memory_space<vmem>>, %arg3: memref<2x32x1xf32, #tpu.memory_space<vmem>>, %arg4: memref<4x32x192xf32, #tpu.memory_space<vmem>>, %arg5: memref<32x1024xf32, #tpu.memory_space<vmem>>, %arg6: memref<288x896xf32, #tpu.memory_space<vmem>>) attributes {dimension_semantics = [#tpu.dimension_semantics<parallel>], iteration_bounds = array<i64: 2>, scalar_prefetch = 0 : i64, scratch_operands = 2 : i64, tpu.core_type = #tpu.core_type<tc>, window_params = [{transform_indices = @transform_0, window_bounds = array<i64: 4, 32, 256>}, {pipeline_mode = #tpu.pipeline_mode<synchronous>, transform_indices = @transform_1, window_bounds = array<i64: 2, 32, 288>}, {pipeline_mode = #tpu.pipeline_mode<synchronous>, transform_indices = @transform_2, window_bounds = array<i64: 2, 32, 1>}, {transform_indices = @transform_3, window_bounds = array<i64: 4, 32, 192>}]} {
    %c0 = arith.constant 0 : index
    %c0_0 = arith.constant 0 : index
    %c0_1 = arith.constant 0 : index
    %0 = vector.load %arg1[%c0, %c0_0, %c0_1] : memref<4x32x256xf32, #tpu.memory_space<vmem>>, vector<1x32x224xf32>
    %1 = vector.shape_cast %0 : vector<1x32x224xf32> to vector<32x224xf32>
    %cst = arith.constant 0.000000e+00 : f32
    %2 = vector.broadcast %cst : f32 to vector<32x224xf32>
    %3 = arith.maximumf %1, %2 : vector<32x224xf32>
    %c0_2 = arith.constant 0 : index
    %c0_3 = arith.constant 0 : index
    %4 = vector.load %arg6[%c0_2, %c0_3] : memref<288x896xf32, #tpu.memory_space<vmem>>, vector<32x224xf32>
    tpu.vector_store %arg6[%c0_2, %c0_3], %3 {strides = array<i32>} : memref<288x896xf32, #tpu.memory_space<vmem>>, vector<32x224xf32>,
    %c0_4 = arith.constant 0 : index
    %c0_5 = arith.constant 0 : index
    %c1 = arith.constant 1 : index
    %5 = vector.load %arg1[%c0_4, %c0_5, %c1] : memref<4x32x256xf32, #tpu.memory_space<vmem>>, vector<1x32x224xf32>
    %6 = vector.shape_cast %5 : vector<1x32x224xf32> to vector<32x224xf32>
    %cst_6 = arith.constant 0.000000e+00 : f32
    %7 = vector.broadcast %cst_6 : f32 to vector<32x224xf32>
    %8 = arith.maximumf %6, %7 : vector<32x224xf32>
    %c32 = arith.constant 32 : index
    %c0_7 = arith.constant 0 : index
    %9 = vector.load %arg6[%c32, %c0_7] : memref<288x896xf32, #tpu.memory_space<vmem>>, vector<32x224xf32>
    tpu.vector_store %arg6[%c32, %c0_7], %8 {strides = array<i32>} : memref<288x896xf32, #tpu.memory_space<vmem>>, vector<32x224xf32>,
    %c0_8 = arith.constant 0 : index
    %c0_9 = arith.constant 0 : index
    %c2 = arith.constant 2 : index
    %10 = vector.load %arg1[%c0_8, %c0_9, %c2] : memref<4x32x256xf32, #tpu.memory_space<vmem>>, vector<1x32x224xf32>
    %11 = vector.shape_cast %10 : vector<1x32x224xf32> to vector<32x224xf32>
    %cst_10 = arith.constant 0.000000e+00 : f32
    %12 = vector.broadcast %cst_10 : f32 to vector<32x224xf32>
    %13 = arith.maximumf %11, %12 : vector<32x224xf32>
    %c64 = arith.constant 64 : index
    %c0_11 = arith.constant 0 : index
    %14 = vector.load %arg6[%c64, %c0_11] : memref<288x896xf32, #tpu.memory_space<vmem>>, vector<32x224xf32>
    tpu.vector_store %arg6[%c64, %c0_11], %13 {strides = array<i32>} : memref<288x896xf32, #tpu.memory_space<vmem>>, vector<32x224xf32>,
    %c0_12 = arith.constant 0 : index
    %c0_13 = arith.constant 0 : index
    %c16 = arith.constant 16 : index
    %15 = vector.load %arg1[%c0_12, %c0_13, %c16] : memref<4x32x256xf32, #tpu.memory_space<vmem>>, vector<1x32x224xf32>
    %16 = vector.shape_cast %15 : vector<1x32x224xf32> to vector<32x224xf32>
    %cst_14 = arith.constant 0.000000e+00 : f32
    %17 = vector.broadcast %cst_14 : f32 to vector<32x224xf32>
    %18 = arith.maximumf %16, %17 : vector<32x224xf32>
    %c96 = arith.constant 96 : index
    %c0_15 = arith.constant 0 : index
    %19 = vector.load %arg6[%c96, %c0_15] : memref<288x896xf32, #tpu.memory_space<vmem>>, vector<32x224xf32>
    tpu.vector_store %arg6[%c96, %c0_15], %18 {strides = array<i32>} : memref<288x896xf32, #tpu.memory_space<vmem>>, vector<32x224xf32>,
    %c0_16 = arith.constant 0 : index
    %c0_17 = arith.constant 0 : index
    %c17 = arith.constant 17 : index
    %20 = vector.load %arg1[%c0_16, %c0_17, %c17] : memref<4x32x256xf32, #tpu.memory_space<vmem>>, vector<1x32x224xf32>
    %21 = vector.shape_cast %20 : vector<1x32x224xf32> to vector<32x224xf32>
    %cst_18 = arith.constant 0.000000e+00 : f32
    %22 = vector.broadcast %cst_18 : f32 to vector<32x224xf32>
    %23 = arith.maximumf %21, %22 : vector<32x224xf32>
    %c128 = arith.constant 128 : index
    %c0_19 = arith.constant 0 : index
    %24 = vector.load %arg6[%c128, %c0_19] : memref<288x896xf32, #tpu.memory_space<vmem>>, vector<32x224xf32>
    tpu.vector_store %arg6[%c128, %c0_19], %23 {strides = array<i32>} : memref<288x896xf32, #tpu.memory_space<vmem>>, vector<32x224xf32>,
    %c0_20 = arith.constant 0 : index
    %c0_21 = arith.constant 0 : index
    %c18 = arith.constant 18 : index
    %25 = vector.load %arg1[%c0_20, %c0_21, %c18] : memref<4x32x256xf32, #tpu.memory_space<vmem>>, vector<1x32x224xf32>
    %26 = vector.shape_cast %25 : vector<1x32x224xf32> to vector<32x224xf32>
    %cst_22 = arith.constant 0.000000e+00 : f32
    %27 = vector.broadcast %cst_22 : f32 to vector<32x224xf32>
    %28 = arith.maximumf %26, %27 : vector<32x224xf32>
    %c160 = arith.constant 160 : index
    %c0_23 = arith.constant 0 : index
    %29 = vector.load %arg6[%c160, %c0_23] : memref<288x896xf32, #tpu.memory_space<vmem>>, vector<32x224xf32>
    tpu.vector_store %arg6[%c160, %c0_23], %28 {strides = array<i32>} : memref<288x896xf32, #tpu.memory_space<vmem>>, vector<32x224xf32>,
    %c0_24 = arith.constant 0 : index
    %c0_25 = arith.constant 0 : index
    %c32_26 = arith.constant 32 : index
    %30 = vector.load %arg1[%c0_24, %c0_25, %c32_26] : memref<4x32x256xf32, #tpu.memory_space<vmem>>, vector<1x32x224xf32>
    %31 = vector.shape_cast %30 : vector<1x32x224xf32> to vector<32x224xf32>
    %cst_27 = arith.constant 0.000000e+00 : f32
    %32 = vector.broadcast %cst_27 : f32 to vector<32x224xf32>
    %33 = arith.maximumf %31, %32 : vector<32x224xf32>
    %c192 = arith.constant 192 : index
    %c0_28 = arith.constant 0 : index
    %34 = vector.load %arg6[%c192, %c0_28] : memref<288x896xf32, #tpu.memory_space<vmem>>, vector<32x224xf32>
    tpu.vector_store %arg6[%c192, %c0_28], %33 {strides = array<i32>} : memref<288x896xf32, #tpu.memory_space<vmem>>, vector<32x224xf32>,
    %c0_29 = arith.constant 0 : index
    %c0_30 = arith.constant 0 : index
    %c33 = arith.constant 33 : index
    %35 = vector.load %arg1[%c0_29, %c0_30, %c33] : memref<4x32x256xf32, #tpu.memory_space<vmem>>, vector<1x32x223xf32>
    %36 = vector.shape_cast %35 : vector<1x32x223xf32> to vector<32x223xf32>
    %cst_31 = arith.constant 0.000000e+00 : f32
    %37 = vector.broadcast %cst_31 : f32 to vector<32x223xf32>
    %38 = arith.maximumf %36, %37 : vector<32x223xf32>
    %c224 = arith.constant 224 : index
    %c0_32 = arith.constant 0 : index
    %39 = vector.load %arg6[%c224, %c0_32] : memref<288x896xf32, #tpu.memory_space<vmem>>, vector<32x223xf32>
    tpu.vector_store %arg6[%c224, %c0_32], %38 {strides = array<i32>} : memref<288x896xf32, #tpu.memory_space<vmem>>, vector<32x223xf32>,
    %cst_33 = arith.constant 0.000000e+00 : f32
    %40 = vector.broadcast %cst_33 : f32 to vector<32x1xf32>
    %c224_34 = arith.constant 224 : index
    %c223 = arith.constant 223 : index
    %41 = vector.load %arg6[%c224_34, %c223] : memref<288x896xf32, #tpu.memory_space<vmem>>, vector<32x1xf32>
    tpu.vector_store %arg6[%c224_34, %c223], %40 {strides = array<i32>} : memref<288x896xf32, #tpu.memory_space<vmem>>, vector<32x1xf32>,
    %c0_35 = arith.constant 0 : index
    %c0_36 = arith.constant 0 : index
    %c34 = arith.constant 34 : index
    %42 = vector.load %arg1[%c0_35, %c0_36, %c34] : memref<4x32x256xf32, #tpu.memory_space<vmem>>, vector<1x32x222xf32>
    %43 = vector.shape_cast %42 : vector<1x32x222xf32> to vector<32x222xf32>
    %cst_37 = arith.constant 0.000000e+00 : f32
    %44 = vector.broadcast %cst_37 : f32 to vector<32x222xf32>
    %45 = arith.maximumf %43, %44 : vector<32x222xf32>
    %c256 = arith.constant 256 : index
    %c0_38 = arith.constant 0 : index
    %46 = vector.load %arg6[%c256, %c0_38] : memref<288x896xf32, #tpu.memory_space<vmem>>, vector<32x222xf32>
    tpu.vector_store %arg6[%c256, %c0_38], %45 {strides = array<i32>} : memref<288x896xf32, #tpu.memory_space<vmem>>, vector<32x222xf32>,
    %cst_39 = arith.constant 0.000000e+00 : f32
    %47 = vector.broadcast %cst_39 : f32 to vector<32x2xf32>
    %c256_40 = arith.constant 256 : index
    %c222 = arith.constant 222 : index
    %48 = vector.load %arg6[%c256_40, %c222] : memref<288x896xf32, #tpu.memory_space<vmem>>, vector<32x2xf32>
    tpu.vector_store %arg6[%c256_40, %c222], %47 {strides = array<i32>} : memref<288x896xf32, #tpu.memory_space<vmem>>, vector<32x2xf32>,
    %c1_41 = arith.constant 1 : index
    %c0_42 = arith.constant 0 : index
    %c0_43 = arith.constant 0 : index
    %49 = vector.load %arg1[%c1_41, %c0_42, %c0_43] : memref<4x32x256xf32, #tpu.memory_space<vmem>>, vector<1x32x224xf32>
    %50 = vector.shape_cast %49 : vector<1x32x224xf32> to vector<32x224xf32>
    %cst_44 = arith.constant 0.000000e+00 : f32
    %51 = vector.broadcast %cst_44 : f32 to vector<32x224xf32>
    %52 = arith.maximumf %50, %51 : vector<32x224xf32>
    %c0_45 = arith.constant 0 : index
    %c224_46 = arith.constant 224 : index
    %53 = vector.load %arg6[%c0_45, %c224_46] : memref<288x896xf32, #tpu.memory_space<vmem>>, vector<32x224xf32>
    tpu.vector_store %arg6[%c0_45, %c224_46], %52 {strides = array<i32>} : memref<288x896xf32, #tpu.memory_space<vmem>>, vector<32x224xf32>,
    %c1_47 = arith.constant 1 : index
    %c0_48 = arith.constant 0 : index
    %c1_49 = arith.constant 1 : index
    %54 = vector.load %arg1[%c1_47, %c0_48, %c1_49] : memref<4x32x256xf32, #tpu.memory_space<vmem>>, vector<1x32x224xf32>
    %55 = vector.shape_cast %54 : vector<1x32x224xf32> to vector<32x224xf32>
    %cst_50 = arith.constant 0.000000e+00 : f32
    %56 = vector.broadcast %cst_50 : f32 to vector<32x224xf32>
    %57 = arith.maximumf %55, %56 : vector<32x224xf32>
    %c32_51 = arith.constant 32 : index
    %c224_52 = arith.constant 224 : index
    %58 = vector.load %arg6[%c32_51, %c224_52] : memref<288x896xf32, #tpu.memory_space<vmem>>, vector<32x224xf32>
    tpu.vector_store %arg6[%c32_51, %c224_52], %57 {strides = array<i32>} : memref<288x896xf32, #tpu.memory_space<vmem>>, vector<32x224xf32>,
    %c1_53 = arith.constant 1 : index
    %c0_54 = arith.constant 0 : index
    %c2_55 = arith.constant 2 : index
    %59 = vector.load %arg1[%c1_53, %c0_54, %c2_55] : memref<4x32x256xf32, #tpu.memory_space<vmem>>, vector<1x32x224xf32>
    %60 = vector.shape_cast %59 : vector<1x32x224xf32> to vector<32x224xf32>
    %cst_56 = arith.constant 0.000000e+00 : f32
    %61 = vector.broadcast %cst_56 : f32 to vector<32x224xf32>
    %62 = arith.maximumf %60, %61 : vector<32x224xf32>
    %c64_57 = arith.constant 64 : index
    %c224_58 = arith.constant 224 : index
    %63 = vector.load %arg6[%c64_57, %c224_58] : memref<288x896xf32, #tpu.memory_space<vmem>>, vector<32x224xf32>
    tpu.vector_store %arg6[%c64_57, %c224_58], %62 {strides = array<i32>} : memref<288x896xf32, #tpu.memory_space<vmem>>, vector<32x224xf32>,
    %c1_59 = arith.constant 1 : index
    %c0_60 = arith.constant 0 : index
    %c16_61 = arith.constant 16 : index
    %64 = vector.load %arg1[%c1_59, %c0_60, %c16_61] : memref<4x32x256xf32, #tpu.memory_space<vmem>>, vector<1x32x224xf32>
    %65 = vector.shape_cast %64 : vector<1x32x224xf32> to vector<32x224xf32>
    %cst_62 = arith.constant 0.000000e+00 : f32
    %66 = vector.broadcast %cst_62 : f32 to vector<32x224xf32>
    %67 = arith.maximumf %65, %66 : vector<32x224xf32>
    %c96_63 = arith.constant 96 : index
    %c224_64 = arith.constant 224 : index
    %68 = vector.load %arg6[%c96_63, %c224_64] : memref<288x896xf32, #tpu.memory_space<vmem>>, vector<32x224xf32>
    tpu.vector_store %arg6[%c96_63, %c224_64], %67 {strides = array<i32>} : memref<288x896xf32, #tpu.memory_space<vmem>>, vector<32x224xf32>,
    %c1_65 = arith.constant 1 : index
    %c0_66 = arith.constant 0 : index
    %c17_67 = arith.constant 17 : index
    %69 = vector.load %arg1[%c1_65, %c0_66, %c17_67] : memref<4x32x256xf32, #tpu.memory_space<vmem>>, vector<1x32x224xf32>
    %70 = vector.shape_cast %69 : vector<1x32x224xf32> to vector<32x224xf32>
    %cst_68 = arith.constant 0.000000e+00 : f32
    %71 = vector.broadcast %cst_68 : f32 to vector<32x224xf32>
    %72 = arith.maximumf %70, %71 : vector<32x224xf32>
    %c128_69 = arith.constant 128 : index
    %c224_70 = arith.constant 224 : index
    %73 = vector.load %arg6[%c128_69, %c224_70] : memref<288x896xf32, #tpu.memory_space<vmem>>, vector<32x224xf32>
    tpu.vector_store %arg6[%c128_69, %c224_70], %72 {strides = array<i32>} : memref<288x896xf32, #tpu.memory_space<vmem>>, vector<32x224xf32>,
    %c1_71 = arith.constant 1 : index
    %c0_72 = arith.constant 0 : index
    %c18_73 = arith.constant 18 : index
    %74 = vector.load %arg1[%c1_71, %c0_72, %c18_73] : memref<4x32x256xf32, #tpu.memory_space<vmem>>, vector<1x32x224xf32>
    %75 = vector.shape_cast %74 : vector<1x32x224xf32> to vector<32x224xf32>
    %cst_74 = arith.constant 0.000000e+00 : f32
    %76 = vector.broadcast %cst_74 : f32 to vector<32x224xf32>
    %77 = arith.maximumf %75, %76 : vector<32x224xf32>
    %c160_75 = arith.constant 160 : index
    %c224_76 = arith.constant 224 : index
    %78 = vector.load %arg6[%c160_75, %c224_76] : memref<288x896xf32, #tpu.memory_space<vmem>>, vector<32x224xf32>
    tpu.vector_store %arg6[%c160_75, %c224_76], %77 {strides = array<i32>} : memref<288x896xf32, #tpu.memory_space<vmem>>, vector<32x224xf32>,
    %c1_77 = arith.constant 1 : index
    %c0_78 = arith.constant 0 : index
    %c32_79 = arith.constant 32 : index
    %79 = vector.load %arg1[%c1_77, %c0_78, %c32_79] : memref<4x32x256xf32, #tpu.memory_space<vmem>>, vector<1x32x224xf32>
    %80 = vector.shape_cast %79 : vector<1x32x224xf32> to vector<32x224xf32>
    %cst_80 = arith.constant 0.000000e+00 : f32
    %81 = vector.broadcast %cst_80 : f32 to vector<32x224xf32>
    %82 = arith.maximumf %80, %81 : vector<32x224xf32>
    %c192_81 = arith.constant 192 : index
    %c224_82 = arith.constant 224 : index
    %83 = vector.load %arg6[%c192_81, %c224_82] : memref<288x896xf32, #tpu.memory_space<vmem>>, vector<32x224xf32>
    tpu.vector_store %arg6[%c192_81, %c224_82], %82 {strides = array<i32>} : memref<288x896xf32, #tpu.memory_space<vmem>>, vector<32x224xf32>,
    %c1_83 = arith.constant 1 : index
    %c0_84 = arith.constant 0 : index
    %c33_85 = arith.constant 33 : index
    %84 = vector.load %arg1[%c1_83, %c0_84, %c33_85] : memref<4x32x256xf32, #tpu.memory_space<vmem>>, vector<1x32x223xf32>
    %85 = vector.shape_cast %84 : vector<1x32x223xf32> to vector<32x223xf32>
    %cst_86 = arith.constant 0.000000e+00 : f32
    %86 = vector.broadcast %cst_86 : f32 to vector<32x223xf32>
    %87 = arith.maximumf %85, %86 : vector<32x223xf32>
    %c224_87 = arith.constant 224 : index
    %c224_88 = arith.constant 224 : index
    %88 = vector.load %arg6[%c224_87, %c224_88] : memref<288x896xf32, #tpu.memory_space<vmem>>, vector<32x223xf32>
    tpu.vector_store %arg6[%c224_87, %c224_88], %87 {strides = array<i32>} : memref<288x896xf32, #tpu.memory_space<vmem>>, vector<32x223xf32>,
    %cst_89 = arith.constant 0.000000e+00 : f32
    %89 = vector.broadcast %cst_89 : f32 to vector<32x1xf32>
    %c224_90 = arith.constant 224 : index
    %c447 = arith.constant 447 : index
    %90 = vector.load %arg6[%c224_90, %c447] : memref<288x896xf32, #tpu.memory_space<vmem>>, vector<32x1xf32>
    tpu.vector_store %arg6[%c224_90, %c447], %89 {strides = array<i32>} : memref<288x896xf32, #tpu.memory_space<vmem>>, vector<32x1xf32>,
    %c1_91 = arith.constant 1 : index
    %c0_92 = arith.constant 0 : index
    %c34_93 = arith.constant 34 : index
    %91 = vector.load %arg1[%c1_91, %c0_92, %c34_93] : memref<4x32x256xf32, #tpu.memory_space<vmem>>, vector<1x32x222xf32>
    %92 = vector.shape_cast %91 : vector<1x32x222xf32> to vector<32x222xf32>
    %cst_94 = arith.constant 0.000000e+00 : f32
    %93 = vector.broadcast %cst_94 : f32 to vector<32x222xf32>
    %94 = arith.maximumf %92, %93 : vector<32x222xf32>
    %c256_95 = arith.constant 256 : index
    %c224_96 = arith.constant 224 : index
    %95 = vector.load %arg6[%c256_95, %c224_96] : memref<288x896xf32, #tpu.memory_space<vmem>>, vector<32x222xf32>
    tpu.vector_store %arg6[%c256_95, %c224_96], %94 {strides = array<i32>} : memref<288x896xf32, #tpu.memory_space<vmem>>, vector<32x222xf32>,
    %cst_97 = arith.constant 0.000000e+00 : f32
    %96 = vector.broadcast %cst_97 : f32 to vector<32x2xf32>
    %c256_98 = arith.constant 256 : index
    %c446 = arith.constant 446 : index
    %97 = vector.load %arg6[%c256_98, %c446] : memref<288x896xf32, #tpu.memory_space<vmem>>, vector<32x2xf32>
    tpu.vector_store %arg6[%c256_98, %c446], %96 {strides = array<i32>} : memref<288x896xf32, #tpu.memory_space<vmem>>, vector<32x2xf32>,
    %c2_99 = arith.constant 2 : index
    %c0_100 = arith.constant 0 : index
    %c0_101 = arith.constant 0 : index
    %98 = vector.load %arg1[%c2_99, %c0_100, %c0_101] : memref<4x32x256xf32, #tpu.memory_space<vmem>>, vector<1x32x224xf32>
    %99 = vector.shape_cast %98 : vector<1x32x224xf32> to vector<32x224xf32>
    %cst_102 = arith.constant 0.000000e+00 : f32
    %100 = vector.broadcast %cst_102 : f32 to vector<32x224xf32>
    %101 = arith.maximumf %99, %100 : vector<32x224xf32>
    %c0_103 = arith.constant 0 : index
    %c448 = arith.constant 448 : index
    %102 = vector.load %arg6[%c0_103, %c448] : memref<288x896xf32, #tpu.memory_space<vmem>>, vector<32x224xf32>
    tpu.vector_store %arg6[%c0_103, %c448], %101 {strides = array<i32>} : memref<288x896xf32, #tpu.memory_space<vmem>>, vector<32x224xf32>,
    %c2_104 = arith.constant 2 : index
    %c0_105 = arith.constant 0 : index
    %c1_106 = arith.constant 1 : index
    %103 = vector.load %arg1[%c2_104, %c0_105, %c1_106] : memref<4x32x256xf32, #tpu.memory_space<vmem>>, vector<1x32x224xf32>
    %104 = vector.shape_cast %103 : vector<1x32x224xf32> to vector<32x224xf32>
    %cst_107 = arith.constant 0.000000e+00 : f32
    %105 = vector.broadcast %cst_107 : f32 to vector<32x224xf32>
    %106 = arith.maximumf %104, %105 : vector<32x224xf32>
    %c32_108 = arith.constant 32 : index
    %c448_109 = arith.constant 448 : index
    %107 = vector.load %arg6[%c32_108, %c448_109] : memref<288x896xf32, #tpu.memory_space<vmem>>, vector<32x224xf32>
    tpu.vector_store %arg6[%c32_108, %c448_109], %106 {strides = array<i32>} : memref<288x896xf32, #tpu.memory_space<vmem>>, vector<32x224xf32>,
    %c2_110 = arith.constant 2 : index
    %c0_111 = arith.constant 0 : index
    %c2_112 = arith.constant 2 : index
    %108 = vector.load %arg1[%c2_110, %c0_111, %c2_112] : memref<4x32x256xf32, #tpu.memory_space<vmem>>, vector<1x32x224xf32>
    %109 = vector.shape_cast %108 : vector<1x32x224xf32> to vector<32x224xf32>
    %cst_113 = arith.constant 0.000000e+00 : f32
    %110 = vector.broadcast %cst_113 : f32 to vector<32x224xf32>
    %111 = arith.maximumf %109, %110 : vector<32x224xf32>
    %c64_114 = arith.constant 64 : index
    %c448_115 = arith.constant 448 : index
    %112 = vector.load %arg6[%c64_114, %c448_115] : memref<288x896xf32, #tpu.memory_space<vmem>>, vector<32x224xf32>
    tpu.vector_store %arg6[%c64_114, %c448_115], %111 {strides = array<i32>} : memref<288x896xf32, #tpu.memory_space<vmem>>, vector<32x224xf32>,
    %c2_116 = arith.constant 2 : index
    %c0_117 = arith.constant 0 : index
    %c16_118 = arith.constant 16 : index
    %113 = vector.load %arg1[%c2_116, %c0_117, %c16_118] : memref<4x32x256xf32, #tpu.memory_space<vmem>>, vector<1x32x224xf32>
    %114 = vector.shape_cast %113 : vector<1x32x224xf32> to vector<32x224xf32>
    %cst_119 = arith.constant 0.000000e+00 : f32
    %115 = vector.broadcast %cst_119 : f32 to vector<32x224xf32>
    %116 = arith.maximumf %114, %115 : vector<32x224xf32>
    %c96_120 = arith.constant 96 : index
    %c448_121 = arith.constant 448 : index
    %117 = vector.load %arg6[%c96_120, %c448_121] : memref<288x896xf32, #tpu.memory_space<vmem>>, vector<32x224xf32>
    tpu.vector_store %arg6[%c96_120, %c448_121], %116 {strides = array<i32>} : memref<288x896xf32, #tpu.memory_space<vmem>>, vector<32x224xf32>,
    %c2_122 = arith.constant 2 : index
    %c0_123 = arith.constant 0 : index
    %c17_124 = arith.constant 17 : index
    %118 = vector.load %arg1[%c2_122, %c0_123, %c17_124] : memref<4x32x256xf32, #tpu.memory_space<vmem>>, vector<1x32x224xf32>
    %119 = vector.shape_cast %118 : vector<1x32x224xf32> to vector<32x224xf32>
    %cst_125 = arith.constant 0.000000e+00 : f32
    %120 = vector.broadcast %cst_125 : f32 to vector<32x224xf32>
    %121 = arith.maximumf %119, %120 : vector<32x224xf32>
    %c128_126 = arith.constant 128 : index
    %c448_127 = arith.constant 448 : index
    %122 = vector.load %arg6[%c128_126, %c448_127] : memref<288x896xf32, #tpu.memory_space<vmem>>, vector<32x224xf32>
    tpu.vector_store %arg6[%c128_126, %c448_127], %121 {strides = array<i32>} : memref<288x896xf32, #tpu.memory_space<vmem>>, vector<32x224xf32>,
    %c2_128 = arith.constant 2 : index
    %c0_129 = arith.constant 0 : index
    %c18_130 = arith.constant 18 : index
    %123 = vector.load %arg1[%c2_128, %c0_129, %c18_130] : memref<4x32x256xf32, #tpu.memory_space<vmem>>, vector<1x32x224xf32>
    %124 = vector.shape_cast %123 : vector<1x32x224xf32> to vector<32x224xf32>
    %cst_131 = arith.constant 0.000000e+00 : f32
    %125 = vector.broadcast %cst_131 : f32 to vector<32x224xf32>
    %126 = arith.maximumf %124, %125 : vector<32x224xf32>
    %c160_132 = arith.constant 160 : index
    %c448_133 = arith.constant 448 : index
    %127 = vector.load %arg6[%c160_132, %c448_133] : memref<288x896xf32, #tpu.memory_space<vmem>>, vector<32x224xf32>
    tpu.vector_store %arg6[%c160_132, %c448_133], %126 {strides = array<i32>} : memref<288x896xf32, #tpu.memory_space<vmem>>, vector<32x224xf32>,
    %c2_134 = arith.constant 2 : index
    %c0_135 = arith.constant 0 : index
    %c32_136 = arith.constant 32 : index
    %128 = vector.load %arg1[%c2_134, %c0_135, %c32_136] : memref<4x32x256xf32, #tpu.memory_space<vmem>>, vector<1x32x224xf32>
    %129 = vector.shape_cast %128 : vector<1x32x224xf32> to vector<32x224xf32>
    %cst_137 = arith.constant 0.000000e+00 : f32
    %130 = vector.broadcast %cst_137 : f32 to vector<32x224xf32>
    %131 = arith.maximumf %129, %130 : vector<32x224xf32>
    %c192_138 = arith.constant 192 : index
    %c448_139 = arith.constant 448 : index
    %132 = vector.load %arg6[%c192_138, %c448_139] : memref<288x896xf32, #tpu.memory_space<vmem>>, vector<32x224xf32>
    tpu.vector_store %arg6[%c192_138, %c448_139], %131 {strides = array<i32>} : memref<288x896xf32, #tpu.memory_space<vmem>>, vector<32x224xf32>,
    %c2_140 = arith.constant 2 : index
    %c0_141 = arith.constant 0 : index
    %c33_142 = arith.constant 33 : index
    %133 = vector.load %arg1[%c2_140, %c0_141, %c33_142] : memref<4x32x256xf32, #tpu.memory_space<vmem>>, vector<1x32x223xf32>
    %134 = vector.shape_cast %133 : vector<1x32x223xf32> to vector<32x223xf32>
    %cst_143 = arith.constant 0.000000e+00 : f32
    %135 = vector.broadcast %cst_143 : f32 to vector<32x223xf32>
    %136 = arith.maximumf %134, %135 : vector<32x223xf32>
    %c224_144 = arith.constant 224 : index
    %c448_145 = arith.constant 448 : index
    %137 = vector.load %arg6[%c224_144, %c448_145] : memref<288x896xf32, #tpu.memory_space<vmem>>, vector<32x223xf32>
    tpu.vector_store %arg6[%c224_144, %c448_145], %136 {strides = array<i32>} : memref<288x896xf32, #tpu.memory_space<vmem>>, vector<32x223xf32>,
    %cst_146 = arith.constant 0.000000e+00 : f32
    %138 = vector.broadcast %cst_146 : f32 to vector<32x1xf32>
    %c224_147 = arith.constant 224 : index
    %c671 = arith.constant 671 : index
    %139 = vector.load %arg6[%c224_147, %c671] : memref<288x896xf32, #tpu.memory_space<vmem>>, vector<32x1xf32>
    tpu.vector_store %arg6[%c224_147, %c671], %138 {strides = array<i32>} : memref<288x896xf32, #tpu.memory_space<vmem>>, vector<32x1xf32>,
    %c2_148 = arith.constant 2 : index
    %c0_149 = arith.constant 0 : index
    %c34_150 = arith.constant 34 : index
    %140 = vector.load %arg1[%c2_148, %c0_149, %c34_150] : memref<4x32x256xf32, #tpu.memory_space<vmem>>, vector<1x32x222xf32>
    %141 = vector.shape_cast %140 : vector<1x32x222xf32> to vector<32x222xf32>
    %cst_151 = arith.constant 0.000000e+00 : f32
    %142 = vector.broadcast %cst_151 : f32 to vector<32x222xf32>
    %143 = arith.maximumf %141, %142 : vector<32x222xf32>
    %c256_152 = arith.constant 256 : index
    %c448_153 = arith.constant 448 : index
    %144 = vector.load %arg6[%c256_152, %c448_153] : memref<288x896xf32, #tpu.memory_space<vmem>>, vector<32x222xf32>
    tpu.vector_store %arg6[%c256_152, %c448_153], %143 {strides = array<i32>} : memref<288x896xf32, #tpu.memory_space<vmem>>, vector<32x222xf32>,
    %cst_154 = arith.constant 0.000000e+00 : f32
    %145 = vector.broadcast %cst_154 : f32 to vector<32x2xf32>
    %c256_155 = arith.constant 256 : index
    %c670 = arith.constant 670 : index
    %146 = vector.load %arg6[%c256_155, %c670] : memref<288x896xf32, #tpu.memory_space<vmem>>, vector<32x2xf32>
    tpu.vector_store %arg6[%c256_155, %c670], %145 {strides = array<i32>} : memref<288x896xf32, #tpu.memory_space<vmem>>, vector<32x2xf32>,
    %c3 = arith.constant 3 : index
    %c0_156 = arith.constant 0 : index
    %c0_157 = arith.constant 0 : index
    %147 = vector.load %arg1[%c3, %c0_156, %c0_157] : memref<4x32x256xf32, #tpu.memory_space<vmem>>, vector<1x32x224xf32>
    %148 = vector.shape_cast %147 : vector<1x32x224xf32> to vector<32x224xf32>
    %cst_158 = arith.constant 0.000000e+00 : f32
    %149 = vector.broadcast %cst_158 : f32 to vector<32x224xf32>
    %150 = arith.maximumf %148, %149 : vector<32x224xf32>
    %c0_159 = arith.constant 0 : index
    %c672 = arith.constant 672 : index
    %151 = vector.load %arg6[%c0_159, %c672] : memref<288x896xf32, #tpu.memory_space<vmem>>, vector<32x224xf32>
    tpu.vector_store %arg6[%c0_159, %c672], %150 {strides = array<i32>} : memref<288x896xf32, #tpu.memory_space<vmem>>, vector<32x224xf32>,
    %c3_160 = arith.constant 3 : index
    %c0_161 = arith.constant 0 : index
    %c1_162 = arith.constant 1 : index
    %152 = vector.load %arg1[%c3_160, %c0_161, %c1_162] : memref<4x32x256xf32, #tpu.memory_space<vmem>>, vector<1x32x224xf32>
    %153 = vector.shape_cast %152 : vector<1x32x224xf32> to vector<32x224xf32>
    %cst_163 = arith.constant 0.000000e+00 : f32
    %154 = vector.broadcast %cst_163 : f32 to vector<32x224xf32>
    %155 = arith.maximumf %153, %154 : vector<32x224xf32>
    %c32_164 = arith.constant 32 : index
    %c672_165 = arith.constant 672 : index
    %156 = vector.load %arg6[%c32_164, %c672_165] : memref<288x896xf32, #tpu.memory_space<vmem>>, vector<32x224xf32>
    tpu.vector_store %arg6[%c32_164, %c672_165], %155 {strides = array<i32>} : memref<288x896xf32, #tpu.memory_space<vmem>>, vector<32x224xf32>,
    %c3_166 = arith.constant 3 : index
    %c0_167 = arith.constant 0 : index
    %c2_168 = arith.constant 2 : index
    %157 = vector.load %arg1[%c3_166, %c0_167, %c2_168] : memref<4x32x256xf32, #tpu.memory_space<vmem>>, vector<1x32x224xf32>
    %158 = vector.shape_cast %157 : vector<1x32x224xf32> to vector<32x224xf32>
    %cst_169 = arith.constant 0.000000e+00 : f32
    %159 = vector.broadcast %cst_169 : f32 to vector<32x224xf32>
    %160 = arith.maximumf %158, %159 : vector<32x224xf32>
    %c64_170 = arith.constant 64 : index
    %c672_171 = arith.constant 672 : index
    %161 = vector.load %arg6[%c64_170, %c672_171] : memref<288x896xf32, #tpu.memory_space<vmem>>, vector<32x224xf32>
    tpu.vector_store %arg6[%c64_170, %c672_171], %160 {strides = array<i32>} : memref<288x896xf32, #tpu.memory_space<vmem>>, vector<32x224xf32>,
    %c3_172 = arith.constant 3 : index
    %c0_173 = arith.constant 0 : index
    %c16_174 = arith.constant 16 : index
    %162 = vector.load %arg1[%c3_172, %c0_173, %c16_174] : memref<4x32x256xf32, #tpu.memory_space<vmem>>, vector<1x32x224xf32>
    %163 = vector.shape_cast %162 : vector<1x32x224xf32> to vector<32x224xf32>
    %cst_175 = arith.constant 0.000000e+00 : f32
    %164 = vector.broadcast %cst_175 : f32 to vector<32x224xf32>
    %165 = arith.maximumf %163, %164 : vector<32x224xf32>
    %c96_176 = arith.constant 96 : index
    %c672_177 = arith.constant 672 : index
    %166 = vector.load %arg6[%c96_176, %c672_177] : memref<288x896xf32, #tpu.memory_space<vmem>>, vector<32x224xf32>
    tpu.vector_store %arg6[%c96_176, %c672_177], %165 {strides = array<i32>} : memref<288x896xf32, #tpu.memory_space<vmem>>, vector<32x224xf32>,
    %c3_178 = arith.constant 3 : index
    %c0_179 = arith.constant 0 : index
    %c17_180 = arith.constant 17 : index
    %167 = vector.load %arg1[%c3_178, %c0_179, %c17_180] : memref<4x32x256xf32, #tpu.memory_space<vmem>>, vector<1x32x224xf32>
    %168 = vector.shape_cast %167 : vector<1x32x224xf32> to vector<32x224xf32>
    %cst_181 = arith.constant 0.000000e+00 : f32
    %169 = vector.broadcast %cst_181 : f32 to vector<32x224xf32>
    %170 = arith.maximumf %168, %169 : vector<32x224xf32>
    %c128_182 = arith.constant 128 : index
    %c672_183 = arith.constant 672 : index
    %171 = vector.load %arg6[%c128_182, %c672_183] : memref<288x896xf32, #tpu.memory_space<vmem>>, vector<32x224xf32>
    tpu.vector_store %arg6[%c128_182, %c672_183], %170 {strides = array<i32>} : memref<288x896xf32, #tpu.memory_space<vmem>>, vector<32x224xf32>,
    %c3_184 = arith.constant 3 : index
    %c0_185 = arith.constant 0 : index
    %c18_186 = arith.constant 18 : index
    %172 = vector.load %arg1[%c3_184, %c0_185, %c18_186] : memref<4x32x256xf32, #tpu.memory_space<vmem>>, vector<1x32x224xf32>
    %173 = vector.shape_cast %172 : vector<1x32x224xf32> to vector<32x224xf32>
    %cst_187 = arith.constant 0.000000e+00 : f32
    %174 = vector.broadcast %cst_187 : f32 to vector<32x224xf32>
    %175 = arith.maximumf %173, %174 : vector<32x224xf32>
    %c160_188 = arith.constant 160 : index
    %c672_189 = arith.constant 672 : index
    %176 = vector.load %arg6[%c160_188, %c672_189] : memref<288x896xf32, #tpu.memory_space<vmem>>, vector<32x224xf32>
    tpu.vector_store %arg6[%c160_188, %c672_189], %175 {strides = array<i32>} : memref<288x896xf32, #tpu.memory_space<vmem>>, vector<32x224xf32>,
    %c3_190 = arith.constant 3 : index
    %c0_191 = arith.constant 0 : index
    %c32_192 = arith.constant 32 : index
    %177 = vector.load %arg1[%c3_190, %c0_191, %c32_192] : memref<4x32x256xf32, #tpu.memory_space<vmem>>, vector<1x32x224xf32>
    %178 = vector.shape_cast %177 : vector<1x32x224xf32> to vector<32x224xf32>
    %cst_193 = arith.constant 0.000000e+00 : f32
    %179 = vector.broadcast %cst_193 : f32 to vector<32x224xf32>
    %180 = arith.maximumf %178, %179 : vector<32x224xf32>
    %c192_194 = arith.constant 192 : index
    %c672_195 = arith.constant 672 : index
    %181 = vector.load %arg6[%c192_194, %c672_195] : memref<288x896xf32, #tpu.memory_space<vmem>>, vector<32x224xf32>
    tpu.vector_store %arg6[%c192_194, %c672_195], %180 {strides = array<i32>} : memref<288x896xf32, #tpu.memory_space<vmem>>, vector<32x224xf32>,
    %c3_196 = arith.constant 3 : index
    %c0_197 = arith.constant 0 : index
    %c33_198 = arith.constant 33 : index
    %182 = vector.load %arg1[%c3_196, %c0_197, %c33_198] : memref<4x32x256xf32, #tpu.memory_space<vmem>>, vector<1x32x223xf32>
    %183 = vector.shape_cast %182 : vector<1x32x223xf32> to vector<32x223xf32>
    %cst_199 = arith.constant 0.000000e+00 : f32
    %184 = vector.broadcast %cst_199 : f32 to vector<32x223xf32>
    %185 = arith.maximumf %183, %184 : vector<32x223xf32>
    %c224_200 = arith.constant 224 : index
    %c672_201 = arith.constant 672 : index
    %186 = vector.load %arg6[%c224_200, %c672_201] : memref<288x896xf32, #tpu.memory_space<vmem>>, vector<32x223xf32>
    tpu.vector_store %arg6[%c224_200, %c672_201], %185 {strides = array<i32>} : memref<288x896xf32, #tpu.memory_space<vmem>>, vector<32x223xf32>,
    %cst_202 = arith.constant 0.000000e+00 : f32
    %187 = vector.broadcast %cst_202 : f32 to vector<32x1xf32>
    %c224_203 = arith.constant 224 : index
    %c895 = arith.constant 895 : index
    %188 = vector.load %arg6[%c224_203, %c895] : memref<288x896xf32, #tpu.memory_space<vmem>>, vector<32x1xf32>
    tpu.vector_store %arg6[%c224_203, %c895], %187 {strides = array<i32>} : memref<288x896xf32, #tpu.memory_space<vmem>>, vector<32x1xf32>,
    %c3_204 = arith.constant 3 : index
    %c0_205 = arith.constant 0 : index
    %c34_206 = arith.constant 34 : index
    %189 = vector.load %arg1[%c3_204, %c0_205, %c34_206] : memref<4x32x256xf32, #tpu.memory_space<vmem>>, vector<1x32x222xf32>
    %190 = vector.shape_cast %189 : vector<1x32x222xf32> to vector<32x222xf32>
    %cst_207 = arith.constant 0.000000e+00 : f32
    %191 = vector.broadcast %cst_207 : f32 to vector<32x222xf32>
    %192 = arith.maximumf %190, %191 : vector<32x222xf32>
    %c256_208 = arith.constant 256 : index
    %c672_209 = arith.constant 672 : index
    %193 = vector.load %arg6[%c256_208, %c672_209] : memref<288x896xf32, #tpu.memory_space<vmem>>, vector<32x222xf32>
    tpu.vector_store %arg6[%c256_208, %c672_209], %192 {strides = array<i32>} : memref<288x896xf32, #tpu.memory_space<vmem>>, vector<32x222xf32>,
    %cst_210 = arith.constant 0.000000e+00 : f32
    %194 = vector.broadcast %cst_210 : f32 to vector<32x2xf32>
    %c256_211 = arith.constant 256 : index
    %c894 = arith.constant 894 : index
    %195 = vector.load %arg6[%c256_211, %c894] : memref<288x896xf32, #tpu.memory_space<vmem>>, vector<32x2xf32>
    tpu.vector_store %arg6[%c256_211, %c894], %194 {strides = array<i32>} : memref<288x896xf32, #tpu.memory_space<vmem>>, vector<32x2xf32>,
    %c0_212 = arith.constant 0 : index
    %c0_213 = arith.constant 0 : index
    %c0_214 = arith.constant 0 : index
    %196 = vector.load %arg2[%c0_212, %c0_213, %c0_214] : memref<2x32x288xf32, #tpu.memory_space<vmem>>, vector<1x32x288xf32>
    %197 = vector.shape_cast %196 : vector<1x32x288xf32> to vector<32x288xf32>
    %c0_215 = arith.constant 0 : index
    %c0_216 = arith.constant 0 : index
    %198 = vector.load %arg6[%c0_215, %c0_216] : memref<288x896xf32, #tpu.memory_space<vmem>>, vector<288x896xf32>
    %cst_217 = arith.constant dense<0.000000e+00> : vector<32x896xf32>
    %199 = tpu.matmul %197, %198, %cst_217 {dimension_numbers = #tpu.dot_dimension_numbers<[1], [0], [0], [1], [0, 0, 1, 1], [], []>} : vector<32x288xf32>, vector<288x896xf32>, vector<32x896xf32> -> vector<32x896xf32>
    %c0_218 = arith.constant 0 : index
    %c0_219 = arith.constant 0 : index
    %c0_220 = arith.constant 0 : index
    %200 = vector.load %arg3[%c0_218, %c0_219, %c0_220] : memref<2x32x1xf32, #tpu.memory_space<vmem>>, vector<1x32x1xf32>
    %201 = vector.shape_cast %200 : vector<1x32x1xf32> to vector<32x1xf32>
    %202 = vector.broadcast %201 : vector<32x1xf32> to vector<32x896xf32>
    %203 = arith.addf %199, %202 : vector<32x896xf32>
    %c0_221 = arith.constant 0 : index
    %c0_222 = arith.constant 0 : index
    %204 = vector.load %arg5[%c0_221, %c0_222] : memref<32x1024xf32, #tpu.memory_space<vmem>>, vector<32x896xf32>
    tpu.vector_store %arg5[%c0_221, %c0_222], %203 {strides = array<i32>} : memref<32x1024xf32, #tpu.memory_space<vmem>>, vector<32x896xf32>,
    %cst_223 = arith.constant 0.000000e+00 : f32
    %205 = vector.broadcast %cst_223 : f32 to vector<32x2xf32>
    %c0_224 = arith.constant 0 : index
    %c896 = arith.constant 896 : index
    %206 = vector.load %arg5[%c0_224, %c896] : memref<32x1024xf32, #tpu.memory_space<vmem>>, vector<32x2xf32>
    tpu.vector_store %arg5[%c0_224, %c896], %205 {strides = array<i32>} : memref<32x1024xf32, #tpu.memory_space<vmem>>, vector<32x2xf32>,
    %c0_225 = arith.constant 0 : index
    %c0_226 = arith.constant 0 : index
    %207 = vector.load %arg5[%c0_225, %c0_226] : memref<32x1024xf32, #tpu.memory_space<vmem>>, vector<32x192xf32>
    %cst_227 = arith.constant 0.000000e+00 : f32
    %208 = vector.broadcast %cst_227 : f32 to vector<32x192xf32>
    %209 = arith.maximumf %207, %208 : vector<32x192xf32>
    %c0_228 = arith.constant 0 : index
    %c0_229 = arith.constant 0 : index
    %210 = vector.load %arg6[%c0_228, %c0_229] : memref<288x896xf32, #tpu.memory_space<vmem>>, vector<32x192xf32>
    tpu.vector_store %arg6[%c0_228, %c0_229], %209 {strides = array<i32>} : memref<288x896xf32, #tpu.memory_space<vmem>>, vector<32x192xf32>,
    %c0_230 = arith.constant 0 : index
    %c1_231 = arith.constant 1 : index
    %211 = vector.load %arg5[%c0_230, %c1_231] : memref<32x1024xf32, #tpu.memory_space<vmem>>, vector<32x192xf32>
    %cst_232 = arith.constant 0.000000e+00 : f32
    %212 = vector.broadcast %cst_232 : f32 to vector<32x192xf32>
    %213 = arith.maximumf %211, %212 : vector<32x192xf32>
    %c32_233 = arith.constant 32 : index
    %c0_234 = arith.constant 0 : index
    %214 = vector.load %arg6[%c32_233, %c0_234] : memref<288x896xf32, #tpu.memory_space<vmem>>, vector<32x192xf32>
    tpu.vector_store %arg6[%c32_233, %c0_234], %213 {strides = array<i32>} : memref<288x896xf32, #tpu.memory_space<vmem>>, vector<32x192xf32>,
    %c0_235 = arith.constant 0 : index
    %c2_236 = arith.constant 2 : index
    %215 = vector.load %arg5[%c0_235, %c2_236] : memref<32x1024xf32, #tpu.memory_space<vmem>>, vector<32x192xf32>
    %cst_237 = arith.constant 0.000000e+00 : f32
    %216 = vector.broadcast %cst_237 : f32 to vector<32x192xf32>
    %217 = arith.maximumf %215, %216 : vector<32x192xf32>
    %c64_238 = arith.constant 64 : index
    %c0_239 = arith.constant 0 : index
    %218 = vector.load %arg6[%c64_238, %c0_239] : memref<288x896xf32, #tpu.memory_space<vmem>>, vector<32x192xf32>
    tpu.vector_store %arg6[%c64_238, %c0_239], %217 {strides = array<i32>} : memref<288x896xf32, #tpu.memory_space<vmem>>, vector<32x192xf32>,
    %c0_240 = arith.constant 0 : index
    %c16_241 = arith.constant 16 : index
    %219 = vector.load %arg5[%c0_240, %c16_241] : memref<32x1024xf32, #tpu.memory_space<vmem>>, vector<32x192xf32>
    %cst_242 = arith.constant 0.000000e+00 : f32
    %220 = vector.broadcast %cst_242 : f32 to vector<32x192xf32>
    %221 = arith.maximumf %219, %220 : vector<32x192xf32>
    %c96_243 = arith.constant 96 : index
    %c0_244 = arith.constant 0 : index
    %222 = vector.load %arg6[%c96_243, %c0_244] : memref<288x896xf32, #tpu.memory_space<vmem>>, vector<32x192xf32>
    tpu.vector_store %arg6[%c96_243, %c0_244], %221 {strides = array<i32>} : memref<288x896xf32, #tpu.memory_space<vmem>>, vector<32x192xf32>,
    %c0_245 = arith.constant 0 : index
    %c17_246 = arith.constant 17 : index
    %223 = vector.load %arg5[%c0_245, %c17_246] : memref<32x1024xf32, #tpu.memory_space<vmem>>, vector<32x192xf32>
    %cst_247 = arith.constant 0.000000e+00 : f32
    %224 = vector.broadcast %cst_247 : f32 to vector<32x192xf32>
    %225 = arith.maximumf %223, %224 : vector<32x192xf32>
    %c128_248 = arith.constant 128 : index
    %c0_249 = arith.constant 0 : index
    %226 = vector.load %arg6[%c128_248, %c0_249] : memref<288x896xf32, #tpu.memory_space<vmem>>, vector<32x192xf32>
    tpu.vector_store %arg6[%c128_248, %c0_249], %225 {strides = array<i32>} : memref<288x896xf32, #tpu.memory_space<vmem>>, vector<32x192xf32>,
    %c0_250 = arith.constant 0 : index
    %c18_251 = arith.constant 18 : index
    %227 = vector.load %arg5[%c0_250, %c18_251] : memref<32x1024xf32, #tpu.memory_space<vmem>>, vector<32x192xf32>
    %cst_252 = arith.constant 0.000000e+00 : f32
    %228 = vector.broadcast %cst_252 : f32 to vector<32x192xf32>
    %229 = arith.maximumf %227, %228 : vector<32x192xf32>
    %c160_253 = arith.constant 160 : index
    %c0_254 = arith.constant 0 : index
    %230 = vector.load %arg6[%c160_253, %c0_254] : memref<288x896xf32, #tpu.memory_space<vmem>>, vector<32x192xf32>
    tpu.vector_store %arg6[%c160_253, %c0_254], %229 {strides = array<i32>} : memref<288x896xf32, #tpu.memory_space<vmem>>, vector<32x192xf32>,
    %c0_255 = arith.constant 0 : index
    %c32_256 = arith.constant 32 : index
    %231 = vector.load %arg5[%c0_255, %c32_256] : memref<32x1024xf32, #tpu.memory_space<vmem>>, vector<32x192xf32>
    %cst_257 = arith.constant 0.000000e+00 : f32
    %232 = vector.broadcast %cst_257 : f32 to vector<32x192xf32>
    %233 = arith.maximumf %231, %232 : vector<32x192xf32>
    %c192_258 = arith.constant 192 : index
    %c0_259 = arith.constant 0 : index
    %234 = vector.load %arg6[%c192_258, %c0_259] : memref<288x896xf32, #tpu.memory_space<vmem>>, vector<32x192xf32>
    tpu.vector_store %arg6[%c192_258, %c0_259], %233 {strides = array<i32>} : memref<288x896xf32, #tpu.memory_space<vmem>>, vector<32x192xf32>,
    %c0_260 = arith.constant 0 : index
    %c33_261 = arith.constant 33 : index
    %235 = vector.load %arg5[%c0_260, %c33_261] : memref<32x1024xf32, #tpu.memory_space<vmem>>, vector<32x192xf32>
    %cst_262 = arith.constant 0.000000e+00 : f32
    %236 = vector.broadcast %cst_262 : f32 to vector<32x192xf32>
    %237 = arith.maximumf %235, %236 : vector<32x192xf32>
    %c224_263 = arith.constant 224 : index
    %c0_264 = arith.constant 0 : index
    %238 = vector.load %arg6[%c224_263, %c0_264] : memref<288x896xf32, #tpu.memory_space<vmem>>, vector<32x192xf32>
    tpu.vector_store %arg6[%c224_263, %c0_264], %237 {strides = array<i32>} : memref<288x896xf32, #tpu.memory_space<vmem>>, vector<32x192xf32>,
    %c0_265 = arith.constant 0 : index
    %c34_266 = arith.constant 34 : index
    %239 = vector.load %arg5[%c0_265, %c34_266] : memref<32x1024xf32, #tpu.memory_space<vmem>>, vector<32x192xf32>
    %cst_267 = arith.constant 0.000000e+00 : f32
    %240 = vector.broadcast %cst_267 : f32 to vector<32x192xf32>
    %241 = arith.maximumf %239, %240 : vector<32x192xf32>
    %c256_268 = arith.constant 256 : index
    %c0_269 = arith.constant 0 : index
    %242 = vector.load %arg6[%c256_268, %c0_269] : memref<288x896xf32, #tpu.memory_space<vmem>>, vector<32x192xf32>
    tpu.vector_store %arg6[%c256_268, %c0_269], %241 {strides = array<i32>} : memref<288x896xf32, #tpu.memory_space<vmem>>, vector<32x192xf32>,
    %c0_270 = arith.constant 0 : index
    %c224_271 = arith.constant 224 : index
    %243 = vector.load %arg5[%c0_270, %c224_271] : memref<32x1024xf32, #tpu.memory_space<vmem>>, vector<32x192xf32>
    %cst_272 = arith.constant 0.000000e+00 : f32
    %244 = vector.broadcast %cst_272 : f32 to vector<32x192xf32>
    %245 = arith.maximumf %243, %244 : vector<32x192xf32>
    %c0_273 = arith.constant 0 : index
    %c192_274 = arith.constant 192 : index
    %246 = vector.load %arg6[%c0_273, %c192_274] : memref<288x896xf32, #tpu.memory_space<vmem>>, vector<32x192xf32>
    tpu.vector_store %arg6[%c0_273, %c192_274], %245 {strides = array<i32>} : memref<288x896xf32, #tpu.memory_space<vmem>>, vector<32x192xf32>,
    %c0_275 = arith.constant 0 : index
    %c225 = arith.constant 225 : index
    %247 = vector.load %arg5[%c0_275, %c225] : memref<32x1024xf32, #tpu.memory_space<vmem>>, vector<32x192xf32>
    %cst_276 = arith.constant 0.000000e+00 : f32
    %248 = vector.broadcast %cst_276 : f32 to vector<32x192xf32>
    %249 = arith.maximumf %247, %248 : vector<32x192xf32>
    %c32_277 = arith.constant 32 : index
    %c192_278 = arith.constant 192 : index
    %250 = vector.load %arg6[%c32_277, %c192_278] : memref<288x896xf32, #tpu.memory_space<vmem>>, vector<32x192xf32>
    tpu.vector_store %arg6[%c32_277, %c192_278], %249 {strides = array<i32>} : memref<288x896xf32, #tpu.memory_space<vmem>>, vector<32x192xf32>,
    %c0_279 = arith.constant 0 : index
    %c226 = arith.constant 226 : index
    %251 = vector.load %arg5[%c0_279, %c226] : memref<32x1024xf32, #tpu.memory_space<vmem>>, vector<32x192xf32>
    %cst_280 = arith.constant 0.000000e+00 : f32
    %252 = vector.broadcast %cst_280 : f32 to vector<32x192xf32>
    %253 = arith.maximumf %251, %252 : vector<32x192xf32>
    %c64_281 = arith.constant 64 : index
    %c192_282 = arith.constant 192 : index
    %254 = vector.load %arg6[%c64_281, %c192_282] : memref<288x896xf32, #tpu.memory_space<vmem>>, vector<32x192xf32>
    tpu.vector_store %arg6[%c64_281, %c192_282], %253 {strides = array<i32>} : memref<288x896xf32, #tpu.memory_space<vmem>>, vector<32x192xf32>,
    %c0_283 = arith.constant 0 : index
    %c240 = arith.constant 240 : index
    %255 = vector.load %arg5[%c0_283, %c240] : memref<32x1024xf32, #tpu.memory_space<vmem>>, vector<32x192xf32>
    %cst_284 = arith.constant 0.000000e+00 : f32
    %256 = vector.broadcast %cst_284 : f32 to vector<32x192xf32>
    %257 = arith.maximumf %255, %256 : vector<32x192xf32>
    %c96_285 = arith.constant 96 : index
    %c192_286 = arith.constant 192 : index
    %258 = vector.load %arg6[%c96_285, %c192_286] : memref<288x896xf32, #tpu.memory_space<vmem>>, vector<32x192xf32>
    tpu.vector_store %arg6[%c96_285, %c192_286], %257 {strides = array<i32>} : memref<288x896xf32, #tpu.memory_space<vmem>>, vector<32x192xf32>,
    %c0_287 = arith.constant 0 : index
    %c241 = arith.constant 241 : index
    %259 = vector.load %arg5[%c0_287, %c241] : memref<32x1024xf32, #tpu.memory_space<vmem>>, vector<32x192xf32>
    %cst_288 = arith.constant 0.000000e+00 : f32
    %260 = vector.broadcast %cst_288 : f32 to vector<32x192xf32>
    %261 = arith.maximumf %259, %260 : vector<32x192xf32>
    %c128_289 = arith.constant 128 : index
    %c192_290 = arith.constant 192 : index
    %262 = vector.load %arg6[%c128_289, %c192_290] : memref<288x896xf32, #tpu.memory_space<vmem>>, vector<32x192xf32>
    tpu.vector_store %arg6[%c128_289, %c192_290], %261 {strides = array<i32>} : memref<288x896xf32, #tpu.memory_space<vmem>>, vector<32x192xf32>,
    %c0_291 = arith.constant 0 : index
    %c242 = arith.constant 242 : index
    %263 = vector.load %arg5[%c0_291, %c242] : memref<32x1024xf32, #tpu.memory_space<vmem>>, vector<32x192xf32>
    %cst_292 = arith.constant 0.000000e+00 : f32
    %264 = vector.broadcast %cst_292 : f32 to vector<32x192xf32>
    %265 = arith.maximumf %263, %264 : vector<32x192xf32>
    %c160_293 = arith.constant 160 : index
    %c192_294 = arith.constant 192 : index
    %266 = vector.load %arg6[%c160_293, %c192_294] : memref<288x896xf32, #tpu.memory_space<vmem>>, vector<32x192xf32>
    tpu.vector_store %arg6[%c160_293, %c192_294], %265 {strides = array<i32>} : memref<288x896xf32, #tpu.memory_space<vmem>>, vector<32x192xf32>,
    %c0_295 = arith.constant 0 : index
    %c256_296 = arith.constant 256 : index
    %267 = vector.load %arg5[%c0_295, %c256_296] : memref<32x1024xf32, #tpu.memory_space<vmem>>, vector<32x192xf32>
    %cst_297 = arith.constant 0.000000e+00 : f32
    %268 = vector.broadcast %cst_297 : f32 to vector<32x192xf32>
    %269 = arith.maximumf %267, %268 : vector<32x192xf32>
    %c192_298 = arith.constant 192 : index
    %c192_299 = arith.constant 192 : index
    %270 = vector.load %arg6[%c192_298, %c192_299] : memref<288x896xf32, #tpu.memory_space<vmem>>, vector<32x192xf32>
    tpu.vector_store %arg6[%c192_298, %c192_299], %269 {strides = array<i32>} : memref<288x896xf32, #tpu.memory_space<vmem>>, vector<32x192xf32>,
    %c0_300 = arith.constant 0 : index
    %c257 = arith.constant 257 : index
    %271 = vector.load %arg5[%c0_300, %c257] : memref<32x1024xf32, #tpu.memory_space<vmem>>, vector<32x192xf32>
    %cst_301 = arith.constant 0.000000e+00 : f32
    %272 = vector.broadcast %cst_301 : f32 to vector<32x192xf32>
    %273 = arith.maximumf %271, %272 : vector<32x192xf32>
    %c224_302 = arith.constant 224 : index
    %c192_303 = arith.constant 192 : index
    %274 = vector.load %arg6[%c224_302, %c192_303] : memref<288x896xf32, #tpu.memory_space<vmem>>, vector<32x192xf32>
    tpu.vector_store %arg6[%c224_302, %c192_303], %273 {strides = array<i32>} : memref<288x896xf32, #tpu.memory_space<vmem>>, vector<32x192xf32>,
    %c0_304 = arith.constant 0 : index
    %c258 = arith.constant 258 : index
    %275 = vector.load %arg5[%c0_304, %c258] : memref<32x1024xf32, #tpu.memory_space<vmem>>, vector<32x192xf32>
    %cst_305 = arith.constant 0.000000e+00 : f32
    %276 = vector.broadcast %cst_305 : f32 to vector<32x192xf32>
    %277 = arith.maximumf %275, %276 : vector<32x192xf32>
    %c256_306 = arith.constant 256 : index
    %c192_307 = arith.constant 192 : index
    %278 = vector.load %arg6[%c256_306, %c192_307] : memref<288x896xf32, #tpu.memory_space<vmem>>, vector<32x192xf32>
    tpu.vector_store %arg6[%c256_306, %c192_307], %277 {strides = array<i32>} : memref<288x896xf32, #tpu.memory_space<vmem>>, vector<32x192xf32>,
    %c0_308 = arith.constant 0 : index
    %c448_309 = arith.constant 448 : index
    %279 = vector.load %arg5[%c0_308, %c448_309] : memref<32x1024xf32, #tpu.memory_space<vmem>>, vector<32x192xf32>
    %cst_310 = arith.constant 0.000000e+00 : f32
    %280 = vector.broadcast %cst_310 : f32 to vector<32x192xf32>
    %281 = arith.maximumf %279, %280 : vector<32x192xf32>
    %c0_311 = arith.constant 0 : index
    %c384 = arith.constant 384 : index
    %282 = vector.load %arg6[%c0_311, %c384] : memref<288x896xf32, #tpu.memory_space<vmem>>, vector<32x192xf32>
    tpu.vector_store %arg6[%c0_311, %c384], %281 {strides = array<i32>} : memref<288x896xf32, #tpu.memory_space<vmem>>, vector<32x192xf32>,
    %c0_312 = arith.constant 0 : index
    %c449 = arith.constant 449 : index
    %283 = vector.load %arg5[%c0_312, %c449] : memref<32x1024xf32, #tpu.memory_space<vmem>>, vector<32x192xf32>
    %cst_313 = arith.constant 0.000000e+00 : f32
    %284 = vector.broadcast %cst_313 : f32 to vector<32x192xf32>
    %285 = arith.maximumf %283, %284 : vector<32x192xf32>
    %c32_314 = arith.constant 32 : index
    %c384_315 = arith.constant 384 : index
    %286 = vector.load %arg6[%c32_314, %c384_315] : memref<288x896xf32, #tpu.memory_space<vmem>>, vector<32x192xf32>
    tpu.vector_store %arg6[%c32_314, %c384_315], %285 {strides = array<i32>} : memref<288x896xf32, #tpu.memory_space<vmem>>, vector<32x192xf32>,
    %c0_316 = arith.constant 0 : index
    %c450 = arith.constant 450 : index
    %287 = vector.load %arg5[%c0_316, %c450] : memref<32x1024xf32, #tpu.memory_space<vmem>>, vector<32x192xf32>
    %cst_317 = arith.constant 0.000000e+00 : f32
    %288 = vector.broadcast %cst_317 : f32 to vector<32x192xf32>
    %289 = arith.maximumf %287, %288 : vector<32x192xf32>
    %c64_318 = arith.constant 64 : index
    %c384_319 = arith.constant 384 : index
    %290 = vector.load %arg6[%c64_318, %c384_319] : memref<288x896xf32, #tpu.memory_space<vmem>>, vector<32x192xf32>
    tpu.vector_store %arg6[%c64_318, %c384_319], %289 {strides = array<i32>} : memref<288x896xf32, #tpu.memory_space<vmem>>, vector<32x192xf32>,
    %c0_320 = arith.constant 0 : index
    %c464 = arith.constant 464 : index
    %291 = vector.load %arg5[%c0_320, %c464] : memref<32x1024xf32, #tpu.memory_space<vmem>>, vector<32x192xf32>
    %cst_321 = arith.constant 0.000000e+00 : f32
    %292 = vector.broadcast %cst_321 : f32 to vector<32x192xf32>
    %293 = arith.maximumf %291, %292 : vector<32x192xf32>
    %c96_322 = arith.constant 96 : index
    %c384_323 = arith.constant 384 : index
    %294 = vector.load %arg6[%c96_322, %c384_323] : memref<288x896xf32, #tpu.memory_space<vmem>>, vector<32x192xf32>
    tpu.vector_store %arg6[%c96_322, %c384_323], %293 {strides = array<i32>} : memref<288x896xf32, #tpu.memory_space<vmem>>, vector<32x192xf32>,
    %c0_324 = arith.constant 0 : index
    %c465 = arith.constant 465 : index
    %295 = vector.load %arg5[%c0_324, %c465] : memref<32x1024xf32, #tpu.memory_space<vmem>>, vector<32x192xf32>
    %cst_325 = arith.constant 0.000000e+00 : f32
    %296 = vector.broadcast %cst_325 : f32 to vector<32x192xf32>
    %297 = arith.maximumf %295, %296 : vector<32x192xf32>
    %c128_326 = arith.constant 128 : index
    %c384_327 = arith.constant 384 : index
    %298 = vector.load %arg6[%c128_326, %c384_327] : memref<288x896xf32, #tpu.memory_space<vmem>>, vector<32x192xf32>
    tpu.vector_store %arg6[%c128_326, %c384_327], %297 {strides = array<i32>} : memref<288x896xf32, #tpu.memory_space<vmem>>, vector<32x192xf32>,
    %c0_328 = arith.constant 0 : index
    %c466 = arith.constant 466 : index
    %299 = vector.load %arg5[%c0_328, %c466] : memref<32x1024xf32, #tpu.memory_space<vmem>>, vector<32x192xf32>
    %cst_329 = arith.constant 0.000000e+00 : f32
    %300 = vector.broadcast %cst_329 : f32 to vector<32x192xf32>
    %301 = arith.maximumf %299, %300 : vector<32x192xf32>
    %c160_330 = arith.constant 160 : index
    %c384_331 = arith.constant 384 : index
    %302 = vector.load %arg6[%c160_330, %c384_331] : memref<288x896xf32, #tpu.memory_space<vmem>>, vector<32x192xf32>
    tpu.vector_store %arg6[%c160_330, %c384_331], %301 {strides = array<i32>} : memref<288x896xf32, #tpu.memory_space<vmem>>, vector<32x192xf32>,
    %c0_332 = arith.constant 0 : index
    %c480 = arith.constant 480 : index
    %303 = vector.load %arg5[%c0_332, %c480] : memref<32x1024xf32, #tpu.memory_space<vmem>>, vector<32x192xf32>
    %cst_333 = arith.constant 0.000000e+00 : f32
    %304 = vector.broadcast %cst_333 : f32 to vector<32x192xf32>
    %305 = arith.maximumf %303, %304 : vector<32x192xf32>
    %c192_334 = arith.constant 192 : index
    %c384_335 = arith.constant 384 : index
    %306 = vector.load %arg6[%c192_334, %c384_335] : memref<288x896xf32, #tpu.memory_space<vmem>>, vector<32x192xf32>
    tpu.vector_store %arg6[%c192_334, %c384_335], %305 {strides = array<i32>} : memref<288x896xf32, #tpu.memory_space<vmem>>, vector<32x192xf32>,
    %c0_336 = arith.constant 0 : index
    %c481 = arith.constant 481 : index
    %307 = vector.load %arg5[%c0_336, %c481] : memref<32x1024xf32, #tpu.memory_space<vmem>>, vector<32x192xf32>
    %cst_337 = arith.constant 0.000000e+00 : f32
    %308 = vector.broadcast %cst_337 : f32 to vector<32x192xf32>
    %309 = arith.maximumf %307, %308 : vector<32x192xf32>
    %c224_338 = arith.constant 224 : index
    %c384_339 = arith.constant 384 : index
    %310 = vector.load %arg6[%c224_338, %c384_339] : memref<288x896xf32, #tpu.memory_space<vmem>>, vector<32x192xf32>
    tpu.vector_store %arg6[%c224_338, %c384_339], %309 {strides = array<i32>} : memref<288x896xf32, #tpu.memory_space<vmem>>, vector<32x192xf32>,
    %c0_340 = arith.constant 0 : index
    %c482 = arith.constant 482 : index
    %311 = vector.load %arg5[%c0_340, %c482] : memref<32x1024xf32, #tpu.memory_space<vmem>>, vector<32x192xf32>
    %cst_341 = arith.constant 0.000000e+00 : f32
    %312 = vector.broadcast %cst_341 : f32 to vector<32x192xf32>
    %313 = arith.maximumf %311, %312 : vector<32x192xf32>
    %c256_342 = arith.constant 256 : index
    %c384_343 = arith.constant 384 : index
    %314 = vector.load %arg6[%c256_342, %c384_343] : memref<288x896xf32, #tpu.memory_space<vmem>>, vector<32x192xf32>
    tpu.vector_store %arg6[%c256_342, %c384_343], %313 {strides = array<i32>} : memref<288x896xf32, #tpu.memory_space<vmem>>, vector<32x192xf32>,
    %c0_344 = arith.constant 0 : index
    %c672_345 = arith.constant 672 : index
    %315 = vector.load %arg5[%c0_344, %c672_345] : memref<32x1024xf32, #tpu.memory_space<vmem>>, vector<32x192xf32>
    %cst_346 = arith.constant 0.000000e+00 : f32
    %316 = vector.broadcast %cst_346 : f32 to vector<32x192xf32>
    %317 = arith.maximumf %315, %316 : vector<32x192xf32>
    %c0_347 = arith.constant 0 : index
    %c576 = arith.constant 576 : index
    %318 = vector.load %arg6[%c0_347, %c576] : memref<288x896xf32, #tpu.memory_space<vmem>>, vector<32x192xf32>
    tpu.vector_store %arg6[%c0_347, %c576], %317 {strides = array<i32>} : memref<288x896xf32, #tpu.memory_space<vmem>>, vector<32x192xf32>,
    %c0_348 = arith.constant 0 : index
    %c673 = arith.constant 673 : index
    %319 = vector.load %arg5[%c0_348, %c673] : memref<32x1024xf32, #tpu.memory_space<vmem>>, vector<32x192xf32>
    %cst_349 = arith.constant 0.000000e+00 : f32
    %320 = vector.broadcast %cst_349 : f32 to vector<32x192xf32>
    %321 = arith.maximumf %319, %320 : vector<32x192xf32>
    %c32_350 = arith.constant 32 : index
    %c576_351 = arith.constant 576 : index
    %322 = vector.load %arg6[%c32_350, %c576_351] : memref<288x896xf32, #tpu.memory_space<vmem>>, vector<32x192xf32>
    tpu.vector_store %arg6[%c32_350, %c576_351], %321 {strides = array<i32>} : memref<288x896xf32, #tpu.memory_space<vmem>>, vector<32x192xf32>,
    %c0_352 = arith.constant 0 : index
    %c674 = arith.constant 674 : index
    %323 = vector.load %arg5[%c0_352, %c674] : memref<32x1024xf32, #tpu.memory_space<vmem>>, vector<32x192xf32>
    %cst_353 = arith.constant 0.000000e+00 : f32
    %324 = vector.broadcast %cst_353 : f32 to vector<32x192xf32>
    %325 = arith.maximumf %323, %324 : vector<32x192xf32>
    %c64_354 = arith.constant 64 : index
    %c576_355 = arith.constant 576 : index
    %326 = vector.load %arg6[%c64_354, %c576_355] : memref<288x896xf32, #tpu.memory_space<vmem>>, vector<32x192xf32>
    tpu.vector_store %arg6[%c64_354, %c576_355], %325 {strides = array<i32>} : memref<288x896xf32, #tpu.memory_space<vmem>>, vector<32x192xf32>,
    %c0_356 = arith.constant 0 : index
    %c688 = arith.constant 688 : index
    %327 = vector.load %arg5[%c0_356, %c688] : memref<32x1024xf32, #tpu.memory_space<vmem>>, vector<32x192xf32>
    %cst_357 = arith.constant 0.000000e+00 : f32
    %328 = vector.broadcast %cst_357 : f32 to vector<32x192xf32>
    %329 = arith.maximumf %327, %328 : vector<32x192xf32>
    %c96_358 = arith.constant 96 : index
    %c576_359 = arith.constant 576 : index
    %330 = vector.load %arg6[%c96_358, %c576_359] : memref<288x896xf32, #tpu.memory_space<vmem>>, vector<32x192xf32>
    tpu.vector_store %arg6[%c96_358, %c576_359], %329 {strides = array<i32>} : memref<288x896xf32, #tpu.memory_space<vmem>>, vector<32x192xf32>,
    %c0_360 = arith.constant 0 : index
    %c689 = arith.constant 689 : index
    %331 = vector.load %arg5[%c0_360, %c689] : memref<32x1024xf32, #tpu.memory_space<vmem>>, vector<32x192xf32>
    %cst_361 = arith.constant 0.000000e+00 : f32
    %332 = vector.broadcast %cst_361 : f32 to vector<32x192xf32>
    %333 = arith.maximumf %331, %332 : vector<32x192xf32>
    %c128_362 = arith.constant 128 : index
    %c576_363 = arith.constant 576 : index
    %334 = vector.load %arg6[%c128_362, %c576_363] : memref<288x896xf32, #tpu.memory_space<vmem>>, vector<32x192xf32>
    tpu.vector_store %arg6[%c128_362, %c576_363], %333 {strides = array<i32>} : memref<288x896xf32, #tpu.memory_space<vmem>>, vector<32x192xf32>,
    %c0_364 = arith.constant 0 : index
    %c690 = arith.constant 690 : index
    %335 = vector.load %arg5[%c0_364, %c690] : memref<32x1024xf32, #tpu.memory_space<vmem>>, vector<32x192xf32>
    %cst_365 = arith.constant 0.000000e+00 : f32
    %336 = vector.broadcast %cst_365 : f32 to vector<32x192xf32>
    %337 = arith.maximumf %335, %336 : vector<32x192xf32>
    %c160_366 = arith.constant 160 : index
    %c576_367 = arith.constant 576 : index
    %338 = vector.load %arg6[%c160_366, %c576_367] : memref<288x896xf32, #tpu.memory_space<vmem>>, vector<32x192xf32>
    tpu.vector_store %arg6[%c160_366, %c576_367], %337 {strides = array<i32>} : memref<288x896xf32, #tpu.memory_space<vmem>>, vector<32x192xf32>,
    %c0_368 = arith.constant 0 : index
    %c704 = arith.constant 704 : index
    %339 = vector.load %arg5[%c0_368, %c704] : memref<32x1024xf32, #tpu.memory_space<vmem>>, vector<32x192xf32>
    %cst_369 = arith.constant 0.000000e+00 : f32
    %340 = vector.broadcast %cst_369 : f32 to vector<32x192xf32>
    %341 = arith.maximumf %339, %340 : vector<32x192xf32>
    %c192_370 = arith.constant 192 : index
    %c576_371 = arith.constant 576 : index
    %342 = vector.load %arg6[%c192_370, %c576_371] : memref<288x896xf32, #tpu.memory_space<vmem>>, vector<32x192xf32>
    tpu.vector_store %arg6[%c192_370, %c576_371], %341 {strides = array<i32>} : memref<288x896xf32, #tpu.memory_space<vmem>>, vector<32x192xf32>,
    %c0_372 = arith.constant 0 : index
    %c705 = arith.constant 705 : index
    %343 = vector.load %arg5[%c0_372, %c705] : memref<32x1024xf32, #tpu.memory_space<vmem>>, vector<32x192xf32>
    %cst_373 = arith.constant 0.000000e+00 : f32
    %344 = vector.broadcast %cst_373 : f32 to vector<32x192xf32>
    %345 = arith.maximumf %343, %344 : vector<32x192xf32>
    %c224_374 = arith.constant 224 : index
    %c576_375 = arith.constant 576 : index
    %346 = vector.load %arg6[%c224_374, %c576_375] : memref<288x896xf32, #tpu.memory_space<vmem>>, vector<32x192xf32>
    tpu.vector_store %arg6[%c224_374, %c576_375], %345 {strides = array<i32>} : memref<288x896xf32, #tpu.memory_space<vmem>>, vector<32x192xf32>,
    %c0_376 = arith.constant 0 : index
    %c706 = arith.constant 706 : index
    %347 = vector.load %arg5[%c0_376, %c706] : memref<32x1024xf32, #tpu.memory_space<vmem>>, vector<32x192xf32>
    %cst_377 = arith.constant 0.000000e+00 : f32
    %348 = vector.broadcast %cst_377 : f32 to vector<32x192xf32>
    %349 = arith.maximumf %347, %348 : vector<32x192xf32>
    %c256_378 = arith.constant 256 : index
    %c576_379 = arith.constant 576 : index
    %350 = vector.load %arg6[%c256_378, %c576_379] : memref<288x896xf32, #tpu.memory_space<vmem>>, vector<32x192xf32>
    tpu.vector_store %arg6[%c256_378, %c576_379], %349 {strides = array<i32>} : memref<288x896xf32, #tpu.memory_space<vmem>>, vector<32x192xf32>,
    %c1_380 = arith.constant 1 : index
    %c0_381 = arith.constant 0 : index
    %c0_382 = arith.constant 0 : index
    %351 = vector.load %arg2[%c1_380, %c0_381, %c0_382] : memref<2x32x288xf32, #tpu.memory_space<vmem>>, vector<1x32x288xf32>
    %352 = vector.shape_cast %351 : vector<1x32x288xf32> to vector<32x288xf32>
    %c0_383 = arith.constant 0 : index
    %c0_384 = arith.constant 0 : index
    %353 = vector.load %arg6[%c0_383, %c0_384] : memref<288x896xf32, #tpu.memory_space<vmem>>, vector<288x768xf32>
    %cst_385 = arith.constant dense<0.000000e+00> : vector<32x768xf32>
    %354 = tpu.matmul %352, %353, %cst_385 {dimension_numbers = #tpu.dot_dimension_numbers<[1], [0], [0], [1], [0, 0, 1, 1], [], []>} : vector<32x288xf32>, vector<288x768xf32>, vector<32x768xf32> -> vector<32x768xf32>
    %c1_386 = arith.constant 1 : index
    %c0_387 = arith.constant 0 : index
    %c0_388 = arith.constant 0 : index
    %355 = vector.load %arg3[%c1_386, %c0_387, %c0_388] : memref<2x32x1xf32, #tpu.memory_space<vmem>>, vector<1x32x1xf32>
    %356 = vector.shape_cast %355 : vector<1x32x1xf32> to vector<32x1xf32>
    %357 = vector.broadcast %356 : vector<32x1xf32> to vector<32x768xf32>
    %358 = arith.addf %354, %357 : vector<32x768xf32>
    %359 = vector.extract_strided_slice %358 {offsets = [0, 0], sizes = [32, 192], strides = [1, 1]} : vector<32x768xf32> to vector<32x192xf32>
    %c0_389 = arith.constant 0 : index
    %c0_390 = arith.constant 0 : index
    %c0_391 = arith.constant 0 : index
    %360 = vector.load %arg4[%c0_389, %c0_390, %c0_391] : memref<4x32x192xf32, #tpu.memory_space<vmem>>, vector<1x32x192xf32>
    %361 = vector.shape_cast %360 : vector<1x32x192xf32> to vector<32x192xf32>
    %362 = vector.shape_cast %359 : vector<32x192xf32> to vector<1x32x192xf32>
    tpu.vector_store %arg4[%c0_389, %c0_390, %c0_391], %362 {strides = array<i32>} : memref<4x32x192xf32, #tpu.memory_space<vmem>>, vector<1x32x192xf32>,
    %363 = vector.extract_strided_slice %358 {offsets = [0, 192], sizes = [32, 192], strides = [1, 1]} : vector<32x768xf32> to vector<32x192xf32>
    %c1_392 = arith.constant 1 : index
    %c0_393 = arith.constant 0 : index
    %c0_394 = arith.constant 0 : index
    %364 = vector.load %arg4[%c1_392, %c0_393, %c0_394] : memref<4x32x192xf32, #tpu.memory_space<vmem>>, vector<1x32x192xf32>
    %365 = vector.shape_cast %364 : vector<1x32x192xf32> to vector<32x192xf32>
    %366 = vector.shape_cast %363 : vector<32x192xf32> to vector<1x32x192xf32>
    tpu.vector_store %arg4[%c1_392, %c0_393, %c0_394], %366 {strides = array<i32>} : memref<4x32x192xf32, #tpu.memory_space<vmem>>, vector<1x32x192xf32>,
    %367 = vector.extract_strided_slice %358 {offsets = [0, 384], sizes = [32, 192], strides = [1, 1]} : vector<32x768xf32> to vector<32x192xf32>
    %c2_395 = arith.constant 2 : index
    %c0_396 = arith.constant 0 : index
    %c0_397 = arith.constant 0 : index
    %368 = vector.load %arg4[%c2_395, %c0_396, %c0_397] : memref<4x32x192xf32, #tpu.memory_space<vmem>>, vector<1x32x192xf32>
    %369 = vector.shape_cast %368 : vector<1x32x192xf32> to vector<32x192xf32>
    %370 = vector.shape_cast %367 : vector<32x192xf32> to vector<1x32x192xf32>
    tpu.vector_store %arg4[%c2_395, %c0_396, %c0_397], %370 {strides = array<i32>} : memref<4x32x192xf32, #tpu.memory_space<vmem>>, vector<1x32x192xf32>,
    %371 = vector.extract_strided_slice %358 {offsets = [0, 576], sizes = [32, 192], strides = [1, 1]} : vector<32x768xf32> to vector<32x192xf32>
    %c3_398 = arith.constant 3 : index
    %c0_399 = arith.constant 0 : index
    %c0_400 = arith.constant 0 : index
    %372 = vector.load %arg4[%c3_398, %c0_399, %c0_400] : memref<4x32x192xf32, #tpu.memory_space<vmem>>, vector<1x32x192xf32>
    %373 = vector.shape_cast %372 : vector<1x32x192xf32> to vector<32x192xf32>
    %374 = vector.shape_cast %371 : vector<32x192xf32> to vector<1x32x192xf32>
    tpu.vector_store %arg4[%c3_398, %c0_399, %c0_400], %374 {strides = array<i32>} : memref<4x32x192xf32, #tpu.memory_space<vmem>>, vector<1x32x192xf32>,
    return
  }
  func.func @transform_0(%arg0: i32) -> (i32, i32, i32) {
    %c0_i32 = arith.constant 0 : i32
    %c0_i32_0 = arith.constant 0 : i32
    %c0_i32_1 = arith.constant 0 : i32
    return %arg0, %c0_i32, %c0_i32_0 : i32, i32, i32
  }
  func.func @transform_1(%arg0: i32) -> (i32, i32, i32) {
    %c0_i32 = arith.constant 0 : i32
    %c0_i32_0 = arith.constant 0 : i32
    %c0_i32_1 = arith.constant 0 : i32
    %c0_i32_2 = arith.constant 0 : i32
    return %c0_i32, %c0_i32_0, %c0_i32_1 : i32, i32, i32
  }
  func.func @transform_2(%arg0: i32) -> (i32, i32, i32) {
    %c0_i32 = arith.constant 0 : i32
    %c0_i32_0 = arith.constant 0 : i32
    %c0_i32_1 = arith.constant 0 : i32
    %c0_i32_2 = arith.constant 0 : i32
    return %c0_i32, %c0_i32_0, %c0_i32_1 : i32, i32, i32
  }
  func.func @transform_3(%arg0: i32) -> (i32, i32, i32) {
    %c0_i32 = arith.constant 0 : i32
    %c0_i32_0 = arith.constant 0 : i32
    %c0_i32_1 = arith.constant 0 : i32
    return %arg0, %c0_i32, %c0_i32_0 : i32, i32, i32
  }
}

</mosaic_0001>

<bundles_post_ra>
// kernel: tpu_custom_call.1
= control target key start
LH: loop header
LB: loop body
LE: loop exit
PB: predicated region body
PF: predicated region fallthrough
CT: control target
= control target key end

     0   :  { %8 = vsyncpa [#allocation5], 0  ;;  %s11782_s0 = inlined_call_operand.hbm [shape: f32[8,32,256], index: 0, kind: input, shape index: {}]   ;;  %s11783_s1 = inlined_call_operand.hbm [shape: f32[2,32,288], index: 1, kind: input, shape index: {}]   ;;  %s11784_s2 = inlined_call_operand.vmem [shape: f32[2,32,1], index: 2, kind: input, shape index: {}]   ;;  %s11785_s3 = inlined_call_operand.hbm [shape: f32[8,32,192], index: 3, kind: output, shape index: {}]  }
   0x1   :  { %10 = vsyncpa [#allocation5 + $0x1], 0 }
   0x2   :  { %11 = vsyncpa [#allocation8], 0 }
   0x3   :  { %12 = vsyncpa [#allocation6], 0 }
   0x4   :  { %14 = vsyncpa [#allocation6 + $0x1], 0  ;;  %s7555_s12 = smov 0   ;;  %s7557_s13 = smov 0  }
   0x5   :  { %s7559_s14 = smov 0   ;;  %s7561_s15 = smov 0  }
   0x6 LB: > { %s7576_s16 = sadd.s32 4294967295, %s7502_s15   ;;  %s6921_s17 = sadd.s32 4294967294, %s7502_s15   ;;  %s7502_s15 = sphi %s7561_s15, %s11979_s15   ;;  %s7498_s14 = sphi %s7559_s14, %s11978_s14   ;;  %s7494_s13 = sphi %s7557_s13, %s11977_s13   ;;  %s7490_s12 = sphi %s7555_s12, %s11976_s12  }
   0x7   : > { %p40_p0 = scmp.ne.s32.totalorder %s7494_s13, %s7490_s12  ;;  %p41_p1 = scmp.eq.s32.totalorder %s7576_s16, 0 }
   0x8   : > { %p106_p2 = scmp.eq.s32.totalorder %s7576_s16, 1  ;;  %p112_p3 = scmp.eq.s32.totalorder %s6921_s17, 1 }
   0x9   : > { %p7585_p4 = por %p41_p1, %p40_p0  ;;  %p6922_p5 = scmp.ge.s32.totalorder %s7502_s15, 1 }
   0xa   : > { %p7590_p6 = por %p112_p3, %p40_p0  ;;  %p119_p7 = scmp.lt.s32.totalorder %s7502_s15, 3 }
   0xb   : > { %s130_s22 = sshll.u32 %s11783_s1, 4  ;;  %s7504_s24 = smov [#allocation7]   ;;  %s131_s22 = int_to_ptr.hbm [resolvable:$true] %s130_s22 }
   0xc   : > { %p7598_p8 = pnand %p6922_p5, %p119_p7  ;;  %s132_s25 = sshll.u32 %s7504_s24, 4  ;;  %s133_s25 = int_to_ptr.vmem [resolvable:$true] %s132_s25 }
   0xd   : > { %s7608_s26 = sadd.s32 1, %s7502_s15   ;;  %s7505_s27 = smov 384  }
   0xe   : > { %p7267_p9 = pneg %p7598_p8  ;;  %s7506_s28 = smov 24  }
   0xf   : > { %s24_s29 = ssub.s32 %s7502_s15, %s7608_s26  ;;  %s27_s30 = sadd.s32 1, %s7498_s14 }
  0x10   : > { %p7268_p10 = pnand %p7267_p9, %p41_p1  ;;  %p25_p12 = scmp.eq.s32.totalorder %s24_s29, 0 }
  0x11   : > { %p34_p13 = scmp.ne.s32.totalorder %s7498_s14, %s7494_s13  ;;  %p35_p0 = scmp.eq.s32.totalorder %s7502_s15, 0 }
  0x12   : > { %7270 = dma.hbm_to_vmem [thread:$0]  (!%p7268_p10), %s131_s22, 3072, %s133_s25, [#allocation8], %s7505_s27, %s7505_s27, %s7506_s28  }
  0x13   : > { %p7280_p3 = scmp.lt.s32.totalorder %s7502_s15, 2  ;;  %p36_p5 = por %p35_p0, %p34_p13 }
  0x14   : > { %s7618_s4 = scalar_select %p25_p12, %s7498_s14, %s27_s30  }
  0x15   : > { %p7622_p7 = por %p106_p2, %p34_p13  ;;  %s149_s6 = sand.u32 1, %s7498_s14  }
  0x16   : > { %s7236_s7 = sshll.u32 %s7502_s15, 8  ;;  %s6925_s8 = sshll.u32 %s149_s6, 8 }
  0x17   : > { %s159_s11 = scalar_lea.hbm %s11782_s0, %s7236_s7  ;;  %s153_s20 = scalar_lea.vmem [#allocation4], %s6925_s8 }
  0x18   : > { %s160_s17 = sshll.u32 %s159_s11, 4  ;;  %s162_s21 = sshll.u32 %s153_s20, 4  ;;  %s161_s17 = int_to_ptr.hbm [resolvable:$true] %s160_s17  ;;  %s163_s21 = int_to_ptr.vmem [resolvable:$true] %s162_s21 }
  0x19   : > { %p7633_p9 = pnand %p7280_p3, %p36_p5  ;;  %s150_s24 = scalar_lea.sflag [#allocation5], %s149_s6 }
  0x1a   : > { %s7402_s25 = sshra.s32 %s161_s17, 4  ;;  %s7409_s30 = scalar_lea.hbm %s11782_s0, 512  ;;  %s7403_s25 = int_to_ptr.hbm [resolvable:$true] %s7402_s25 }
  0x1b   : > { %s7404_s27 = scalar_lea.hbm %s7403_s25, 256  ;;  %p7406_p10 = pneg %p7633_p9 }
  0x1c   : > { %p7405_p2 = scmp.ne.s32.totalorder %s7403_s25, %s7404_s27  ;;  %p7410_p0 = scmp.lt.s32.totalorder %s7403_s25, %s11782_s0 }
  0x1d   : > { %p7411_p3 = scmp.lt.s32.totalorder %s7409_s30, %s7404_s27 }
  0x1e   : > { %p7407_p12 = pnand %p7406_p10, %p7405_p2 }
  0x1f   : > { %p7412_p5 = por %p7411_p3, %p7410_p0 }
  0x20   : > { %p7408_p13 = pneg %p7407_p12 }
  0x22   : > { %p7413_p11 = pnand %p7412_p5, %p7408_p13 }
  0x24   : > { %7416 = shalt.err (!%p7413_p11)
}
  0x25   : > { %s7507_s6 = smov 256   ;;  %s7508_s9 = smov 16  }
  0x26   : > { %7274 = dma.hbm_to_vmem [thread:$0]  (!%p7633_p9), %s161_s17, 4096, %s163_s21, %s150_s24, %s7507_s6, %s7507_s6, %s7508_s9  }
  0x27   : > { %174 = sbr.rel (%p7598_p8) target bundleno = 2173 (0x87d), region = 32 }
  0x2c   : > { %s7650_s10 = sand.u32 1, %s7494_s13  }
  0x2d   : > { %s11786_s11 = sshll.u32 %s7650_s10, 8  ;;  %s177_s20 = scalar_lea.sflag [#allocation5], %s7650_s10 }
  0x2e   : > { %s7656_s25 = scalar_lea.vmem [#allocation4], %s11786_s11 }
  0x2f   : > { %7477 = dma.done.wait (%p7585_p4), %s177_s20, 4096  }
  0x30   : > { %7479 = vsyncadd (%p7585_p4), %s177_s20, 4294963200 }
  0x31   : > { %7481 = dma.done.wait (%p41_p1), [#allocation8], 3072  }
  0x32   : > { %7483 = vsyncadd (%p41_p1), [#allocation8], 4294964224  ;;  %v240_v0 = vld [vmem:[%s7656_s25 + $0x20] sm:$0xff]  ;;  %v238_v1 = vld [vmem:[%s7656_s25 + $0x10] sm:$0xff]  ;;  %s7509_s18 = smov 127   ;;  %s7510_s23 = smov 126  }
  0x33   : > { %v236_v2 = vld [vmem:[%s7656_s25] sm:$0xff]  ;;  %v7669_v3 = vmax.f32 %v240_v0, 0.0  ;;  %v7671_v4 = vmax.f32 %v238_v1, 0.0  ;;  %v241_v6 = vld [vmem:[%s7656_s25 + $0x28] sm:$0xff]  ;;  %v239_v7 = vld [vmem:[%s7656_s25 + $0x18] sm:$0xff]  ;;  %s7511_s17 = smov 112  }
  0x34   : > { %v7673_v5 = vmax.f32 %v236_v2, 0.0  ;;  %v237_v8 = vld [vmem:[%s7656_s25 + $0x8] sm:$0xff]  ;;  %v7684_v9 = vmax.f32 %v241_v6, 0.0  ;;  %v7686_v10 = vmax.f32 %v239_v7, 0.0  ;;  %v243_v12 = vld [vmem:[%s7656_s25 + $0x38] sm:$0xff]  ;;  %v242_v13 = vld [vmem:[%s7656_s25 + $0x30] sm:$0xff] }
  0x35   : > { %268 = vrot.lane.b32.xlu2 %v7669_v3, %s7509_s18  ;;  %264 = vrot.lane.b32.xlu1 %v7671_v4, %s7509_s18  ;;  %v7688_v11 = vmax.f32 %v237_v8, 0.0  ;;  %v7698_v14 = vmax.f32 %v243_v12, 0.0  ;;  %v7700_v15 = vmax.f32 %v242_v13, 0.0  ;;  %s7512_s21 = smov 111   ;;  %vm228_vm0 = vcmask 785408   ;;  %s7513_s22 = smov 110  }
  0x36   : > { %260 = vrot.lane.b32.xlu0 %v7673_v5, %s7509_s18  ;;  %233 = vst.msk [vmem:[#allocation3 + $0x78] sm:$0xff] %vm228_vm0, %v7684_v9  ;;  %s7514_s24 = smov 96   ;;  %s7515_s27 = smov 95   ;;  %v6934_v37 = vld [vmem:[%s7656_s25 + $0x48] sm:$0xff]  ;;  %v6933_v38 = vld [vmem:[%s7656_s25 + $0x40] sm:$0xff]  ;;  %v6936_v45 = vld [vmem:[%s7656_s25 + $0x58] sm:$0xff] }
  0x37   : > { %s7516_s28 = smov 94   ;;  %v7875_v42 = vmax.f32 %v6934_v37, 0.0  ;;  %v7877_v43 = vmax.f32 %v6933_v38, 0.0  ;;  %v6937_v44 = vld [vmem:[%s7656_s25 + $0x60] sm:$0xff]  ;;  %vm398_vm1 = vcmask 916480   ;;  %v6935_v48 = vld [vmem:[%s7656_s25 + $0x50] sm:$0xff] }
  0x38   : > { %v7892_v51 = vmax.f32 %v6937_v44, 0.0  ;;  %v7894_v52 = vmax.f32 %v6936_v45, 0.0  ;;  %v7897_v54 = vmax.f32 %v6935_v48, 0.0  ;;  %v6940_v56 = vld [vmem:[%s7656_s25 + $0x78] sm:$0xff]  ;;  %v6939_v57 = vld [vmem:[%s7656_s25 + $0x70] sm:$0xff]  ;;  %v6938_v61 = vld [vmem:[%s7656_s25 + $0x68] sm:$0xff] }
  0x39   : > { %vm337_vm2 = vcmask 1031168   ;;  %v7923_v0 = vmax.f32 %v6940_v56, 0.0  ;;  %v7925_v1 = vmax.f32 %v6939_v57, 0.0  ;;  %v7927_v2 = vmax.f32 %v6938_v61, 0.0  ;;  %s7517_s29 = smov 80   ;;  %v212_v38 = vld [vmem:[%s7656_s25 + $0x8] sm:$0xff] }
  0x3a   : > { %vm276_vm3 = vcmask 1039360   ;;  %vm641_vm4 = vcmask 777216   ;;  %vm707_vm5 = vcmask 769024   ;;  %s7518_s30 = smov 79   ;;  %vm793_vm6 = vcmask 523264   ;;  %v218_v61 = vld [vmem:[%s7656_s25 + $0x38] sm:$0xff] }
  0x3b   : > { %vm790_vm7 = vcmask 1048320   ;;  %s7519_s7 = smov 78   ;;  %vm520_vm8 = vcmask 900096   ;;  %vm459_vm9 = vcmask 908288   ;;  %s11817_s8 = smov 64   ;;  %vm11804_vm10 = vcmask 654336  }
  0x3c   : > { %s11815_s6 = smov 63   ;;  %s11793_s9 = smov 62   ;;  %vm662_vm11 = vcmask 786168   ;;  %vm728_vm12 = vcmask 786160   ;;  %vm11795_vm13 = vcmask 515072   ;;  %vm11796_vm14 = vcmask 506880  }
  0x3d   : > { %270 = vrot.lane.b32.xlu2 %v7684_v9, %s7509_s18  ;;  %266 = vrot.lane.b32.xlu1 %v7686_v10, %s7509_s18  ;;  %s11787_s20 = smov 48   ;;  %s11789_s11 = smov 47   ;;  %vm1423_vm15 = vcmask 261120  }
  0x3e   : > { %262 = vrot.lane.b32.xlu0 %v7688_v11, %s7509_s18 }
  0x45   : > { %321 = vrot.lane.b32.xlu2 %v7673_v5, %s7510_s23  ;;  %274 = vrot.lane.b32.xlu1 %v7698_v14, %s7509_s18 }
  0x46   : > { %272 = vrot.lane.b32.xlu0 %v7700_v15, %s7509_s18 }
  0x4d   : > { %327 = vrot.lane.b32.xlu2 %v7686_v10, %s7510_s23  ;;  %325 = vrot.lane.b32.xlu1 %v7671_v4, %s7510_s23 }
  0x4e   : > { %323 = vrot.lane.b32.xlu0 %v7688_v11, %s7510_s23 }
  0x55   : > { %333 = vrot.lane.b32.xlu2 %v7700_v15, %s7510_s23  ;;  %331 = vrot.lane.b32.xlu1 %v7684_v9, %s7510_s23 }
  0x56   : > { %329 = vrot.lane.b32.xlu0 %v7669_v3, %s7510_s23 }
  0x5d   : > { %384 = vrot.lane.b32.xlu2 %v7688_v11, %s7511_s17  ;;  %382 = vrot.lane.b32.xlu1 %v7673_v5, %s7511_s17 }
  0x5e   : > { %335 = vrot.lane.b32.xlu0 %v7698_v14, %s7510_s23 }
  0x65   : > { %390 = vrot.lane.b32.xlu2 %v7669_v3, %s7511_s17  ;;  %388 = vrot.lane.b32.xlu1 %v7686_v10, %s7511_s17 }
  0x66   : > { %386 = vrot.lane.b32.xlu0 %v7671_v4, %s7511_s17 }
  0x6d   : > { %396 = vrot.lane.b32.xlu2 %v7698_v14, %s7511_s17  ;;  %394 = vrot.lane.b32.xlu1 %v7700_v15, %s7511_s17 }
  0x6e   : > { %392 = vrot.lane.b32.xlu0 %v7684_v9, %s7511_s17 }
  0x75   : > { %447 = vrot.lane.b32.xlu2 %v7671_v4, %s7512_s21  ;;  %445 = vrot.lane.b32.xlu1 %v7688_v11, %s7512_s21 }
  0x76   : > { %443 = vrot.lane.b32.xlu0 %v7673_v5, %s7512_s21 }
  0x7d   : > { %453 = vrot.lane.b32.xlu2 %v7684_v9, %s7512_s21  ;;  %451 = vrot.lane.b32.xlu1 %v7669_v3, %s7512_s21 }
  0x7e   : > { %449 = vrot.lane.b32.xlu0 %v7686_v10, %s7512_s21 }
  0x85   : > { %504 = vrot.lane.b32.xlu2 %v7673_v5, %s7513_s22  ;;  %457 = vrot.lane.b32.xlu1 %v7698_v14, %s7512_s21 }
  0x86   : > { %455 = vrot.lane.b32.xlu0 %v7700_v15, %s7512_s21 }
  0x8d   : > { %510 = vrot.lane.b32.xlu2 %v7686_v10, %s7513_s22  ;;  %508 = vrot.lane.b32.xlu1 %v7671_v4, %s7513_s22 }
  0x8e   : > { %506 = vrot.lane.b32.xlu0 %v7688_v11, %s7513_s22 }
  0x8f   : > { %v7764_v16 = vpop.permute.xlu2 %268 }
  0x95   : > { %516 = vrot.lane.b32.xlu2 %v7700_v15, %s7513_s22  ;;  %514 = vrot.lane.b32.xlu1 %v7684_v9, %s7513_s22 }
  0x96   : > { %512 = vrot.lane.b32.xlu0 %v7669_v3, %s7513_s22 }
  0x97   : > { %v7772_v17 = vpop.permute.xlu2 %270 }
  0x98   : > { %294 = vst.msk [vmem:[#allocation3 + $0x158] sm:$0xff] %vm228_vm0, %v7772_v17 }
  0x9d   : > { %567 = vrot.lane.b32.xlu2 %v7688_v11, %s7514_s24  ;;  %565 = vrot.lane.b32.xlu1 %v7673_v5, %s7514_s24 }
  0x9e   : > { %518 = vrot.lane.b32.xlu0 %v7698_v14, %s7513_s22 }
  0x9f   : > { %v7782_v18 = vpop.permute.xlu2 %321 }
  0xa5   : > { %573 = vrot.lane.b32.xlu2 %v7669_v3, %s7514_s24  ;;  %571 = vrot.lane.b32.xlu1 %v7686_v10, %s7514_s24 }
  0xa6   : > { %569 = vrot.lane.b32.xlu0 %v7671_v4, %s7514_s24 }
  0xa7   : > { %v7790_v19 = vpop.permute.xlu2 %327  ;;  %v7792_v20 = vpop.permute.xlu1 %264 }
  0xa8   : > { %353 = vst.msk [vmem:[#allocation3 + $0x200] sm:$0xff] %vm228_vm0, %v7790_v19  ;;  %v7796_v21 = vpop.permute.xlu0 %260 }
  0xad   : > { %579 = vrot.lane.b32.xlu2 %v7698_v14, %s7514_s24  ;;  %577 = vrot.lane.b32.xlu1 %v7700_v15, %s7514_s24 }
  0xae   : > { %575 = vrot.lane.b32.xlu0 %v7684_v9, %s7514_s24 }
  0xaf   : > { %v7804_v22 = vpop.permute.xlu2 %333  ;;  %v7806_v23 = vpop.permute.xlu1 %266 }
  0xb0   : > { %292 = vst.msk [vmem:[#allocation3 + $0x120] sm:$0xff] %vm228_vm0, %v7806_v23  ;;  %v7810_v24 = vpop.permute.xlu0 %262 }
  0xb1   : > { %290 = vst.msk [vmem:[#allocation3 + $0xe8] sm:$0xff] %vm228_vm0, %v7810_v24  ;;  %v277_v12 = vsel %vm276_vm3, %v7796_v21, %v7810_v24 }
  0xb5   : > { %629 = vrot.lane.b32.xlu2 %v7671_v4, %s7515_s27  ;;  %627 = vrot.lane.b32.xlu1 %v7688_v11, %s7515_s27 }
  0xb6   : > { %625 = vrot.lane.b32.xlu0 %v7673_v5, %s7515_s27 }
  0xb7   : > { %v7820_v25 = vpop.permute.xlu2 %384  ;;  %v7822_v26 = vpop.permute.xlu1 %274 }
  0xb8   : > { %412 = vst.msk [vmem:[#allocation3 + $0x2a8] sm:$0xff] %vm228_vm0, %v7820_v25  ;;  %v7826_v27 = vpop.permute.xlu0 %272 }
  0xb9   : > { %296 = vst.msk [vmem:[#allocation3 + $0x190] sm:$0xff] %vm228_vm0, %v7822_v26 }
  0xbd   : > { %635 = vrot.lane.b32.xlu2 %v7684_v9, %s7515_s27  ;;  %633 = vrot.lane.b32.xlu1 %v7669_v3, %s7515_s27 }
  0xbe   : > { %631 = vrot.lane.b32.xlu0 %v7686_v10, %s7515_s27 }
  0xbf   : > { %v391_v28 = vpop.permute.xlu2 %390  ;;  %v7836_v29 = vpop.permute.xlu1 %325 }
  0xc0   : > { %v7838_v30 = vpop.permute.xlu0 %323 }
  0xc1   : > { %351 = vst.msk [vmem:[#allocation3 + $0x1c8] sm:$0xff] %vm228_vm0, %v7838_v30 }
  0xc5   : > { %691 = vrot.lane.b32.xlu2 %v7673_v5, %s7516_s28  ;;  %639 = vrot.lane.b32.xlu1 %v7698_v14, %s7515_s27  ;;  %v338_v5 = vsel %vm337_vm2, %v7782_v18, %v7838_v30 }
  0xc6   : > { %637 = vrot.lane.b32.xlu0 %v7700_v15, %s7515_s27 }
  0xc7   : > { %v397_v31 = vpop.permute.xlu2 %396  ;;  %v7848_v32 = vpop.permute.xlu1 %331 }
  0xc8   : > { %418 = vst.msk [vmem:[#allocation3 + $0x350] sm:$0xff] %vm228_vm0, %v397_v31  ;;  %v330_v33 = vpop.permute.xlu0 %329 }
  0xc9   : > { %355 = vst.msk [vmem:[#allocation3 + $0x238] sm:$0xff] %vm228_vm0, %v7848_v32 }
  0xcd   : > { %697 = vrot.lane.b32.xlu2 %v7686_v10, %s7516_s28  ;;  %695 = vrot.lane.b32.xlu1 %v7671_v4, %s7516_s28  ;;  %v339_v4 = vsel %vm337_vm2, %v7836_v29, %v7790_v19  ;;  %v279_v10 = vsel %vm276_vm3, %v7764_v16, %v7772_v17 }
  0xce   : > { %693 = vrot.lane.b32.xlu0 %v7688_v11, %s7516_s28  ;;  %v278_v11 = vsel %vm276_vm3, %v7792_v20, %v7806_v23 }
  0xcf   : > { %v7859_v34 = vpop.permute.xlu2 %447  ;;  %v383_v35 = vpop.permute.xlu1 %382 }
  0xd0   : > { %v336_v36 = vpop.permute.xlu0 %335  ;;  %v399_v58 = vsel %vm398_vm1, %v383_v35, %v7820_v25 }
  0xd1   : > { %357 = vst.msk [vmem:[#allocation3 + $0x270] sm:$0xff] %vm228_vm0, %v336_v36  ;;  %v341_v63 = vsel %vm337_vm2, %v7804_v22, %v336_v36 }
  0xd5   : > { %703 = vrot.lane.b32.xlu2 %v7700_v15, %s7516_s28  ;;  %701 = vrot.lane.b32.xlu1 %v7684_v9, %s7516_s28  ;;  %v280_v9 = vsel %vm276_vm3, %v7826_v27, %v7822_v26 }
  0xd6   : > { %699 = vrot.lane.b32.xlu0 %v7669_v3, %s7516_s28  ;;  %v340_v3 = vsel %vm337_vm2, %v330_v33, %v7848_v32 }
  0xd7   : > { %v7870_v39 = vpop.permute.xlu2 %453  ;;  %v389_v40 = vpop.permute.xlu1 %388 }
  0xd8   : > { %477 = vst.msk [vmem:[#allocation3 + $0x3f8] sm:$0xff] %vm228_vm0, %v7870_v39  ;;  %v387_v41 = vpop.permute.xlu0 %386 }
  0xd9   : > { %414 = vst.msk [vmem:[#allocation3 + $0x2e0] sm:$0xff] %vm228_vm0, %v389_v40  ;;  %v400_v55 = vsel %vm398_vm1, %v387_v41, %v389_v40  ;;  %v220_v40 = vmax.f32 %v212_v38, 0.0  ;;  %v214_v41 = vld [vmem:[%s7656_s25 + $0x18] sm:$0xff] }
  0xdb   : > { %229 = vst.msk [vmem:[#allocation3 + $0x8] sm:$0xff] %vm228_vm0, %v220_v40 }
  0xdd   : > { %760 = vrot.lane.b32.xlu2 %v7875_v42, %s7514_s24  ;;  %758 = vrot.lane.b32.xlu1 %v7877_v43, %s7514_s24 }
  0xde   : > { %705 = vrot.lane.b32.xlu0 %v7698_v14, %s7516_s28 }
  0xdf   : > { %v7887_v46 = vpop.permute.xlu2 %504  ;;  %v395_v47 = vpop.permute.xlu1 %394 }
  0xe0   : > { %v402_v49 = vsel %vm398_vm1, %v395_v47, %v397_v31  ;;  %v393_v50 = vpop.permute.xlu0 %392  ;;  %v222_v47 = vmax.f32 %v214_v41, 0.0 }
  0xe1   : > { %416 = vst.msk [vmem:[#allocation3 + $0x318] sm:$0xff] %vm228_vm0, %v393_v50  ;;  %2812 = vmatpush.msra.mxu0 %v402_v49  ;;  %v401_v53 = vsel %vm398_vm1, %v391_v28, %v393_v50 }
  0xe2   : > { %231 = vst.msk [vmem:[#allocation3 + $0x40] sm:$0xff] %vm228_vm0, %v222_v47 }
  0xe3   : > { %2813 = vmatpush.msra.mxu0 %v401_v53 }
  0xe5   : > { %766 = vrot.lane.b32.xlu2 %v7892_v51, %s7514_s24  ;;  %764 = vrot.lane.b32.xlu1 %v7894_v52, %s7514_s24 }
  0xe6   : > { %762 = vrot.lane.b32.xlu0 %v7897_v54, %s7514_s24  ;;  %2814 = vmatpush.msra.mxu0 %v400_v55 }
  0xe7   : > { %v7910_v59 = vpop.permute.xlu2 %510  ;;  %v7912_v60 = vpop.permute.xlu1 %445 }
  0xe8   : > { %536 = vst.msk [vmem:[#allocation3 + $0x4a0] sm:$0xff] %vm228_vm0, %v7910_v59  ;;  %v7917_v62 = vpop.permute.xlu0 %443  ;;  %2815 = vmatpush.msra.mxu0 %v399_v58 }
  0xe9   : > { %473 = vst.msk [vmem:[#allocation3 + $0x388] sm:$0xff] %vm228_vm0, %v7912_v60 }
  0xea   : > { %2816 = vmatpush.msra.mxu0 %v341_v63 }
  0xec   : > { %2817 = vmatpush.msra.mxu0 %v340_v3  ;;  %v226_v3 = vmax.f32 %v218_v61, 0.0 }
  0xed   : > { %772 = vrot.lane.b32.xlu2 %v7923_v0, %s7514_s24  ;;  %770 = vrot.lane.b32.xlu1 %v7925_v1, %s7514_s24 }
  0xee   : > { %768 = vrot.lane.b32.xlu0 %v7927_v2, %s7514_s24  ;;  %2818 = vmatpush.msra.mxu0 %v339_v4  ;;  %235 = vst.msk [vmem:[#allocation3 + $0xb0] sm:$0xff] %vm228_vm0, %v226_v3 }
  0xef   : > { %v7943_v6 = vpop.permute.xlu2 %516  ;;  %v7945_v7 = vpop.permute.xlu1 %451 }
  0xf0   : > { %v7947_v8 = vpop.permute.xlu0 %449  ;;  %2819 = vmatpush.msra.mxu0 %v338_v5 }
  0xf1   : > { %475 = vst.msk [vmem:[#allocation3 + $0x3c0] sm:$0xff] %vm228_vm0, %v7947_v8 }
  0xf2   : > { %2820 = vmatpush.msra.mxu0 %v280_v9 }
  0xf4   : > { %2821 = vmatpush.msra.mxu0 %v279_v10 }
  0xf5   : > { %832 = vrot.lane.b32.xlu2 %v7897_v54, %s7515_s27  ;;  %830 = vrot.lane.b32.xlu1 %v7875_v42, %s7515_s27 }
  0xf6   : > { %828 = vrot.lane.b32.xlu0 %v7877_v43, %s7515_s27  ;;  %2822 = vmatpush.msra.mxu0 %v278_v11 }
  0xf7   : > { %v7969_v13 = vpop.permute.xlu2 %567  ;;  %v7971_v14 = vpop.permute.xlu1 %457 }
  0xf8   : > { %594 = vst.msk [vmem:[#allocation3 + $0x548] sm:$0xff] %vm228_vm0, %v7969_v13  ;;  %v7975_v15 = vpop.permute.xlu0 %455  ;;  %2823 = vmatpush.msra.mxu0 %v277_v12 }
  0xf9   : > { %479 = vst.msk [vmem:[#allocation3 + $0x430] sm:$0xff] %vm228_vm0, %v7971_v14 }
  0xfd   : > { %838 = vrot.lane.b32.xlu2 %v7927_v2, %s7515_s27  ;;  %836 = vrot.lane.b32.xlu1 %v7892_v51, %s7515_s27 }
  0xfe   : > { %834 = vrot.lane.b32.xlu0 %v7894_v52, %s7515_s27 }
  0xff   : > { %v7985_v16 = vpop.permute.xlu2 %573  ;;  %v7987_v17 = vpop.permute.xlu1 %508 }
 0x100   : > { %v7989_v18 = vpop.permute.xlu0 %506 }
 0x101   : > { %534 = vst.msk [vmem:[#allocation3 + $0x468] sm:$0xff] %vm228_vm0, %v7989_v18 }
 0x105   : > { %896 = vrot.lane.b32.xlu2 %v7877_v43, %s7516_s28  ;;  %842 = vrot.lane.b32.xlu1 %v7923_v0, %s7515_s27 }
 0x106   : > { %840 = vrot.lane.b32.xlu0 %v7925_v1, %s7515_s27 }
 0x107   : > { %v7999_v19 = vpop.permute.xlu2 %579  ;;  %v8001_v20 = vpop.permute.xlu1 %514 }
 0x108   : > { %600 = vst.msk [vmem:[#allocation3 + $0x5f0] sm:$0xff] %vm228_vm0, %v7999_v19  ;;  %v8005_v21 = vpop.permute.xlu0 %512 }
 0x109   : > { %538 = vst.msk [vmem:[#allocation3 + $0x4d8] sm:$0xff] %vm228_vm0, %v8001_v20 }
 0x10d   : > { %902 = vrot.lane.b32.xlu2 %v7894_v52, %s7516_s28  ;;  %900 = vrot.lane.b32.xlu1 %v7897_v54, %s7516_s28 }
 0x10e   : > { %898 = vrot.lane.b32.xlu0 %v7875_v42, %s7516_s28 }
 0x10f   : > { %v630_v22 = vpop.permute.xlu2 %629  ;;  %v8015_v23 = vpop.permute.xlu1 %565 }
 0x110   : > { %v8017_v24 = vpop.permute.xlu0 %518  ;;  %v581_v9 = vsel %vm228_vm0, %v8015_v23, %v7969_v13  ;;  %v523_v13 = vsel %vm520_vm8, %v8005_v21, %v8001_v20 }
 0x111   : > { %540 = vst.msk [vmem:[#allocation3 + $0x510] sm:$0xff] %vm228_vm0, %v8017_v24 }
 0x115   : > { %908 = vrot.lane.b32.xlu2 %v7925_v1, %s7516_s28  ;;  %906 = vrot.lane.b32.xlu1 %v7927_v2, %s7516_s28 }
 0x116   : > { %904 = vrot.lane.b32.xlu0 %v7892_v51, %s7516_s28 }
 0x117   : > { %v636_v25 = vpop.permute.xlu2 %635  ;;  %v8027_v26 = vpop.permute.xlu1 %571 }
 0x118   : > { %659 = vst.msk [vmem:[#allocation3 + $0x698] sm:$0xff] %vm641_vm4, %v636_v25  ;;  %v8030_v27 = vpop.permute.xlu0 %569 }
 0x119   : > { %596 = vst.msk [vmem:[#allocation3 + $0x580] sm:$0xff] %vm228_vm0, %v8027_v26  ;;  %v582_v5 = vsel %vm228_vm0, %v8030_v27, %v8027_v26 }
 0x11d   : > { %966 = vrot.lane.b32.xlu2 %v7875_v42, %s7517_s29  ;;  %964 = vrot.lane.b32.xlu1 %v7877_v43, %s7517_s29 }
 0x11e   : > { %910 = vrot.lane.b32.xlu0 %v7923_v0, %s7516_s28 }
 0x11f   : > { %v8040_v28 = vpop.permute.xlu2 %691  ;;  %v578_v29 = vpop.permute.xlu1 %577 }
 0x120   : > { %v576_v30 = vpop.permute.xlu0 %575  ;;  %v584_v63 = vsel %vm228_vm0, %v578_v29, %v7999_v19  ;;  %v522_v19 = vsel %vm520_vm8, %v7987_v17, %v7910_v59  ;;  %v463_v17 = vsel %vm459_vm9, %v7975_v15, %v7971_v14  ;;  %v461_v14 = vsel %vm459_vm9, %v7859_v34, %v7947_v8 }
 0x121   : > { %598 = vst.msk [vmem:[#allocation3 + $0x5b8] sm:$0xff] %vm228_vm0, %v576_v30  ;;  %v583_v4 = vsel %vm228_vm0, %v7985_v16, %v576_v30  ;;  %v524_v16 = vsel %vm520_vm8, %v7943_v6, %v8017_v24  ;;  %v521_v6 = vsel %vm520_vm8, %v7887_v46, %v7989_v18  ;;  %v462_v18 = vsel %vm459_vm9, %v7945_v7, %v7870_v39 }
 0x122   : > { %v460_v39 = vsel %vm459_vm9, %v7917_v62, %v7912_v60 }
 0x125   : > { %972 = vrot.lane.b32.xlu2 %v7892_v51, %s7517_s29  ;;  %970 = vrot.lane.b32.xlu1 %v7894_v52, %s7517_s29 }
 0x126   : > { %968 = vrot.lane.b32.xlu0 %v7897_v54, %s7517_s29 }
 0x127   : > { %v8049_v31 = vpop.permute.xlu2 %697  ;;  %v628_v32 = vpop.permute.xlu1 %627 }
 0x128   : > { %723 = vst.msk [vmem:[#allocation3 + $0x740] sm:$0xff] %vm707_vm5, %v8049_v31  ;;  %v626_v33 = vpop.permute.xlu0 %625 }
 0x129   : > { %655 = vst.msk [vmem:[#allocation3 + $0x628] sm:$0xff] %vm641_vm4, %v628_v32  ;;  %v642_v55 = vsel %vm641_vm4, %v626_v33, %v628_v32 }
 0x12d   : > { %978 = vrot.lane.b32.xlu2 %v7923_v0, %s7517_s29  ;;  %976 = vrot.lane.b32.xlu1 %v7925_v1, %s7517_s29 }
 0x12e   : > { %974 = vrot.lane.b32.xlu0 %v7927_v2, %s7517_s29 }
 0x12f   : > { %v8060_v35 = vpop.permute.xlu2 %703  ;;  %v634_v36 = vpop.permute.xlu1 %633 }
 0x130   : > { %v632_v37 = vpop.permute.xlu0 %631  ;;  %v644_v50 = vsel %vm641_vm4, %v634_v36, %v636_v25 }
 0x131   : > { %657 = vst.msk [vmem:[#allocation3 + $0x660] sm:$0xff] %vm641_vm4, %v632_v37  ;;  %v643_v53 = vsel %vm641_vm4, %v630_v22, %v632_v37 }
 0x135   : > { %1037 = vrot.lane.b32.xlu2 %v7897_v54, %s7518_s30  ;;  %1035 = vrot.lane.b32.xlu1 %v7875_v42, %s7518_s30 }
 0x136   : > { %1033 = vrot.lane.b32.xlu0 %v7877_v43, %s7518_s30 }
 0x137   : > { %v8072_v44 = vpop.permute.xlu2 %760  ;;  %v640_v45 = vpop.permute.xlu1 %639 }
 0x138   : > { %794 = vst.msk [vmem:[#allocation3 + $0x18] sm:$0xff] %vm793_vm6, %v8072_v44  ;;  %v638_v48 = vpop.permute.xlu0 %637 }
 0x139   : > { %661 = vst.msk [vmem:[#allocation3 + $0x6d0] sm:$0xff] %vm641_vm4, %v640_v45  ;;  %v645_v49 = vsel %vm641_vm4, %v638_v48, %v640_v45 }
 0x13a   : > { %2841 = vmatpush.msra.mxu1 %v645_v49 }
 0x13c   : > { %2842 = vmatpush.msra.mxu1 %v644_v50 }
 0x13d   : > { %1043 = vrot.lane.b32.xlu2 %v7927_v2, %s7518_s30  ;;  %1041 = vrot.lane.b32.xlu1 %v7892_v51, %s7518_s30 }
 0x13e   : > { %1039 = vrot.lane.b32.xlu0 %v7894_v52, %s7518_s30  ;;  %2843 = vmatpush.msra.mxu1 %v643_v53 }
 0x13f   : > { %v8088_v56 = vpop.permute.xlu2 %766  ;;  %v696_v57 = vpop.permute.xlu1 %695 }
 0x140   : > { %798 = vst.msk [vmem:[#allocation3 + $0x78] sm:$0xff] %vm790_vm7, %v8088_v56  ;;  %v694_v58 = vpop.permute.xlu0 %693  ;;  %2844 = vmatpush.msra.mxu1 %v642_v55  ;;  %v709_v15 = vsel %vm707_vm5, %v696_v57, %v8049_v31  ;;  %v7007_v57 = vld [vmem:[%s7656_s25 + $0x90] sm:$0xff] }
 0x141   : > { %721 = vst.msk [vmem:[#allocation3 + $0x708] sm:$0xff] %vm707_vm5, %v694_v58  ;;  %v708_v8 = vsel %vm707_vm5, %v8040_v28, %v694_v58 }
 0x142   : > { %2845 = vmatpush.msra.mxu1 %v584_v63 }
 0x144   : > { %2846 = vmatpush.msra.mxu1 %v583_v4  ;;  %v8333_v4 = vmax.f32 %v7007_v57, 0.0 }
 0x145   : > { %1102 = vrot.lane.b32.xlu2 %v7877_v43, %s7519_s7  ;;  %1047 = vrot.lane.b32.xlu1 %v7923_v0, %s7518_s30 }
 0x146   : > { %1045 = vrot.lane.b32.xlu0 %v7925_v1, %s7518_s30  ;;  %2847 = vmatpush.msra.mxu1 %v582_v5 }
 0x147   : > { %v8111_v10 = vpop.permute.xlu2 %772  ;;  %v702_v11 = vpop.permute.xlu1 %701 }
 0x148   : > { %803 = vst.msk [vmem:[#allocation3 + $0xc0] sm:$0xff] %vm793_vm6, %v8111_v10  ;;  %v700_v12 = vpop.permute.xlu0 %699  ;;  %2848 = vmatpush.msra.mxu1 %v581_v9  ;;  %v7012_v9 = vld [vmem:[%s7656_s25 + $0xb8] sm:$0xff] }
 0x149   : > { %725 = vst.msk [vmem:[#allocation3 + $0x778] sm:$0xff] %vm707_vm5, %v702_v11  ;;  %v710_v22 = vsel %vm707_vm5, %v700_v12, %v702_v11 }
 0x14a   : > { %2849 = vmatpush.msra.mxu1 %v524_v16 }
 0x14c   : > { %2850 = vmatpush.msra.mxu1 %v523_v13  ;;  %v7011_v13 = vld [vmem:[%s7656_s25 + $0xb0] sm:$0xff] }
 0x14d   : > { %1108 = vrot.lane.b32.xlu2 %v7894_v52, %s7519_s7  ;;  %1106 = vrot.lane.b32.xlu1 %v7897_v54, %s7519_s7 }
 0x14e   : > { %1104 = vrot.lane.b32.xlu0 %v7875_v42, %s7519_s7  ;;  %2851 = vmatpush.msra.mxu1 %v522_v19  ;;  %v7010_v19 = vld [vmem:[%s7656_s25 + $0xa8] sm:$0xff] }
 0x14f   : > { %v8134_v20 = vpop.permute.xlu2 %832  ;;  %v8136_v21 = vpop.permute.xlu1 %758 }
 0x150   : > { %863 = vst.msk [vmem:[#allocation3 + $0x120] sm:$0xff] %vm790_vm7, %v8134_v20  ;;  %v706_v59 = vpop.permute.xlu0 %705  ;;  %2852 = vmatpush.msra.mxu1 %v521_v6 }
 0x151   : > { %791 = vst.msk [vmem:[#allocation3 + $0x8] sm:$0xff] %vm790_vm7, %v8136_v21  ;;  %v711_v46 = vsel %vm707_vm5, %v8060_v35, %v706_v59 }
 0x152   : > { %727 = vst.msk [vmem:[#allocation3 + $0x7b0] sm:$0xff] %vm707_vm5, %v706_v59  ;;  %2853 = vmatpush.msra.mxu1 %v463_v17  ;;  %2882 = vmatpush.msra.mxu2 %v711_v46  ;;  %v8359_v46 = vmax.f32 %v7012_v9, 0.0 }
 0x154   : > { %2854 = vmatpush.msra.mxu1 %v462_v18  ;;  %2883 = vmatpush.msra.mxu2 %v710_v22  ;;  %v8363_v22 = vmax.f32 %v7011_v13, 0.0 }
 0x155   : > { %1114 = vrot.lane.b32.xlu2 %v7925_v1, %s7519_s7  ;;  %1112 = vrot.lane.b32.xlu1 %v7927_v2, %s7519_s7 }
 0x156   : > { %1110 = vrot.lane.b32.xlu0 %v7892_v51, %s7519_s7  ;;  %2855 = vmatpush.msra.mxu1 %v461_v14  ;;  %v8365_v14 = vmax.f32 %v7010_v19, 0.0 }
 0x157   : > { %v8166_v7 = vpop.permute.xlu2 %838  ;;  %v8168_v34 = vpop.permute.xlu1 %764  ;;  %2884 = vmatpush.msra.mxu2 %v709_v15 }
 0x158   : > { %868 = vst.msk [vmem:[#allocation3 + $0x168] sm:$0xff] %vm793_vm6, %v8166_v7  ;;  %v8174_v23 = vpop.permute.xlu0 %762  ;;  %2856 = vmatpush.msra.mxu1 %v460_v39 }
 0x159   : > { %797 = vst.msk [vmem:[#allocation3 + $0x50] sm:$0xff] %vm793_vm6, %v8168_v34  ;;  %2885 = vmatpush.msra.mxu2 %v708_v8 }
 0x15a   : > { %795 = vst.msk [vmem:[#allocation3 + $0x40] sm:$0xff] %vm790_vm7, %v8174_v23 }
 0x15d   : > { %1173 = vrot.lane.b32.xlu2 %v7875_v42, %s11817_s8  ;;  %1171 = vrot.lane.b32.xlu1 %v7877_v43, %s11817_s8 }
 0x15e   : > { %1116 = vrot.lane.b32.xlu0 %v7923_v0, %s7519_s7 }
 0x15f   : > { %v8186_v60 = vpop.permute.xlu2 %896  ;;  %v8188_v62 = vpop.permute.xlu1 %770 }
 0x160   : > { %928 = vst.msk [vmem:[#allocation3 + $0x1c8] sm:$0xff] %vm790_vm7, %v8186_v60  ;;  %v8192_v24 = vpop.permute.xlu0 %768 }
 0x161   : > { %801 = vst.msk [vmem:[#allocation3 + $0xb0] sm:$0xff] %vm790_vm7, %v8188_v62 }
 0x162   : > { %800 = vst.msk [vmem:[#allocation3 + $0x88] sm:$0xff] %vm793_vm6, %v8192_v24 }
 0x165   : > { %1179 = vrot.lane.b32.xlu2 %v7892_v51, %s11817_s8  ;;  %1177 = vrot.lane.b32.xlu1 %v7894_v52, %s11817_s8 }
 0x166   : > { %1175 = vrot.lane.b32.xlu0 %v7897_v54, %s11817_s8 }
 0x167   : > { %v8204_v25 = vpop.permute.xlu2 %902  ;;  %v8206_v26 = vpop.permute.xlu1 %830 }
 0x168   : > { %933 = vst.msk [vmem:[#allocation3 + $0x210] sm:$0xff] %vm793_vm6, %v8204_v25  ;;  %v8210_v27 = vpop.permute.xlu0 %828 }
 0x169   : > { %862 = vst.msk [vmem:[#allocation3 + $0xf8] sm:$0xff] %vm793_vm6, %v8206_v26 }
 0x16a   : > { %860 = vst.msk [vmem:[#allocation3 + $0xe8] sm:$0xff] %vm790_vm7, %v8210_v27 }
 0x16d   : > { %1185 = vrot.lane.b32.xlu2 %v7923_v0, %s11817_s8  ;;  %1183 = vrot.lane.b32.xlu1 %v7925_v1, %s11817_s8 }
 0x16e   : > { %1181 = vrot.lane.b32.xlu0 %v7927_v2, %s11817_s8 }
 0x16f   : > { %v8222_v28 = vpop.permute.xlu2 %908  ;;  %v8224_v29 = vpop.permute.xlu1 %836 }
 0x170   : > { %937 = vst.msk [vmem:[#allocation3 + $0x270] sm:$0xff] %vm790_vm7, %v8222_v28  ;;  %v8228_v30 = vpop.permute.xlu0 %834 }
 0x171   : > { %866 = vst.msk [vmem:[#allocation3 + $0x158] sm:$0xff] %vm790_vm7, %v8224_v29 }
 0x172   : > { %865 = vst.msk [vmem:[#allocation3 + $0x130] sm:$0xff] %vm793_vm6, %v8228_v30 }
 0x175   : > { %1243 = vrot.lane.b32.xlu2 %v7897_v54, %s11815_s6  ;;  %1241 = vrot.lane.b32.xlu1 %v7875_v42, %s11815_s6 }
 0x176   : > { %1239 = vrot.lane.b32.xlu0 %v7877_v43, %s11815_s6 }
 0x177   : > { %v8240_v31 = vpop.permute.xlu2 %966  ;;  %v8242_v32 = vpop.permute.xlu1 %842 }
 0x178   : > { %999 = vst.msk [vmem:[#allocation3 + $0x2b8] sm:$0xff] %vm793_vm6, %v8240_v31  ;;  %v8246_v33 = vpop.permute.xlu0 %840 }
 0x179   : > { %871 = vst.msk [vmem:[#allocation3 + $0x1a0] sm:$0xff] %vm793_vm6, %v8242_v32 }
 0x17a   : > { %869 = vst.msk [vmem:[#allocation3 + $0x190] sm:$0xff] %vm790_vm7, %v8246_v33 }
 0x17d   : > { %1249 = vrot.lane.b32.xlu2 %v7927_v2, %s11815_s6  ;;  %1247 = vrot.lane.b32.xlu1 %v7892_v51, %s11815_s6 }
 0x17e   : > { %1245 = vrot.lane.b32.xlu0 %v7894_v52, %s11815_s6 }
 0x17f   : > { %v973_v35 = vpop.permute.xlu2 %972  ;;  %v8258_v36 = vpop.permute.xlu1 %900 }
 0x180   : > { %1003 = vst.msk [vmem:[#allocation3 + $0x318] sm:$0xff] %vm790_vm7, %v973_v35  ;;  %v8261_v37 = vpop.permute.xlu0 %898  ;;  %v913_v8 = vsel %vm707_vm5, %v8258_v36, %v8204_v25 }
 0x181   : > { %931 = vst.msk [vmem:[#allocation3 + $0x200] sm:$0xff] %vm790_vm7, %v8258_v36  ;;  %v912_v25 = vsel %vm707_vm5, %v8186_v60, %v8261_v37 }
 0x182   : > { %930 = vst.msk [vmem:[#allocation3 + $0x1d8] sm:$0xff] %vm793_vm6, %v8261_v37 }
 0x185   : > { %1313 = vrot.lane.b32.xlu2 %v7877_v43, %s11793_s9  ;;  %1253 = vrot.lane.b32.xlu1 %v7923_v0, %s11815_s6 }
 0x186   : > { %1251 = vrot.lane.b32.xlu0 %v7925_v1, %s11815_s6 }
 0x187   : > { %v979_v38 = vpop.permute.xlu2 %978  ;;  %v8273_v40 = vpop.permute.xlu1 %906  ;;  %v2623_v18 = vld [vmem:[#allocation3 + $0x318] sm:$0xff] }
 0x188   : > { %1008 = vst.msk [vmem:[#allocation3 + $0x360] sm:$0xff] %vm793_vm6, %v979_v38  ;;  %v8276_v41 = vpop.permute.xlu0 %904  ;;  %v2588_v60 = vld [vmem:[#allocation3 + $0x200] sm:$0xff] }
 0x189   : > { %936 = vst.msk [vmem:[#allocation3 + $0x248] sm:$0xff] %vm793_vm6, %v8273_v40  ;;  %v914_v15 = vsel %vm707_vm5, %v8276_v41, %v8273_v40  ;;  %v2602_v40 = vld [vmem:[#allocation3 + $0x270] sm:$0xff] }
 0x18a   : > { %934 = vst.msk [vmem:[#allocation3 + $0x238] sm:$0xff] %vm790_vm7, %v8276_v41  ;;  %v847_v41 = vsel %vm641_vm4, %v8246_v33, %v8242_v32  ;;  %v846_v32 = vsel %vm641_vm4, %v8224_v29, %v8166_v7  ;;  %v2581_v33 = vld [vmem:[#allocation3 + $0x1c8] sm:$0xff]  ;;  %v2574_v29 = vld [vmem:[#allocation3 + $0x190] sm:$0xff] }
 0x18d   : > { %1319 = vrot.lane.b32.xlu2 %v7894_v52, %s11793_s9  ;;  %1317 = vrot.lane.b32.xlu1 %v7897_v54, %s11793_s9  ;;  %v7005_v52 = vld [vmem:[%s7656_s25 + $0x80] sm:$0xff] }
 0x18e   : > { %1315 = vrot.lane.b32.xlu0 %v7875_v42, %s11793_s9  ;;  %v7006_v42 = vld [vmem:[%s7656_s25 + $0x88] sm:$0xff]  ;;  %v8309_v50 = vmax.f32 %v7005_v52, 0.0  ;;  %v844_v52 = vsel %vm641_vm4, %v8210_v27, %v8206_v26 }
 0x18f   : > { %v8288_v43 = vpop.permute.xlu2 %1037  ;;  %v965_v45 = vpop.permute.xlu1 %964  ;;  %v2553_v26 = vld [vmem:[#allocation3 + $0xe8] sm:$0xff] }
 0x190   : > { %1069 = vst.msk [vmem:[#allocation3 + $0x3c0] sm:$0xff] %vm790_vm7, %v8288_v43  ;;  %v911_v47 = vpop.permute.xlu0 %910  ;;  %v981_v11 = vsel %vm11804_vm10, %v965_v45, %v8240_v31 }
 0x191   : > { %997 = vst.msk [vmem:[#allocation3 + $0x2a8] sm:$0xff] %vm790_vm7, %v965_v45  ;;  %v915_v17 = vsel %vm707_vm5, %v8222_v28, %v911_v47  ;;  %v2595_v45 = vld [vmem:[#allocation3 + $0x238] sm:$0xff] }
 0x192   : > { %939 = vst.msk [vmem:[#allocation3 + $0x280] sm:$0xff] %vm793_vm6, %v911_v47 }
 0x195   : > { %1325 = vrot.lane.b32.xlu2 %v7925_v1, %s11793_s9  ;;  %1323 = vrot.lane.b32.xlu1 %v7927_v2, %s11793_s9  ;;  %v8307_v1 = vmax.f32 %v7006_v42, 0.0  ;;  %v7008_v2 = vld [vmem:[%s7656_s25 + $0x98] sm:$0xff]  ;;  %v845_v42 = vsel %vm641_vm4, %v8134_v20, %v8228_v30  ;;  %v2560_v20 = vld [vmem:[#allocation3 + $0x120] sm:$0xff]  ;;  %v777_v30 = vsel %vm228_vm0, %v8188_v62, %v8111_v10  ;;  %v776_v10 = vsel %vm228_vm0, %v8088_v56, %v8192_v24 }
 0x196   : > { %1321 = vrot.lane.b32.xlu0 %v7892_v51, %s11793_s9  ;;  %v7009_v51 = vld [vmem:[%s7656_s25 + $0xa0] sm:$0xff] }
 0x197   : > { %v8302_v54 = vpop.permute.xlu2 %1043  ;;  %v971_v48 = vpop.permute.xlu1 %970  ;;  %v8327_v63 = vmax.f32 %v7009_v51, 0.0  ;;  %v2546_v51 = vld [vmem:[#allocation3 + $0xb0] sm:$0xff]  ;;  %v2532_v56 = vld [vmem:[#allocation3 + $0x40] sm:$0xff] }
 0x198   : > { %1074 = vst.msk [vmem:[#allocation3 + $0x408] sm:$0xff] %vm793_vm6, %v8302_v54  ;;  %v969_v49 = vpop.permute.xlu0 %968  ;;  %v2609_v28 = vld [vmem:[#allocation3 + $0x2a8] sm:$0xff] }
 0x199   : > { %1002 = vst.msk [vmem:[#allocation3 + $0x2f0] sm:$0xff] %vm793_vm6, %v971_v48  ;;  %v982_v5 = vsel %vm11804_vm10, %v969_v49, %v971_v48  ;;  %v2567_v48 = vld [vmem:[#allocation3 + $0x158] sm:$0xff] }
 0x19a   : > { %1000 = vst.msk [vmem:[#allocation3 + $0x2e0] sm:$0xff] %vm790_vm7, %v969_v49 }
 0x19d   : > { %1390 = vrot.lane.b32.xlu2 %v8307_v1, %s11817_s8  ;;  %1388 = vrot.lane.b32.xlu1 %v8309_v50, %s11817_s8 }
 0x19e   : > { %1327 = vrot.lane.b32.xlu0 %v7923_v0, %s11793_s9  ;;  %v8329_v0 = vmax.f32 %v7008_v2, 0.0  ;;  %v775_v2 = vsel %vm228_vm0, %v8174_v23, %v8168_v34  ;;  %v774_v34 = vsel %vm228_vm0, %v8136_v21, %v8072_v44  ;;  %v2525_v23 = vld [vmem:[#allocation3 + $0x8] sm:$0xff] }
 0x19f   : > { %v8320_v53 = vpop.permute.xlu2 %1102  ;;  %v977_v55 = vpop.permute.xlu1 %976 }
 0x1a0   : > { %1135 = vst.msk [vmem:[#allocation3 + $0x468] sm:$0xff] %vm790_vm7, %v8320_v53  ;;  %v984_v58 = vsel %vm11804_vm10, %v977_v55, %v979_v38  ;;  %v975_v61 = vpop.permute.xlu0 %974  ;;  %v11833_v38 = vmov 0.0  }
 0x1a1   : > { %1006 = vst.msk [vmem:[#allocation3 + $0x350] sm:$0xff] %vm790_vm7, %v977_v55  ;;  %2986 = vmatpush.msrb.mxu1 %v984_v58  ;;  %v983_v3 = vsel %vm11804_vm10, %v973_v35, %v975_v61  ;;  %v2616_v39 = vld [vmem:[#allocation3 + $0x2e0] sm:$0xff]  ;;  %v2539_v55 = vld [vmem:[#allocation3 + $0x78] sm:$0xff]  ;;  %vm1988_vm10 = vcmask 261360  }
 0x1a2   : > { %1005 = vst.msk [vmem:[#allocation3 + $0x328] sm:$0xff] %vm793_vm6, %v975_v61 }
 0x1a3   : > { %2987 = vmatpush.msrb.mxu1 %v983_v3  ;;  %664 = vst.msk [vmem:[#allocation3 + $0x660] sm:$0xff] %vm662_vm11, %v11833_v38 }
 0x1a4   : > { %663 = vst.msk [vmem:[#allocation3 + $0x628] sm:$0xff] %vm662_vm11, %v11833_v38 }
 0x1a5   : > { %1396 = vrot.lane.b32.xlu2 %v8327_v63, %s11817_s8  ;;  %1394 = vrot.lane.b32.xlu1 %v8329_v0, %s11817_s8  ;;  %665 = vst.msk [vmem:[#allocation3 + $0x698] sm:$0xff] %vm662_vm11, %v11833_v38 }
 0x1a6   : > { %1392 = vrot.lane.b32.xlu0 %v8333_v4, %s11817_s8  ;;  %2988 = vmatpush.msrb.mxu1 %v982_v5  ;;  %666 = vst.msk [vmem:[#allocation3 + $0x6d0] sm:$0xff] %vm662_vm11, %v11833_v38  ;;  %vm1420_vm11 = vcmask 1048064  }
 0x1a7   : > { %v8345_v12 = vpop.permute.xlu2 %1108  ;;  %v8347_v16 = vpop.permute.xlu1 %1035  ;;  %729 = vst.msk [vmem:[#allocation3 + $0x708] sm:$0xff] %vm728_vm12, %v11833_v38 }
 0x1a8   : > { %1140 = vst.msk [vmem:[#allocation3 + $0x4b0] sm:$0xff] %vm793_vm6, %v8345_v12  ;;  %v8353_v6 = vpop.permute.xlu0 %1033  ;;  %v2630_v59 = vld [vmem:[#allocation3 + $0x350] sm:$0xff]  ;;  %2989 = vmatpush.msrb.mxu1 %v981_v11 }
 0x1a9   : > { %1068 = vst.msk [vmem:[#allocation3 + $0x398] sm:$0xff] %vm793_vm6, %v8347_v16  ;;  %2899 = vmatpush.msra.mxu3 %v2630_v59 }
 0x1aa   : > { %1066 = vst.msk [vmem:[#allocation3 + $0x388] sm:$0xff] %vm790_vm7, %v8353_v6  ;;  %2990 = vmatpush.msrb.mxu1 %v915_v17 }
 0x1ab   : > { %2900 = vmatpush.msra.mxu3 %v2623_v18  ;;  %730 = vst.msk [vmem:[#allocation3 + $0x740] sm:$0xff] %vm728_vm12, %v11833_v38 }
 0x1ac   : > { %2991 = vmatpush.msrb.mxu1 %v914_v15  ;;  %731 = vst.msk [vmem:[#allocation3 + $0x778] sm:$0xff] %vm728_vm12, %v11833_v38  ;;  %v217_v15 = vld [vmem:[%s7656_s25 + $0x30] sm:$0xff] }
 0x1ad   : > { %2901 = vmatpush.msra.mxu3 %v2616_v39  ;;  %1402 = vrot.lane.b32.xlu2 %v8359_v46, %s11817_s8  ;;  %732 = vst.msk [vmem:[#allocation3 + $0x7b0] sm:$0xff] %vm728_vm12, %v11833_v38  ;;  %v215_v39 = vld [vmem:[%s7656_s25 + $0x20] sm:$0xff]  ;;  %vm11798_vm12 = vcmask 637952  }
 0x1ae   : > { %1400 = vrot.lane.b32.xlu1 %v8363_v22, %s11817_s8  ;;  %1398 = vrot.lane.b32.xlu0 %v8365_v14, %s11817_s8  ;;  %s11941_s8 = smov 14  }
 0x1af   : > { %2902 = vmatpush.msra.mxu3 %v2609_v28  ;;  %v8379_v31 = vpop.permute.xlu2 %1114  ;;  %v8381_v35 = vpop.permute.xlu1 %1041  ;;  %2992 = vmatpush.msrb.mxu1 %v913_v8  ;;  %v225_v8 = vmax.f32 %v217_v15, 0.0  ;;  %v223_v28 = vmax.f32 %v215_v39, 0.0 }
 0x1b0   : > { %1144 = vst.msk [vmem:[#allocation3 + $0x510] sm:$0xff] %vm790_vm7, %v8379_v31  ;;  %v8390_v36 = vpop.permute.xlu0 %1039 }
 0x1b1   : > { %1072 = vst.msk [vmem:[#allocation3 + $0x3f8] sm:$0xff] %vm790_vm7, %v8381_v35  ;;  %2903 = vmatpush.msra.mxu3 %v2602_v40  ;;  %2993 = vmatpush.msrb.mxu1 %v912_v25  ;;  %v213_v25 = vld [vmem:[%s7656_s25 + $0x10] sm:$0xff] }
 0x1b2   : > { %1071 = vst.msk [vmem:[#allocation3 + $0x3d0] sm:$0xff] %vm793_vm6, %v8390_v36  ;;  %2824 = vmatpush.msra.mxu0 %v225_v8  ;;  %v221_v40 = vmax.f32 %v213_v25, 0.0 }
 0x1b3   : > { %2904 = vmatpush.msra.mxu3 %v2595_v45  ;;  %2994 = vmatpush.msrb.mxu1 %v847_v41 }
 0x1b4   : > { %2825 = vmatpush.msra.mxu0 %v223_v28 }
 0x1b5   : > { %2905 = vmatpush.msra.mxu3 %v2588_v60  ;;  %1462 = vrot.lane.b32.xlu2 %v8333_v4, %s11815_s6  ;;  %v211_v60 = vld [vmem:[%s7656_s25] sm:$0xff] }
 0x1b6   : > { %1460 = vrot.lane.b32.xlu1 %v8307_v1, %s11815_s6  ;;  %1458 = vrot.lane.b32.xlu0 %v8309_v50, %s11815_s6 }
 0x1b7   : > { %2906 = vmatpush.msra.mxu3 %v2581_v33  ;;  %v8414_v37 = vpop.permute.xlu2 %1173  ;;  %v8416_v47 = vpop.permute.xlu1 %1047  ;;  %2995 = vmatpush.msrb.mxu1 %v846_v32  ;;  %v219_v33 = vmax.f32 %v211_v60, 0.0  ;;  %v2686_v28 = vld [vmem:[#allocation3 + $0x510] sm:$0xff] }
 0x1b8   : > { %1205 = vst.msk [vmem:[#allocation3 + $0x558] sm:$0xff] %vm793_vm6, %v8414_v37  ;;  %v8423_v7 = vpop.permute.xlu0 %1045  ;;  %2826 = vmatpush.msra.mxu0 %v221_v40 }
 0x1b9   : > { %1077 = vst.msk [vmem:[#allocation3 + $0x440] sm:$0xff] %vm793_vm6, %v8416_v47  ;;  %2907 = vmatpush.msra.mxu3 %v2574_v29  ;;  %2996 = vmatpush.msrb.mxu1 %v845_v42 }
 0x1ba   : > { %1075 = vst.msk [vmem:[#allocation3 + $0x430] sm:$0xff] %vm790_vm7, %v8423_v7  ;;  %2827 = vmatpush.msra.mxu0 %v219_v33 }
 0x1bb   : > { %2908 = vmatpush.msra.mxu3 %v2567_v48  ;;  %2997 = vmatpush.msrb.mxu1 %v844_v52 }
 0x1bd   : > { %2909 = vmatpush.msra.mxu3 %v2560_v20  ;;  %1468 = vrot.lane.b32.xlu2 %v8365_v14, %s11815_s6 }
 0x1be   : > { %1466 = vrot.lane.b32.xlu1 %v8327_v63, %s11815_s6  ;;  %1464 = vrot.lane.b32.xlu0 %v8329_v0, %s11815_s6 }
 0x1bf   : > { %2910 = vmatpush.msra.mxu3 %v2553_v26  ;;  %v8441_v27 = vpop.permute.xlu2 %1179  ;;  %v8443_v49 = vpop.permute.xlu1 %1106  ;;  %2998 = vmatpush.msrb.mxu1 %v777_v30 }
 0x1c0   : > { %1209 = vst.msk [vmem:[#allocation3 + $0x5b8] sm:$0xff] %vm790_vm7, %v8441_v27  ;;  %v8452_v62 = vpop.permute.xlu0 %1104 }
 0x1c1   : > { %1138 = vst.msk [vmem:[#allocation3 + $0x4a0] sm:$0xff] %vm790_vm7, %v8443_v49  ;;  %2911 = vmatpush.msra.mxu3 %v2546_v51  ;;  %2999 = vmatpush.msrb.mxu1 %v776_v10 }
 0x1c2   : > { %1137 = vst.msk [vmem:[#allocation3 + $0x478] sm:$0xff] %vm793_vm6, %v8452_v62 }
 0x1c3   : > { %2912 = vmatpush.msra.mxu3 %v2539_v55  ;;  %3000 = vmatpush.msrb.mxu1 %v775_v2 }
 0x1c5   : > { %2913 = vmatpush.msra.mxu3 %v2532_v56  ;;  %1526 = vrot.lane.b32.xlu2 %v8309_v50, %s11793_s9 }
 0x1c6   : > { %1472 = vrot.lane.b32.xlu1 %v8359_v46, %s11815_s6  ;;  %1470 = vrot.lane.b32.xlu0 %v8363_v22, %s11815_s6  ;;  %s11945_s6 = smov 15  }
 0x1c7   : > { %2914 = vmatpush.msra.mxu3 %v2525_v23  ;;  %v8476_v24 = vpop.permute.xlu2 %1185  ;;  %v8478_v57 = vpop.permute.xlu1 %1112  ;;  %3001 = vmatpush.msrb.mxu1 %v774_v34  ;;  %v8609_v23 = vld [vmem:[#allocation7 + $0x10] sm:$0xff] }
 0x1c8   : > { %1214 = vst.msk [vmem:[#allocation3 + $0x600] sm:$0xff] %vm793_vm6, %v8476_v24  ;;  %v8482_v58 = vpop.permute.xlu0 %1110  ;;  %7149 = vmatmul.msk.f32.vlgmr.msra.gmra.mxu2 %vm1423_vm15, %v8609_v23  ;;  %v2672_v60 = vld [vmem:[#allocation3 + $0x4a0] sm:$0xff] }
 0x1c9   : > { %1143 = vst.msk [vmem:[#allocation3 + $0x4e8] sm:$0xff] %vm793_vm6, %v8478_v57 }
 0x1ca   : > { %1141 = vst.msk [vmem:[#allocation3 + $0x4d8] sm:$0xff] %vm790_vm7, %v8482_v58 }
 0x1cd   : > { %1532 = vrot.lane.b32.xlu2 %v8329_v0, %s11793_s9 }
 0x1ce   : > { %1530 = vrot.lane.b32.xlu1 %v8333_v4, %s11793_s9  ;;  %1528 = vrot.lane.b32.xlu0 %v8307_v1, %s11793_s9 }
 0x1cf   : > { %v8494_v44 = vpop.permute.xlu2 %1243  ;;  %v8496_v21 = vpop.permute.xlu1 %1171 }
 0x1d0   : > { %1275 = vst.msk [vmem:[#allocation3 + $0x660] sm:$0xff] %vm790_vm7, %v8494_v44  ;;  %v8500_v61 = vpop.permute.xlu0 %1116 }
 0x1d1   : > { %1203 = vst.msk [vmem:[#allocation3 + $0x548] sm:$0xff] %vm790_vm7, %v8496_v21  ;;  %v1122_v15 = vsel %vm11798_vm12, %v8379_v31, %v8500_v61  ;;  %v1120_v31 = vsel %vm11798_vm12, %v8443_v49, %v8345_v12 }
 0x1d2   : > { %1146 = vst.msk [vmem:[#allocation3 + $0x520] sm:$0xff] %vm793_vm6, %v8500_v61 }
 0x1d5   : > { %1538 = vrot.lane.b32.xlu2 %v8363_v22, %s11793_s9 }
 0x1d6   : > { %1536 = vrot.lane.b32.xlu1 %v8365_v14, %s11793_s9  ;;  %1534 = vrot.lane.b32.xlu0 %v8327_v63, %s11793_s9 }
 0x1d7   : > { %v8512_v3 = vpop.permute.xlu2 %1249  ;;  %v8514_v5 = vpop.permute.xlu1 %1177 }
 0x1d8   : > { %1280 = vst.msk [vmem:[#allocation3 + $0x6a8] sm:$0xff] %vm11795_vm13, %v8512_v3  ;;  %v8518_v9 = vpop.permute.xlu0 %1175  ;;  %v2693_v61 = vld [vmem:[#allocation3 + $0x548] sm:$0xff] }
 0x1d9   : > { %1208 = vst.msk [vmem:[#allocation3 + $0x590] sm:$0xff] %vm793_vm6, %v8514_v5 }
 0x1da   : > { %1206 = vst.msk [vmem:[#allocation3 + $0x580] sm:$0xff] %vm790_vm7, %v8518_v9 }
 0x1dd   : > { %1596 = vrot.lane.b32.xlu2 %v8307_v1, %s11787_s20 }
 0x1de   : > { %1594 = vrot.lane.b32.xlu1 %v8309_v50, %s11787_s20  ;;  %1540 = vrot.lane.b32.xlu0 %v8359_v46, %s11793_s9  ;;  %s11807_s9 = smov 30  }
 0x1df   : > { %v8530_v11 = vpop.permute.xlu2 %1313  ;;  %v8532_v13 = vpop.permute.xlu1 %1183 }
 0x1e0   : > { %1346 = vst.msk [vmem:[#allocation3 + $0x708] sm:$0xff] %vm790_vm7, %v8530_v11  ;;  %v8536_v19 = vpop.permute.xlu0 %1181  ;;  %v1190_v34 = vsel %vm793_vm6, %v8532_v13, %v8476_v24  ;;  %v1188_v24 = vsel %vm793_vm6, %v8518_v9, %v8514_v5 }
 0x1e1   : > { %1212 = vst.msk [vmem:[#allocation3 + $0x5f0] sm:$0xff] %vm790_vm7, %v8532_v13  ;;  %v2700_v39 = vld [vmem:[#allocation3 + $0x580] sm:$0xff] }
 0x1e2   : > { %1211 = vst.msk [vmem:[#allocation3 + $0x5c8] sm:$0xff] %vm793_vm6, %v8536_v19 }
 0x1e5   : > { %1602 = vrot.lane.b32.xlu2 %v8327_v63, %s11787_s20 }
 0x1e6   : > { %1600 = vrot.lane.b32.xlu1 %v8329_v0, %s11787_s20  ;;  %1598 = vrot.lane.b32.xlu0 %v8333_v4, %s11787_s20 }
 0x1e7   : > { %v8548_v59 = vpop.permute.xlu2 %1319  ;;  %v1242_v17 = vpop.permute.xlu1 %1241 }
 0x1e8   : > { %1351 = vst.msk [vmem:[#allocation3 + $0x750] sm:$0xff] %vm11796_vm14, %v8548_v59  ;;  %v1240_v18 = vpop.permute.xlu0 %1239  ;;  %v2714_v9 = vld [vmem:[#allocation3 + $0x5f0] sm:$0xff] }
 0x1e9   : > { %1274 = vst.msk [vmem:[#allocation3 + $0x638] sm:$0xff] %vm11795_vm13, %v1242_v17  ;;  %v1256_v2 = vsel %vm11795_vm13, %v1240_v18, %v1242_v17  ;;  %v2728_v17 = vld [vmem:[#allocation3 + $0x660] sm:$0xff] }
 0x1ea   : > { %1272 = vst.msk [vmem:[#allocation3 + $0x628] sm:$0xff] %vm790_vm7, %v1240_v18  ;;  %v1187_v18 = vsel %vm793_vm6, %v8496_v21, %v8414_v37  ;;  %v2707_v37 = vld [vmem:[#allocation3 + $0x5b8] sm:$0xff]  ;;  %v1121_v21 = vsel %vm11798_vm12, %v8482_v58, %v8478_v57  ;;  %v1119_v58 = vsel %vm11798_vm12, %v8320_v53, %v8452_v62  ;;  %vm2046_vm12 = vcmask 1047808  }
 0x1eb   : > { %v2679_v53 = vld [vmem:[#allocation3 + $0x4d8] sm:$0xff] }
 0x1ed   : > { %1608 = vrot.lane.b32.xlu2 %v8359_v46, %s11787_s20 }
 0x1ee   : > { %1606 = vrot.lane.b32.xlu1 %v8363_v22, %s11787_s20  ;;  %1604 = vrot.lane.b32.xlu0 %v8365_v14, %s11787_s20  ;;  %s11791_s20 = smov 46  }
 0x1ef   : > { %v8563_v41 = vpop.permute.xlu2 %1325  ;;  %v1248_v45 = vpop.permute.xlu1 %1247 }
 0x1f0   : > { %1355 = vst.msk [vmem:[#allocation3 + $0x7b0] sm:$0xff] %vm790_vm7, %v8563_v41  ;;  %v1246_v32 = vpop.permute.xlu0 %1245  ;;  %v1258_v30 = vsel %vm11795_vm13, %v1248_v45, %v8512_v3  ;;  %v1189_v3 = vsel %vm793_vm6, %v8441_v27, %v8536_v19 }
 0x1f1   : > { %1278 = vst.msk [vmem:[#allocation3 + $0x698] sm:$0xff] %vm790_vm7, %v1248_v45  ;;  %v1257_v26 = vsel %vm11795_vm13, %v8494_v44, %v1246_v32  ;;  %v2721_v13 = vld [vmem:[#allocation3 + $0x628] sm:$0xff] }
 0x1f2   : > { %1277 = vst.msk [vmem:[#allocation3 + $0x670] sm:$0xff] %vm11795_vm13, %v1246_v32  ;;  %v2749_v32 = vld [vmem:[#allocation3 + $0x708] sm:$0xff] }
 0x1f5   : > { %1667 = vrot.lane.b32.xlu2 %v8333_v4, %s11789_s11 }
 0x1f6   : > { %1665 = vrot.lane.b32.xlu1 %v8307_v1, %s11789_s11  ;;  %1663 = vrot.lane.b32.xlu0 %v8309_v50, %s11789_s11 }
 0x1f7   : > { %v8576_v42 = vpop.permute.xlu2 %1390  ;;  %v1254_v29 = vpop.permute.xlu1 %1253  ;;  %v2770_v52 = vld [vmem:[#allocation3 + $0x7b0] sm:$0xff] }
 0x1f8   : > { %1424 = vst.msk [vmem:[#allocation3 + $0x28] sm:$0xff] %vm1423_vm15, %v8576_v42  ;;  %v1252_v48 = vpop.permute.xlu0 %1251  ;;  %2969 = vmatpush.msrb.mxu0 %v2770_v52  ;;  %v2735_v44 = vld [vmem:[#allocation3 + $0x698] sm:$0xff]  ;;  %v2644_v52 = vld [vmem:[#allocation3 + $0x3c0] sm:$0xff] }
 0x1f9   : > { %1283 = vst.msk [vmem:[#allocation3 + $0x6e0] sm:$0xff] %vm11795_vm13, %v1254_v29  ;;  %v1259_v20 = vsel %vm11795_vm13, %v1252_v48, %v1254_v29  ;;  %v2651_v29 = vld [vmem:[#allocation3 + $0x3f8] sm:$0xff] }
 0x1fa   : > { %1281 = vst.msk [vmem:[#allocation3 + $0x6d0] sm:$0xff] %vm790_vm7, %v1252_v48  ;;  %3015 = vmatpush.msrb.mxu3 %v1259_v20 }
 0x1fc   : > { %3016 = vmatpush.msrb.mxu3 %v1258_v30 }
 0x1fd   : > { %1673 = vrot.lane.b32.xlu2 %v8365_v14, %s11789_s11 }
 0x1fe   : > { %1671 = vrot.lane.b32.xlu1 %v8327_v63, %s11789_s11  ;;  %1669 = vrot.lane.b32.xlu0 %v8329_v0, %s11789_s11 }
 0x1ff   : > { %v8593_v10 = vpop.permute.xlu2 %1396  ;;  %v8595_v51 = vpop.permute.xlu1 %1317  ;;  %3017 = vmatpush.msrb.mxu3 %v1257_v26 }
 0x200   : > { %1428 = vst.msk [vmem:[#allocation3 + $0x88] sm:$0xff] %vm1420_vm11, %v8593_v10  ;;  %v8600_v55 = vpop.permute.xlu0 %1315  ;;  %v1331_v26 = vsel %vm11796_vm14, %v8595_v51, %v8548_v59 }
 0x201   : > { %1349 = vst.msk [vmem:[#allocation3 + $0x740] sm:$0xff] %vm790_vm7, %v8595_v51  ;;  %v2742_v56 = vld [vmem:[#allocation3 + $0x6d0] sm:$0xff]  ;;  %3018 = vmatpush.msrb.mxu3 %v1256_v2 }
 0x202   : > { %1348 = vst.msk [vmem:[#allocation3 + $0x718] sm:$0xff] %vm11796_vm14, %v8600_v55  ;;  %2928 = vmatpush.msrb.mxu2 %v2742_v56  ;;  %v8754_v56 = vld [vmem:[%s7656_s25 + $0x88] sm:$0xff] }
 0x203   : > { %3019 = vmatpush.msrb.mxu3 %v1190_v34  ;;  %v7061_v34 = vld [vmem:[%s7656_s25 + $0x80] sm:$0xff] }
 0x204   : > { %2929 = vmatpush.msrb.mxu2 %v2735_v44  ;;  %v8757_v44 = vld [vmem:[#allocation7 + $0x28] sm:$0xff] }
 0x205   : > { %1732 = vrot.lane.b32.xlu2 %v8309_v50, %s11791_s20  ;;  %3020 = vmatpush.msrb.mxu3 %v1189_v3  ;;  %v1854_v3 = vmax.f32 %v8754_v56, 0.0 }
 0x206   : > { %2930 = vmatpush.msrb.mxu2 %v2728_v17  ;;  %1677 = vrot.lane.b32.xlu1 %v8359_v46, %s11789_s11  ;;  %v1853_v17 = vmax.f32 %v7061_v34, 0.0 }
 0x207   : > { %1675 = vrot.lane.b32.xlu0 %v8363_v22, %s11789_s11  ;;  %v8625_v27 = vpop.permute.xlu2 %1402  ;;  %v8627_v19 = vpop.permute.xlu1 %1323  ;;  %3021 = vmatpush.msrb.mxu3 %v1188_v24  ;;  %s11813_s11 = smov 32  }
 0x208   : > { %2931 = vmatpush.msrb.mxu2 %v2721_v13  ;;  %1433 = vst.msk [vmem:[#allocation3 + $0xd0] sm:$0xff] %vm1423_vm15, %v8625_v27  ;;  %v8634_v5 = vpop.permute.xlu0 %1321  ;;  %v2756_v62 = vld [vmem:[#allocation3 + $0x740] sm:$0xff] }
 0x209   : > { %1354 = vst.msk [vmem:[#allocation3 + $0x788] sm:$0xff] %vm11796_vm14, %v8627_v19  ;;  %3022 = vmatpush.msrb.mxu3 %v1187_v18  ;;  %7150 = vmatmul.msk.f32.gmra.mxu2 %vm1423_vm15, %v8757_v44  ;;  %v7064_v18 = vld [vmem:[%s7656_s25 + $0x98] sm:$0xff] }
 0x20a   : > { %1352 = vst.msk [vmem:[#allocation3 + $0x778] sm:$0xff] %vm790_vm7, %v8634_v5  ;;  %2932 = vmatpush.msrb.mxu2 %v2714_v9  ;;  %vm11803_vm7 = vcmask 646144  }
 0x20b   : > { %3023 = vmatpush.msrb.mxu3 %v1122_v15  ;;  %v1053_v40 = vsel %vm11803_vm7, %v8423_v7, %v8416_v47  ;;  %v1052_v45 = vsel %vm11803_vm7, %v8381_v35, %v8302_v54  ;;  %v1051_v47 = vsel %vm11803_vm7, %v8288_v43, %v8390_v36  ;;  %v2665_v54 = vld [vmem:[#allocation3 + $0x468] sm:$0xff]  ;;  %v1050_v43 = vsel %vm11803_vm7, %v8353_v6, %v8347_v16 }
 0x20c   : > { %2933 = vmatpush.msrb.mxu2 %v2707_v37  ;;  %v2637_v16 = vld [vmem:[#allocation3 + $0x388] sm:$0xff]  ;;  %v1856_v15 = vmax.f32 %v7064_v18, 0.0  ;;  %v7083_v18 = vld [vmem:[%s7656_s25 + $0xf0] sm:$0xff]  ;;  %vm11825_vm7 = vcmask 244736  }
 0x20d   : > { %1738 = vrot.lane.b32.xlu2 %v8329_v0, %s11791_s20  ;;  %3024 = vmatpush.msrb.mxu3 %v1121_v21 }
 0x20e   : > { %2934 = vmatpush.msrb.mxu2 %v2700_v39  ;;  %1736 = vrot.lane.b32.xlu1 %v8333_v4, %s11791_s20 }
 0x20f   : > { %1734 = vrot.lane.b32.xlu0 %v8307_v1, %s11791_s20  ;;  %v8655_v8 = vpop.permute.xlu2 %1462  ;;  %v1389_v57 = vpop.permute.xlu1 %1388  ;;  %3025 = vmatpush.msrb.mxu3 %v1120_v31  ;;  %v8806_v31 = vld [vmem:[%s7656_s25 + $0xb8] sm:$0xff] }
 0x210   : > { %2935 = vmatpush.msrb.mxu2 %v2693_v61  ;;  %1493 = vst.msk [vmem:[#allocation3 + $0x130] sm:$0xff] %vm1420_vm11, %v8655_v8  ;;  %v8664_v12 = vsel %vm793_vm6, %v1389_v57, %v8576_v42  ;;  %v1328_v49 = vpop.permute.xlu0 %1327  ;;  %v2658_v42 = vld [vmem:[#allocation3 + $0x430] sm:$0xff] }
 0x211   : > { %1421 = vst.msk [vmem:[#allocation3 + $0x18] sm:$0xff] %vm1420_vm11, %v1389_v57  ;;  %v2763_v25 = vld [vmem:[#allocation3 + $0x778] sm:$0xff]  ;;  %3026 = vmatpush.msrb.mxu3 %v1119_v58  ;;  %v1333_v48 = vsel %vm11796_vm14, %v8563_v41, %v1328_v49  ;;  %v1332_v41 = vsel %vm11796_vm14, %v8634_v5, %v8627_v19  ;;  %v8783_v19 = vld [vmem:[%s7656_s25 + $0xa0] sm:$0xff]  ;;  %v7067_v61 = vld [vmem:[%s7656_s25 + $0xb0] sm:$0xff]  ;;  %v1860_v58 = vmax.f32 %v8806_v31, 0.0 }
 0x212   : > { %1422 = vst [vmem:[#allocation3 + $0x20] sm:$0xff] %v8664_v12  ;;  %2936 = vmatpush.msrb.mxu2 %v2686_v28  ;;  %2970 = vmatpush.msrb.mxu0 %v2763_v25  ;;  %v8786_v5 = vld [vmem:[#allocation7 + $0x40] sm:$0xff]  ;;  %v1857_v9 = vmax.f32 %v8783_v19, 0.0 }
 0x213   : > { %1357 = vst.msk [vmem:[#allocation3 + $0x7c0] sm:$0xff] %vm11796_vm14, %v1328_v49  ;;  %3027 = vmatpush.msrb.mxu3 %v1053_v40  ;;  %7151 = vmatmul.msk.f32.gmra.mxu2 %vm1423_vm15, %v8786_v5  ;;  %v1859_v49 = vmax.f32 %v7067_v61, 0.0 }
 0x214   : > { %2937 = vmatpush.msrb.mxu2 %v2679_v53  ;;  %2971 = vmatpush.msrb.mxu0 %v2756_v62  ;;  %v7071_v53 = vld [vmem:[%s7656_s25 + $0x90] sm:$0xff]  ;;  %v8830_v62 = vld [vmem:[#allocation7 + $0x8] sm:$0xff] }
 0x215   : > { %1744 = vrot.lane.b32.xlu2 %v8363_v22, %s11791_s20  ;;  %3028 = vmatpush.msrb.mxu3 %v1052_v45 }
 0x216   : > { %2938 = vmatpush.msrb.mxu2 %v2672_v60  ;;  %2972 = vmatpush.msrb.mxu0 %v2749_v32  ;;  %v1929_v60 = vmax.f32 %v7071_v53, 0.0  ;;  %v8840_v32 = vld [vmem:[#allocation7] sm:$0xff] }
 0x217   : > { %1742 = vrot.lane.b32.xlu1 %v8365_v14, %s11791_s20  ;;  %1740 = vrot.lane.b32.xlu0 %v8327_v63, %s11791_s20  ;;  %v8684_v35 = vpop.permute.xlu2 %1468  ;;  %v1395_v7 = vpop.permute.xlu1 %1394 }
 0x218   : > { %2939 = vmatpush.msrb.mxu2 %v2665_v54  ;;  %1498 = vst.msk [vmem:[#allocation3 + $0x178] sm:$0xff] %vm1423_vm15, %v8684_v35  ;;  %v1393_v33 = vpop.permute.xlu0 %1392  ;;  %3029 = vmatpush.msrb.mxu3 %v1051_v47 }
 0x219   : > { %1427 = vst.msk [vmem:[#allocation3 + $0x60] sm:$0xff] %vm1423_vm15, %v1395_v7  ;;  %v8693_v36 = vsel %vm793_vm6, %v1393_v33, %v1395_v7  ;;  %2857 = vmatmul.f32.vlgmr.msra.gmra.mxu1 %v8830_v62  ;;  %2828 = vmatmul.f32.vlgmr.msra.gmra.mxu0 %v8840_v32  ;;  %v7074_v7 = vld [vmem:[%s7656_s25 + $0xa8] sm:$0xff] }
 0x21a   : > { %1425 = vst.msk [vmem:[#allocation3 + $0x50] sm:$0xff] %vm1420_vm11, %v1393_v33  ;;  %2940 = vmatpush.msrb.mxu2 %v2658_v42  ;;  %3030 = vmatpush.msrb.mxu3 %v1050_v43  ;;  %v1932_v42 = vmax.f32 %v7074_v7, 0.0  ;;  %v2562_v7 = vld [vmem:[#allocation3 + $0x130] sm:$0xff] }
 0x21b   : > { %1426 = vst [vmem:[#allocation3 + $0x58] sm:$0xff] %v8693_v36  ;;  %2915 = vmatmul.f32.vlgmr.msra.gmra.mxu3 %v8840_v32 }
 0x21c   : > { %2941 = vmatpush.msrb.mxu2 %v2651_v29  ;;  %v7078_v29 = vld [vmem:[%s7656_s25 + $0xc8] sm:$0xff] }
 0x21d   : > { %1803 = vrot.lane.b32.xlu2 %v8307_v1, %s11813_s11 }
 0x21e   : > { %2942 = vmatpush.msrb.mxu2 %v2644_v52 }
 0x21f   : > { %1801 = vrot.lane.b32.xlu1 %v8309_v50, %s11813_s11  ;;  %1746 = vrot.lane.b32.xlu0 %v8359_v46, %s11791_s20  ;;  %v8703_v6 = vpop.permute.xlu2 %1526  ;;  %s11801_s20 = smov 31  }
 0x220   : > { %2943 = vmatpush.msrb.mxu2 %v2637_v16  ;;  %1558 = vst.msk [vmem:[#allocation3 + $0x1d8] sm:$0xff] %vm1420_vm11, %v8703_v6  ;;  %v1401_v20 = vpop.permute.xlu1 %1400  ;;  %v1399_v30 = vpop.permute.xlu0 %1398 }
 0x221   : > { %v8711_v1 = vsel %vm793_vm6, %v1401_v20, %v8625_v27  ;;  %1431 = vst.msk [vmem:[#allocation3 + $0xc0] sm:$0xff] %vm1420_vm11, %v1401_v20  ;;  %v8716_v50 = vsel %vm793_vm6, %v8593_v10, %v1399_v30  ;;  %v1330_v10 = vsel %vm11796_vm14, %v8530_v11, %v8600_v55 }
 0x222   : > { %3056 = vmatpush.msra.mxu2 %v1333_v48  ;;  %1432 = vst [vmem:[#allocation3 + $0xc8] sm:$0xff] %v8711_v1  ;;  %v7077_v48 = vld [vmem:[%s7656_s25 + $0xc0] sm:$0xff] }
 0x223   : > { %1429 = vst [vmem:[#allocation3 + $0x90] sm:$0xff] %v8716_v50 }
 0x224   : > { %3057 = vmatpush.msra.mxu2 %v1332_v41  ;;  %1430 = vst.msk [vmem:[#allocation3 + $0x98] sm:$0xff] %vm1423_vm15, %v1399_v30  ;;  %v8869_v30 = vmax.f32 %v7078_v29, 0.0  ;;  %v8872_v41 = vmax.f32 %v7077_v48, 0.0  ;;  %v2527_v48 = vld [vmem:[#allocation3 + $0x18] sm:$0xff] }
 0x225   : > { %1809 = vrot.lane.b32.xlu2 %v8327_v63, %s11813_s11 }
 0x226   : > { %3058 = vmatpush.msra.mxu2 %v1331_v26  ;;  %v7081_v26 = vld [vmem:[%s7656_s25 + $0xe0] sm:$0xff] }
 0x227   : > { %1807 = vrot.lane.b32.xlu1 %v8329_v0, %s11813_s11  ;;  %1805 = vrot.lane.b32.xlu0 %v8333_v4, %s11813_s11  ;;  %v1533_v2 = vpop.permute.xlu2 %1532  ;;  %v8890_v56 = vmax.f32 %v7081_v26, 0.0 }
 0x228   : > { %3059 = vmatpush.msra.mxu2 %v1330_v10  ;;  %1563 = vst.msk [vmem:[#allocation3 + $0x220] sm:$0xff] %vm1423_vm15, %v1533_v2  ;;  %v1461_v59 = vpop.permute.xlu1 %1460  ;;  %v1459_v51 = vpop.permute.xlu0 %1458  ;;  %v2548_v29 = vld [vmem:[#allocation3 + $0xc0] sm:$0xff] }
 0x229   : > { %1492 = vst.msk [vmem:[#allocation3 + $0x108] sm:$0xff] %vm1423_vm15, %v1461_v59  ;;  %v8739_v63 = vsel %vm11795_vm13, %v1459_v51, %v1461_v59 }
 0x22a   : > { %1490 = vst.msk [vmem:[#allocation3 + $0xf8] sm:$0xff] %vm1420_vm11, %v1459_v51  ;;  %v7080_v51 = vld [vmem:[%s7656_s25 + $0xd8] sm:$0xff] }
 0x22b   : > { %1491 = vst [vmem:[#allocation3 + $0x100] sm:$0xff] %v8739_v63  ;;  %v8892_v34 = vmax.f32 %v7080_v51, 0.0 }
 0x22d   : > { %1815 = vrot.lane.b32.xlu2 %v8359_v46, %s11813_s11 }
 0x22f   : > { %1813 = vrot.lane.b32.xlu1 %v8363_v22, %s11813_s11  ;;  %1811 = vrot.lane.b32.xlu0 %v8365_v14, %s11813_s11  ;;  %v8749_v0 = vpop.permute.xlu2 %1538 }
 0x230   : > { %1567 = vst.msk [vmem:[#allocation3 + $0x280] sm:$0xff] %vm1420_vm11, %v8749_v0  ;;  %v1467_v11 = vpop.permute.xlu1 %1466  ;;  %v1465_v55 = vpop.permute.xlu0 %1464 }
 0x231   : > { %v8761_v46 = vsel %vm11795_vm13, %v1467_v11, %v8684_v35  ;;  %1496 = vst.msk [vmem:[#allocation3 + $0x168] sm:$0xff] %vm1420_vm11, %v1467_v11  ;;  %v8766_v22 = vsel %vm11795_vm13, %v8655_v8, %v1465_v55  ;;  %v8809_v8 = vld [vmem:[#allocation7 + $0x58] sm:$0xff] }
 0x232   : > { %1497 = vst [vmem:[#allocation3 + $0x170] sm:$0xff] %v8761_v46  ;;  %7152 = vmatmul.msk.f32.gmra.mxu2 %vm1423_vm15, %v8809_v8 }
 0x233   : > { %1494 = vst [vmem:[#allocation3 + $0x138] sm:$0xff] %v8766_v22 }
 0x234   : > { %1495 = vst.msk [vmem:[#allocation3 + $0x140] sm:$0xff] %vm1423_vm15, %v1465_v55 }
 0x235   : > { %1873 = vrot.lane.b32.xlu2 %v8333_v4, %s11801_s20 }
 0x237   : > { %1871 = vrot.lane.b32.xlu1 %v1854_v3, %s11801_s20  ;;  %1869 = vrot.lane.b32.xlu0 %v1853_v17, %s11801_s20  ;;  %v8778_v24 = vpop.permute.xlu2 %1596  ;;  %v2604_v53 = vld [vmem:[#allocation3 + $0x280] sm:$0xff] }
 0x238   : > { %1629 = vst.msk [vmem:[#allocation3 + $0x2c8] sm:$0xff] %vm1423_vm15, %v8778_v24  ;;  %v1473_v13 = vpop.permute.xlu1 %1472  ;;  %v1471_v27 = vpop.permute.xlu0 %1470 }
 0x239   : > { %1501 = vst.msk [vmem:[#allocation3 + $0x1b0] sm:$0xff] %vm1423_vm15, %v1473_v13  ;;  %v8790_v4 = vsel %vm11795_vm13, %v1471_v27, %v1473_v13  ;;  %vm11797_vm13 = vcmask 392192  }
 0x23a   : > { %1499 = vst.msk [vmem:[#allocation3 + $0x1a0] sm:$0xff] %vm1420_vm11, %v1471_v27  ;;  %2944 = vmatmul.f32.vlgmr.msrb.gmra.mxu2 %v8830_v62 }
 0x23b   : > { %1500 = vst [vmem:[#allocation3 + $0x1a8] sm:$0xff] %v8790_v4 }
 0x23d   : > { %1879 = vrot.lane.b32.xlu2 %v8365_v14, %s11801_s20 }
 0x23f   : > { %1877 = vrot.lane.b32.xlu1 %v1857_v9, %s11801_s20  ;;  %1875 = vrot.lane.b32.xlu0 %v1856_v15, %s11801_s20  ;;  %v8801_v37 = vpop.permute.xlu2 %1602 }
 0x240   : > { %1633 = vst.msk [vmem:[#allocation3 + $0x328] sm:$0xff] %vm1420_vm11, %v8801_v37  ;;  %v1531_v21 = vpop.permute.xlu1 %1530  ;;  %v1529_v39 = vpop.permute.xlu0 %1528 }
 0x241   : > { %v8812_v57 = vsel %vm11796_vm14, %v1531_v21, %v1533_v2  ;;  %1561 = vst.msk [vmem:[#allocation3 + $0x210] sm:$0xff] %vm1420_vm11, %v1531_v21  ;;  %v8817_v14 = vsel %vm11796_vm14, %v8703_v6, %v1529_v39 }
 0x242   : > { %1562 = vst [vmem:[#allocation3 + $0x218] sm:$0xff] %v8812_v57 }
 0x243   : > { %1559 = vst [vmem:[#allocation3 + $0x1e0] sm:$0xff] %v8817_v14 }
 0x244   : > { %1560 = vst.msk [vmem:[#allocation3 + $0x1e8] sm:$0xff] %vm1423_vm15, %v1529_v39  ;;  %v8918_v39 = vmax.f32 %v7083_v18, 0.0 }
 0x245   : > { %1943 = vrot.lane.b32.xlu2 %v1853_v17, %s11807_s9  ;;  %v7084_v17 = vld [vmem:[%s7656_s25 + $0xf8] sm:$0xff] }
 0x247   : > { %1883 = vrot.lane.b32.xlu1 %v1860_v58, %s11801_s20  ;;  %1881 = vrot.lane.b32.xlu0 %v1859_v49, %s11801_s20  ;;  %v1609_v28 = vpop.permute.xlu2 %1608  ;;  %v2625_v21 = vld [vmem:[#allocation3 + $0x328] sm:$0xff] }
 0x248   : > { %1638 = vst.msk [vmem:[#allocation3 + $0x370] sm:$0xff] %vm1423_vm15, %v1609_v28  ;;  %v1537_v25 = vpop.permute.xlu1 %1536  ;;  %v1535_v40 = vpop.permute.xlu0 %1534 }
 0x249   : > { %1566 = vst.msk [vmem:[#allocation3 + $0x258] sm:$0xff] %vm1423_vm15, %v1537_v25  ;;  %v8834_v45 = vsel %vm11796_vm14, %v1535_v40, %v1537_v25 }
 0x24a   : > { %1564 = vst.msk [vmem:[#allocation3 + $0x248] sm:$0xff] %vm1420_vm11, %v1535_v40 }
 0x24b   : > { %1565 = vst [vmem:[#allocation3 + $0x250] sm:$0xff] %v8834_v45 }
 0x24d   : > { %1949 = vrot.lane.b32.xlu2 %v1856_v15, %s11807_s9 }
 0x24f   : > { %1947 = vrot.lane.b32.xlu1 %v1929_v60, %s11807_s9  ;;  %1945 = vrot.lane.b32.xlu0 %v1854_v3, %s11807_s9  ;;  %v8847_v47 = vpop.permute.xlu2 %1667 }
 0x250   : > { %1699 = vst.msk [vmem:[#allocation3 + $0x3d0] sm:$0xff] %vm1420_vm11, %v8847_v47  ;;  %v1595_v54 = vpop.permute.xlu1 %1594  ;;  %v1541_v35 = vpop.permute.xlu0 %1540 }
 0x251   : > { %v1611_v33 = vsel %vm11797_vm13, %v1595_v54, %v8778_v24  ;;  %1627 = vst.msk [vmem:[#allocation3 + $0x2b8] sm:$0xff] %vm1420_vm11, %v1595_v54  ;;  %v1545_v43 = vsel %vm11796_vm14, %v8749_v0, %v1541_v35  ;;  %v7079_v0 = vld [vmem:[%s7656_s25 + $0xd0] sm:$0xff]  ;;  %vm11799_vm14 = vcmask 384000   ;;  %v2576_v54 = vld [vmem:[#allocation3 + $0x1a0] sm:$0xff] }
 0x252   : > { %1628 = vst [vmem:[#allocation3 + $0x2c0] sm:$0xff] %v1611_v33  ;;  %v8894_v3 = vmax.f32 %v7079_v0, 0.0 }
 0x253   : > { %1568 = vst [vmem:[#allocation3 + $0x288] sm:$0xff] %v1545_v43 }
 0x254   : > { %1569 = vst.msk [vmem:[#allocation3 + $0x290] sm:$0xff] %vm1423_vm15, %v1541_v35 }
 0x255   : > { %1955 = vrot.lane.b32.xlu2 %v1859_v49, %s11807_s9 }
 0x257   : > { %1953 = vrot.lane.b32.xlu1 %v1932_v42, %s11807_s9  ;;  %1951 = vrot.lane.b32.xlu0 %v1857_v9, %s11807_s9  ;;  %v8862_v52 = vpop.permute.xlu2 %1673  ;;  %v7082_v9 = vld [vmem:[%s7656_s25 + $0xe8] sm:$0xff] }
 0x258   : > { %1704 = vst.msk [vmem:[#allocation3 + $0x418] sm:$0xff] %vm1423_vm15, %v8862_v52  ;;  %v1601_v16 = vpop.permute.xlu1 %1600  ;;  %v1599_v6 = vpop.permute.xlu0 %1598  ;;  %v8920_v31 = vmax.f32 %v7082_v9, 0.0  ;;  %v9095_v9 = vld [vmem:[#allocation7 + $0x50] sm:$0xff] }
 0x259   : > { %1632 = vst.msk [vmem:[#allocation3 + $0x300] sm:$0xff] %vm1423_vm15, %v1601_v16  ;;  %v1612_v20 = vsel %vm11797_vm13, %v1599_v6, %v1601_v16  ;;  %v2534_v16 = vld [vmem:[#allocation3 + $0x50] sm:$0xff] }
 0x25a   : > { %1630 = vst.msk [vmem:[#allocation3 + $0x2f0] sm:$0xff] %vm1420_vm11, %v1599_v6  ;;  %v9017_v6 = vld [vmem:[#allocation7 + $0x48] sm:$0xff] }
 0x25b   : > { %1631 = vst [vmem:[#allocation3 + $0x2f8] sm:$0xff] %v1612_v20 }
 0x25d   : > { %2020 = vrot.lane.b32.xlu2 %v8869_v30, %s11813_s11 }
 0x25f   : > { %2018 = vrot.lane.b32.xlu1 %v8872_v41, %s11813_s11  ;;  %1957 = vrot.lane.b32.xlu0 %v1860_v58, %s11807_s9  ;;  %v8880_v10 = vpop.permute.xlu2 %1732  ;;  %v2611_v58 = vld [vmem:[#allocation3 + $0x2b8] sm:$0xff] }
 0x260   : > { %1765 = vst.msk [vmem:[#allocation3 + $0x478] sm:$0xff] %vm1420_vm11, %v8880_v10  ;;  %v1607_v2 = vpop.permute.xlu1 %1606  ;;  %v1605_v59 = vpop.permute.xlu0 %1604 }
 0x261   : > { %v1614_v11 = vsel %vm11797_vm13, %v1607_v2, %v1609_v28  ;;  %1636 = vst.msk [vmem:[#allocation3 + $0x360] sm:$0xff] %vm1420_vm11, %v1607_v2  ;;  %v1613_v55 = vsel %vm11797_vm13, %v8801_v37, %v1605_v59  ;;  %v8914_v37 = vmax.f32 %v7084_v17, 0.0  ;;  %v2618_v61 = vld [vmem:[#allocation3 + $0x2f0] sm:$0xff]  ;;  %vm1284_vm13 = vcmask 523768  }
 0x262   : > { %1637 = vst [vmem:[#allocation3 + $0x368] sm:$0xff] %v1614_v11  ;;  %3160 = vmatpush.msrb.mxu2 %v1614_v11 }
 0x263   : > { %1634 = vst [vmem:[#allocation3 + $0x330] sm:$0xff] %v1613_v55 }
 0x264   : > { %1635 = vst.msk [vmem:[#allocation3 + $0x338] sm:$0xff] %vm1423_vm15, %v1605_v59  ;;  %3161 = vmatpush.msrb.mxu2 %v1613_v55  ;;  %v9038_v59 = vld [vmem:[#allocation7 + $0x20] sm:$0xff] }
 0x265   : > { %2026 = vrot.lane.b32.xlu2 %v8890_v56, %s11813_s11  ;;  %1286 = vst.msk [vmem:[#allocation3 + $0x670] sm:$0xff] %vm1284_vm13, %v11833_v38  ;;  %2860 = vmatmul.f32.gmra.mxu1 %v9038_v59 }
 0x266   : > { %3162 = vmatpush.msrb.mxu2 %v1612_v20  ;;  %1285 = vst.msk [vmem:[#allocation3 + $0x638] sm:$0xff] %vm1284_vm13, %v11833_v38 }
 0x267   : > { %2024 = vrot.lane.b32.xlu1 %v8892_v34, %s11813_s11  ;;  %2022 = vrot.lane.b32.xlu0 %v8894_v3, %s11813_s11  ;;  %v8904_v24 = vpop.permute.xlu2 %1738  ;;  %1287 = vst.msk [vmem:[#allocation3 + $0x6a8] sm:$0xff] %vm1284_vm13, %v11833_v38 }
 0x268   : > { %1770 = vst.msk [vmem:[#allocation3 + $0x4c0] sm:$0xff] %vm1423_vm15, %v8904_v24  ;;  %v1666_v13 = vpop.permute.xlu1 %1665  ;;  %v1664_v27 = vpop.permute.xlu0 %1663  ;;  %v2632_v19 = vld [vmem:[#allocation3 + $0x360] sm:$0xff]  ;;  %3163 = vmatpush.msrb.mxu2 %v1611_v33  ;;  %v8986_v33 = vld [vmem:[#allocation7 + $0x30] sm:$0xff] }
 0x269   : > { %1698 = vst.msk [vmem:[#allocation3 + $0x3a8] sm:$0xff] %vm1423_vm15, %v1666_v13  ;;  %v8912_v15 = vsel %vm11799_vm14, %v1664_v27, %v1666_v13  ;;  %3073 = vmatpush.msra.mxu0 %v2632_v19  ;;  %2947 = vmatmul.f32.gmra.mxu2 %v9038_v59 }
 0x26a   : > { %1696 = vst.msk [vmem:[#allocation3 + $0x398] sm:$0xff] %vm1420_vm11, %v1664_v27  ;;  %3164 = vmatpush.msrb.mxu2 %v1545_v43 }
 0x26b   : > { %1697 = vst [vmem:[#allocation3 + $0x3a0] sm:$0xff] %v8912_v15  ;;  %3074 = vmatpush.msra.mxu0 %v2625_v21 }
 0x26c   : > { %3165 = vmatpush.msrb.mxu2 %v8834_v45  ;;  %v2597_v45 = vld [vmem:[#allocation3 + $0x248] sm:$0xff]  ;;  %1288 = vst.msk [vmem:[#allocation3 + $0x6e0] sm:$0xff] %vm1284_vm13, %v11833_v38  ;;  %vm1358_vm13 = vcmask 523760  }
 0x26d   : > { %3075 = vmatpush.msra.mxu0 %v2618_v61  ;;  %2032 = vrot.lane.b32.xlu2 %v8914_v37, %s11813_s11  ;;  %1359 = vst.msk [vmem:[#allocation3 + $0x718] sm:$0xff] %vm1358_vm13, %v11833_v38 }
 0x26e   : > { %3166 = vmatpush.msrb.mxu2 %v8812_v57  ;;  %1360 = vst.msk [vmem:[#allocation3 + $0x750] sm:$0xff] %vm1358_vm13, %v11833_v38 }
 0x26f   : > { %2030 = vrot.lane.b32.xlu1 %v8918_v39, %s11813_s11  ;;  %2028 = vrot.lane.b32.xlu0 %v8920_v31, %s11813_s11  ;;  %v8930_v49 = vpop.permute.xlu2 %1744  ;;  %1361 = vst.msk [vmem:[#allocation3 + $0x788] sm:$0xff] %vm1358_vm13, %v11833_v38  ;;  %s11861_s11 = smov 64  }
 0x270   : > { %3076 = vmatpush.msra.mxu0 %v2611_v58  ;;  %1774 = vst.msk [vmem:[#allocation3 + $0x520] sm:$0xff] %vm1420_vm11, %v8930_v49  ;;  %v1672_v28 = vpop.permute.xlu1 %1671  ;;  %v1670_v25 = vpop.permute.xlu0 %1669  ;;  %3167 = vmatpush.msrb.mxu2 %v8817_v14  ;;  %v2590_v14 = vld [vmem:[#allocation3 + $0x210] sm:$0xff] }
 0x271   : > { %v8937_v57 = vsel %vm11799_vm14, %v1672_v28, %v8862_v52  ;;  %1702 = vst.msk [vmem:[#allocation3 + $0x408] sm:$0xff] %vm1420_vm11, %v1672_v28  ;;  %v8942_v40 = vsel %vm11799_vm14, %v8847_v47, %v1670_v25 }
 0x272   : > { %1703 = vst [vmem:[#allocation3 + $0x410] sm:$0xff] %v8937_v57  ;;  %3077 = vmatpush.msra.mxu0 %v2604_v53  ;;  %3168 = vmatpush.msrb.mxu2 %v8790_v4  ;;  %v8956_v4 = vld [vmem:[#allocation7 + $0x18] sm:$0xff] }
 0x273   : > { %1700 = vst [vmem:[#allocation3 + $0x3d8] sm:$0xff] %v8942_v40  ;;  %2831 = vmatmul.f32.gmra.mxu0 %v8956_v4  ;;  %2918 = vmatmul.f32.gmra.mxu3 %v8956_v4 }
 0x274   : > { %1701 = vst.msk [vmem:[#allocation3 + $0x3e0] sm:$0xff] %vm1423_vm15, %v1670_v25  ;;  %3078 = vmatpush.msra.mxu0 %v2597_v45  ;;  %3169 = vmatpush.msrb.mxu2 %v8761_v46  ;;  %v2583_v46 = vld [vmem:[#allocation3 + $0x1d8] sm:$0xff] }
 0x275   : > { %2083 = vrot.lane.b32.xlu2 %v8894_v3, %s11801_s20  ;;  %1362 = vst.msk [vmem:[#allocation3 + $0x7c0] sm:$0xff] %vm1358_vm13, %v11833_v38  ;;  %vm1885_vm13 = vcmask 252928  }
 0x276   : > { %3079 = vmatpush.msra.mxu0 %v2590_v14  ;;  %3170 = vmatpush.msrb.mxu2 %v8766_v22 }
 0x277   : > { %2081 = vrot.lane.b32.xlu1 %v8869_v30, %s11801_s20  ;;  %2079 = vrot.lane.b32.xlu0 %v8872_v41, %s11801_s20  ;;  %v8962_v60 = vpop.permute.xlu2 %1803 }
 0x278   : > { %3080 = vmatpush.msra.mxu0 %v2583_v46  ;;  %1835 = vst.msk [vmem:[#allocation3 + $0x568] sm:$0xff] %vm1423_vm15, %v8962_v60  ;;  %v1678_v22 = vpop.permute.xlu1 %1677  ;;  %3171 = vmatpush.msrb.mxu2 %v8739_v63  ;;  %v2569_v63 = vld [vmem:[#allocation3 + $0x168] sm:$0xff] }
 0x279   : > { %2374 = vst.msk [vmem:[#allocation3 + $0x568] sm:$0xff] %vm2046_vm12, %v8872_v41  ;;  %v1676_v47 = vpop.permute.xlu0 %1675 }
 0x27a   : > { %1707 = vst.msk [vmem:[#allocation3 + $0x450] sm:$0xff] %vm1423_vm15, %v1678_v22  ;;  %v8975_v35 = vsel %vm11799_vm14, %v1676_v47, %v1678_v22  ;;  %3081 = vmatpush.msra.mxu0 %v2576_v54  ;;  %3172 = vmatpush.msrb.mxu2 %v8711_v1  ;;  %v2555_v1 = vld [vmem:[#allocation3 + $0xf8] sm:$0xff]  ;;  %vm11800_vm14 = vcmask 375808  }
 0x27b   : > { %1705 = vst.msk [vmem:[#allocation3 + $0x440] sm:$0xff] %vm1420_vm11, %v1676_v47  ;;  %2834 = vmatmul.f32.gmra.mxu0 %v8986_v33  ;;  %2921 = vmatmul.f32.gmra.mxu3 %v8986_v33 }
 0x27c   : > { %1706 = vst [vmem:[#allocation3 + $0x448] sm:$0xff] %v8975_v35  ;;  %3082 = vmatpush.msra.mxu0 %v2569_v63  ;;  %3173 = vmatpush.msrb.mxu2 %v8716_v50 }
 0x27d   : > { %2089 = vrot.lane.b32.xlu2 %v8920_v31, %s11801_s20 }
 0x27e   : > { %3083 = vmatpush.msra.mxu0 %v2562_v7  ;;  %3174 = vmatpush.msrb.mxu2 %v8693_v36 }
 0x27f   : > { %2087 = vrot.lane.b32.xlu1 %v8890_v56, %s11801_s20  ;;  %2085 = vrot.lane.b32.xlu0 %v8892_v34, %s11801_s20  ;;  %v8992_v50 = vpop.permute.xlu2 %1809 }
 0x280   : > { %3084 = vmatpush.msra.mxu0 %v2555_v1  ;;  %1839 = vst.msk [vmem:[#allocation3 + $0x5c8] sm:$0xff] %vm1420_vm11, %v8992_v50  ;;  %v1737_v43 = vpop.permute.xlu1 %1736  ;;  %3175 = vmatpush.msrb.mxu2 %v8664_v12  ;;  %v2541_v12 = vld [vmem:[#allocation3 + $0x88] sm:$0xff] }
 0x281   : > { %v8999_v36 = vsel %vm11800_vm14, %v1737_v43, %v8904_v24  ;;  %1768 = vst.msk [vmem:[#allocation3 + $0x4b0] sm:$0xff] %vm1420_vm11, %v1737_v43  ;;  %v1735_v42 = vpop.permute.xlu0 %1734  ;;  %v9068_v24 = vld [vmem:[#allocation7 + $0x38] sm:$0xff] }
 0x282   : > { %1769 = vst [vmem:[#allocation3 + $0x4b8] sm:$0xff] %v8999_v36  ;;  %v9007_v52 = vsel %vm11800_vm14, %v8880_v10, %v1735_v42  ;;  %3085 = vmatpush.msra.mxu0 %v2548_v29  ;;  %2863 = vmatmul.f32.gmra.mxu1 %v9068_v24 }
 0x283   : > { %1766 = vst [vmem:[#allocation3 + $0x480] sm:$0xff] %v9007_v52  ;;  %2837 = vmatmul.f32.gmra.mxu0 %v9017_v6  ;;  %2924 = vmatmul.f32.gmra.mxu3 %v9017_v6 }
 0x284   : > { %1767 = vst.msk [vmem:[#allocation3 + $0x488] sm:$0xff] %vm1423_vm15, %v1735_v42  ;;  %3086 = vmatpush.msra.mxu0 %v2541_v12  ;;  %2950 = vmatmul.f32.gmra.mxu2 %v9068_v24 }
 0x285   : > { %2139 = vrot.lane.b32.xlu2 %v8872_v41, %s11807_s9 }
 0x286   : > { %3087 = vmatpush.msra.mxu0 %v2534_v16 }
 0x287   : > { %2093 = vrot.lane.b32.xlu1 %v8914_v37, %s11801_s20  ;;  %2091 = vrot.lane.b32.xlu0 %v8918_v39, %s11801_s20  ;;  %v9023_v20 = vpop.permute.xlu2 %1815  ;;  %s11805_s20 = smov 16  }
 0x288   : > { %3088 = vmatpush.msra.mxu0 %v2527_v48  ;;  %1844 = vst.msk [vmem:[#allocation3 + $0x610] sm:$0xff] %vm1423_vm15, %v9023_v20 }
 0x289   : > { %2380 = vst.msk [vmem:[#allocation3 + $0x610] sm:$0xff] %vm2046_vm12, %v8918_v39  ;;  %v1743_v26 = vpop.permute.xlu1 %1742  ;;  %v1741_v10 = vpop.permute.xlu0 %1740 }
 0x28a   : > { %1773 = vst.msk [vmem:[#allocation3 + $0x4f8] sm:$0xff] %vm1423_vm15, %v1743_v26  ;;  %v9035_v2 = vsel %vm11800_vm14, %v1741_v10, %v1743_v26  ;;  %2866 = vmatmul.f32.gmra.mxu1 %v9095_v9 }
 0x28b   : > { %1771 = vst.msk [vmem:[#allocation3 + $0x4e8] sm:$0xff] %vm1420_vm11, %v1741_v10  ;;  %7153 = vmatmul.msk.f32.vlgmr.msrb.gmra.mxu0 %vm1423_vm15, %v8609_v23  ;;  %3031 = vmatmul.f32.vlgmr.msrb.gmra.mxu3 %v8830_v62 }
 0x28c   : > { %1772 = vst [vmem:[#allocation3 + $0x4f0] sm:$0xff] %v9035_v2  ;;  %2953 = vmatmul.f32.gmra.mxu2 %v9095_v9 }
 0x28d   : > { %2145 = vrot.lane.b32.xlu2 %v8892_v34, %s11807_s9 }
 0x28f   : > { %2143 = vrot.lane.b32.xlu1 %v8894_v3, %s11807_s9  ;;  %2141 = vrot.lane.b32.xlu0 %v8869_v30, %s11807_s9  ;;  %v9051_v51 = vpop.permute.xlu2 %1873 }
 0x290   : > { %1905 = vst.msk [vmem:[#allocation3 + $0x670] sm:$0xff] %vm1420_vm11, %v9051_v51 }
 0x291   : > { %v1802_v0 = vpop.permute.xlu1 %1801  ;;  %v1747_v11 = vpop.permute.xlu0 %1746 }
 0x292   : > { %v9060_v55 = vsel %vm1423_vm15, %v1802_v0, %v8962_v60  ;;  %1833 = vst.msk [vmem:[#allocation3 + $0x558] sm:$0xff] %vm1420_vm11, %v1802_v0  ;;  %v9065_v17 = vsel %vm11800_vm14, %v8930_v49, %v1747_v11  ;;  %vm1914_vm14 = vcmask 261368   ;;  %3002 = vmatmul.f32.vlgmr.msrb.gmra.mxu1 %v8840_v32 }
 0x293   : > { %1834 = vst [vmem:[#allocation3 + $0x560] sm:$0xff] %v9060_v55  ;;  %7154 = vmatmul.msk.f32.gmra.mxu0 %vm1423_vm15, %v8757_v44  ;;  %3034 = vmatmul.f32.gmra.mxu3 %v9038_v59 }
 0x294   : > { %1775 = vst [vmem:[#allocation3 + $0x528] sm:$0xff] %v9065_v17  ;;  %7157 = vmatmul.msk.f32.vlgmr.msra.gmra.mxu2 %vm1423_vm15, %v8609_v23 }
 0x295   : > { %1776 = vst.msk [vmem:[#allocation3 + $0x530] sm:$0xff] %vm1423_vm15, %v1747_v11  ;;  %2151 = vrot.lane.b32.xlu2 %v8918_v39, %s11807_s9 }
 0x297   : > { %2149 = vrot.lane.b32.xlu1 %v8920_v31, %s11807_s9  ;;  %2147 = vrot.lane.b32.xlu0 %v8890_v56, %s11807_s9  ;;  %v9080_v13 = vpop.permute.xlu2 %1879  ;;  %v2730_v26 = vld [vmem:[#allocation3 + $0x670] sm:$0xff] }
 0x298   : > { %1910 = vst.msk [vmem:[#allocation3 + $0x6b8] sm:$0xff] %vm1885_vm13, %v9080_v13 }
 0x299   : > { %1917 = vst.msk [vmem:[#allocation3 + $0x6b8] sm:$0xff] %vm1914_vm14, %v11833_v38  ;;  %v1808_v27 = vpop.permute.xlu1 %1807  ;;  %v1806_v19 = vpop.permute.xlu0 %1805 }
 0x29a   : > { %1838 = vst.msk [vmem:[#allocation3 + $0x5a0] sm:$0xff] %vm1423_vm15, %v1808_v27  ;;  %v9091_v18 = vsel %vm1423_vm15, %v1806_v19, %v1808_v27  ;;  %3005 = vmatmul.f32.gmra.mxu1 %v8956_v4  ;;  %v2709_v27 = vld [vmem:[#allocation3 + $0x5c8] sm:$0xff] }
 0x29b   : > { %2376 = vst.msk [vmem:[#allocation3 + $0x5a0] sm:$0xff] %vm2046_vm12, %v8894_v3  ;;  %7155 = vmatmul.msk.f32.gmra.mxu0 %vm1423_vm15, %v8786_v5  ;;  %3037 = vmatmul.f32.gmra.mxu3 %v9068_v24 }
 0x29c   : > { %1836 = vst.msk [vmem:[#allocation3 + $0x590] sm:$0xff] %vm1420_vm11, %v1806_v19  ;;  %7158 = vmatmul.msk.f32.gmra.mxu2 %vm1423_vm15, %v8757_v44 }
 0x29d   : > { %1837 = vst [vmem:[#allocation3 + $0x598] sm:$0xff] %v9091_v18  ;;  %2201 = vrot.lane.b32.xlu2 %v8869_v30, %s11805_s20 }
 0x29f   : > { %2199 = vrot.lane.b32.xlu1 %v8872_v41, %s11805_s20  ;;  %2153 = vrot.lane.b32.xlu0 %v8914_v37, %s11807_s9  ;;  %v9107_v21 = vpop.permute.xlu2 %1943  ;;  %s11811_s9 = smov 14  }
 0x2a0   : > { %1976 = vst.msk [vmem:[#allocation3 + $0x718] sm:$0xff] %vm1420_vm11, %v9107_v21 }
 0x2a1   : > { %v1814_v61 = vpop.permute.xlu1 %1813  ;;  %v1812_v58 = vpop.permute.xlu0 %1811 }
 0x2a2   : > { %v9116_v49 = vsel %vm1423_vm15, %v1814_v61, %v9023_v20  ;;  %1842 = vst.msk [vmem:[#allocation3 + $0x600] sm:$0xff] %vm1420_vm11, %v1814_v61  ;;  %v9121_v28 = vsel %vm1423_vm15, %v8992_v50, %v1812_v58  ;;  %3008 = vmatmul.f32.gmra.mxu1 %v8986_v33  ;;  %v2688_v61 = vld [vmem:[#allocation3 + $0x520] sm:$0xff] }
 0x2a3   : > { %1843 = vst [vmem:[#allocation3 + $0x608] sm:$0xff] %v9116_v49  ;;  %7156 = vmatmul.msk.f32.gmra.mxu0 %vm1423_vm15, %v8809_v8  ;;  %3040 = vmatmul.f32.gmra.mxu3 %v9095_v9 }
 0x2a4   : > { %1840 = vst [vmem:[#allocation3 + $0x5d0] sm:$0xff] %v9121_v28  ;;  %7159 = vmatmul.msk.f32.gmra.mxu2 %vm1423_vm15, %v8786_v5 }
 0x2a5   : > { %1841 = vst.msk [vmem:[#allocation3 + $0x5d8] sm:$0xff] %vm1423_vm15, %v1812_v58  ;;  %2207 = vrot.lane.b32.xlu2 %v8890_v56, %s11805_s20 }
 0x2a6   : > { %2378 = vst.msk [vmem:[#allocation3 + $0x5d8] sm:$0xff] %vm2046_vm12, %v8890_v56 }
 0x2a7   : > { %2205 = vrot.lane.b32.xlu1 %v8892_v34, %s11805_s20  ;;  %2203 = vrot.lane.b32.xlu0 %v8894_v3, %s11805_s20  ;;  %v1950_v25 = vpop.permute.xlu2 %1949 }
 0x2a8   : > { %1981 = vst.msk [vmem:[#allocation3 + $0x760] sm:$0xff] %vm11825_vm7, %v1950_v25 }
 0x2a9   : > { %1990 = vst.msk [vmem:[#allocation3 + $0x760] sm:$0xff] %vm1988_vm10, %v11833_v38  ;;  %v1872_v23 = vpop.permute.xlu1 %1871  ;;  %v1870_v53 = vpop.permute.xlu0 %1869 }
 0x2aa   : > { %1904 = vst.msk [vmem:[#allocation3 + $0x648] sm:$0xff] %vm1885_vm13, %v1872_v23  ;;  %v1886_v45 = vsel %vm1885_vm13, %v1870_v53, %v1872_v23  ;;  %3011 = vmatmul.f32.gmra.mxu1 %v9017_v6  ;;  %v2751_v23 = vld [vmem:[#allocation3 + $0x718] sm:$0xff] }
 0x2ab   : > { %1915 = vst.msk [vmem:[#allocation3 + $0x648] sm:$0xff] %vm1914_vm14, %v11833_v38  ;;  %3089 = vmatmul.f32.vlgmr.msra.gmra.mxu0 %v8840_v32 }
 0x2ac   : > { %1902 = vst.msk [vmem:[#allocation3 + $0x638] sm:$0xff] %vm1420_vm11, %v1870_v53  ;;  %7160 = vmatmul.msk.f32.gmra.mxu2 %vm1423_vm15, %v8809_v8 }
 0x2ad   : > { %1903 = vst [vmem:[#allocation3 + $0x640] sm:$0xff] %v1886_v45  ;;  %2213 = vrot.lane.b32.xlu2 %v8914_v37, %s11805_s20 }
 0x2af   : > { %2211 = vrot.lane.b32.xlu1 %v8918_v39, %s11805_s20  ;;  %2209 = vrot.lane.b32.xlu0 %v8920_v31, %s11805_s20  ;;  %v9157_v14 = vpop.permute.xlu2 %1955  ;;  %s11809_s20 = smov 15  }
 0x2b0   : > { %1985 = vst.msk [vmem:[#allocation3 + $0x7c0] sm:$0xff] %vm1420_vm11, %v9157_v14 }
 0x2b1   : > { %v1878_v46 = vpop.permute.xlu1 %1877  ;;  %v1876_v60 = vpop.permute.xlu0 %1875 }
 0x2b2   : > { %v1888_v22 = vsel %vm1885_vm13, %v1878_v46, %v9080_v13  ;;  %1908 = vst.msk [vmem:[#allocation3 + $0x6a8] sm:$0xff] %vm1420_vm11, %v1878_v46  ;;  %v1887_v47 = vsel %vm1885_vm13, %v9051_v51, %v1876_v60  ;;  %v2716_v13 = vld [vmem:[#allocation3 + $0x600] sm:$0xff]  ;;  %v9275_v46 = vld [vmem:[#allocation7 + $0x10] sm:$0xff] }
 0x2b3   : > { %1909 = vst [vmem:[#allocation3 + $0x6b0] sm:$0xff] %v1888_v22  ;;  %3092 = vmatmul.f32.gmra.mxu0 %v8956_v4  ;;  %v2723_v51 = vld [vmem:[#allocation3 + $0x638] sm:$0xff] }
 0x2b4   : > { %1906 = vst [vmem:[#allocation3 + $0x678] sm:$0xff] %v1887_v47  ;;  %3176 = vmatmul.f32.vlgmr.msrb.gmra.mxu2 %v8840_v32 }
 0x2b5   : > { %1907 = vst.msk [vmem:[#allocation3 + $0x680] sm:$0xff] %vm1885_vm13, %v1876_v60  ;;  %2264 = vrot.lane.b32.xlu2 %v8894_v3, %s11809_s20 }
 0x2b6   : > { %1916 = vst.msk [vmem:[#allocation3 + $0x680] sm:$0xff] %vm1914_vm14, %v11833_v38 }
 0x2b7   : > { %2262 = vrot.lane.b32.xlu1 %v8869_v30, %s11809_s20  ;;  %2260 = vrot.lane.b32.xlu0 %v8872_v41, %s11809_s20  ;;  %v9179_v54 = vpop.permute.xlu2 %2020  ;;  %v2772_v63 = vld [vmem:[#allocation3 + $0x7c0] sm:$0xff]  ;;  %11840 = vst [vmem:[#allocation13_spill] sm:$0xff] %v9275_v46 }
 0x2b8   : > { %3143 = vmatpush.msra.mxu3 %v2772_v63  ;;  %v2646_v63 = vld [vmem:[#allocation3 + $0x3d0] sm:$0xff] }
 0x2b9   : > { %v1884_v7 = vpop.permute.xlu1 %1883  ;;  %v1882_v1 = vpop.permute.xlu0 %1881  ;;  %v2737_v20 = vld [vmem:[#allocation3 + $0x6a8] sm:$0xff] }
 0x2ba   : > { %1913 = vst.msk [vmem:[#allocation3 + $0x6f0] sm:$0xff] %vm1885_vm13, %v1884_v7  ;;  %v1889_v50 = vsel %vm1885_vm13, %v1882_v1, %v1884_v7 }
 0x2bb   : > { %1918 = vst.msk [vmem:[#allocation3 + $0x6f0] sm:$0xff] %vm1914_vm14, %v11833_v38  ;;  %3189 = vmatpush.msrb.mxu0 %v1889_v50  ;;  %vm11820_vm14 = vcmask 121856  }
 0x2bc   : > { %1911 = vst.msk [vmem:[#allocation3 + $0x6e0] sm:$0xff] %vm1420_vm11, %v1882_v1  ;;  %3095 = vmatmul.f32.gmra.mxu0 %v8986_v33  ;;  %3179 = vmatmul.f32.gmra.mxu2 %v8956_v4 }
 0x2bd   : > { %1912 = vst [vmem:[#allocation3 + $0x6e8] sm:$0xff] %v1889_v50  ;;  %2270 = vrot.lane.b32.xlu2 %v8920_v31, %s11809_s20  ;;  %3190 = vmatpush.msrb.mxu0 %v1888_v22  ;;  %v2660_v22 = vld [vmem:[#allocation3 + $0x440] sm:$0xff] }
 0x2bf   : > { %2268 = vrot.lane.b32.xlu1 %v8890_v56, %s11809_s20  ;;  %2266 = vrot.lane.b32.xlu0 %v8892_v34, %s11809_s20  ;;  %v9196_v43 = vpop.permute.xlu2 %2026 }
 0x2c0   : > { %2051 = vst.msk [vmem:[#allocation3 + $0x98] sm:$0xff] %vm2046_vm12, %v9196_v43  ;;  %3191 = vmatpush.msrb.mxu0 %v1887_v47  ;;  %v9286_v47 = vld [vmem:[%s7656_s25 + $0xe8] sm:$0xff] }
 0x2c1   : > { %v1948_v42 = vpop.permute.xlu1 %1947  ;;  %v1946_v29 = vpop.permute.xlu0 %1945 }
 0x2c2   : > { %v9202_v12 = vsel %vm11825_vm7, %v1948_v42, %v1950_v25  ;;  %1979 = vst.msk [vmem:[#allocation3 + $0x750] sm:$0xff] %vm1420_vm11, %v1948_v42  ;;  %v9207_v16 = vsel %vm11825_vm7, %v9107_v21, %v1946_v29  ;;  %3192 = vmatpush.msrb.mxu0 %v1886_v45  ;;  %v2674_v25 = vld [vmem:[#allocation3 + $0x4b0] sm:$0xff]  ;;  %v7533_v42 = vmov 0  }
 0x2c3   : > { %1980 = vst [vmem:[#allocation3 + $0x758] sm:$0xff] %v9202_v12  ;;  %v2744_v48 = vld [vmem:[#allocation3 + $0x6e0] sm:$0xff]  ;;  %7348 = vset.pattern.permute.xlu1 %v7533_v42  ;;  %7346 = vset.pattern.permute.xlu2 %v7533_v42 }
 0x2c4   : > { %1977 = vst [vmem:[#allocation3 + $0x720] sm:$0xff] %v9207_v16  ;;  %3102 = vmatpush.msra.mxu1 %v2744_v48  ;;  %3193 = vmatpush.msrb.mxu0 %v9116_v49  ;;  %v7145_v48 = vld [vmem:[%s7656_s25 + $0xe0] sm:$0xff] }
 0x2c5   : > { %1978 = vst.msk [vmem:[#allocation3 + $0x728] sm:$0xff] %vm11825_vm7, %v1946_v29  ;;  %2321 = vrot.lane.b32.xlu2 %v8872_v41, %s11811_s9  ;;  %3098 = vmatmul.f32.gmra.mxu0 %v9017_v6 }
 0x2c6   : > { %1989 = vst.msk [vmem:[#allocation3 + $0x728] sm:$0xff] %vm1988_vm10, %v11833_v38  ;;  %3103 = vmatpush.msra.mxu1 %v2737_v20  ;;  %3194 = vmatpush.msrb.mxu0 %v9121_v28  ;;  %v9263_v28 = vld [vmem:[%s7656_s25 + $0xc8] sm:$0xff] }
 0x2c7   : > { %2274 = vrot.lane.b32.xlu1 %v8914_v37, %s11809_s20  ;;  %2272 = vrot.lane.b32.xlu0 %v8918_v39, %s11809_s20  ;;  %v9223_v10 = vpop.permute.xlu2 %2032 }
 0x2c8   : > { %3104 = vmatpush.msra.mxu1 %v2730_v26  ;;  %3195 = vmatpush.msrb.mxu0 %v9091_v18 }
 0x2c9   : > { %v1954_v32 = vpop.permute.xlu1 %1953  ;;  %v1952_v0 = vpop.permute.xlu0 %1951  ;;  %v2758_v49 = vld [vmem:[#allocation3 + $0x750] sm:$0xff]  ;;  %3182 = vmatmul.f32.gmra.mxu2 %v8986_v33  ;;  %7347 = vset.pattern.permute.xlu0 %v7533_v42 }
 0x2ca   : > { %3105 = vmatpush.msra.mxu1 %v2723_v51  ;;  %1984 = vst.msk [vmem:[#allocation3 + $0x798] sm:$0xff] %vm11825_vm7, %v1954_v32  ;;  %v9229_v11 = vsel %vm11825_vm7, %v1952_v0, %v1954_v32  ;;  %3196 = vmatpush.msrb.mxu0 %v9060_v55  ;;  %v2702_v55 = vld [vmem:[#allocation3 + $0x590] sm:$0xff]  ;;  %v2459_v51 = vmax.f32 %v7145_v48, 0.0  ;;  %v9381_v32 = vpop.f32.mrf.mxu0 }
 0x2cb   : > { %1991 = vst.msk [vmem:[#allocation3 + $0x798] sm:$0xff] %vm1988_vm10, %v11833_v38 }
 0x2cc   : > { %1982 = vst.msk [vmem:[#allocation3 + $0x788] sm:$0xff] %vm1420_vm11, %v1952_v0  ;;  %3106 = vmatpush.msra.mxu1 %v2716_v13  ;;  %3197 = vmatpush.msrb.mxu0 %v9065_v17  ;;  %v2695_v17 = vld [vmem:[#allocation3 + $0x558] sm:$0xff] }
 0x2cd   : > { %1983 = vst [vmem:[#allocation3 + $0x790] sm:$0xff] %v9229_v11  ;;  %2327 = vrot.lane.b32.xlu2 %v8892_v34, %s11811_s9 }
 0x2ce   : > { %3107 = vmatpush.msra.mxu1 %v2709_v27  ;;  %3198 = vmatpush.msrb.mxu0 %v9035_v2 }
 0x2cf   : > { %2325 = vrot.lane.b32.xlu1 %v8894_v3, %s11811_s9  ;;  %2323 = vrot.lane.b32.xlu0 %v8869_v30, %s11811_s9  ;;  %v9245_v19 = vpop.permute.xlu2 %2083 }
 0x2d0   : > { %3108 = vmatpush.msra.mxu1 %v2702_v55  ;;  %2109 = vst.msk [vmem:[#allocation3 + $0x140] sm:$0xff] %vm2046_vm12, %v9245_v19  ;;  %3199 = vmatpush.msrb.mxu0 %v8999_v36  ;;  %v2681_v36 = vld [vmem:[#allocation3 + $0x4e8] sm:$0xff] }
 0x2d1   : > { %v2019_v4 = vpop.permute.xlu1 %2018  ;;  %v1958_v18 = vpop.permute.xlu0 %1957  ;;  %3185 = vmatmul.f32.gmra.mxu2 %v9017_v6 }
 0x2d2   : > { %3109 = vmatpush.msra.mxu1 %v2695_v17  ;;  %v9252_v2 = vsel %vm1423_vm15, %v2019_v4, %v9179_v54  ;;  %2047 = vst.msk [vmem:[#allocation3 + $0x28] sm:$0xff] %vm2046_vm12, %v2019_v4  ;;  %v1963_v21 = vsel %vm11825_vm7, %v9157_v14, %v1958_v18  ;;  %3200 = vmatpush.msrb.mxu0 %v9007_v52  ;;  %v11821_v52 = vmax.f32 %v9263_v28, 0.0  ;;  %v2653_v54 = vld [vmem:[#allocation3 + $0x408] sm:$0xff] }
 0x2d3   : > { %v2765_v58 = vld [vmem:[#allocation3 + $0x788] sm:$0xff]  ;;  %1986 = vst [vmem:[#allocation3 + $0x7c8] sm:$0xff] %v1963_v21 }
 0x2d4   : > { %3110 = vmatpush.msra.mxu1 %v2688_v61  ;;  %3144 = vmatpush.msra.mxu3 %v2765_v58  ;;  %1987 = vst.msk [vmem:[#allocation3 + $0x7d0] sm:$0xff] %vm11825_vm7, %v1958_v18 }
 0x2d5   : > { %2333 = vrot.lane.b32.xlu2 %v8918_v39, %s11811_s9  ;;  %3201 = vmatpush.msrb.mxu0 %v8975_v35  ;;  %1992 = vst.msk [vmem:[#allocation3 + $0x7d0] sm:$0xff] %vm1988_vm10, %v11833_v38  ;;  %v2667_v35 = vld [vmem:[#allocation3 + $0x478] sm:$0xff]  ;;  %vm11819_vm10 = vcmask 130048  }
 0x2d6   : > { %3111 = vmatpush.msra.mxu1 %v2681_v36  ;;  %3145 = vmatpush.msra.mxu3 %v2758_v49  ;;  %v2779_v49 = vld [vmem:[%s11784_s2 + $0x18] sm:$0xff] }
 0x2d7   : > { %2331 = vrot.lane.b32.xlu1 %v8920_v31, %s11811_s9  ;;  %2329 = vrot.lane.b32.xlu0 %v8890_v56, %s11811_s9  ;;  %v9272_v53 = vpop.permute.xlu2 %2089 }
 0x2d8   : > { %3112 = vmatpush.msra.mxu1 %v2674_v25  ;;  %3146 = vmatpush.msra.mxu3 %v2751_v23  ;;  %v9417_v25 = vld [vmem:[#allocation7 + $0x28] sm:$0xff]  ;;  %v2778_v23 = vld [vmem:[%s11784_s2 + $0x10] sm:$0xff] }
 0x2d9   : > { %v2025_v45 = vpop.permute.xlu1 %2024  ;;  %v2023_v14 = vpop.permute.xlu0 %2022  ;;  %3202 = vmatpush.msrb.mxu0 %v8937_v57  ;;  %7161 = vmatmul.msk.f32.vlgmr.msra.gmra.mxu3 %vm1423_vm15, %v9275_v46  ;;  %v11823_v57 = vmax.f32 %v9286_v47, 0.0  ;;  %11841 = vst [vmem:[#allocation14_spill] sm:$0xff] %v9417_v25 }
 0x2da   : > { %3113 = vmatpush.msra.mxu1 %v2667_v35  ;;  %v9280_v60 = vsel %vm1423_vm15, %v2023_v14, %v2025_v45  ;;  %2049 = vst.msk [vmem:[#allocation3 + $0x60] sm:$0xff] %vm2046_vm12, %v2023_v14  ;;  %v9427_v35 = vpop.f32.mrf.mxu3 }
 0x2db   : > { %3203 = vmatpush.msrb.mxu0 %v8942_v40 }
 0x2dc   : > { %3114 = vmatpush.msra.mxu1 %v2660_v22  ;;  %v9435_v22 = vpop.f32.mrf.mxu1 }
 0x2dd   : > { %2408 = vrot.lane.b32.xlu2 %v8869_v30, %s7509_s18  ;;  %3204 = vmatpush.msrb.mxu0 %v8912_v15  ;;  %v9302_v30 = vld [vmem:[%s7656_s25 + $0xd8] sm:$0xff] }
 0x2de   : > { %3115 = vmatpush.msra.mxu1 %v2653_v54  ;;  %3205 = vmatmul.f32.vlgmr.msrb.gmra.mxu0 %v8830_v62  ;;  %v2639_v15 = vld [vmem:[#allocation3 + $0x398] sm:$0xff]  ;;  %v11822_v50 = vmax.f32 %v9302_v30, 0.0 }
 0x2df   : > { %2406 = vrot.lane.b32.xlu1 %v8872_v41, %s7509_s18  ;;  %2335 = vrot.lane.b32.xlu0 %v8914_v37, %s11811_s9  ;;  %v9297_v40 = vpop.permute.xlu2 %2139 }
 0x2e0   : > { %3116 = vmatpush.msra.mxu1 %v2646_v63  ;;  %2167 = vst.msk [vmem:[#allocation3 + $0x1e8] sm:$0xff] %vm2046_vm12, %v9297_v40 }
 0x2e1   : > { %v2031_v33 = vpop.permute.xlu1 %2030  ;;  %v2029_v7 = vpop.permute.xlu0 %2028  ;;  %7162 = vmatmul.msk.f32.gmra.mxu3 %vm1423_vm15, %v8757_v44  ;;  %v9321_v44 = vld [vmem:[%s7656_s25 + $0xf8] sm:$0xff] }
 0x2e2   : > { %3117 = vmatpush.msra.mxu1 %v2639_v15  ;;  %v9308_v41 = vsel %vm1423_vm15, %v2031_v33, %v9223_v10  ;;  %2053 = vst.msk [vmem:[#allocation3 + $0xd0] sm:$0xff] %vm2046_vm12, %v2031_v33  ;;  %v9313_v1 = vsel %vm1423_vm15, %v9196_v43, %v2029_v7  ;;  %v11824_v43 = vmax.f32 %v9321_v44, 0.0  ;;  %v9443_v7 = vld [vmem:[#allocation7 + $0x40] sm:$0xff] }
 0x2e3   : > { %3118 = vmatmul.f32.vlgmr.msra.gmra.mxu1 %v8830_v62  ;;  %11842 = vst [vmem:[#allocation15_spill] sm:$0xff] %v9443_v7 }
 0x2e4   : > { %3230 = vmatpush.msrb.mxu1 %v1963_v21 }
 0x2e5   : > { %2414 = vrot.lane.b32.xlu2 %v8890_v56, %s7509_s18 }
 0x2e6   : > { %3231 = vmatpush.msrb.mxu1 %v9229_v11  ;;  %3208 = vmatmul.f32.gmra.mxu0 %v9038_v59  ;;  %v7147_v11 = vld [vmem:[%s7656_s25 + $0xf0] sm:$0xff] }
 0x2e7   : > { %2412 = vrot.lane.b32.xlu1 %v8892_v34, %s7509_s18  ;;  %2410 = vrot.lane.b32.xlu0 %v8894_v3, %s7509_s18  ;;  %v2146_v62 = vpop.permute.xlu2 %2145  ;;  %v7143_v34 = vld [vmem:[%s7656_s25 + $0xd0] sm:$0xff]  ;;  %v7141_v3 = vld [vmem:[%s7656_s25 + $0xc0] sm:$0xff]  ;;  %v2461_v17 = vmax.f32 %v7147_v11, 0.0 }
 0x2e8   : > { %3232 = vmatpush.msrb.mxu1 %v9202_v12 }
 0x2e9   : > { %v2082_v56 = vpop.permute.xlu1 %2081  ;;  %v2080_v6 = vpop.permute.xlu0 %2079  ;;  %7163 = vmatmul.msk.f32.gmra.mxu3 %vm1423_vm15, %v8786_v5 }
 0x2ea   : > { %3233 = vmatpush.msrb.mxu1 %v9207_v16  ;;  %v9335_v29 = vsel %vm1885_vm13, %v2080_v6, %v2082_v56  ;;  %2107 = vst.msk [vmem:[#allocation3 + $0x108] sm:$0xff] %vm2046_vm12, %v2080_v6  ;;  %v2457_v16 = vmax.f32 %v7143_v34, 0.0 }
 0x2eb   : > { %3121 = vmatmul.f32.gmra.mxu1 %v9038_v59 }
 0x2ed   : > { %2420 = vrot.lane.b32.xlu2 %v8914_v37, %s7509_s18 }
 0x2ee   : > { %3211 = vmatmul.f32.gmra.mxu0 %v9068_v24 }
 0x2ef   : > { %2418 = vrot.lane.b32.xlu1 %v8918_v39, %s7509_s18  ;;  %2416 = vrot.lane.b32.xlu0 %v8920_v31, %s7509_s18  ;;  %v9347_v5 = vpop.permute.xlu2 %2151  ;;  %v2455_v31 = vmax.f32 %v7141_v3, 0.0 }
 0x2f0   : > { %2173 = vst.msk [vmem:[#allocation3 + $0x290] sm:$0xff] %vm2046_vm12, %v9347_v5  ;;  %v9408_v21 = vpop.f32.mrf.mxu0 }
 0x2f1   : > { %v2088_v59 = vpop.permute.xlu1 %2087  ;;  %v2086_v12 = vpop.permute.xlu0 %2085  ;;  %7164 = vmatmul.msk.f32.gmra.mxu3 %vm1423_vm15, %v8809_v8 }
 0x2f2   : > { %v9356_v37 = vsel %vm1885_vm13, %v2088_v59, %v9272_v53  ;;  %2111 = vst.msk [vmem:[#allocation3 + $0x178] sm:$0xff] %vm2046_vm12, %v2088_v59  ;;  %v9361_v39 = vsel %vm1885_vm13, %v9245_v19, %v2086_v12  ;;  %v2776_v19 = vld [vmem:[%s11784_s2] sm:$0xff]  ;;  %v2777_v53 = vld [vmem:[%s11784_s2 + $0x8] sm:$0xff]  ;;  %v9453_v59 = vpop.f32.mrf.mxu1 }
 0x2f3   : > { %3124 = vmatmul.f32.gmra.mxu1 %v9068_v24  ;;  %v9375_v24 = vpop.f32.mrf.mxu2 }
 0x2f5   : > { %2475 = vrot.lane.b32.xlu2 %v2457_v16, %s7510_s23 }
 0x2f6   : > { %3214 = vmatmul.f32.gmra.mxu0 %v9095_v9  ;;  %v9447_v42 = vpop.f32.mrf.mxu3 }
 0x2f7   : > { %2473 = vrot.lane.b32.xlu1 %v11821_v52, %s7510_s23  ;;  %2471 = vrot.lane.b32.xlu0 %v2455_v31, %s7510_s23  ;;  %v2202_v8 = vpop.permute.xlu2 %2201  ;;  %v7355_v52 = vld [vmem:[#allocation7 + $0x30] sm:$0xff] }
 0x2f8   : > { %v9441_v33 = vpop.f32.mrf.mxu0 }
 0x2f9   : > { %v2094_v20 = vpop.permute.xlu1 %2093  ;;  %v2092_v26 = vpop.permute.xlu0 %2091 }
 0x2fa   : > { %v9372_v10 = vsel %vm1885_vm13, %v2092_v26, %v2094_v20  ;;  %2113 = vst.msk [vmem:[#allocation3 + $0x1b0] sm:$0xff] %vm2046_vm12, %v2092_v26 }
 0x2fb   : > { %3127 = vmatmul.f32.gmra.mxu1 %v9095_v9  ;;  %v9402_v4 = vpop.f32.mrf.mxu2 }
 0x2fd   : > { %2481 = vrot.lane.b32.xlu2 %v11823_v57, %s7510_s23 }
 0x2fe   : > { %v9465_v31 = vpop.f32.mrf.mxu3 }
 0x2ff   : > { %2479 = vrot.lane.b32.xlu1 %v2459_v51, %s7510_s23  ;;  %2477 = vrot.lane.b32.xlu0 %v11822_v50, %s7510_s23  ;;  %v2208_v0 = vpop.permute.xlu2 %2207  ;;  %v9472_v11 = vpop.f32.mrf.mxu1 }
 0x300   : > { %2232 = vst.msk [vmem:[#allocation3 + $0x338] sm:$0xff] %vm2046_vm12, %v2208_v0  ;;  %v9459_v12 = vpop.f32.mrf.mxu0 }
 0x301   : > { %v2144_v13 = vpop.permute.xlu1 %2143  ;;  %v2142_v27 = vpop.permute.xlu0 %2141 }
 0x302   : > { %v9390_v9 = vsel %vm11825_vm7, %v2144_v13, %v2146_v62  ;;  %2169 = vst.msk [vmem:[#allocation3 + $0x220] sm:$0xff] %vm2046_vm12, %v2144_v13  ;;  %v9395_v55 = vsel %vm11825_vm7, %v9297_v40, %v2142_v27 }
 0x303   : > { %7165 = vmatmul.msk.f32.vlgmr.msrb.gmra.mxu1 %vm1423_vm15, %v9275_v46  ;;  %v9429_v45 = vpop.f32.mrf.mxu2 }
 0x305   : > { %2782 = vperm.xlu2 %7346, %v2776_v19  }
 0x307   : > { %2485 = vrot.lane.b32.xlu1 %v11824_v43, %s7510_s23  ;;  %2483 = vrot.lane.b32.xlu0 %v2461_v17, %s7510_s23  ;;  %v2214_v18 = vpop.permute.xlu2 %2213 }
 0x308   : > { %v9474_v13 = vpop.f32.mrf.mxu0 }
 0x309   : > { %v2150_v61 = vpop.permute.xlu1 %2149  ;;  %v2148_v58 = vpop.permute.xlu0 %2147 }
 0x30a   : > { %v9411_v36 = vsel %vm11825_vm7, %v2148_v58, %v2150_v61  ;;  %2171 = vst.msk [vmem:[#allocation3 + $0x258] sm:$0xff] %vm2046_vm12, %v2148_v58  ;;  %v2627_v58 = vld [vmem:[#allocation3 + $0x338] sm:$0xff] }
 0x30b   : > { %7166 = vmatmul.msk.f32.gmra.mxu1 %vm1423_vm15, %v9417_v25  ;;  %v9449_v56 = vpop.f32.mrf.mxu2 }
 0x30d   : > { %2797 = vperm.xlu2 %7346, %v2779_v49  }
 0x30f   : > { %2792 = vperm.xlu1 %7348, %v2778_v23   ;;  %2787 = vperm.xlu0 %7347, %v2777_v53   ;;  %v9431_v14 = vpop.permute.xlu2 %2264  ;;  %v9487_v53 = vpop.f32.mrf.mxu1 }
 0x310   : > { %2291 = vst.msk [vmem:[#allocation3 + $0x3e0] sm:$0xff] %vm2046_vm12, %v9431_v14 }
 0x311   : > { %v2200_v54 = vpop.permute.xlu1 %2199  ;;  %v2154_v63 = vpop.permute.xlu0 %2153 }
 0x312   : > { %v2216_v40 = vsel %vm11819_vm10, %v2200_v54, %v2202_v8  ;;  %2228 = vst.msk [vmem:[#allocation3 + $0x2c8] sm:$0xff] %vm2046_vm12, %v2200_v54  ;;  %v2158_v15 = vsel %vm11825_vm7, %v9347_v5, %v2154_v63  ;;  %v9455_v5 = vld [vmem:[#allocation7 + $0x58] sm:$0xff]  ;;  %vm2507_vm7 = vcmask 1048560  }
 0x313   : > { %7167 = vmatmul.msk.f32.gmra.mxu1 %vm1423_vm15, %v9443_v7  ;;  %11843 = vst [vmem:[#allocation16_spill] sm:$0xff] %v9455_v5  ;;  %v9470_v51 = vpop.f32.mrf.mxu2 }
 0x317   : > { %v2271_v62 = vpop.permute.xlu2 %2270 }
 0x319   : > { %v2206_v6 = vpop.permute.xlu1 %2205  ;;  %v2204_v34 = vpop.permute.xlu0 %2203  ;;  %v2613_v54 = vld [vmem:[#allocation3 + $0x2c8] sm:$0xff] }
 0x31a   : > { %v2217_v3 = vsel %vm11819_vm10, %v2204_v34, %v2206_v6  ;;  %2230 = vst.msk [vmem:[#allocation3 + $0x300] sm:$0xff] %vm2046_vm12, %v2204_v34  ;;  %v2606_v34 = vld [vmem:[#allocation3 + $0x290] sm:$0xff] }
 0x31b   : > { %7168 = vmatmul.msk.f32.gmra.mxu1 %vm1423_vm15, %v9455_v5  ;;  %v9484_v49 = vpop.f32.mrf.mxu2 }
 0x31f   : > { %v9461_v16 = vpop.permute.xlu2 %2321 }
 0x320   : > { %2350 = vst.msk [vmem:[#allocation3 + $0x488] sm:$0xff] %vm2046_vm12, %v9461_v16 }
 0x321   : > { %v2212_v8 = vpop.permute.xlu1 %2211  ;;  %v2210_v48 = vpop.permute.xlu0 %2209  ;;  %v2620_v23 = vld [vmem:[#allocation3 + $0x300] sm:$0xff] }
 0x322   : > { %v2219_v20 = vsel %vm11819_vm10, %v2212_v8, %v2214_v18  ;;  %2234 = vst.msk [vmem:[#allocation3 + $0x370] sm:$0xff] %vm2046_vm12, %v2212_v8  ;;  %v2218_v26 = vsel %vm11819_vm10, %v2208_v0, %v2210_v48  ;;  %v9482_v0 = vpop.f32.mrf.mxu3  ;;  %v2592_v48 = vld [vmem:[#allocation3 + $0x220] sm:$0xff]  ;;  %vm2442_vm10 = vcmask 1048568  }
 0x323   : > { %3334 = vmatpush.msra.mxu1 %v2219_v20 }
 0x325   : > { %3335 = vmatpush.msra.mxu1 %v2218_v26  ;;  %v2578_v26 = vld [vmem:[#allocation3 + $0x1b0] sm:$0xff] }
 0x327   : > { %v9476_v27 = vpop.permute.xlu2 %2327  ;;  %3336 = vmatpush.msra.mxu1 %v2217_v3 }
 0x329   : > { %v2263_v19 = vpop.permute.xlu1 %2262  ;;  %v2261_v17 = vpop.permute.xlu0 %2260  ;;  %v2634_v61 = vld [vmem:[#allocation3 + $0x370] sm:$0xff]  ;;  %3337 = vmatpush.msra.mxu1 %v2216_v40 }
 0x32a   : > { %v9479_v18 = vsel %vm11820_vm14, %v2261_v17, %v2263_v19  ;;  %2289 = vst.msk [vmem:[#allocation3 + $0x3a8] sm:$0xff] %vm2046_vm12, %v2261_v17  ;;  %3247 = vmatpush.msrb.mxu3 %v2634_v61  ;;  %v9494_v40 = vpop.f32.mrf.mxu0  ;;  %v9506_v8 = vpop.f32.mrf.mxu3  ;;  %v2571_v17 = vld [vmem:[#allocation3 + $0x178] sm:$0xff]  ;;  %v2564_v61 = vld [vmem:[#allocation3 + $0x140] sm:$0xff] }
 0x32b   : > { %11844 = vst [vmem:[#allocation17_spill] sm:$0xff] %v9479_v18  ;;  %3338 = vmatpush.msra.mxu1 %v2158_v15 }
 0x32c   : > { %3248 = vmatpush.msrb.mxu3 %v2627_v58 }
 0x32d   : > { %3339 = vmatpush.msra.mxu1 %v9411_v36 }
 0x32e   : > { %3249 = vmatpush.msrb.mxu3 %v2620_v23  ;;  %v2557_v23 = vld [vmem:[#allocation3 + $0x108] sm:$0xff] }
 0x32f   : > { %v9489_v63 = vpop.permute.xlu2 %2333  ;;  %3340 = vmatpush.msra.mxu1 %v9390_v9  ;;  %v2599_v9 = vld [vmem:[#allocation3 + $0x258] sm:$0xff] }
 0x330   : > { %3250 = vmatpush.msrb.mxu3 %v2613_v54  ;;  %2356 = vst.msk [vmem:[#allocation3 + $0x530] sm:$0xff] %vm2046_vm12, %v9489_v63 }
 0x331   : > { %v2269_v15 = vpop.permute.xlu1 %2268  ;;  %v2267_v6 = vpop.permute.xlu0 %2266  ;;  %3341 = vmatpush.msra.mxu1 %v9395_v55 }
 0x332   : > { %v9498_v36 = vsel %vm11820_vm14, %v2269_v15, %v2271_v62  ;;  %2293 = vst.msk [vmem:[#allocation3 + $0x418] sm:$0xff] %vm2046_vm12, %v2269_v15  ;;  %v9503_v3 = vsel %vm11820_vm14, %v9431_v14, %v2267_v6  ;;  %3251 = vmatpush.msrb.mxu3 %v2606_v34  ;;  %v9509_v55 = vpop.f32.mrf.mxu2  ;;  %v2585_v62 = vld [vmem:[#allocation3 + $0x1e8] sm:$0xff]  ;;  %v9529_v58 = vpop.f32.mrf.mxu3  ;;  %v2550_v34 = vld [vmem:[#allocation3 + $0xd0] sm:$0xff] }
 0x333   : > { %11845 = vst [vmem:[#allocation18_spill] sm:$0xff] %v9498_v36  ;;  %3342 = vmatpush.msra.mxu1 %v9372_v10  ;;  %v9516_v10 = vpop.f32.mrf.mxu1 }
 0x334   : > { %11846 = vst [vmem:[#allocation19_spill] sm:$0xff] %v9503_v3  ;;  %3252 = vmatpush.msrb.mxu3 %v2599_v9  ;;  %v7353_v9 = vld [vmem:[#allocation7] sm:$0xff] }
 0x335   : > { %3343 = vmatpush.msra.mxu1 %v9356_v37 }
 0x336   : > { %3253 = vmatpush.msrb.mxu3 %v2592_v48  ;;  %v2543_v48 = vld [vmem:[#allocation3 + $0x98] sm:$0xff] }
 0x337   : > { %v9511_v20 = vpop.permute.xlu2 %2408  ;;  %3344 = vmatpush.msra.mxu1 %v9361_v39  ;;  %v9525_v39 = vpop.f32.mrf.mxu0 }
 0x338   : > { %3254 = vmatpush.msrb.mxu3 %v2585_v62  ;;  %2435 = vst.msk [vmem:[#allocation3 + $0x650] sm:$0xff] %vm276_vm3, %v9511_v20 }
 0x339   : > { %2443 = vst.msk [vmem:[#allocation3 + $0x650] sm:$0xff] %vm2442_vm10, %v11833_v38  ;;  %v2275_v14 = vpop.permute.xlu1 %2274  ;;  %v2273_v37 = vpop.permute.xlu0 %2272  ;;  %3345 = vmatpush.msra.mxu1 %v9335_v29 }
 0x33a   : > { %v9522_v19 = vsel %vm11820_vm14, %v2273_v37, %v2275_v14  ;;  %2295 = vst.msk [vmem:[#allocation3 + $0x450] sm:$0xff] %vm2046_vm12, %v2273_v37  ;;  %3255 = vmatpush.msrb.mxu3 %v2578_v26  ;;  %vm2337_vm14 = vcmask 113664   ;;  %v9534_v54 = vpop.f32.mrf.mxu2  ;;  %v2529_v14 = vld [vmem:[#allocation3 + $0x28] sm:$0xff]  ;;  %v9551_v37 = vpop.f32.mrf.mxu3 }
 0x33b   : > { %3346 = vmatpush.msra.mxu1 %v9308_v41 }
 0x33c   : > { %3256 = vmatpush.msrb.mxu3 %v2571_v17 }
 0x33d   : > { %3347 = vmatpush.msra.mxu1 %v9313_v1 }
 0x33e   : > { %3257 = vmatpush.msrb.mxu3 %v2564_v61 }
 0x33f   : > { %v9531_v29 = vpop.permute.xlu2 %2414  ;;  %3348 = vmatpush.msra.mxu1 %v9280_v60  ;;  %v9546_v60 = vpop.f32.mrf.mxu1 }
 0x340   : > { %3258 = vmatpush.msrb.mxu3 %v2557_v23  ;;  %v9548_v62 = vpop.f32.mrf.mxu0  ;;  %v7354_v23 = vld [vmem:[#allocation7 + $0x18] sm:$0xff] }
 0x341   : > { %v2326_v15 = vpop.permute.xlu1 %2325  ;;  %v2324_v6 = vpop.permute.xlu0 %2323  ;;  %3349 = vmatpush.msra.mxu1 %v9252_v2  ;;  %v2536_v2 = vld [vmem:[#allocation3 + $0x60] sm:$0xff] }
 0x342   : > { %v9539_v41 = vsel %vm2337_vm14, %v2326_v15, %v9476_v27  ;;  %2352 = vst.msk [vmem:[#allocation3 + $0x4c0] sm:$0xff] %vm2046_vm12, %v2326_v15  ;;  %v9544_v1 = vsel %vm2337_vm14, %v9461_v16, %v2324_v6  ;;  %3259 = vmatpush.msrb.mxu3 %v2550_v34  ;;  %3350 = vmatmul.f32.vlgmr.msra.gmra.mxu1 %v7353_v9  ;;  %v3061_v17 = vpop.f32.mrf.mxu2 }
 0x344   : > { %3260 = vmatpush.msrb.mxu3 %v2543_v48 }
 0x346   : > { %3261 = vmatpush.msrb.mxu3 %v2536_v2 }
 0x347   : > { %v2421_v27 = vpop.permute.xlu2 %2420  ;;  %v9559_v15 = vpop.f32.mrf.mxu1 }
 0x348   : > { %3262 = vmatpush.msrb.mxu3 %v2529_v14  ;;  %2441 = vst.msk [vmem:[#allocation3 + $0x6f8] sm:$0xff] %vm276_vm3, %v2421_v27  ;;  %v3090_v6 = vpop.f32.mrf.mxu0 }
 0x349   : > { %2446 = vst.msk [vmem:[#allocation3 + $0x6f8] sm:$0xff] %vm2442_vm10, %v11833_v38  ;;  %v2332_v16 = vpop.permute.xlu1 %2331  ;;  %v2330_v26 = vpop.permute.xlu0 %2329  ;;  %3263 = vmatmul.f32.vlgmr.msrb.gmra.mxu3 %v7353_v9 }
 0x34a   : > { %v9556_v61 = vsel %vm2337_vm14, %v2330_v26, %v2332_v16  ;;  %2354 = vst.msk [vmem:[#allocation3 + $0x4f8] sm:$0xff] %vm2046_vm12, %v2330_v26  ;;  %3353 = vmatmul.f32.gmra.mxu1 %v7354_v23  ;;  %v9569_v26 = vpop.f32.mrf.mxu3  ;;  %v9572_v50 = vpop.f32.mrf.mxu2 }
 0x34b   : > { %11847 = vst [vmem:[#allocation20_spill] sm:$0xff] %v9572_v50 }
 0x34f   : > { %v9561_v34 = vpop.permute.xlu2 %2475  ;;  %v3012_v57 = vpop.f32.mrf.mxu1 }
 0x350   : > { %v2747_v48 = vld [vmem:[#allocation3 + $0x6f8] sm:$0xff] }
 0x351   : > { %v2407_v2 = vpop.permute.xlu1 %2406  ;;  %v2336_v14 = vpop.permute.xlu0 %2335  ;;  %3266 = vmatmul.f32.gmra.mxu3 %v7354_v23 }
 0x352   : > { %v2422_v9 = vsel %vm276_vm3, %v2407_v2, %v9511_v20  ;;  %v9567_v16 = vsel %vm2337_vm14, %v9489_v63, %v2336_v14  ;;  %3356 = vmatmul.f32.gmra.mxu1 %v7355_v52  ;;  %3363 = vmatpush.msra.mxu3 %v2747_v48  ;;  %v9576_v23 = vpop.f32.mrf.mxu0  ;;  %v7356_v2 = vld [vmem:[#allocation7 + $0x48] sm:$0xff] }
 0x353   : > { %2434 = vst.msk [vmem:[#allocation3 + $0x648] sm:$0xff] %vm2046_vm12, %v2422_v9  ;;  %v9587_v9 = vpop.f32.mrf.mxu2 }
 0x357   : > { %v9574_v43 = vpop.permute.xlu2 %2481 }
 0x358   : > { %2504 = vst.msk [vmem:[#allocation3 + $0x7a0] sm:$0xff] %vm337_vm2, %v9574_v43 }
 0x359   : > { %2510 = vst.msk [vmem:[#allocation3 + $0x7a0] sm:$0xff] %vm2507_vm7, %v11833_v38  ;;  %v2413_v63 = vpop.permute.xlu1 %2412  ;;  %v2411_v20 = vpop.permute.xlu0 %2410  ;;  %3269 = vmatmul.f32.gmra.mxu3 %v7355_v52 }
 0x35a   : > { %2437 = vst.msk [vmem:[#allocation3 + $0x688] sm:$0xff] %vm276_vm3, %v2413_v63  ;;  %v2423_v48 = vsel %vm276_vm3, %v2411_v20, %v2413_v63  ;;  %3359 = vmatmul.f32.gmra.mxu1 %v7356_v2 }
 0x35b   : > { %2444 = vst.msk [vmem:[#allocation3 + $0x688] sm:$0xff] %vm2442_vm10, %v11833_v38  ;;  %v9598_v38 = vpop.f32.mrf.mxu0 }
 0x35c   : > { %2436 = vst.msk [vmem:[#allocation3 + $0x680] sm:$0xff] %vm2046_vm12, %v2423_v48  ;;  %v3148_v14 = vpop.f32.mrf.mxu3 }
 0x35f   : > { %v9589_v5 = vpop.permute.xlu2 %2782 }
 0x360   : > { %v3119_v7 = vpop.f32.mrf.mxu1  ;;  %v2830_v52 = vadd.f32 %v9381_v32, %v9589_v5  ;;  %v2917_v25 = vadd.f32 %v9427_v35, %v9589_v5  ;;  %v3004_v63 = vadd.f32 %v9516_v10, %v9589_v5  ;;  %v3091_v48 = vadd.f32 %v3090_v6, %v9589_v5 }
 0x361   : > { %v2419_v20 = vpop.permute.xlu1 %2418  ;;  %v2417_v46 = vpop.permute.xlu0 %2416  ;;  %3272 = vmatmul.f32.gmra.mxu3 %v7356_v2 }
 0x362   : > { %v2859_v18 = vadd.f32 %v9435_v22, %v2830_v52  ;;  %v2946_v50 = vadd.f32 %v9470_v51, %v2917_v25  ;;  %v3033_v3 = vadd.f32 %v9506_v8, %v3004_v63  ;;  %v2425_v32 = vsel %vm276_vm3, %v2419_v20, %v2421_v27  ;;  %2439 = vst.msk [vmem:[#allocation3 + $0x6c0] sm:$0xff] %vm276_vm3, %v2417_v46  ;;  %v2733_v20 = vld [vmem:[#allocation3 + $0x688] sm:$0xff] }
 0x363   : > { %2440 = vst.msk [vmem:[#allocation3 + $0x6f0] sm:$0xff] %vm2046_vm12, %v2425_v32  ;;  %v2424_v35 = vsel %vm276_vm3, %v9531_v29, %v2417_v46  ;;  %v3120_v10 = vadd.f32 %v3119_v7, %v3091_v48  ;;  %v11848_v22 = vmov 0.0  }
 0x364   : > { %v2888_v6 = vadd.f32 %v9375_v24, %v2859_v18  ;;  %v2975_v2 = vadd.f32 %v9474_v13, %v2946_v50  ;;  %v3062_v36 = vadd.f32 %v3061_v17, %v3033_v3  ;;  %2438 = vst.msk [vmem:[#allocation3 + $0x6b8] sm:$0xff] %vm2046_vm12, %v2424_v35  ;;  %v9611_v25 = vpop.f32.mrf.mxu3  ;;  %v3070_v24 = vpop.f32.mrf.mxu2  ;;  %v2726_v35 = vld [vmem:[#allocation3 + $0x650] sm:$0xff] }
 0x365   : > { %2445 = vst.msk [vmem:[#allocation3 + $0x6c0] sm:$0xff] %vm2442_vm10, %v11848_v22  ;;  %v3149_v51 = vadd.f32 %v3148_v14, %v3120_v10  ;;  %v3099_v14 = vpop.f32.mrf.mxu0  ;;  %vm11872_vm10 = vcmask 646144  }
 0x366   : > { %3421 = vst [vmem:[#allocation2] sm:$0xff] %v2888_v6  ;;  %v9615_v8 = vmax.f32 %v2888_v6, 0.0  ;;  %v9619_v46 = vmax.f32 %v2975_v2, 0.0 }
 0x367   : > { %3422 = vst [vmem:[#allocation2 + $0x8] sm:$0xff] %v2975_v2  ;;  %v9617_v27 = vpop.permute.xlu2 %2797  ;;  %v2725_v2 = vld [vmem:[#allocation3 + $0x648] sm:$0xff] }
 0x368   : > { %3423 = vst [vmem:[#allocation2 + $0x10] sm:$0xff] %v3062_v36  ;;  %v9621_v50 = vpop.f32.mrf.mxu1  ;;  %v2839_v7 = vadd.f32 %v9459_v12, %v9617_v27  ;;  %v2926_v13 = vadd.f32 %v9482_v0, %v9617_v27  ;;  %v3013_v18 = vadd.f32 %v3012_v57, %v9617_v27  ;;  %3502 = vrot.lane.b32.xlu1 %v9615_v8, %s7509_s18 }
 0x369   : > { %v2474_v3 = vpop.permute.xlu1 %2473  ;;  %v2472_v29 = vpop.permute.xlu0 %2471  ;;  %3424 = vst [vmem:[#allocation2 + $0x18] sm:$0xff] %v3149_v51  ;;  %3504 = vrot.lane.b32.xlu2 %v9619_v46, %s7509_s18  ;;  %v2718_v51 = vld [vmem:[#allocation3 + $0x610] sm:$0xff] }
 0x36a   : > { %2500 = vst.msk [vmem:[#allocation3 + $0x730] sm:$0xff] %vm337_vm2, %v2474_v3  ;;  %v2487_v36 = vsel %vm337_vm2, %v2472_v29, %v2474_v3  ;;  %v2746_v17 = vld [vmem:[#allocation3 + $0x6f0] sm:$0xff]  ;;  %v2868_v12 = vadd.f32 %v9487_v53, %v2839_v7  ;;  %v2955_v0 = vadd.f32 %v9534_v54, %v2926_v13  ;;  %v3042_v57 = vadd.f32 %v9569_v26, %v3013_v18  ;;  %v2732_v26 = vld [vmem:[#allocation3 + $0x680] sm:$0xff]  ;;  %v2711_v29 = vld [vmem:[#allocation3 + $0x5d8] sm:$0xff] }
 0x36b   : > { %2508 = vst.msk [vmem:[#allocation3 + $0x730] sm:$0xff] %vm2507_vm7, %v11848_v22  ;;  %3276 = vmatpush.msra.mxu2 %v2746_v17  ;;  %v2739_v63 = vld [vmem:[#allocation3 + $0x6b8] sm:$0xff]  ;;  %v11849_v17 = vmax.f32 %v9321_v44, 0.0 }
 0x36c   : > { %2499 = vst.msk [vmem:[#allocation3 + $0x728] sm:$0xff] %vm2046_vm12, %v2487_v36  ;;  %v2740_v52 = vld [vmem:[#allocation3 + $0x6c0] sm:$0xff]  ;;  %v9641_v48 = vadd.f32 %v9449_v56, %v2868_v12  ;;  %v9644_v32 = vadd.f32 %v9548_v62, %v2955_v0  ;;  %v3071_v53 = vadd.f32 %v3070_v24, %v3042_v57  ;;  %v9649_v10 = vpop.f32.mrf.mxu3  ;;  %v3177_v13 = vpop.f32.mrf.mxu2 }
 0x36d   : > { %3364 = vmatpush.msra.mxu3 %v2740_v52  ;;  %3277 = vmatpush.msra.mxu2 %v2739_v63  ;;  %v9646_v54 = vld [vmem:[#allocation2] sm:$0xff]  ;;  %v3206_v57 = vpop.f32.mrf.mxu0  ;;  %v2697_v52 = vld [vmem:[#allocation3 + $0x568] sm:$0xff] }
 0x36e   : > { %3442 = vst [vmem:[#allocation2 + $0xc0] sm:$0xff] %v9641_v48  ;;  %v3462_v6 = vmax.f32 %v9646_v54, 0.0  ;;  %v3958_v56 = vld [vmem:[#allocation2 + $0x8] sm:$0xff]  ;;  %v2704_v12 = vld [vmem:[#allocation3 + $0x5a0] sm:$0xff] }
 0x36f   : > { %3365 = vmatpush.msra.mxu3 %v2733_v20  ;;  %3443 = vst [vmem:[#allocation2 + $0xc8] sm:$0xff] %v9644_v32  ;;  %3278 = vmatpush.msra.mxu2 %v2732_v26  ;;  %v9660_v36 = vmax.f32 %v3958_v56, 0.0  ;;  %v11851_v20 = vmax.f32 %v9302_v30, 0.0  ;;  %v11852_v56 = vmax.f32 %v9263_v28, 0.0 }
 0x370   : > { %v9653_v62 = vpop.f32.mrf.mxu1  ;;  %3444 = vst [vmem:[#allocation2 + $0xd0] sm:$0xff] %v3071_v53 }
 0x371   : > { %3366 = vmatpush.msra.mxu3 %v2726_v35  ;;  %v2480_v24 = vpop.permute.xlu1 %2479  ;;  %3279 = vmatpush.msra.mxu2 %v2725_v2  ;;  %v2478_v7 = vpop.permute.xlu0 %2477  ;;  %3471 = vst.msk [vmem:[#allocation3 + $0x8] sm:$0xff] %vm793_vm6, %v9660_v36 }
 0x372   : > { %v2489_v18 = vsel %vm337_vm2, %v2480_v24, %v9574_v43  ;;  %v2488_v3 = vsel %vm337_vm2, %v9561_v34, %v2478_v7  ;;  %2502 = vst.msk [vmem:[#allocation3 + $0x768] sm:$0xff] %vm337_vm2, %v2478_v7  ;;  %v11850_v43 = vmax.f32 %v9286_v47, 0.0  ;;  %v3100_v34 = vadd.f32 %v3099_v14, %v9617_v27  ;;  %v2690_v24 = vld [vmem:[#allocation3 + $0x530] sm:$0xff] }
 0x373   : > { %2503 = vst.msk [vmem:[#allocation3 + $0x798] sm:$0xff] %vm2046_vm12, %v2489_v18  ;;  %3367 = vmatpush.msra.mxu3 %v11849_v17  ;;  %3280 = vmatpush.msra.mxu2 %v2718_v51  ;;  %v3178_v14 = vadd.f32 %v3177_v13, %v9589_v5  ;;  %v2683_v13 = vld [vmem:[#allocation3 + $0x4f8] sm:$0xff] }
 0x374   : > { %2501 = vst.msk [vmem:[#allocation3 + $0x760] sm:$0xff] %vm2046_vm12, %v2488_v3  ;;  %v3157_v26 = vpop.f32.mrf.mxu3  ;;  %v3180_v28 = vpop.f32.mrf.mxu2  ;;  %v2676_v3 = vld [vmem:[#allocation3 + $0x4c0] sm:$0xff] }
 0x375   : > { %2509 = vst.msk [vmem:[#allocation3 + $0x768] sm:$0xff] %vm2507_vm7, %v11848_v22  ;;  %3368 = vmatpush.msra.mxu3 %v11850_v43  ;;  %3281 = vmatpush.msra.mxu2 %v2711_v29  ;;  %v9671_v0 = vld [vmem:[#allocation2 + $0xc0] sm:$0xff]  ;;  %v3207_v18 = vadd.f32 %v3206_v57, %v3178_v14  ;;  %v3209_v29 = vpop.f32.mrf.mxu0 }
 0x376   : > { %v3967_v63 = vld [vmem:[#allocation2 + $0xc8] sm:$0xff]  ;;  %v3468_v44 = vmax.f32 %v9671_v0, 0.0 }
 0x377   : > { %3369 = vmatpush.msra.mxu3 %v11851_v20  ;;  %3282 = vmatpush.msra.mxu2 %v2704_v12  ;;  %v9678_v53 = vmax.f32 %v3967_v63, 0.0 }
 0x378   : > { %v3128_v47 = vpop.f32.mrf.mxu1 }
 0x379   : > { %v3129_v35 = vadd.f32 %v3128_v47, %v3100_v34  ;;  %3370 = vmatpush.msra.mxu3 %v11852_v56  ;;  %v2486_v2 = vpop.permute.xlu1 %2485  ;;  %3283 = vmatpush.msra.mxu2 %v2697_v52  ;;  %v2484_v51 = vpop.permute.xlu0 %2483  ;;  %3477 = vst.msk [vmem:[#allocation3 + $0xb0] sm:$0xff] %vm793_vm6, %v9678_v53 }
 0x37a   : > { %2506 = vst.msk [vmem:[#allocation3 + $0x7d8] sm:$0xff] %vm337_vm2, %v2486_v2  ;;  %v2490_v30 = vsel %vm337_vm2, %v2484_v51, %v2486_v2  ;;  %v11855_v51 = vld [vmem:[#allocation20_spill] sm:$0xff] }
 0x37b   : > { %2511 = vst.msk [vmem:[#allocation3 + $0x7d8] sm:$0xff] %vm2507_vm7, %v11848_v22  ;;  %3371 = vmatpush.msra.mxu3 %v9567_v16  ;;  %3284 = vmatpush.msra.mxu2 %v2690_v24  ;;  %v9690_v7 = vadd.f32 %v3157_v26, %v3129_v35  ;;  %v2669_v16 = vld [vmem:[#allocation3 + $0x488] sm:$0xff] }
 0x37c   : > { %2505 = vst.msk [vmem:[#allocation3 + $0x7d0] sm:$0xff] %vm2046_vm12, %v2490_v30 }
 0x37d   : > { %3372 = vmatpush.msra.mxu3 %v9556_v61  ;;  %3285 = vmatpush.msra.mxu2 %v2683_v13  ;;  %3445 = vst [vmem:[#allocation2 + $0xd8] sm:$0xff] %v9690_v7  ;;  %v3212_v2 = vpop.f32.mrf.mxu0 }
 0x37f   : > { %3373 = vmatpush.msra.mxu3 %v9539_v41  ;;  %3286 = vmatpush.msra.mxu2 %v2676_v3  ;;  %v2641_v3 = vld [vmem:[#allocation3 + $0x3a8] sm:$0xff] }
 0x380   : > { %v3235_v17 = vpop.f32.mrf.mxu1 }
 0x381   : > { %v3236_v12 = vadd.f32 %v3235_v17, %v3207_v18  ;;  %3374 = vmatpush.msra.mxu3 %v9544_v1  ;;  %v9697_v43 = vpop.permute.xlu1 %2792  ;;  %3287 = vmatpush.msra.mxu2 %v2669_v16  ;;  %v9699_v34 = vpop.permute.xlu0 %2787  ;;  %v11856_v18 = vld [vmem:[#allocation17_spill] sm:$0xff] }
 0x382   : > { %v2836_v61 = vadd.f32 %v9441_v33, %v9697_v43  ;;  %v2923_v57 = vadd.f32 %v9465_v31, %v9697_v43  ;;  %v3010_v41 = vadd.f32 %v9559_v15, %v9697_v43  ;;  %v3097_v52 = vadd.f32 %v9598_v38, %v9697_v43 }
 0x383   : > { %3425 = vst [vmem:[#allocation2 + $0x20] sm:$0xff] %v3236_v12  ;;  %v2833_v1 = vadd.f32 %v9408_v21, %v9699_v34  ;;  %v2920_v63 = vadd.f32 %v9447_v42, %v9699_v34  ;;  %v3007_v20 = vadd.f32 %v9546_v60, %v9699_v34  ;;  %v3094_v33 = vadd.f32 %v9576_v23, %v9699_v34  ;;  %v2774_v31 = vld [vmem:[#allocation3 + $0x7d0] sm:$0xff]  ;;  %v3183_v60 = vpop.f32.mrf.mxu2  ;;  %v2753_v12 = vld [vmem:[#allocation3 + $0x728] sm:$0xff] }
 0x384   : > { %v2865_v47 = vadd.f32 %v9472_v11, %v2836_v61  ;;  %v2952_v15 = vadd.f32 %v9509_v55, %v2923_v57  ;;  %v3039_v38 = vadd.f32 %v9551_v37, %v3010_v41  ;;  %v3126_v26 = vadd.f32 %v9653_v62, %v3097_v52  ;;  %3375 = vmatpush.msra.mxu3 %v9522_v19  ;;  %v2662_v21 = vld [vmem:[#allocation3 + $0x450] sm:$0xff]  ;;  %v11853_v62 = vld [vmem:[#allocation18_spill] sm:$0xff]  ;;  %v2775_v61 = vld [vmem:[#allocation3 + $0x7d8] sm:$0xff] }
 0x385   : > { %v2862_v42 = vadd.f32 %v9453_v59, %v2833_v1  ;;  %v2949_v14 = vadd.f32 %v9484_v49, %v2920_v63  ;;  %3288 = vmatpush.msra.mxu2 %v2662_v21  ;;  %v3036_v55 = vadd.f32 %v9529_v58, %v3007_v20  ;;  %3317 = vmatpush.msra.mxu0 %v2774_v31  ;;  %v11857_v57 = vld [vmem:[#allocation13_spill] sm:$0xff]  ;;  %v2761_v20 = vld [vmem:[#allocation3 + $0x768] sm:$0xff] }
 0x386   : > { %v2894_v23 = vadd.f32 %v9429_v45, %v2865_v47  ;;  %v9726_v35 = vadd.f32 %v9525_v39, %v2952_v15  ;;  %v9729_v11 = vadd.f32 %v9587_v9, %v3039_v38  ;;  %v9733_v19 = vadd.f32 %v9649_v10, %v3126_v26  ;;  %3376 = vmatpush.msra.mxu3 %v11853_v62  ;;  %v2655_v45 = vld [vmem:[#allocation3 + $0x418] sm:$0xff]  ;;  %v11854_v10 = vld [vmem:[#allocation19_spill] sm:$0xff]  ;;  %v2768_v41 = vld [vmem:[#allocation3 + $0x7a0] sm:$0xff] }
 0x387   : > { %v2891_v59 = vadd.f32 %v9402_v4, %v2862_v42  ;;  %v2978_v49 = vadd.f32 %v9494_v40, %v2949_v14  ;;  %v3123_v37 = vadd.f32 %v9621_v50, %v3094_v33  ;;  %v2767_v39 = vld [vmem:[#allocation3 + $0x798] sm:$0xff]  ;;  %3289 = vmatpush.msra.mxu2 %v2655_v45  ;;  %v3181_v9 = vadd.f32 %v3180_v28, %v9699_v34  ;;  %v2648_v4 = vld [vmem:[#allocation3 + $0x3e0] sm:$0xff]  ;;  %v3215_v14 = vpop.f32.mrf.mxu0 }
 0x388   : > { %3435 = vst [vmem:[#allocation2 + $0x80] sm:$0xff] %v2894_v23  ;;  %3318 = vmatpush.msra.mxu0 %v2767_v39  ;;  %v3238_v58 = vpop.f32.mrf.mxu1  ;;  %v9740_v56 = vmax.f32 %v2894_v23, 0.0  ;;  %3377 = vmatpush.msra.mxu3 %v11854_v10  ;;  %v2760_v40 = vld [vmem:[#allocation3 + $0x760] sm:$0xff]  ;;  %v3184_v50 = vadd.f32 %v3183_v60, %v9697_v43  ;;  %v9747_v30 = vadd.f32 %v11855_v51, %v3036_v55  ;;  %v9772_v15 = vmax.f32 %v9644_v32, 0.0  ;;  %v2754_v32 = vld [vmem:[#allocation3 + $0x730] sm:$0xff] }
 0x389   : > { %3436 = vst [vmem:[#allocation2 + $0x88] sm:$0xff] %v9726_v35  ;;  %v3210_v24 = vadd.f32 %v3209_v29, %v3181_v9  ;;  %3290 = vmatpush.msra.mxu2 %v2648_v4  ;;  %v9749_v28 = vmax.f32 %v2891_v59, 0.0  ;;  %v9753_v13 = vadd.f32 %v9611_v25, %v3123_v37  ;;  %v9758_v17 = vmax.f32 %v2978_v49, 0.0  ;;  %v7357_v29 = vld [vmem:[#allocation7 + $0x8] sm:$0xff]  ;;  %v7358_v60 = vld [vmem:[#allocation7 + $0x20] sm:$0xff]  ;;  %v11859_v39 = vld [vmem:[#allocation15_spill] sm:$0xff] }
 0x38a   : > { %3437 = vst [vmem:[#allocation2 + $0x90] sm:$0xff] %v9729_v11  ;;  %3319 = vmatpush.msra.mxu0 %v2760_v40  ;;  %3378 = vmatpush.msra.mxu3 %v11856_v18  ;;  %v3213_v25 = vadd.f32 %v3212_v2, %v3184_v50  ;;  %v9777_v26 = vmax.f32 %v9726_v35, 0.0  ;;  %v9788_v35 = vmax.f32 %v9641_v48, 0.0  ;;  %v7359_v48 = vld [vmem:[#allocation7 + $0x38] sm:$0xff]  ;;  %v7360_v9 = vld [vmem:[#allocation7 + $0x50] sm:$0xff] }
 0x38b   : > { %3438 = vst [vmem:[#allocation2 + $0x98] sm:$0xff] %v9733_v19  ;;  %3510 = vrot.lane.b32.xlu2 %v9740_v56, %s7509_s18  ;;  %v3239_v16 = vadd.f32 %v3238_v58, %v3210_v24  ;;  %3379 = vmatmul.f32.vlgmr.msra.gmra.mxu3 %v7357_v29  ;;  %v3186_v1 = vpop.f32.mrf.mxu2  ;;  %v11860_v58 = vld [vmem:[#allocation16_spill] sm:$0xff]  ;;  %v7361_v10 = vld [vmem:[#allocation7 + $0x10] sm:$0xff] }
 0x38c   : > { %3428 = vst [vmem:[#allocation2 + $0x40] sm:$0xff] %v2891_v59  ;;  %3291 = vmatpush.msra.mxu2 %v2641_v3  ;;  %3320 = vmatpush.msra.mxu0 %v2753_v12  ;;  %v3187_v21 = vadd.f32 %v3186_v1, %v9617_v27 }
 0x38d   : > { %3429 = vst [vmem:[#allocation2 + $0x48] sm:$0xff] %v2978_v49  ;;  %3292 = vmatmul.f32.vlgmr.msra.gmra.mxu2 %v7357_v29  ;;  %7169 = vmatmul.msk.f32.vlgmr.msra.gmra.mxu0 %vm1423_vm15, %v11857_v57  ;;  %v11858_v49 = vld [vmem:[#allocation14_spill] sm:$0xff] }
 0x38e   : > { %3430 = vst [vmem:[#allocation2 + $0x50] sm:$0xff] %v9747_v30  ;;  %3506 = vrot.lane.b32.xlu0 %v9749_v28, %s7509_s18  ;;  %3508 = vrot.lane.b32.xlu1 %v9758_v17, %s7509_s18  ;;  %v3216_v37 = vadd.f32 %v3215_v14, %v3187_v21 }
 0x38f   : > { %3431 = vst [vmem:[#allocation2 + $0x58] sm:$0xff] %v9753_v13  ;;  %3404 = vmatpush.msrb.mxu2 %v2775_v61  ;;  %v9768_v52 = vld [vmem:[#allocation2 + $0x80] sm:$0xff] }
 0x390   : > { %3432 = vst [vmem:[#allocation2 + $0x60] sm:$0xff] %v3239_v16  ;;  %v3241_v63 = vpop.f32.mrf.mxu1  ;;  %v3466_v33 = vmax.f32 %v9768_v52, 0.0  ;;  %v4048_v31 = vld [vmem:[#allocation2 + $0x88] sm:$0xff] }
 0x391   : > { %v3242_v47 = vadd.f32 %v3241_v63, %v3213_v25  ;;  %3405 = vmatpush.msrb.mxu2 %v2768_v41  ;;  %v9774_v38 = vmax.f32 %v4048_v31, 0.0 }
 0x393   : > { %3439 = vst [vmem:[#allocation2 + $0xa0] sm:$0xff] %v3242_v47  ;;  %3516 = vrot.lane.b32.xlu2 %v9772_v15, %s7509_s18  ;;  %3406 = vmatpush.msrb.mxu2 %v2761_v20  ;;  %v9782_v42 = vld [vmem:[#allocation2 + $0x40] sm:$0xff] }
 0x394   : > { %3382 = vmatmul.f32.gmra.mxu3 %v7358_v60  ;;  %v3464_v23 = vmax.f32 %v9782_v42, 0.0  ;;  %v4129_v55 = vld [vmem:[#allocation2 + $0x48] sm:$0xff]  ;;  %3475 = vst.msk [vmem:[#allocation3 + $0x78] sm:$0xff] %vm793_vm6, %v9774_v38 }
 0x395   : > { %3295 = vmatmul.f32.gmra.mxu2 %v7358_v60  ;;  %v9790_v59 = vmax.f32 %v4129_v55, 0.0  ;;  %7170 = vmatmul.msk.f32.gmra.mxu0 %vm1423_vm15, %v11858_v49 }
 0x396   : > { %3512 = vrot.lane.b32.xlu0 %v9777_v26, %s7509_s18  ;;  %3514 = vrot.lane.b32.xlu1 %v9788_v35, %s7509_s18 }
 0x397   : > { %3407 = vmatpush.msrb.mxu2 %v2754_v32  ;;  %3473 = vst.msk [vmem:[#allocation3 + $0x40] sm:$0xff] %vm793_vm6, %v9790_v59 }
 0x398   : > { %v3244_v62 = vpop.f32.mrf.mxu1 }
 0x399   : > { %v3245_v45 = vadd.f32 %v3244_v62, %v3216_v37 }
 0x39b   : > { %3446 = vst [vmem:[#allocation2 + $0xe0] sm:$0xff] %v3245_v45  ;;  %3566 = vrot.lane.b32.xlu2 %v9749_v28, %s7510_s23 }
 0x39c   : > { %3385 = vmatmul.f32.gmra.mxu3 %v7359_v48 }
 0x39d   : > { %3298 = vmatmul.f32.gmra.mxu2 %v7359_v48  ;;  %7171 = vmatmul.msk.f32.gmra.mxu0 %vm1423_vm15, %v11859_v39 }
 0x39e   : > { %3562 = vrot.lane.b32.xlu0 %v9615_v8, %s7510_s23  ;;  %3564 = vrot.lane.b32.xlu1 %v9619_v46, %s7510_s23 }
 0x3a3   : > { %3572 = vrot.lane.b32.xlu2 %v9777_v26, %s7510_s23 }
 0x3a4   : > { %3388 = vmatmul.f32.gmra.mxu3 %v7360_v9 }
 0x3a5   : > { %3301 = vmatmul.f32.gmra.mxu2 %v7360_v9  ;;  %7172 = vmatmul.msk.f32.gmra.mxu0 %vm1423_vm15, %v11860_v58 }
 0x3a6   : > { %3568 = vrot.lane.b32.xlu0 %v9758_v17, %s7510_s23  ;;  %3570 = vrot.lane.b32.xlu1 %v9740_v56, %s7510_s23 }
 0x3ab   : > { %3622 = vrot.lane.b32.xlu2 %v9615_v8, %s7511_s17 }
 0x3ad   : > { %7173 = vmatmul.msk.f32.vlgmr.msrb.gmra.mxu2 %vm1423_vm15, %v7361_v10 }
 0x3ae   : > { %3574 = vrot.lane.b32.xlu0 %v9788_v35, %s7510_s23  ;;  %3576 = vrot.lane.b32.xlu1 %v9772_v15, %s7510_s23 }
 0x3b3   : > { %3628 = vrot.lane.b32.xlu2 %v9758_v17, %s7511_s17 }
 0x3b5   : > { %7174 = vmatmul.msk.f32.gmra.mxu2 %vm1423_vm15, %v11858_v49 }
 0x3b6   : > { %3624 = vrot.lane.b32.xlu0 %v9619_v46, %s7511_s17  ;;  %3626 = vrot.lane.b32.xlu1 %v9749_v28, %s7511_s17 }
 0x3bb   : > { %3634 = vrot.lane.b32.xlu2 %v9788_v35, %s7511_s17 }
 0x3bd   : > { %7175 = vmatmul.msk.f32.gmra.mxu2 %vm1423_vm15, %v11859_v39 }
 0x3be   : > { %3630 = vrot.lane.b32.xlu0 %v9740_v56, %s7511_s17  ;;  %3632 = vrot.lane.b32.xlu1 %v9777_v26, %s7511_s17 }
 0x3c3   : > { %3684 = vrot.lane.b32.xlu2 %v9619_v46, %s7512_s21  ;;  %v3505_v4 = vpop.permute.xlu2 %3504 }
 0x3c4   : > { %3531 = vst.msk [vmem:[#allocation3 + $0xe8] sm:$0xff] %vm793_vm6, %v3505_v4 }
 0x3c5   : > { %7176 = vmatmul.msk.f32.gmra.mxu2 %vm1423_vm15, %v11860_v58 }
 0x3c6   : > { %3636 = vrot.lane.b32.xlu0 %v9772_v15, %s7511_s17  ;;  %3682 = vrot.lane.b32.xlu1 %v9615_v8, %s7512_s21  ;;  %s11862_s17 = smov 63  }
 0x3cb   : > { %3690 = vrot.lane.b32.xlu2 %v9740_v56, %s7512_s21 }
 0x3cc   : > { %v3264_v3 = vpop.f32.mrf.mxu3 }
 0x3cd   : > { %v3265_v47 = vadd.f32 %v3264_v3, %v9589_v5 }
 0x3ce   : > { %3686 = vrot.lane.b32.xlu0 %v9749_v28, %s7512_s21  ;;  %3688 = vrot.lane.b32.xlu1 %v9758_v17, %s7512_s21 }
 0x3d3   : > { %3696 = vrot.lane.b32.xlu2 %v9772_v15, %s7512_s21 }
 0x3d4   : > { %v3267_v25 = vpop.f32.mrf.mxu3 }
 0x3d5   : > { %v3268_v48 = vadd.f32 %v3267_v25, %v9699_v34 }
 0x3d6   : > { %3692 = vrot.lane.b32.xlu0 %v9777_v26, %s7512_s21  ;;  %3694 = vrot.lane.b32.xlu1 %v9788_v35, %s7512_s21  ;;  %s11869_s21 = smov 62  }
 0x3da   : > { %v3503_v40 = vpop.permute.xlu1 %3502 }
 0x3db   : > { %3746 = vrot.lane.b32.xlu2 %v9749_v28, %s7513_s22  ;;  %v9863_v50 = vsel %vm276_vm3, %v3503_v40, %v3505_v4 }
 0x3dc   : > { %v3270_v55 = vpop.f32.mrf.mxu3 }
 0x3de   : > { %3742 = vrot.lane.b32.xlu0 %v9615_v8, %s7513_s22  ;;  %3744 = vrot.lane.b32.xlu1 %v9619_v46, %s7513_s22 }
 0x3e3   : > { %3752 = vrot.lane.b32.xlu2 %v9777_v26, %s7513_s22 }
 0x3e5   : > { %v3511_v2 = vpop.permute.xlu2 %3510 }
 0x3e6   : > { %3748 = vrot.lane.b32.xlu0 %v9758_v17, %s7513_s22  ;;  %3750 = vrot.lane.b32.xlu1 %v9740_v56, %s7513_s22 }
 0x3eb   : > { %3802 = vrot.lane.b32.xlu2 %v9615_v8, %s7514_s24 }
 0x3ed   : > { %v3517_v51 = vpop.permute.xlu2 %3516 }
 0x3ee   : > { %3754 = vrot.lane.b32.xlu0 %v9788_v35, %s7513_s22  ;;  %3537 = vst.msk [vmem:[#allocation3 + $0x190] sm:$0xff] %vm793_vm6, %v3517_v51  ;;  %3756 = vrot.lane.b32.xlu1 %v9772_v15, %s7513_s22  ;;  %s11890_s22 = smov 48  }
 0x3f3   : > { %3808 = vrot.lane.b32.xlu2 %v9758_v17, %s7514_s24 }
 0x3f5   : > { %v3567_v24 = vpop.permute.xlu2 %3566 }
 0x3f6   : > { %3804 = vrot.lane.b32.xlu0 %v9619_v46, %s7514_s24  ;;  %3806 = vrot.lane.b32.xlu1 %v9749_v28, %s7514_s24 }
 0x3fb   : > { %3814 = vrot.lane.b32.xlu2 %v9788_v35, %s7514_s24 }
 0x3fd   : > { %v3573_v18 = vpop.permute.xlu2 %3572 }
 0x3fe   : > { %3810 = vrot.lane.b32.xlu0 %v9740_v56, %s7514_s24  ;;  %3595 = vst.msk [vmem:[#allocation3 + $0x238] sm:$0xff] %vm793_vm6, %v3573_v18  ;;  %3812 = vrot.lane.b32.xlu1 %v9777_v26, %s7514_s24 }
 0x400   : > { %v3507_v16 = vpop.permute.xlu0 %3506  ;;  %v3509_v29 = vpop.permute.xlu1 %3508 }
 0x401   : > { %v9896_v12 = vsel %vm276_vm3, %v3507_v16, %v3509_v29  ;;  %3533 = vst.msk [vmem:[#allocation3 + $0x120] sm:$0xff] %vm793_vm6, %v3509_v29 }
 0x403   : > { %3864 = vrot.lane.b32.xlu2 %v9619_v46, %s7515_s27 }
 0x405   : > { %v9901_v61 = vpop.permute.xlu2 %3622 }
 0x406   : > { %3816 = vrot.lane.b32.xlu0 %v9772_v15, %s7514_s24  ;;  %3862 = vrot.lane.b32.xlu1 %v9615_v8, %s7515_s27 }
 0x408   : > { %v3513_v57 = vpop.permute.xlu0 %3512  ;;  %v3515_v1 = vpop.permute.xlu1 %3514 }
 0x409   : > { %v9908_v41 = vsel %vm276_vm3, %v3511_v2, %v3513_v57  ;;  %3535 = vst.msk [vmem:[#allocation3 + $0x158] sm:$0xff] %vm793_vm6, %v3513_v57  ;;  %v9912_v63 = vsel %vm276_vm3, %v3515_v1, %v3517_v51  ;;  %v3273_v51 = vpop.f32.mrf.mxu3  ;;  %v3351_v1 = vpop.f32.mrf.mxu1 }
 0x40a   : > { %v3322_v20 = vpop.f32.mrf.mxu0 }
 0x40b   : > { %3870 = vrot.lane.b32.xlu2 %v9740_v56, %s7515_s27 }
 0x40d   : > { %v3629_v31 = vpop.permute.xlu2 %3628 }
 0x40e   : > { %3866 = vrot.lane.b32.xlu0 %v9749_v28, %s7515_s27  ;;  %3653 = vst.msk [vmem:[#allocation3 + $0x2e0] sm:$0xff] %vm793_vm6, %v3629_v31  ;;  %3868 = vrot.lane.b32.xlu1 %v9758_v17, %s7515_s27 }
 0x410   : > { %v3293_v21 = vpop.f32.mrf.mxu2  ;;  %v3563_v14 = vpop.permute.xlu0 %3562 }
 0x411   : > { %v3294_v60 = vadd.f32 %v3293_v21, %v3265_v47  ;;  %v3565_v32 = vpop.permute.xlu1 %3564 }
 0x412   : > { %v9923_v49 = vsel %vm337_vm2, %v3563_v14, %v3565_v32  ;;  %3591 = vst.msk [vmem:[#allocation3 + $0x1c8] sm:$0xff] %vm793_vm6, %v3565_v32  ;;  %v3325_v62 = vpop.f32.mrf.mxu0 }
 0x413   : > { %v3323_v37 = vadd.f32 %v3322_v20, %v3294_v60  ;;  %3876 = vrot.lane.b32.xlu2 %v9772_v15, %s7515_s27 }
 0x415   : > { %3426 = vst [vmem:[#allocation2 + $0x28] sm:$0xff] %v3323_v37  ;;  %v9928_v45 = vpop.permute.xlu2 %3634 }
 0x416   : > { %3872 = vrot.lane.b32.xlu0 %v9777_v26, %s7515_s27  ;;  %3874 = vrot.lane.b32.xlu1 %v9788_v35, %s7515_s27 }
 0x418   : > { %v3296_v39 = vpop.f32.mrf.mxu2  ;;  %v3569_v9 = vpop.permute.xlu0 %3568 }
 0x419   : > { %v3297_v58 = vadd.f32 %v3296_v39, %v3268_v48  ;;  %v9936_v10 = vsel %vm337_vm2, %v3567_v24, %v3569_v9  ;;  %3593 = vst.msk [vmem:[#allocation3 + $0x200] sm:$0xff] %vm793_vm6, %v3569_v9  ;;  %v3571_v4 = vpop.permute.xlu1 %3570  ;;  %v3271_v24 = vadd.f32 %v3270_v55, %v9697_v43  ;;  %v3352_v39 = vadd.f32 %v3351_v1, %v9589_v5  ;;  %v3354_v9 = vpop.f32.mrf.mxu1  ;;  %v3959_v5 = vld [vmem:[#allocation2 + $0x10] sm:$0xff] }
 0x41a   : > { %v9940_v40 = vsel %vm337_vm2, %v3571_v4, %v3573_v18  ;;  %v3328_v3 = vpop.f32.mrf.mxu0 }
 0x41b   : > { %v3326_v2 = vadd.f32 %v3325_v62, %v3297_v58  ;;  %3926 = vrot.lane.b32.xlu2 %v9749_v28, %s7516_s28 }
 0x41d   : > { %3433 = vst [vmem:[#allocation2 + $0x68] sm:$0xff] %v3326_v2  ;;  %v9944_v16 = vpop.permute.xlu2 %3684 }
 0x41e   : > { %3922 = vrot.lane.b32.xlu0 %v9615_v8, %s7516_s28  ;;  %3711 = vst.msk [vmem:[#allocation3 + $0x388] sm:$0xff] %vm793_vm6, %v9944_v16  ;;  %3924 = vrot.lane.b32.xlu1 %v9619_v46, %s7516_s28  ;;  %v3380_v8 = vpop.f32.mrf.mxu3  ;;  %v3274_v46 = vadd.f32 %v3273_v51, %v9617_v27 }
 0x420   : > { %v3299_v18 = vpop.f32.mrf.mxu2  ;;  %v3575_v29 = vpop.permute.xlu0 %3574 }
 0x421   : > { %v3300_v25 = vadd.f32 %v3299_v18, %v3271_v24  ;;  %v3577_v28 = vpop.permute.xlu1 %3576  ;;  %v3960_v24 = vld [vmem:[#allocation2 + $0x18] sm:$0xff]  ;;  %v9985_v18 = vmax.f32 %v3959_v5, 0.0 }
 0x422   : > { %v9954_v57 = vsel %vm337_vm2, %v3575_v29, %v3577_v28  ;;  %3597 = vst.msk [vmem:[#allocation3 + $0x270] sm:$0xff] %vm793_vm6, %v3577_v28  ;;  %v3331_v21 = vpop.f32.mrf.mxu0  ;;  %v3355_v29 = vadd.f32 %v3354_v9, %v9699_v34  ;;  %v3357_v28 = vpop.f32.mrf.mxu1 }
 0x423   : > { %v3329_v20 = vadd.f32 %v3328_v3, %v3300_v25  ;;  %3932 = vrot.lane.b32.xlu2 %v9777_v26, %s7516_s28 }
 0x425   : > { %3440 = vst [vmem:[#allocation2 + $0xa8] sm:$0xff] %v3329_v20  ;;  %v9959_v47 = vpop.permute.xlu2 %3690 }
 0x426   : > { %3928 = vrot.lane.b32.xlu0 %v9758_v17, %s7516_s28  ;;  %3930 = vrot.lane.b32.xlu1 %v9740_v56, %s7516_s28  ;;  %v3383_v58 = vpop.f32.mrf.mxu3 }
 0x427   : > { %v3384_v1 = vadd.f32 %v3383_v58, %v3355_v29 }
 0x428   : > { %v3302_v14 = vpop.f32.mrf.mxu2  ;;  %v3625_v60 = vpop.permute.xlu0 %3624 }
 0x429   : > { %v3303_v32 = vadd.f32 %v3302_v14, %v3274_v46  ;;  %v3638_v55 = vsel %vm398_vm1, %v9901_v61, %v3625_v60  ;;  %3651 = vst.msk [vmem:[#allocation3 + $0x2a8] sm:$0xff] %vm793_vm6, %v3625_v60  ;;  %v3627_v37 = vpop.permute.xlu1 %3626  ;;  %v3381_v61 = vadd.f32 %v3380_v8, %v3352_v39 }
 0x42a   : > { %v3639_v62 = vsel %vm398_vm1, %v3627_v37, %v3629_v31  ;;  %v3974_v37 = vmax.f32 %v9747_v30, 0.0  ;;  %v3360_v58 = vpop.f32.mrf.mxu1 }
 0x42b   : > { %v3332_v48 = vadd.f32 %v3331_v21, %v3303_v32  ;;  %3994 = vrot.lane.b32.xlu2 %v9660_v36, %s7514_s24 }
 0x42d   : > { %3447 = vst [vmem:[#allocation2 + $0xe8] sm:$0xff] %v3332_v48  ;;  %v9973_v56 = vpop.permute.xlu2 %3696  ;;  %v3358_v48 = vadd.f32 %v3357_v28, %v9697_v43 }
 0x42e   : > { %3934 = vrot.lane.b32.xlu0 %v9788_v35, %s7516_s28  ;;  %3717 = vst.msk [vmem:[#allocation3 + $0x430] sm:$0xff] %vm793_vm6, %v9973_v56  ;;  %3936 = vrot.lane.b32.xlu1 %v9772_v15, %s7516_s28  ;;  %v9988_v15 = vmax.f32 %v3960_v24, 0.0  ;;  %v3386_v14 = vpop.f32.mrf.mxu3 }
 0x430   : > { %v3409_v31 = vpop.f32.mrf.mxu2  ;;  %v3631_v4 = vpop.permute.xlu0 %3630 }
 0x431   : > { %v3410_v2 = vadd.f32 %v3409_v31, %v3381_v61  ;;  %v3633_v51 = vpop.permute.xlu1 %3632 }
 0x432   : > { %v3640_v3 = vsel %vm398_vm1, %v3631_v4, %v3633_v51  ;;  %3655 = vst.msk [vmem:[#allocation3 + $0x318] sm:$0xff] %vm793_vm6, %v3633_v51  ;;  %v3978_v51 = vmax.f32 %v9733_v19, 0.0 }
 0x433   : > { %3427 = vst [vmem:[#allocation2 + $0x30] sm:$0xff] %v3410_v2  ;;  %v5743_v35 = vmax.f32 %v3410_v2, 0.0  ;;  %4000 = vrot.lane.b32.xlu2 %v9758_v17, %s7514_s24  ;;  %v3977_v2 = vmax.f32 %v9729_v11, 0.0 }
 0x435   : > { %5751 = vst [vmem:[#allocation3 + $0x568] sm:$0xff] %v5743_v35  ;;  %v9990_v25 = vpop.permute.xlu2 %3746 }
 0x436   : > { %3996 = vrot.lane.b32.xlu0 %v9985_v18, %s7514_s24  ;;  %3998 = vrot.lane.b32.xlu1 %v9988_v15, %s7514_s24  ;;  %v3389_v4 = vpop.f32.mrf.mxu3 }
 0x438   : > { %v3412_v20 = vpop.f32.mrf.mxu2  ;;  %v3637_v8 = vpop.permute.xlu0 %3636 }
 0x439   : > { %v3413_v46 = vadd.f32 %v3412_v20, %v3384_v1  ;;  %v3641_v21 = vsel %vm398_vm1, %v9928_v45, %v3637_v8  ;;  %3657 = vst.msk [vmem:[#allocation3 + $0x350] sm:$0xff] %vm793_vm6, %v3637_v8  ;;  %v3683_v34 = vpop.permute.xlu1 %3682  ;;  %v3975_v45 = vmax.f32 %v9753_v13, 0.0  ;;  %v4053_v8 = vld [vmem:[#allocation2 + $0xd8] sm:$0xff] }
 0x43a   : > { %v10001_v60 = vsel %vm459_vm9, %v3683_v34, %v9944_v16  ;;  %6192 = vmatpush.msrb.mxu0 %v3641_v21  ;;  %v3387_v16 = vadd.f32 %v3386_v14, %v3358_v48 }
 0x43b   : > { %3434 = vst [vmem:[#allocation2 + $0x70] sm:$0xff] %v3413_v46  ;;  %v5745_v32 = vmax.f32 %v3413_v46, 0.0  ;;  %4006 = vrot.lane.b32.xlu2 %v9777_v26, %s7514_s24  ;;  %v10115_v46 = vmax.f32 %v4053_v8, 0.0 }
 0x43c   : > { %6193 = vmatpush.msrb.mxu0 %v3640_v3 }
 0x43d   : > { %5753 = vst [vmem:[#allocation3 + $0x5a0] sm:$0xff] %v5745_v32  ;;  %v10008_v39 = vpop.permute.xlu2 %3752 }
 0x43e   : > { %4002 = vrot.lane.b32.xlu0 %v3974_v37, %s7514_s24  ;;  %3775 = vst.msk [vmem:[#allocation3 + $0x4d8] sm:$0xff] %vm793_vm6, %v10008_v39  ;;  %6194 = vmatpush.msrb.mxu0 %v3639_v62 }
 0x43f   : > { %4004 = vrot.lane.b32.xlu1 %v3975_v45, %s7514_s24 }
 0x440   : > { %v3415_v26 = vpop.f32.mrf.mxu2  ;;  %v3687_v43 = vpop.permute.xlu0 %3686  ;;  %6195 = vmatpush.msrb.mxu0 %v3638_v55  ;;  %v3361_v55 = vadd.f32 %v3360_v58, %v9617_v27 }
 0x441   : > { %v3416_v9 = vadd.f32 %v3415_v26, %v3387_v16  ;;  %v3689_v61 = vpop.permute.xlu1 %3688  ;;  %v4130_v16 = vld [vmem:[#allocation2 + $0x50] sm:$0xff] }
 0x442   : > { %v10019_v31 = vsel %vm459_vm9, %v3687_v43, %v3689_v61  ;;  %3713 = vst.msk [vmem:[#allocation3 + $0x3c0] sm:$0xff] %vm793_vm6, %v3689_v61  ;;  %6196 = vmatpush.msrb.mxu0 %v9954_v57  ;;  %v3390_v57 = vadd.f32 %v3389_v4, %v3361_v55  ;;  %v4131_v43 = vld [vmem:[#allocation2 + $0x58] sm:$0xff] }
 0x443   : > { %3441 = vst [vmem:[#allocation2 + $0xb0] sm:$0xff] %v3416_v9  ;;  %v5747_v62 = vmax.f32 %v3416_v9, 0.0  ;;  %4012 = vrot.lane.b32.xlu2 %v9678_v53, %s7514_s24  ;;  %v10135_v9 = vmax.f32 %v4130_v16, 0.0  ;;  %v10137_v61 = vmax.f32 %v4131_v43, 0.0 }
 0x444   : > { %6197 = vmatpush.msrb.mxu0 %v9940_v40  ;;  %v3968_v40 = vld [vmem:[#allocation2 + $0xd0] sm:$0xff] }
 0x445   : > { %5755 = vst [vmem:[#allocation3 + $0x5d8] sm:$0xff] %v5747_v62  ;;  %v10029_v5 = vpop.permute.xlu2 %3802 }
 0x446   : > { %4008 = vrot.lane.b32.xlu0 %v3977_v2, %s7514_s24  ;;  %6198 = vmatpush.msrb.mxu0 %v9936_v10 }
 0x447   : > { %4010 = vrot.lane.b32.xlu1 %v3978_v51, %s7514_s24 }
 0x448   : > { %v3418_v3 = vpop.f32.mrf.mxu2  ;;  %v3693_v24 = vpop.permute.xlu0 %3692  ;;  %6199 = vmatpush.msrb.mxu0 %v9923_v49  ;;  %v10047_v49 = vmax.f32 %v3968_v40, 0.0 }
 0x449   : > { %v3419_v11 = vadd.f32 %v3418_v3, %v3390_v57  ;;  %v10037_v27 = vsel %vm459_vm9, %v9959_v47, %v3693_v24  ;;  %3715 = vst.msk [vmem:[#allocation3 + $0x3f8] sm:$0xff] %vm793_vm6, %v3693_v24  ;;  %v3695_v19 = vpop.permute.xlu1 %3694  ;;  %v3981_v47 = vmax.f32 %v9690_v7, 0.0 }
 0x44a   : > { %v10042_v35 = vsel %vm459_vm9, %v3695_v19, %v9973_v56  ;;  %6200 = vmatpush.msrb.mxu0 %v9912_v63 }
 0x44b   : > { %3448 = vst [vmem:[#allocation2 + $0xf0] sm:$0xff] %v3419_v11  ;;  %v5749_v10 = vmax.f32 %v3419_v11, 0.0  ;;  %4078 = vrot.lane.b32.xlu2 %v9660_v36, %s7515_s27 }
 0x44c   : > { %6201 = vmatpush.msrb.mxu0 %v9908_v41 }
 0x44d   : > { %5757 = vst [vmem:[#allocation3 + $0x610] sm:$0xff] %v5749_v10  ;;  %v3809_v29 = vpop.permute.xlu2 %3808 }
 0x44e   : > { %4014 = vrot.lane.b32.xlu0 %v10047_v49, %s7514_s24  ;;  %3833 = vst.msk [vmem:[#allocation3 + $0x580] sm:$0xff] %vm793_vm6, %v3809_v29  ;;  %6202 = vmatpush.msrb.mxu0 %v9896_v12 }
 0x44f   : > { %4016 = vrot.lane.b32.xlu1 %v3981_v47, %s7514_s24  ;;  %s11897_s24 = smov 47  }
 0x450   : > { %v3743_v63 = vpop.permute.xlu0 %3742  ;;  %6203 = vmatpush.msrb.mxu0 %v9863_v50 }
 0x451   : > { %v3745_v56 = vpop.permute.xlu1 %3744 }
 0x452   : > { %v10058_v28 = vsel %vm520_vm8, %v3743_v63, %v3745_v56  ;;  %3771 = vst.msk [vmem:[#allocation3 + $0x468] sm:$0xff] %vm793_vm6, %v3745_v56  ;;  %6204 = vmatpush.msrb.mxu0 %v3468_v44 }
 0x453   : > { %4084 = vrot.lane.b32.xlu2 %v9758_v17, %s7515_s27 }
 0x454   : > { %6205 = vmatpush.msrb.mxu0 %v3466_v33  ;;  %v4049_v33 = vld [vmem:[#allocation2 + $0x90] sm:$0xff] }
 0x455   : > { %v3815_v7 = vpop.permute.xlu2 %3814  ;;  %v10099_v30 = vmax.f32 %v4049_v33, 0.0 }
 0x456   : > { %4080 = vrot.lane.b32.xlu0 %v9985_v18, %s7515_s27  ;;  %6206 = vmatpush.msrb.mxu0 %v3464_v23  ;;  %v4050_v23 = vld [vmem:[#allocation2 + $0x98] sm:$0xff] }
 0x457   : > { %4082 = vrot.lane.b32.xlu1 %v9988_v15, %s7515_s27  ;;  %v10101_v12 = vmax.f32 %v4050_v23, 0.0 }
 0x458   : > { %v3749_v50 = vpop.permute.xlu0 %3748  ;;  %6207 = vmatpush.msrb.mxu0 %v3462_v6 }
 0x459   : > { %v10077_v0 = vsel %vm520_vm8, %v9990_v25, %v3749_v50  ;;  %3773 = vst.msk [vmem:[#allocation3 + $0x4a0] sm:$0xff] %vm793_vm6, %v3749_v50  ;;  %v3751_v44 = vpop.permute.xlu1 %3750 }
 0x45a   : > { %v10082_v17 = vsel %vm520_vm8, %v3751_v44, %v10008_v39 }
 0x45b   : > { %4090 = vrot.lane.b32.xlu2 %v9774_v38, %s7515_s27 }
 0x45d   : > { %v3865_v52 = vpop.permute.xlu2 %3864 }
 0x45e   : > { %4086 = vrot.lane.b32.xlu0 %v3974_v37, %s7515_s27  ;;  %3891 = vst.msk [vmem:[#allocation3 + $0x628] sm:$0xff] %vm793_vm6, %v3865_v52 }
 0x45f   : > { %4088 = vrot.lane.b32.xlu1 %v3975_v45, %s7515_s27 }
 0x460   : > { %v3755_v54 = vpop.permute.xlu0 %3754 }
 0x461   : > { %v3757_v6 = vpop.permute.xlu1 %3756 }
 0x462   : > { %v10094_v42 = vsel %vm520_vm8, %v3755_v54, %v3757_v6  ;;  %3777 = vst.msk [vmem:[#allocation3 + $0x510] sm:$0xff] %vm793_vm6, %v3757_v6 }
 0x463   : > { %4096 = vrot.lane.b32.xlu2 %v9678_v53, %s7515_s27 }
 0x465   : > { %v3871_v41 = vpop.permute.xlu2 %3870 }
 0x466   : > { %4092 = vrot.lane.b32.xlu0 %v10099_v30, %s7515_s27 }
 0x467   : > { %4094 = vrot.lane.b32.xlu1 %v10101_v12, %s7515_s27 }
 0x468   : > { %v3805_v13 = vpop.permute.xlu0 %3804 }
 0x469   : > { %v10109_v25 = vsel %vm228_vm0, %v10029_v5, %v3805_v13  ;;  %3831 = vst.msk [vmem:[#allocation3 + $0x548] sm:$0xff] %vm793_vm6, %v3805_v13  ;;  %v3807_v1 = vpop.permute.xlu1 %3806 }
 0x46a   : > { %v3819_v20 = vsel %vm228_vm0, %v3807_v1, %v3809_v29 }
 0x46b   : > { %4162 = vrot.lane.b32.xlu2 %v9660_v36, %s7516_s28 }
 0x46d   : > { %v3877_v21 = vpop.permute.xlu2 %3876 }
 0x46e   : > { %4098 = vrot.lane.b32.xlu0 %v10047_v49, %s7515_s27  ;;  %3897 = vst.msk [vmem:[#allocation3 + $0x6d0] sm:$0xff] %vm793_vm6, %v3877_v21 }
 0x46f   : > { %4100 = vrot.lane.b32.xlu1 %v10115_v46, %s7515_s27  ;;  %s11901_s27 = smov 46  }
 0x470   : > { %v3811_v34 = vpop.permute.xlu0 %3810 }
 0x471   : > { %v3813_v14 = vpop.permute.xlu1 %3812 }
 0x472   : > { %v3820_v32 = vsel %vm228_vm0, %v3811_v34, %v3813_v14  ;;  %3835 = vst.msk [vmem:[#allocation3 + $0x5b8] sm:$0xff] %vm793_vm6, %v3813_v14 }
 0x473   : > { %4168 = vrot.lane.b32.xlu2 %v9790_v59, %s7516_s28 }
 0x475   : > { %v3927_v37 = vpop.permute.xlu2 %3926 }
 0x476   : > { %4164 = vrot.lane.b32.xlu0 %v9985_v18, %s7516_s28 }
 0x477   : > { %4166 = vrot.lane.b32.xlu1 %v9988_v15, %s7516_s28 }
 0x478   : > { %v3817_v48 = vpop.permute.xlu0 %3816 }
 0x479   : > { %v3821_v45 = vsel %vm228_vm0, %v3815_v7, %v3817_v48  ;;  %3837 = vst.msk [vmem:[#allocation3 + $0x5f0] sm:$0xff] %vm793_vm6, %v3817_v48  ;;  %v3863_v39 = vpop.permute.xlu1 %3862 }
 0x47a   : > { %v3878_v26 = vsel %vm641_vm4, %v3863_v39, %v3865_v52 }
 0x47b   : > { %4174 = vrot.lane.b32.xlu2 %v9774_v38, %s7516_s28 }
 0x47d   : > { %v3933_v58 = vpop.permute.xlu2 %3932 }
 0x47e   : > { %4170 = vrot.lane.b32.xlu0 %v10135_v9, %s7516_s28  ;;  %3955 = vst.msk [vmem:[#allocation3 + $0x778] sm:$0xff] %vm793_vm6, %v3933_v58 }
 0x47f   : > { %4172 = vrot.lane.b32.xlu1 %v10137_v61, %s7516_s28 }
 0x480   : > { %v3867_v62 = vpop.permute.xlu0 %3866 }
 0x481   : > { %v3869_v4 = vpop.permute.xlu1 %3868 }
 0x482   : > { %v3879_v2 = vsel %vm641_vm4, %v3867_v62, %v3869_v4  ;;  %3893 = vst.msk [vmem:[#allocation3 + $0x660] sm:$0xff] %vm793_vm6, %v3869_v4 }
 0x483   : > { %4180 = vrot.lane.b32.xlu2 %v9678_v53, %s7516_s28 }
 0x485   : > { %v3995_v55 = vpop.permute.xlu2 %3994 }
 0x486   : > { %4176 = vrot.lane.b32.xlu0 %v10099_v30, %s7516_s28 }
 0x487   : > { %4178 = vrot.lane.b32.xlu1 %v10101_v12, %s7516_s28 }
 0x488   : > { %v3873_v51 = vpop.permute.xlu0 %3872 }
 0x489   : > { %v3880_v5 = vsel %vm641_vm4, %v3871_v41, %v3873_v51  ;;  %3895 = vst.msk [vmem:[#allocation3 + $0x698] sm:$0xff] %vm793_vm6, %v3873_v51  ;;  %v3875_v57 = vpop.permute.xlu1 %3874 }
 0x48a   : > { %v3881_v3 = vsel %vm641_vm4, %v3875_v57, %v3877_v21 }
 0x48b   : > { %4246 = vrot.lane.b32.xlu2 %v9660_v36, %s7517_s29  ;;  %6221 = vmatpush.msrb.mxu1 %v3881_v3 }
 0x48d   : > { %v4001_v24 = vpop.permute.xlu2 %4000  ;;  %6222 = vmatpush.msrb.mxu1 %v3880_v5 }
 0x48e   : > { %4182 = vrot.lane.b32.xlu0 %v10047_v49, %s7516_s28 }
 0x48f   : > { %4184 = vrot.lane.b32.xlu1 %v10115_v46, %s7516_s28  ;;  %6223 = vmatpush.msrb.mxu1 %v3879_v2  ;;  %s11908_s28 = smov 32  }
 0x490   : > { %v3923_v11 = vpop.permute.xlu0 %3922 }
 0x491   : > { %v3925_v19 = vpop.permute.xlu1 %3924  ;;  %6224 = vmatpush.msrb.mxu1 %v3878_v26 }
 0x492   : > { %v3938_v40 = vsel %vm707_vm5, %v3923_v11, %v3925_v19  ;;  %3951 = vst.msk [vmem:[#allocation3 + $0x708] sm:$0xff] %vm793_vm6, %v3925_v19 }
 0x493   : > { %4252 = vrot.lane.b32.xlu2 %v9790_v59, %s7517_s29  ;;  %6225 = vmatpush.msrb.mxu1 %v3821_v45 }
 0x495   : > { %v4007_v10 = vpop.permute.xlu2 %4006  ;;  %6226 = vmatpush.msrb.mxu1 %v3820_v32 }
 0x496   : > { %4248 = vrot.lane.b32.xlu0 %v9985_v18, %s7517_s29 }
 0x497   : > { %4250 = vrot.lane.b32.xlu1 %v9988_v15, %s7517_s29  ;;  %6227 = vmatpush.msrb.mxu1 %v3819_v20 }
 0x498   : > { %v3929_v47 = vpop.permute.xlu0 %3928 }
 0x499   : > { %v3939_v29 = vsel %vm707_vm5, %v3927_v37, %v3929_v47  ;;  %3953 = vst.msk [vmem:[#allocation3 + $0x740] sm:$0xff] %vm793_vm6, %v3929_v47  ;;  %v3931_v63 = vpop.permute.xlu1 %3930  ;;  %6228 = vmatpush.msrb.mxu1 %v10109_v25 }
 0x49a   : > { %v3940_v56 = vsel %vm707_vm5, %v3931_v63, %v3933_v58 }
 0x49b   : > { %4258 = vrot.lane.b32.xlu2 %v9774_v38, %s7517_s29  ;;  %6229 = vmatpush.msrb.mxu1 %v10094_v42 }
 0x49d   : > { %v4013_v7 = vpop.permute.xlu2 %4012  ;;  %6230 = vmatpush.msrb.mxu1 %v10082_v17 }
 0x49e   : > { %4254 = vrot.lane.b32.xlu0 %v10135_v9, %s7517_s29 }
 0x49f   : > { %4256 = vrot.lane.b32.xlu1 %v10137_v61, %s7517_s29  ;;  %6231 = vmatpush.msrb.mxu1 %v10077_v0 }
 0x4a0   : > { %v3935_v50 = vpop.permute.xlu0 %3934 }
 0x4a1   : > { %v3937_v44 = vpop.permute.xlu1 %3936  ;;  %6232 = vmatpush.msrb.mxu1 %v10058_v28 }
 0x4a2   : > { %v3941_v52 = vsel %vm707_vm5, %v3935_v50, %v3937_v44  ;;  %3957 = vst.msk [vmem:[#allocation3 + $0x7b0] sm:$0xff] %vm793_vm6, %v3937_v44 }
 0x4a3   : > { %4264 = vrot.lane.b32.xlu2 %v9678_v53, %s7517_s29  ;;  %6233 = vmatpush.msrb.mxu1 %v10042_v35 }
 0x4a4   : > { %6262 = vmatpush.msrb.mxu3 %v3941_v52 }
 0x4a5   : > { %v4079_v17 = vpop.permute.xlu2 %4078  ;;  %6234 = vmatpush.msrb.mxu1 %v10037_v27 }
 0x4a6   : > { %4260 = vrot.lane.b32.xlu0 %v10099_v30, %s7517_s29  ;;  %6263 = vmatpush.msrb.mxu3 %v3940_v56 }
 0x4a7   : > { %4262 = vrot.lane.b32.xlu1 %v10101_v12, %s7517_s29  ;;  %6235 = vmatpush.msrb.mxu1 %v10019_v31 }
 0x4a8   : > { %v3997_v28 = vpop.permute.xlu0 %3996  ;;  %6264 = vmatpush.msrb.mxu3 %v3939_v29 }
 0x4a9   : > { %v4018_v0 = vsel %vm228_vm0, %v3995_v55, %v3997_v28  ;;  %v3999_v54 = vpop.permute.xlu1 %3998  ;;  %6236 = vmatpush.msrb.mxu1 %v10001_v60 }
 0x4aa   : > { %4034 = vst.msk [vmem:[#allocation3 + $0x8] sm:$0xff] %vm1420_vm11, %v4018_v0  ;;  %v10198_v27 = vsel %vm228_vm0, %v3997_v28, %v3999_v54  ;;  %6265 = vmatpush.msrb.mxu3 %v3938_v40 }
 0x4ab   : > { %4330 = vrot.lane.b32.xlu2 %v9660_v36, %s7518_s30 }
 0x4ad   : > { %v4085_v35 = vpop.permute.xlu2 %4084 }
 0x4ae   : > { %4266 = vrot.lane.b32.xlu0 %v10047_v49, %s7517_s29 }
 0x4af   : > { %4268 = vrot.lane.b32.xlu1 %v10115_v46, %s7517_s29  ;;  %s11917_s29 = smov 31  }
 0x4b0   : > { %v4003_v31 = vpop.permute.xlu0 %4002 }
 0x4b1   : > { %v4020_v6 = vsel %vm228_vm0, %v4001_v24, %v4003_v31  ;;  %v4005_v60 = vpop.permute.xlu1 %4004 }
 0x4b2   : > { %4036 = vst.msk [vmem:[#allocation3 + $0x40] sm:$0xff] %vm1420_vm11, %v4020_v6  ;;  %v10209_v33 = vsel %vm228_vm0, %v4003_v31, %v4005_v60  ;;  %v4522_v31 = vld [vmem:[#allocation2 + $0x10] sm:$0xff] }
 0x4b3   : > { %4336 = vrot.lane.b32.xlu2 %v9790_v59, %s7518_s30  ;;  %v4530_v6 = vmax.f32 %v4522_v31, 0.0 }
 0x4b5   : > { %v4091_v42 = vpop.permute.xlu2 %4090 }
 0x4b6   : > { %4332 = vrot.lane.b32.xlu0 %v9985_v18, %s7518_s30 }
 0x4b7   : > { %4334 = vrot.lane.b32.xlu1 %v9988_v15, %s7518_s30 }
 0x4b8   : > { %v4009_v23 = vpop.permute.xlu0 %4008 }
 0x4b9   : > { %v4022_v41 = vsel %vm228_vm0, %v4007_v10, %v4009_v23  ;;  %v4011_v13 = vpop.permute.xlu1 %4010 }
 0x4ba   : > { %4038 = vst.msk [vmem:[#allocation3 + $0x78] sm:$0xff] %vm1420_vm11, %v4022_v41  ;;  %v10220_v25 = vsel %vm228_vm0, %v4009_v23, %v4011_v13 }
 0x4bb   : > { %4342 = vrot.lane.b32.xlu2 %v9774_v38, %s7518_s30 }
 0x4bd   : > { %v4097_v1 = vpop.permute.xlu2 %4096 }
 0x4be   : > { %4338 = vrot.lane.b32.xlu0 %v10135_v9, %s7518_s30 }
 0x4bf   : > { %4340 = vrot.lane.b32.xlu1 %v10137_v61, %s7518_s30 }
 0x4c0   : > { %v4015_v20 = vpop.permute.xlu0 %4014 }
 0x4c1   : > { %v4024_v8 = vsel %vm228_vm0, %v4013_v7, %v4015_v20  ;;  %v4017_v21 = vpop.permute.xlu1 %4016 }
 0x4c2   : > { %4040 = vst.msk [vmem:[#allocation3 + $0xb0] sm:$0xff] %vm1420_vm11, %v4024_v8  ;;  %v10231_v34 = vsel %vm228_vm0, %v4015_v20, %v4017_v21  ;;  %vm11863_vm0 = vcmask 654336  }
 0x4c3   : > { %4348 = vrot.lane.b32.xlu2 %v9678_v53, %s7518_s30  ;;  %vm11864_vm1 = vmmov %vm11863_vm0 }
 0x4c4   : > { %vm11867_vm8 = vmmov %vm11863_vm0 }
 0x4c5   : > { %v4163_v14 = vpop.permute.xlu2 %4162  ;;  %vm11868_vm9 = vmmov %vm11863_vm0 }
 0x4c6   : > { %4344 = vrot.lane.b32.xlu0 %v10099_v30, %s7518_s30  ;;  %vm11870_vm12 = vmmov %vm11863_vm0 }
 0x4c7   : > { %4346 = vrot.lane.b32.xlu1 %v10101_v12, %s7518_s30  ;;  %vm11871_vm7 = vmmov %vm11863_vm0 }
 0x4c8   : > { %v4081_v32 = vpop.permute.xlu0 %4080 }
 0x4c9   : > { %v4102_v37 = vsel %vm641_vm4, %v4079_v17, %v4081_v32  ;;  %v4083_v48 = vpop.permute.xlu1 %4082 }
 0x4ca   : > { %4118 = vst.msk [vmem:[#allocation3 + $0xe8] sm:$0xff] %vm1420_vm11, %v4102_v37  ;;  %v10242_v45 = vsel %vm641_vm4, %v4081_v32, %v4083_v48 }
 0x4cb   : > { %4414 = vrot.lane.b32.xlu2 %v9660_v36, %s7519_s7 }
 0x4cd   : > { %v4169_v39 = vpop.permute.xlu2 %4168 }
 0x4ce   : > { %4350 = vrot.lane.b32.xlu0 %v10047_v49, %s7518_s30 }
 0x4cf   : > { %4352 = vrot.lane.b32.xlu1 %v10115_v46, %s7518_s30  ;;  %s11926_s30 = smov 30  }
 0x4d0   : > { %v4087_v16 = vpop.permute.xlu0 %4086 }
 0x4d1   : > { %v4104_v26 = vsel %vm641_vm4, %v4085_v35, %v4087_v16  ;;  %v4089_v43 = vpop.permute.xlu1 %4088 }
 0x4d2   : > { %4120 = vst.msk [vmem:[#allocation3 + $0x120] sm:$0xff] %vm1420_vm11, %v4104_v26  ;;  %v10253_v58 = vsel %vm641_vm4, %v4087_v16, %v4089_v43 }
 0x4d3   : > { %4420 = vrot.lane.b32.xlu2 %v9790_v59, %s7519_s7 }
 0x4d5   : > { %v4175_v36 = vpop.permute.xlu2 %4174 }
 0x4d6   : > { %4416 = vrot.lane.b32.xlu0 %v9985_v18, %s7519_s7 }
 0x4d7   : > { %4418 = vrot.lane.b32.xlu1 %v9988_v15, %s7519_s7 }
 0x4d8   : > { %v4093_v62 = vpop.permute.xlu0 %4092 }
 0x4d9   : > { %v4106_v4 = vsel %vm641_vm4, %v4091_v42, %v4093_v62  ;;  %v4095_v2 = vpop.permute.xlu1 %4094 }
 0x4da   : > { %4122 = vst.msk [vmem:[#allocation3 + $0x158] sm:$0xff] %vm1420_vm11, %v4106_v4  ;;  %v10264_v55 = vsel %vm641_vm4, %v4093_v62, %v4095_v2 }
 0x4db   : > { %4426 = vrot.lane.b32.xlu2 %v9774_v38, %s7519_s7 }
 0x4dd   : > { %v4181_v59 = vpop.permute.xlu2 %4180 }
 0x4de   : > { %4422 = vrot.lane.b32.xlu0 %v10135_v9, %s7519_s7 }
 0x4df   : > { %4424 = vrot.lane.b32.xlu1 %v10137_v61, %s7519_s7 }
 0x4e0   : > { %v4099_v51 = vpop.permute.xlu0 %4098 }
 0x4e1   : > { %v4108_v5 = vsel %vm641_vm4, %v4097_v1, %v4099_v51  ;;  %v4101_v57 = vpop.permute.xlu1 %4100 }
 0x4e2   : > { %4124 = vst.msk [vmem:[#allocation3 + $0x190] sm:$0xff] %vm1420_vm11, %v4108_v5  ;;  %v10275_v3 = vsel %vm641_vm4, %v4099_v51, %v4101_v57  ;;  %vm11865_vm4 = vmmov %vm11863_vm0  ;;  %v4588_v5 = vld [vmem:[#allocation2 + $0xd0] sm:$0xff] }
 0x4e3   : > { %4432 = vrot.lane.b32.xlu2 %v9678_v53, %s7519_s7 }
 0x4e5   : > { %v4247_v38 = vpop.permute.xlu2 %4246 }
 0x4e6   : > { %4428 = vrot.lane.b32.xlu0 %v10099_v30, %s7519_s7 }
 0x4e7   : > { %4430 = vrot.lane.b32.xlu1 %v10101_v12, %s7519_s7 }
 0x4e8   : > { %v4165_v24 = vpop.permute.xlu0 %4164 }
 0x4e9   : > { %v4186_v11 = vsel %vm707_vm5, %v4163_v14, %v4165_v24  ;;  %v4167_v19 = vpop.permute.xlu1 %4166 }
 0x4ea   : > { %4202 = vst.msk [vmem:[#allocation3 + $0x1c8] sm:$0xff] %vm1420_vm11, %v4186_v11  ;;  %v10286_v40 = vsel %vm707_vm5, %v4165_v24, %v4167_v19  ;;  %v4645_v11 = vld [vmem:[#allocation2 + $0x60] sm:$0xff] }
 0x4eb   : > { %4486 = vrot.lane.b32.xlu2 %v9985_v18, %s11861_s11 }
 0x4ed   : > { %v4253_v53 = vpop.permute.xlu2 %4252 }
 0x4ee   : > { %4434 = vrot.lane.b32.xlu0 %v10047_v49, %s7519_s7 }
 0x4ef   : > { %4436 = vrot.lane.b32.xlu1 %v10115_v46, %s7519_s7  ;;  %s11939_s7 = smov 16  }
 0x4f0   : > { %v4171_v10 = vpop.permute.xlu0 %4170 }
 0x4f1   : > { %v4188_v47 = vsel %vm707_vm5, %v4169_v39, %v4171_v10  ;;  %v4173_v29 = vpop.permute.xlu1 %4172 }
 0x4f2   : > { %4204 = vst.msk [vmem:[#allocation3 + $0x200] sm:$0xff] %vm1420_vm11, %v4188_v47  ;;  %v10297_v63 = vsel %vm707_vm5, %v4171_v10, %v4173_v29 }
 0x4f3   : > { %4492 = vrot.lane.b32.xlu2 %v10137_v61, %s11861_s11 }
 0x4f5   : > { %v4259_v18 = vpop.permute.xlu2 %4258 }
 0x4f6   : > { %4488 = vrot.lane.b32.xlu0 %v9988_v15, %s11861_s11  ;;  %v4523_v15 = vld [vmem:[#allocation2 + $0x18] sm:$0xff] }
 0x4f7   : > { %4490 = vrot.lane.b32.xlu1 %v10135_v9, %s11861_s11  ;;  %v10317_v54 = vmax.f32 %v4523_v15, 0.0 }
 0x4f8   : > { %v4177_v56 = vpop.permute.xlu0 %4176 }
 0x4f9   : > { %v4190_v7 = vsel %vm707_vm5, %v4175_v36, %v4177_v56  ;;  %v4179_v50 = vpop.permute.xlu1 %4178 }
 0x4fa   : > { %4206 = vst.msk [vmem:[#allocation3 + $0x238] sm:$0xff] %vm1420_vm11, %v4190_v7  ;;  %v10308_v44 = vsel %vm707_vm5, %v4177_v56, %v4179_v50  ;;  %v4643_v56 = vld [vmem:[#allocation2 + $0x20] sm:$0xff] }
 0x4fb   : > { %4498 = vrot.lane.b32.xlu2 %v10047_v49, %s11861_s11 }
 0x4fd   : > { %v4265_v52 = vpop.permute.xlu2 %4264 }
 0x4fe   : > { %4494 = vrot.lane.b32.xlu0 %v10099_v30, %s11861_s11 }
 0x4ff   : > { %4496 = vrot.lane.b32.xlu1 %v10101_v12, %s11861_s11 }
 0x500   : > { %v4183_v17 = vpop.permute.xlu0 %4182 }
 0x501   : > { %v4192_v28 = vsel %vm707_vm5, %v4181_v59, %v4183_v17  ;;  %v4185_v0 = vpop.permute.xlu1 %4184  ;;  %v6000_v50 = vld [vmem:[#allocation3 + $0x238] sm:$0xff] }
 0x502   : > { %4208 = vst.msk [vmem:[#allocation3 + $0x270] sm:$0xff] %vm1420_vm11, %v4192_v28  ;;  %v4193_v35 = vsel %vm707_vm5, %v4183_v17, %v4185_v0  ;;  %vm11866_vm5 = vmmov %vm11863_vm0  ;;  %v5982_v28 = vld [vmem:[#allocation3 + $0x190] sm:$0xff]  ;;  %v4646_v0 = vld [vmem:[#allocation2 + $0x98] sm:$0xff] }
 0x503   : > { %4548 = vrot.lane.b32.xlu2 %v10317_v54, %s11862_s17 }
 0x505   : > { %v4331_v60 = vpop.permute.xlu2 %4330 }
 0x506   : > { %4500 = vrot.lane.b32.xlu0 %v10115_v46, %s11861_s11 }
 0x507   : > { %4546 = vrot.lane.b32.xlu1 %v4530_v6, %s11862_s17 }
 0x508   : > { %v4249_v42 = vpop.permute.xlu0 %4248 }
 0x509   : > { %v4270_v23 = vsel %vm11863_vm0, %v4247_v38, %v4249_v42  ;;  %v4251_v41 = vpop.permute.xlu1 %4250  ;;  %vm11873_vm0 = vmmov %vm11872_vm10  ;;  %v6006_v29 = vld [vmem:[#allocation3 + $0x270] sm:$0xff] }
 0x50a   : > { %4286 = vst.msk [vmem:[#allocation3 + $0x2a8] sm:$0xff] %vm1420_vm11, %v4270_v23  ;;  %v4271_v13 = vsel %vm11864_vm1, %v4249_v42, %v4251_v41  ;;  %vm11874_vm1 = vmmov %vm11873_vm0  ;;  %v5958_v23 = vld [vmem:[#allocation3 + $0xb0] sm:$0xff]  ;;  %v4649_v41 = vld [vmem:[#allocation2 + $0xe0] sm:$0xff] }
 0x50b   : > { %4554 = vrot.lane.b32.xlu2 %v10099_v30, %s11862_s17 }
 0x50d   : > { %v4337_v1 = vpop.permute.xlu2 %4336 }
 0x50e   : > { %4550 = vrot.lane.b32.xlu0 %v10135_v9, %s11862_s17 }
 0x50f   : > { %4552 = vrot.lane.b32.xlu1 %v10137_v61, %s11862_s17 }
 0x510   : > { %v4255_v20 = vpop.permute.xlu0 %4254 }
 0x511   : > { %v4272_v8 = vsel %vm11865_vm4, %v4253_v53, %v4255_v20  ;;  %v4257_v21 = vpop.permute.xlu1 %4256  ;;  %v6012_v19 = vld [vmem:[#allocation3 + $0x2a8] sm:$0xff]  ;;  %vm11875_vm4 = vmmov %vm11873_vm0 }
 0x512   : > { %4288 = vst.msk [vmem:[#allocation3 + $0x2e0] sm:$0xff] %vm1420_vm11, %v4272_v8  ;;  %v4273_v14 = vsel %vm11866_vm5, %v4255_v20, %v4257_v21  ;;  %vm11876_vm5 = vmmov %vm11873_vm0 }
 0x513   : > { %4560 = vrot.lane.b32.xlu2 %v10115_v46, %s11862_s17 }
 0x515   : > { %v10340_v32 = vpop.permute.xlu2 %4342 }
 0x516   : > { %4556 = vrot.lane.b32.xlu0 %v10101_v12, %s11862_s17 }
 0x517   : > { %4558 = vrot.lane.b32.xlu1 %v10047_v49, %s11862_s17 }
 0x518   : > { %v4261_v37 = vpop.permute.xlu0 %4260 }
 0x519   : > { %v4274_v48 = vsel %vm11867_vm8, %v4259_v18, %v4261_v37  ;;  %v4263_v39 = vpop.permute.xlu1 %4262  ;;  %v6018_v38 = vld [vmem:[#allocation3 + $0x2e0] sm:$0xff]  ;;  %v10382_v18 = vmax.f32 %v4645_v11, 0.0  ;;  %vm11877_vm8 = vmmov %vm11873_vm0 }
 0x51a   : > { %4290 = vst.msk [vmem:[#allocation3 + $0x318] sm:$0xff] %vm1420_vm11, %v4274_v48  ;;  %v4275_v16 = vsel %vm11868_vm9, %v4261_v37, %v4263_v39  ;;  %vm11878_vm9 = vmmov %vm11873_vm0  ;;  %v4705_v48 = vld [vmem:[#allocation2 + $0x58] sm:$0xff] }
 0x51b   : > { %4610 = vrot.lane.b32.xlu2 %v10135_v9, %s11869_s21 }
 0x51d   : > { %v10351_v26 = vpop.permute.xlu2 %4348 }
 0x51e   : > { %4606 = vrot.lane.b32.xlu0 %v4530_v6, %s11869_s21  ;;  %v5970_v6 = vld [vmem:[#allocation3 + $0x120] sm:$0xff] }
 0x51f   : > { %4608 = vrot.lane.b32.xlu1 %v10317_v54, %s11869_s21 }
 0x520   : > { %v4267_v43 = vpop.permute.xlu0 %4266 }
 0x521   : > { %v4276_v49 = vsel %vm11870_vm12, %v4265_v52, %v4267_v43  ;;  %v4269_v36 = vpop.permute.xlu1 %4268  ;;  %v6024_v57 = vld [vmem:[#allocation3 + $0x318] sm:$0xff]  ;;  %vm11879_vm12 = vmmov %vm11873_vm0 }
 0x522   : > { %4292 = vst.msk [vmem:[#allocation3 + $0x350] sm:$0xff] %vm1420_vm11, %v4276_v49  ;;  %v4277_v62 = vsel %vm11871_vm7, %v4267_v43, %v4269_v36  ;;  %vm11880_vm7 = vcmask 637952  }
 0x523   : > { %4616 = vrot.lane.b32.xlu2 %v10101_v12, %s11869_s21  ;;  %6366 = vmatpush.msra.mxu3 %v4277_v62  ;;  %v4707_v62 = vld [vmem:[#allocation2 + $0x68] sm:$0xff] }
 0x525   : > { %v10361_v9 = vpop.permute.xlu2 %4414  ;;  %6367 = vmatpush.msra.mxu3 %v4275_v16  ;;  %v10450_v16 = vmax.f32 %v4705_v48, 0.0 }
 0x526   : > { %4612 = vrot.lane.b32.xlu0 %v10137_v61, %s11869_s21 }
 0x527   : > { %4614 = vrot.lane.b32.xlu1 %v10099_v30, %s11869_s21  ;;  %6368 = vmatpush.msra.mxu3 %v4273_v14  ;;  %v4596_v30 = vmax.f32 %v4588_v5, 0.0 }
 0x528   : > { %v4333_v4 = vpop.permute.xlu0 %4332 }
 0x529   : > { %v4354_v2 = vsel %vm11872_vm10, %v4331_v60, %v4333_v4  ;;  %v4335_v59 = vpop.permute.xlu1 %4334  ;;  %v6030_v51 = vld [vmem:[#allocation3 + $0x350] sm:$0xff]  ;;  %6369 = vmatpush.msra.mxu3 %v4271_v13  ;;  %v5952_v13 = vld [vmem:[#allocation3 + $0x78] sm:$0xff]  ;;  %vm11881_vm10 = vmmov %vm11880_vm7 }
 0x52a   : > { %4370 = vst.msk [vmem:[#allocation3 + $0x388] sm:$0xff] %vm1420_vm11, %v4354_v2  ;;  %v10370_v12 = vsel %vm11873_vm0, %v4333_v4, %v4335_v59  ;;  %6279 = vmatpush.msra.mxu2 %v6030_v51  ;;  %vm11882_vm0 = vmmov %vm11880_vm7  ;;  %v10464_v4 = vmax.f32 %v4707_v62, 0.0 }
 0x52b   : > { %4666 = vrot.lane.b32.xlu2 %v10317_v54, %s11861_s11  ;;  %6370 = vmatpush.msra.mxu3 %v4193_v35  ;;  %v5976_v35 = vld [vmem:[#allocation3 + $0x158] sm:$0xff] }
 0x52c   : > { %6280 = vmatpush.msra.mxu2 %v6024_v57  ;;  %v4710_v57 = vld [vmem:[#allocation2 + $0xa8] sm:$0xff] }
 0x52d   : > { %v10374_v24 = vpop.permute.xlu2 %4420  ;;  %6371 = vmatpush.msra.mxu3 %v10308_v44  ;;  %v5994_v44 = vld [vmem:[#allocation3 + $0x200] sm:$0xff] }
 0x52e   : > { %4618 = vrot.lane.b32.xlu0 %v4596_v30, %s11869_s21  ;;  %6281 = vmatpush.msra.mxu2 %v6018_v38  ;;  %v4711_v38 = vld [vmem:[#allocation2 + $0xd8] sm:$0xff] }
 0x52f   : > { %4620 = vrot.lane.b32.xlu1 %v10115_v46, %s11869_s21  ;;  %6372 = vmatpush.msra.mxu3 %v10297_v63  ;;  %v10392_v63 = vmax.f32 %v4643_v56, 0.0  ;;  %v10481_v11 = vmax.f32 %v4711_v38, 0.0 }
 0x530   : > { %v4339_v53 = vpop.permute.xlu0 %4338  ;;  %6282 = vmatpush.msra.mxu2 %v6012_v19 }
 0x531   : > { %v4356_v10 = vsel %vm11874_vm1, %v4337_v1, %v4339_v53  ;;  %v4341_v47 = vpop.permute.xlu1 %4340  ;;  %6373 = vmatpush.msra.mxu3 %v10286_v40  ;;  %v5988_v40 = vld [vmem:[#allocation3 + $0x1c8] sm:$0xff]  ;;  %v5946_v1 = vld [vmem:[#allocation3 + $0x40] sm:$0xff]  ;;  %vm11883_vm1 = vmmov %vm11882_vm0 }
 0x532   : > { %4372 = vst.msk [vmem:[#allocation3 + $0x3c0] sm:$0xff] %vm1420_vm11, %v4356_v10  ;;  %v10387_v7 = vsel %vm11875_vm4, %v4339_v53, %v4341_v47  ;;  %6283 = vmatpush.msra.mxu2 %v6006_v29  ;;  %vm11884_vm4 = vmmov %vm11882_vm0  ;;  %v4713_v29 = vld [vmem:[#allocation2 + $0xe8] sm:$0xff] }
 0x533   : > { %4672 = vrot.lane.b32.xlu2 %v10382_v18, %s11861_s11  ;;  %6374 = vmatpush.msra.mxu3 %v10275_v3 }
 0x534   : > { %6284 = vmatpush.msra.mxu2 %v6000_v50  ;;  %v10495_v50 = vmax.f32 %v4713_v29, 0.0 }
 0x535   : > { %v10394_v52 = vpop.permute.xlu2 %4426  ;;  %6375 = vmatpush.msra.mxu3 %v10264_v55 }
 0x536   : > { %4668 = vrot.lane.b32.xlu0 %v10392_v63, %s11861_s11  ;;  %6285 = vmatpush.msra.mxu2 %v5994_v44 }
 0x537   : > { %4670 = vrot.lane.b32.xlu1 %v10137_v61, %s11861_s11  ;;  %6376 = vmatpush.msra.mxu3 %v10253_v58  ;;  %v4647_v61 = vld [vmem:[#allocation2 + $0xa0] sm:$0xff]  ;;  %v10412_v58 = vmax.f32 %v4646_v0, 0.0 }
 0x538   : > { %v4345_v15 = vpop.permute.xlu0 %4344  ;;  %6286 = vmatpush.msra.mxu2 %v5988_v40  ;;  %v10414_v31 = vmax.f32 %v4647_v61, 0.0 }
 0x539   : > { %v4358_v3 = vsel %vm11876_vm5, %v10340_v32, %v4345_v15  ;;  %v4347_v17 = vpop.permute.xlu1 %4346  ;;  %6377 = vmatpush.msra.mxu3 %v10242_v45  ;;  %v4704_v32 = vld [vmem:[#allocation2 + $0x28] sm:$0xff]  ;;  %vm11885_vm5 = vmmov %vm11882_vm0 }
 0x53a   : > { %4374 = vst.msk [vmem:[#allocation3 + $0x3f8] sm:$0xff] %vm1420_vm11, %v4358_v3  ;;  %v10407_v55 = vsel %vm11877_vm8, %v4345_v15, %v4347_v17  ;;  %6287 = vmatpush.msra.mxu2 %v5982_v28  ;;  %v10448_v39 = vmax.f32 %v4704_v32, 0.0  ;;  %vm11886_vm8 = vmmov %vm11882_vm0 }
 0x53b   : > { %4678 = vrot.lane.b32.xlu2 %v10115_v46, %s11861_s11  ;;  %6378 = vmatpush.msra.mxu3 %v10231_v34  ;;  %v5964_v46 = vld [vmem:[#allocation3 + $0xe8] sm:$0xff] }
 0x53c   : > { %6288 = vmatpush.msra.mxu2 %v5976_v35 }
 0x53d   : > { %v10416_v45 = vpop.permute.xlu2 %4432  ;;  %6379 = vmatpush.msra.mxu3 %v10220_v25 }
 0x53e   : > { %4674 = vrot.lane.b32.xlu0 %v10412_v58, %s11861_s11  ;;  %6289 = vmatpush.msra.mxu2 %v5970_v6 }
 0x53f   : > { %4676 = vrot.lane.b32.xlu1 %v10414_v31, %s11861_s11  ;;  %6380 = vmatpush.msra.mxu3 %v10209_v33  ;;  %v10433_v33 = vmax.f32 %v4649_v41, 0.0 }
 0x540   : > { %v4351_v34 = vpop.permute.xlu0 %4350  ;;  %6290 = vmatpush.msra.mxu2 %v5964_v46 }
 0x541   : > { %v4360_v60 = vsel %vm11878_vm9, %v10351_v26, %v4351_v34  ;;  %v4353_v42 = vpop.permute.xlu1 %4352  ;;  %6381 = vmatpush.msra.mxu3 %v10198_v27  ;;  %v5940_v27 = vld [vmem:[#allocation3 + $0x8] sm:$0xff]  ;;  %vm11887_vm9 = vmmov %vm11882_vm0 }
 0x542   : > { %4376 = vst.msk [vmem:[#allocation3 + $0x430] sm:$0xff] %vm1420_vm11, %v4360_v60  ;;  %v10429_v25 = vsel %vm11879_vm12, %v4351_v34, %v4353_v42  ;;  %6291 = vmatpush.msra.mxu2 %v5958_v23  ;;  %vm11888_vm12 = vcmask 515072  }
 0x543   : > { %4740 = vrot.lane.b32.xlu2 %v10392_v63, %s11862_s17 }
 0x544   : > { %6292 = vmatpush.msra.mxu2 %v5952_v13 }
 0x545   : > { %v4487_v20 = vpop.permute.xlu2 %4486 }
 0x546   : > { %4680 = vrot.lane.b32.xlu0 %v10433_v33, %s11861_s11  ;;  %6293 = vmatpush.msra.mxu2 %v5946_v1  ;;  %4514 = vst.msk [vmem:[#allocation3 + $0x548] sm:$0xff] %vm1420_vm11, %v4487_v20 }
 0x547   : > { %4738 = vrot.lane.b32.xlu1 %v10317_v54, %s11862_s17 }
 0x548   : > { %v4417_v8 = vpop.permute.xlu0 %4416  ;;  %6294 = vmatpush.msra.mxu2 %v5940_v27 }
 0x549   : > { %v4438_v21 = vsel %vm11880_vm7, %v10361_v9, %v4417_v8  ;;  %v4419_v14 = vpop.permute.xlu1 %4418  ;;  %vm11889_vm7 = vmmov %vm11888_vm12 }
 0x54a   : > { %4454 = vst.msk [vmem:[#allocation3 + $0x468] sm:$0xff] %vm1420_vm11, %v4438_v21  ;;  %v10444_v37 = vsel %vm11881_vm10, %v4417_v8, %v4419_v14  ;;  %vm11891_vm10 = vmmov %vm11889_vm7 }
 0x54b   : > { %4746 = vrot.lane.b32.xlu2 %v10382_v18, %s11862_s17 }
 0x54d   : > { %v4493_v26 = vpop.permute.xlu2 %4492 }
 0x54e   : > { %4742 = vrot.lane.b32.xlu0 %v10448_v39, %s11862_s17 }
 0x54f   : > { %4744 = vrot.lane.b32.xlu1 %v10450_v16, %s11862_s17 }
 0x550   : > { %v4423_v43 = vpop.permute.xlu0 %4422 }
 0x551   : > { %v4440_v49 = vsel %vm11882_vm0, %v10374_v24, %v4423_v43  ;;  %v4425_v36 = vpop.permute.xlu1 %4424  ;;  %v10479_v24 = vmax.f32 %v4710_v57, 0.0  ;;  %vm11892_vm0 = vmmov %vm11889_vm7 }
 0x552   : > { %4456 = vst.msk [vmem:[#allocation3 + $0x4a0] sm:$0xff] %vm1420_vm11, %v4440_v49  ;;  %v10460_v9 = vsel %vm11883_vm1, %v4423_v43, %v4425_v36  ;;  %vm11893_vm1 = vcmask 506880   ;;  %v10560_v43 = vld [vmem:[#allocation7 + $0x60] sm:$0xff] }
 0x553   : > { %4752 = vrot.lane.b32.xlu2 %v10414_v31, %s11862_s17  ;;  %6208 = vmatmul.f32.vlgmr.msrb.gmra.mxu0 %v10560_v43 }
 0x554   : > { %6295 = vmatmul.f32.vlgmr.msra.gmra.mxu2 %v10560_v43 }
 0x555   : > { %v4499_v2 = vpop.permute.xlu2 %4498 }
 0x556   : > { %4748 = vrot.lane.b32.xlu0 %v10464_v4, %s11862_s17  ;;  %4520 = vst.msk [vmem:[#allocation3 + $0x5f0] sm:$0xff] %vm1420_vm11, %v4499_v2 }
 0x557   : > { %4750 = vrot.lane.b32.xlu1 %v10412_v58, %s11862_s17 }
 0x558   : > { %v4429_v59 = vpop.permute.xlu0 %4428 }
 0x559   : > { %v4442_v51 = vsel %vm11884_vm4, %v10394_v52, %v4429_v59  ;;  %v4431_v5 = vpop.permute.xlu1 %4430  ;;  %vm11894_vm4 = vmmov %vm11893_vm1 }
 0x55a   : > { %4458 = vst.msk [vmem:[#allocation3 + $0x4d8] sm:$0xff] %vm1420_vm11, %v4442_v51  ;;  %v10475_v30 = vsel %vm11885_vm5, %v4429_v59, %v4431_v5  ;;  %vm11895_vm5 = vmmov %vm11893_vm1 }
 0x55b   : > { %4758 = vrot.lane.b32.xlu2 %v10433_v33, %s11862_s17 }
 0x55d   : > { %v4549_v19 = vpop.permute.xlu2 %4548  ;;  %v6102_v38 = vld [vmem:[#allocation3 + $0x5f0] sm:$0xff] }
 0x55e   : > { %4754 = vrot.lane.b32.xlu0 %v10479_v24, %s11862_s17 }
 0x55f   : > { %4756 = vrot.lane.b32.xlu1 %v10481_v11, %s11862_s17 }
 0x560   : > { %v4435_v53 = vpop.permute.xlu0 %4434 }
 0x561   : > { %v4444_v10 = vsel %vm11886_vm8, %v10416_v45, %v4435_v53  ;;  %v4437_v47 = vpop.permute.xlu1 %4436  ;;  %vm11896_vm8 = vmmov %vm11893_vm1 }
 0x562   : > { %4460 = vst.msk [vmem:[#allocation3 + $0x510] sm:$0xff] %vm1420_vm11, %v4444_v10  ;;  %v10491_v56 = vsel %vm11887_vm9, %v4435_v53, %v4437_v47  ;;  %v6084_v47 = vld [vmem:[#allocation3 + $0x548] sm:$0xff]  ;;  %vm11898_vm9 = vmmov %vm11892_vm0 }
 0x563   : > { %4824 = vrot.lane.b32.xlu2 %v10392_v63, %s11869_s21 }
 0x565   : > { %v4555_v44 = vpop.permute.xlu2 %4554 }
 0x566   : > { %4760 = vrot.lane.b32.xlu0 %v10495_v50, %s11862_s17  ;;  %4578 = vst.msk [vmem:[#allocation3 + $0x698] sm:$0xff] %vm1420_vm11, %v4555_v44 }
 0x567   : > { %4822 = vrot.lane.b32.xlu1 %v10317_v54, %s11869_s21 }
 0x568   : > { %v4489_v52 = vpop.permute.xlu0 %4488 }
 0x569   : > { %v10503_v40 = vsel %vm793_vm6, %v4487_v20, %v4489_v52  ;;  %v4491_v15 = vpop.permute.xlu1 %4490  ;;  %v6078_v52 = vld [vmem:[#allocation3 + $0x510] sm:$0xff] }
 0x56a   : > { %v10506_v3 = vsel %vm793_vm6, %v4491_v15, %v4493_v26  ;;  %4516 = vst.msk [vmem:[#allocation3 + $0x580] sm:$0xff] %vm1420_vm11, %v4491_v15 }
 0x56b   : > { %4830 = vrot.lane.b32.xlu2 %v10382_v18, %s11869_s21 }
 0x56d   : > { %v4561_v17 = vpop.permute.xlu2 %4560  ;;  %v6120_v49 = vld [vmem:[#allocation3 + $0x698] sm:$0xff] }
 0x56e   : > { %4826 = vrot.lane.b32.xlu0 %v10448_v39, %s11869_s21 }
 0x56f   : > { %4828 = vrot.lane.b32.xlu1 %v10450_v16, %s11869_s21 }
 0x570   : > { %v4495_v28 = vpop.permute.xlu0 %4494 }
 0x571   : > { %4518 = vst.msk [vmem:[#allocation3 + $0x5b8] sm:$0xff] %vm1420_vm11, %v4495_v28  ;;  %v4497_v0 = vpop.permute.xlu1 %4496  ;;  %v6090_v10 = vld [vmem:[#allocation3 + $0x580] sm:$0xff] }
 0x572   : > { %v4504_v61 = vsel %vm793_vm6, %v4495_v28, %v4497_v0 }
 0x573   : > { %4836 = vrot.lane.b32.xlu2 %v10414_v31, %s11869_s21 }
 0x575   : > { %v4611_v35 = vpop.permute.xlu2 %4610 }
 0x576   : > { %4832 = vrot.lane.b32.xlu0 %v10464_v4, %s11869_s21  ;;  %4636 = vst.msk [vmem:[#allocation3 + $0x740] sm:$0xff] %vm1420_vm11, %v4611_v35 }
 0x577   : > { %4834 = vrot.lane.b32.xlu1 %v10412_v58, %s11869_s21 }
 0x578   : > { %v4501_v6 = vpop.permute.xlu0 %4500 }
 0x579   : > { %v4505_v45 = vsel %vm793_vm6, %v4499_v2, %v4501_v6  ;;  %v4547_v46 = vpop.permute.xlu1 %4546  ;;  %v6036_v6 = vld [vmem:[#allocation3 + $0x388] sm:$0xff] }
 0x57a   : > { %v4562_v34 = vsel %vm11888_vm12, %v4547_v46, %v4549_v19  ;;  %4574 = vst.msk [vmem:[#allocation3 + $0x628] sm:$0xff] %vm1420_vm11, %v4547_v46  ;;  %v6096_v19 = vld [vmem:[#allocation3 + $0x5b8] sm:$0xff]  ;;  %vm11899_vm12 = vmmov %vm11892_vm0 }
 0x57b   : > { %4842 = vrot.lane.b32.xlu2 %v10433_v33, %s11869_s21 }
 0x57d   : > { %v4617_v60 = vpop.permute.xlu2 %4616  ;;  %v6138_v0 = vld [vmem:[#allocation3 + $0x740] sm:$0xff] }
 0x57e   : > { %4838 = vrot.lane.b32.xlu0 %v10479_v24, %s11869_s21 }
 0x57f   : > { %4840 = vrot.lane.b32.xlu1 %v10481_v11, %s11869_s21 }
 0x580   : > { %v4551_v42 = vpop.permute.xlu0 %4550 }
 0x581   : > { %4576 = vst.msk [vmem:[#allocation3 + $0x660] sm:$0xff] %vm1420_vm11, %v4551_v42  ;;  %v4553_v23 = vpop.permute.xlu1 %4552  ;;  %v6108_v2 = vld [vmem:[#allocation3 + $0x628] sm:$0xff] }
 0x582   : > { %v4563_v41 = vsel %vm11889_vm7, %v4551_v42, %v4553_v23  ;;  %vm11900_vm7 = vmmov %vm11892_vm0 }
 0x583   : > { %4908 = vrot.lane.b32.xlu2 %v10392_v63, %s11890_s22 }
 0x585   : > { %v10537_v13 = vpop.permute.xlu2 %4666 }
 0x586   : > { %4844 = vrot.lane.b32.xlu0 %v10495_v50, %s11869_s21 }
 0x587   : > { %4906 = vrot.lane.b32.xlu1 %v10317_v54, %s11890_s22 }
 0x588   : > { %v4557_v1 = vpop.permute.xlu0 %4556  ;;  %v6114_v62 = vld [vmem:[#allocation3 + $0x660] sm:$0xff] }
 0x589   : > { %v4564_v20 = vsel %vm11891_vm10, %v4555_v44, %v4557_v1  ;;  %v4559_v27 = vpop.permute.xlu1 %4558  ;;  %vm11902_vm10 = vmmov %vm11892_vm0 }
 0x58a   : > { %v4565_v8 = vsel %vm11892_vm0, %v4559_v27, %v4561_v17  ;;  %4580 = vst.msk [vmem:[#allocation3 + $0x6d0] sm:$0xff] %vm1420_vm11, %v4559_v27 }
 0x58b   : > { %4914 = vrot.lane.b32.xlu2 %v10382_v18, %s11890_s22  ;;  %6395 = vmatpush.msrb.mxu2 %v4565_v8 }
 0x58d   : > { %v10548_v21 = vpop.permute.xlu2 %4672  ;;  %6396 = vmatpush.msrb.mxu2 %v4564_v20 }
 0x58e   : > { %4910 = vrot.lane.b32.xlu0 %v10448_v39, %s11890_s22  ;;  %4697 = vst.msk [vmem:[#allocation3 + $0x58] sm:$0xff] %vm793_vm6, %v10548_v21 }
 0x58f   : > { %4912 = vrot.lane.b32.xlu1 %v10450_v16, %s11890_s22  ;;  %6397 = vmatpush.msrb.mxu2 %v4563_v41 }
 0x590   : > { %v4607_v14 = vpop.permute.xlu0 %4606 }
 0x591   : > { %4634 = vst.msk [vmem:[#allocation3 + $0x708] sm:$0xff] %vm1420_vm11, %v4607_v14  ;;  %v4609_v32 = vpop.permute.xlu1 %4608  ;;  %6398 = vmatpush.msrb.mxu2 %v4562_v34  ;;  %v6126_v26 = vld [vmem:[#allocation3 + $0x6d0] sm:$0xff] }
 0x592   : > { %v10558_v48 = vsel %vm11893_vm1, %v4607_v14, %v4609_v32  ;;  %6308 = vmatpush.msra.mxu0 %v6126_v26  ;;  %v5038_v14 = vld [vmem:[#allocation2 + $0x18] sm:$0xff]  ;;  %vm11903_vm1 = vmmov %vm11892_vm0 }
 0x593   : > { %4920 = vrot.lane.b32.xlu2 %v10414_v31, %s11890_s22  ;;  %6399 = vmatpush.msrb.mxu2 %v4505_v45  ;;  %v10665_v32 = vmax.f32 %v5038_v14, 0.0 }
 0x594   : > { %6309 = vmatpush.msra.mxu0 %v6120_v49 }
 0x595   : > { %v10565_v36 = vpop.permute.xlu2 %4678  ;;  %6400 = vmatpush.msrb.mxu2 %v4504_v61 }
 0x596   : > { %4916 = vrot.lane.b32.xlu0 %v10464_v4, %s11890_s22  ;;  %6310 = vmatpush.msra.mxu0 %v6114_v62 }
 0x597   : > { %4918 = vrot.lane.b32.xlu1 %v10412_v58, %s11890_s22  ;;  %6401 = vmatpush.msrb.mxu2 %v10506_v3 }
 0x598   : > { %v4613_v59 = vpop.permute.xlu0 %4612  ;;  %6311 = vmatpush.msra.mxu0 %v6108_v2 }
 0x599   : > { %v10574_v51 = vsel %vm11894_vm4, %v4611_v35, %v4613_v59  ;;  %v4615_v5 = vpop.permute.xlu1 %4614  ;;  %6402 = vmatpush.msrb.mxu2 %v10503_v40  ;;  %v6042_v35 = vld [vmem:[#allocation3 + $0x3c0] sm:$0xff]  ;;  %vm11904_vm4 = vmmov %vm11892_vm0 }
 0x59a   : > { %v10577_v57 = vsel %vm11895_vm5, %v4615_v5, %v4617_v60  ;;  %4638 = vst.msk [vmem:[#allocation3 + $0x778] sm:$0xff] %vm1420_vm11, %v4615_v5  ;;  %6312 = vmatpush.msra.mxu0 %v6102_v38  ;;  %vm11905_vm5 = vmmov %vm11892_vm0 }
 0x59b   : > { %4926 = vrot.lane.b32.xlu2 %v10433_v33, %s11890_s22  ;;  %6403 = vmatpush.msrb.mxu2 %v10491_v56 }
 0x59c   : > { %6313 = vmatpush.msra.mxu0 %v6096_v19 }
 0x59d   : > { %v10584_v53 = vpop.permute.xlu2 %4740  ;;  %6404 = vmatpush.msrb.mxu2 %v10475_v30  ;;  %v6072_v30 = vld [vmem:[#allocation3 + $0x4d8] sm:$0xff] }
 0x59e   : > { %4922 = vrot.lane.b32.xlu0 %v10479_v24, %s11890_s22  ;;  %6314 = vmatpush.msra.mxu0 %v6090_v10 }
 0x59f   : > { %4924 = vrot.lane.b32.xlu1 %v10481_v11, %s11890_s22  ;;  %6405 = vmatpush.msrb.mxu2 %v10460_v9  ;;  %v6066_v9 = vld [vmem:[#allocation3 + $0x4a0] sm:$0xff] }
 0x5a0   : > { %v4619_v29 = vpop.permute.xlu0 %4618  ;;  %6315 = vmatpush.msra.mxu0 %v6084_v47 }
 0x5a1   : > { %4640 = vst.msk [vmem:[#allocation3 + $0x7b0] sm:$0xff] %vm1420_vm11, %v4619_v29  ;;  %v4621_v56 = vpop.permute.xlu1 %4620  ;;  %6406 = vmatpush.msrb.mxu2 %v10444_v37  ;;  %v6060_v37 = vld [vmem:[#allocation3 + $0x468] sm:$0xff]  ;;  %v6144_v28 = vld [vmem:[#allocation3 + $0x778] sm:$0xff] }
 0x5a2   : > { %v4625_v44 = vsel %vm11896_vm8, %v4619_v29, %v4621_v56  ;;  %6316 = vmatpush.msra.mxu0 %v6078_v52 }
 0x5a3   : > { %4992 = vrot.lane.b32.xlu2 %v10392_v63, %s11897_s24  ;;  %6407 = vmatpush.msrb.mxu2 %v10429_v25 }
 0x5a4   : > { %6317 = vmatpush.msra.mxu0 %v6072_v30 }
 0x5a5   : > { %v10598_v40 = vpop.permute.xlu2 %4746  ;;  %6408 = vmatpush.msrb.mxu2 %v10407_v55 }
 0x5a6   : > { %4928 = vrot.lane.b32.xlu0 %v10495_v50, %s11890_s22  ;;  %6318 = vmatpush.msra.mxu0 %v6066_v9 }
 0x5a7   : > { %4990 = vrot.lane.b32.xlu1 %v10317_v54, %s11897_s24  ;;  %6409 = vmatpush.msrb.mxu2 %v10387_v7  ;;  %v6054_v54 = vld [vmem:[#allocation3 + $0x430] sm:$0xff]  ;;  %v6048_v7 = vld [vmem:[#allocation3 + $0x3f8] sm:$0xff] }
 0x5a8   : > { %v4669_v15 = vpop.permute.xlu0 %4668  ;;  %v6150_v3 = vld [vmem:[#allocation3 + $0x7b0] sm:$0xff]  ;;  %6319 = vmatpush.msra.mxu0 %v6060_v37 }
 0x5a9   : > { %v10608_v25 = vsel %vm793_vm6, %v10537_v13, %v4669_v15  ;;  %4695 = vst.msk [vmem:[#allocation3 + $0x20] sm:$0xff] %vm793_vm6, %v4669_v15  ;;  %v4671_v17 = vpop.permute.xlu1 %4670  ;;  %6349 = vmatpush.msra.mxu1 %v6150_v3  ;;  %6410 = vmatpush.msrb.mxu2 %v10370_v12  ;;  %v6132_v12 = vld [vmem:[#allocation3 + $0x708] sm:$0xff] }
 0x5aa   : > { %4694 = vst [vmem:[#allocation3 + $0x18] sm:$0xff] %v10608_v25  ;;  %v10614_v55 = vsel %vm793_vm6, %v4671_v17, %v10548_v21  ;;  %6320 = vmatpush.msra.mxu0 %v6054_v54 }
 0x5ab   : > { %4696 = vst [vmem:[#allocation3 + $0x50] sm:$0xff] %v10614_v55  ;;  %6350 = vmatpush.msra.mxu1 %v6144_v28  ;;  %4998 = vrot.lane.b32.xlu2 %v10382_v18, %s11897_s24 }
 0x5ac   : > { %6321 = vmatpush.msra.mxu0 %v6048_v7 }
 0x5ad   : > { %6351 = vmatpush.msra.mxu1 %v6138_v0  ;;  %v4753_v61 = vpop.permute.xlu2 %4752 }
 0x5ae   : > { %4994 = vrot.lane.b32.xlu0 %v10448_v39, %s11897_s24  ;;  %6322 = vmatpush.msra.mxu0 %v6042_v35 }
 0x5af   : > { %4996 = vrot.lane.b32.xlu1 %v10450_v16, %s11897_s24  ;;  %6352 = vmatpush.msra.mxu1 %v6132_v12 }
 0x5b0   : > { %v4675_v45 = vpop.permute.xlu0 %4674  ;;  %6323 = vmatpush.msra.mxu0 %v6036_v6 }
 0x5b1   : > { %v4677_v46 = vpop.permute.xlu1 %4676 }
 0x5b2   : > { %v10625_v34 = vsel %vm793_vm6, %v4675_v45, %v4677_v46  ;;  %4699 = vst.msk [vmem:[#allocation3 + $0x90] sm:$0xff] %vm793_vm6, %v4677_v46  ;;  %6436 = vmatpush.msrb.mxu0 %v4625_v44 }
 0x5b3   : > { %4698 = vst [vmem:[#allocation3 + $0x88] sm:$0xff] %v10625_v34  ;;  %5004 = vrot.lane.b32.xlu2 %v10414_v31, %s11897_s24 }
 0x5b4   : > { %6437 = vmatpush.msrb.mxu0 %v10577_v57 }
 0x5b5   : > { %v4759_v60 = vpop.permute.xlu2 %4758 }
 0x5b6   : > { %6438 = vmatpush.msrb.mxu0 %v10574_v51  ;;  %5000 = vrot.lane.b32.xlu0 %v10464_v4, %s11897_s24 }
 0x5b7   : > { %5002 = vrot.lane.b32.xlu1 %v10412_v58, %s11897_s24 }
 0x5b8   : > { %6439 = vmatpush.msrb.mxu0 %v10558_v48  ;;  %v4681_v42 = vpop.permute.xlu0 %4680 }
 0x5b9   : > { %v10640_v23 = vsel %vm793_vm6, %v10565_v36, %v4681_v42  ;;  %4701 = vst.msk [vmem:[#allocation3 + $0xc8] sm:$0xff] %vm793_vm6, %v4681_v42  ;;  %v4739_v41 = vpop.permute.xlu1 %4738 }
 0x5ba   : > { %4700 = vst [vmem:[#allocation3 + $0xc0] sm:$0xff] %v10640_v23  ;;  %v10646_v13 = vsel %vm11898_vm9, %v4739_v41, %v10584_v53  ;;  %vm11906_vm9 = vmmov %vm11896_vm8 }
 0x5bb   : > { %4778 = vst [vmem:[#allocation3 + $0xf8] sm:$0xff] %v10646_v13  ;;  %5010 = vrot.lane.b32.xlu2 %v10433_v33, %s11897_s24 }
 0x5bd   : > { %v4825_v1 = vpop.permute.xlu2 %4824 }
 0x5be   : > { %5006 = vrot.lane.b32.xlu0 %v10479_v24, %s11897_s24 }
 0x5bf   : > { %5008 = vrot.lane.b32.xlu1 %v10481_v11, %s11897_s24 }
 0x5c0   : > { %v4743_v20 = vpop.permute.xlu0 %4742 }
 0x5c1   : > { %v4763_v27 = vsel %vm11899_vm12, %v10584_v53, %v4743_v20  ;;  %v4745_v8 = vpop.permute.xlu1 %4744  ;;  %vm11907_vm12 = vmmov %vm11896_vm8 }
 0x5c2   : > { %4779 = vst.msk [vmem:[#allocation3 + $0x100] sm:$0xff] %vm793_vm6, %v4763_v27  ;;  %v10660_v21 = vsel %vm11900_vm7, %v4745_v8, %v10598_v40  ;;  %vm11909_vm7 = vmmov %vm11896_vm8 }
 0x5c3   : > { %4780 = vst [vmem:[#allocation3 + $0x130] sm:$0xff] %v10660_v21  ;;  %5076 = vrot.lane.b32.xlu2 %v10392_v63, %s11901_s27 }
 0x5c5   : > { %v4831_v48 = vpop.permute.xlu2 %4830 }
 0x5c6   : > { %5012 = vrot.lane.b32.xlu0 %v10495_v50, %s11897_s24  ;;  %s11966_s24 = sshll.u32 %s7650_s10, 8 }
 0x5c7   : > { %5074 = vrot.lane.b32.xlu1 %v10665_v32, %s11901_s27 }
 0x5c8   : > { %v4749_v26 = vpop.permute.xlu0 %4748 }
 0x5c9   : > { %v4765_v49 = vsel %vm11902_vm10, %v10598_v40, %v4749_v26  ;;  %v4751_v36 = vpop.permute.xlu1 %4750  ;;  %vm11910_vm10 = vmmov %vm11909_vm7 }
 0x5ca   : > { %4781 = vst.msk [vmem:[#allocation3 + $0x138] sm:$0xff] %vm793_vm6, %v4765_v49  ;;  %v10675_v62 = vsel %vm11892_vm0, %v4751_v36, %v4753_v61  ;;  %vm11911_vm0 = vmmov %vm11909_vm7  ;;  %v10782_v49 = vld [vmem:[#allocation2 + $0xa0] sm:$0xff] }
 0x5cb   : > { %4782 = vst [vmem:[#allocation3 + $0x168] sm:$0xff] %v10675_v62  ;;  %5082 = vrot.lane.b32.xlu2 %v10382_v18, %s11901_s27 }
 0x5cd   : > { %v4837_v2 = vpop.permute.xlu2 %4836 }
 0x5ce   : > { %5078 = vrot.lane.b32.xlu0 %v10448_v39, %s11901_s27 }
 0x5cf   : > { %5080 = vrot.lane.b32.xlu1 %v10450_v16, %s11901_s27 }
 0x5d0   : > { %v4755_v59 = vpop.permute.xlu0 %4754 }
 0x5d1   : > { %v4767_v51 = vsel %vm11903_vm1, %v4753_v61, %v4755_v59  ;;  %v4757_v5 = vpop.permute.xlu1 %4756  ;;  %vm11912_vm1 = vmmov %vm11911_vm0 }
 0x5d2   : > { %4783 = vst.msk [vmem:[#allocation3 + $0x170] sm:$0xff] %vm793_vm6, %v4767_v51  ;;  %v10687_v57 = vsel %vm11904_vm4, %v4757_v5, %v4759_v60  ;;  %vm11913_vm4 = vmmov %vm11911_vm0  ;;  %v5225_v5 = vmax.f32 %v10782_v49, 0.0  ;;  %v5762_v49 = vld [vmem:[#allocation2 + $0x70] sm:$0xff] }
 0x5d3   : > { %4784 = vst [vmem:[#allocation3 + $0x1a0] sm:$0xff] %v10687_v57  ;;  %5088 = vrot.lane.b32.xlu2 %v10414_v31, %s11901_s27 }
 0x5d5   : > { %v4843_v38 = vpop.permute.xlu2 %4842 }
 0x5d6   : > { %5084 = vrot.lane.b32.xlu0 %v10464_v4, %s11901_s27 }
 0x5d7   : > { %5086 = vrot.lane.b32.xlu1 %v10412_v58, %s11901_s27 }
 0x5d8   : > { %v4761_v19 = vpop.permute.xlu0 %4760 }
 0x5d9   : > { %v4769_v53 = vsel %vm11905_vm5, %v4759_v60, %v4761_v19  ;;  %v4823_v10 = vpop.permute.xlu1 %4822  ;;  %vm11914_vm5 = vcmask 392192  }
 0x5da   : > { %4785 = vst.msk [vmem:[#allocation3 + $0x1a8] sm:$0xff] %vm793_vm6, %v4769_v53  ;;  %v10699_v47 = vsel %vm11896_vm8, %v4823_v10, %v4825_v1  ;;  %vm11915_vm8 = vmmov %vm11914_vm5 }
 0x5db   : > { %4862 = vst [vmem:[#allocation3 + $0x1d8] sm:$0xff] %v10699_v47  ;;  %5094 = vrot.lane.b32.xlu2 %v10433_v33, %s11901_s27 }
 0x5dd   : > { %v4909_v29 = vpop.permute.xlu2 %4908 }
 0x5de   : > { %5090 = vrot.lane.b32.xlu0 %v10479_v24, %s11901_s27 }
 0x5df   : > { %5092 = vrot.lane.b32.xlu1 %v10481_v11, %s11901_s27 }
 0x5e0   : > { %v4827_v56 = vpop.permute.xlu0 %4826 }
 0x5e1   : > { %v4847_v44 = vsel %vm11906_vm9, %v4825_v1, %v4827_v56  ;;  %v4829_v52 = vpop.permute.xlu1 %4828  ;;  %vm11916_vm9 = vmmov %vm11914_vm5  ;;  %v10769_v1 = vld [vmem:[#allocation2 + $0x60] sm:$0xff] }
 0x5e2   : > { %4863 = vst.msk [vmem:[#allocation3 + $0x1e0] sm:$0xff] %vm793_vm6, %v4847_v44  ;;  %v10711_v30 = vsel %vm11907_vm12, %v4829_v52, %v4831_v48  ;;  %vm11918_vm12 = vmmov %vm11914_vm5  ;;  %v10806_v56 = vld [vmem:[#allocation2 + $0xe0] sm:$0xff] }
 0x5e3   : > { %4864 = vst [vmem:[#allocation3 + $0x210] sm:$0xff] %v10711_v30  ;;  %5160 = vrot.lane.b32.xlu2 %v10392_v63, %s11908_s28 }
 0x5e5   : > { %v4915_v40 = vpop.permute.xlu2 %4914 }
 0x5e6   : > { %5096 = vrot.lane.b32.xlu0 %v10495_v50, %s11901_s27  ;;  %s11587_s27 = scalar_lea.vmem [#allocation9], %s11966_s24 }
 0x5e7   : > { %5158 = vrot.lane.b32.xlu1 %v10665_v32, %s11908_s28 }
 0x5e8   : > { %v4833_v9 = vpop.permute.xlu0 %4832 }
 0x5e9   : > { %v4849_v37 = vsel %vm11909_vm7, %v4831_v48, %v4833_v9  ;;  %v4835_v15 = vpop.permute.xlu1 %4834  ;;  %vm11919_vm7 = vmmov %vm11914_vm5  ;;  %v5222_v48 = vmax.f32 %v10769_v1, 0.0 }
 0x5ea   : > { %4865 = vst.msk [vmem:[#allocation3 + $0x218] sm:$0xff] %vm793_vm6, %v4849_v37  ;;  %v10723_v3 = vsel %vm11910_vm10, %v4835_v15, %v4837_v2  ;;  %vm11920_vm10 = vmmov %vm11914_vm5 }
 0x5eb   : > { %4866 = vst [vmem:[#allocation3 + $0x248] sm:$0xff] %v10723_v3  ;;  %5166 = vrot.lane.b32.xlu2 %v10382_v18, %s11908_s28  ;;  %v10740_v18 = vld [vmem:[#allocation7 + $0x68] sm:$0xff] }
 0x5ec   : > { %6237 = vmatmul.f32.vlgmr.msrb.gmra.mxu1 %v10740_v18 }
 0x5ed   : > { %v4921_v63 = vpop.permute.xlu2 %4920 }
 0x5ee   : > { %5162 = vrot.lane.b32.xlu0 %v10448_v39, %s11908_s28 }
 0x5ef   : > { %5164 = vrot.lane.b32.xlu1 %v10450_v16, %s11908_s28 }
 0x5f0   : > { %v4839_v17 = vpop.permute.xlu0 %4838 }
 0x5f1   : > { %v4851_v54 = vsel %vm11911_vm0, %v4837_v2, %v4839_v17  ;;  %v4841_v28 = vpop.permute.xlu1 %4840  ;;  %vm11921_vm0 = vmmov %vm11914_vm5 }
 0x5f2   : > { %4867 = vst.msk [vmem:[#allocation3 + $0x250] sm:$0xff] %vm793_vm6, %v4851_v54  ;;  %v10735_v7 = vsel %vm11912_vm1, %v4841_v28, %v4843_v38  ;;  %vm11922_vm1 = vmmov %vm11921_vm0 }
 0x5f3   : > { %4868 = vst [vmem:[#allocation3 + $0x280] sm:$0xff] %v10735_v7  ;;  %5172 = vrot.lane.b32.xlu2 %v10414_v31, %s11908_s28 }
 0x5f5   : > { %v4927_v0 = vpop.permute.xlu2 %4926 }
 0x5f6   : > { %5168 = vrot.lane.b32.xlu0 %v10464_v4, %s11908_s28 }
 0x5f7   : > { %5170 = vrot.lane.b32.xlu1 %v10412_v58, %s11908_s28  ;;  %v10756_v58 = vld [vmem:[#allocation2 + $0x20] sm:$0xff] }
 0x5f8   : > { %v4845_v61 = vpop.permute.xlu0 %4844  ;;  %v5219_v41 = vmax.f32 %v10756_v58, 0.0 }
 0x5f9   : > { %v4853_v35 = vsel %vm11913_vm4, %v4843_v38, %v4845_v61  ;;  %v4907_v12 = vpop.permute.xlu1 %4906  ;;  %v10788_v38 = vld [vmem:[#allocation2 + $0x98] sm:$0xff]  ;;  %vm11923_vm4 = vcmask 384000  }
 0x5fa   : > { %4869 = vst.msk [vmem:[#allocation3 + $0x288] sm:$0xff] %vm793_vm6, %v4853_v35  ;;  %v4930_v6 = vsel %vm11914_vm5, %v4907_v12, %v4909_v29  ;;  %vm11924_vm5 = vmmov %vm11923_vm4  ;;  %v5299_v12 = vld [vmem:[#allocation2 + $0xd8] sm:$0xff] }
 0x5fb   : > { %4946 = vst [vmem:[#allocation3 + $0x2b8] sm:$0xff] %v4930_v6  ;;  %5178 = vrot.lane.b32.xlu2 %v10433_v33, %s11908_s28 }
 0x5fd   : > { %v4993_v31 = vpop.permute.xlu2 %4992 }
 0x5fe   : > { %5174 = vrot.lane.b32.xlu0 %v10479_v24, %s11908_s28 }
 0x5ff   : > { %5176 = vrot.lane.b32.xlu1 %v10481_v11, %s11908_s28 }
 0x600   : > { %v4911_v45 = vpop.permute.xlu0 %4910 }
 0x601   : > { %v4931_v46 = vsel %vm11915_vm8, %v4909_v29, %v4911_v45  ;;  %v4913_v60 = vpop.permute.xlu1 %4912  ;;  %vm11925_vm8 = vmmov %vm11923_vm4  ;;  %v5765_v45 = vld [vmem:[#allocation2 + $0xb0] sm:$0xff] }
 0x602   : > { %4947 = vst.msk [vmem:[#allocation3 + $0x2c0] sm:$0xff] %vm793_vm6, %v4931_v46  ;;  %v4932_v42 = vsel %vm11916_vm9, %v4913_v60, %v4915_v40  ;;  %vm11927_vm9 = vmmov %vm11923_vm4  ;;  %v10901_v1 = vmax.f32 %v5765_v45, 0.0 }
 0x603   : > { %4948 = vst [vmem:[#allocation3 + $0x2f0] sm:$0xff] %v4932_v42  ;;  %5244 = vrot.lane.b32.xlu2 %v5219_v41, %s11917_s29 }
 0x605   : > { %v10765_v33 = vpop.permute.xlu2 %4998 }
 0x606   : > { %5180 = vrot.lane.b32.xlu0 %v10495_v50, %s11908_s28 }
 0x607   : > { %5242 = vrot.lane.b32.xlu1 %v10665_v32, %s11917_s29 }
 0x608   : > { %v4917_v20 = vpop.permute.xlu0 %4916 }
 0x609   : > { %v4933_v27 = vsel %vm11918_vm12, %v4915_v40, %v4917_v20  ;;  %v4919_v8 = vpop.permute.xlu1 %4918  ;;  %vm11928_vm12 = vmmov %vm11923_vm4 }
 0x60a   : > { %4949 = vst.msk [vmem:[#allocation3 + $0x2f8] sm:$0xff] %vm793_vm6, %v4933_v27  ;;  %v4934_v14 = vsel %vm11919_vm7, %v4919_v8, %v4921_v63  ;;  %vm11929_vm7 = vmmov %vm11923_vm4 }
 0x60b   : > { %4950 = vst [vmem:[#allocation3 + $0x328] sm:$0xff] %v4934_v14  ;;  %5250 = vrot.lane.b32.xlu2 %v5222_v48, %s11917_s29 }
 0x60d   : > { %v10778_v26 = vpop.permute.xlu2 %5004 }
 0x60e   : > { %5246 = vrot.lane.b32.xlu0 %v10448_v39, %s11917_s29  ;;  %v5224_v39 = vmax.f32 %v10788_v38, 0.0 }
 0x60f   : > { %5248 = vrot.lane.b32.xlu1 %v10450_v16, %s11917_s29 }
 0x610   : > { %v4923_v36 = vpop.permute.xlu0 %4922 }
 0x611   : > { %v4935_v2 = vsel %vm11920_vm10, %v4921_v63, %v4923_v36  ;;  %v4925_v59 = vpop.permute.xlu1 %4924  ;;  %v5295_v63 = vld [vmem:[#allocation2 + $0x68] sm:$0xff]  ;;  %vm11930_vm10 = vmmov %vm11923_vm4  ;;  %v10922_v36 = vmax.f32 %v5762_v49, 0.0 }
 0x612   : > { %4951 = vst.msk [vmem:[#allocation3 + $0x330] sm:$0xff] %vm793_vm6, %v4935_v2  ;;  %v4936_v51 = vsel %vm11921_vm0, %v4925_v59, %v4927_v0  ;;  %vm11931_vm0 = vmmov %vm11923_vm4 }
 0x613   : > { %4952 = vst [vmem:[#allocation3 + $0x360] sm:$0xff] %v4936_v51  ;;  %6453 = vmatpush.msrb.mxu1 %v4936_v51  ;;  %5256 = vrot.lane.b32.xlu2 %v5225_v5, %s11917_s29 }
 0x615   : > { %6454 = vmatpush.msrb.mxu1 %v4934_v14  ;;  %v10796_v16 = vpop.permute.xlu2 %5010 }
 0x616   : > { %5252 = vrot.lane.b32.xlu0 %v10464_v4, %s11917_s29  ;;  %v5228_v4 = vmax.f32 %v10806_v56, 0.0 }
 0x617   : > { %5254 = vrot.lane.b32.xlu1 %v5224_v39, %s11917_s29  ;;  %6455 = vmatpush.msrb.mxu1 %v4932_v42 }
 0x618   : > { %v4929_v19 = vpop.permute.xlu0 %4928 }
 0x619   : > { %v4937_v53 = vsel %vm11922_vm1, %v4927_v0, %v4929_v19  ;;  %v4991_v10 = vpop.permute.xlu1 %4990  ;;  %6456 = vmatpush.msrb.mxu1 %v4930_v6  ;;  %v5298_v0 = vld [vmem:[#allocation2 + $0xa8] sm:$0xff]  ;;  %vm11932_vm1 = vcmask 375808  }
 0x61a   : > { %4953 = vst.msk [vmem:[#allocation3 + $0x368] sm:$0xff] %vm793_vm6, %v4937_v53  ;;  %v10804_v29 = vsel %vm11923_vm4, %v4991_v10, %v4993_v31  ;;  %v10889_v6 = vmax.f32 %v5298_v0, 0.0  ;;  %vm11933_vm4 = vmmov %vm11932_vm1 }
 0x61b   : > { %5030 = vst [vmem:[#allocation3 + $0x398] sm:$0xff] %v10804_v29  ;;  %6457 = vmatpush.msrb.mxu1 %v10735_v7  ;;  %5258 = vrot.lane.b32.xlu2 %v10479_v24, %s11917_s29 }
 0x61d   : > { %6458 = vmatpush.msrb.mxu1 %v10723_v3  ;;  %v10816_v44 = vpop.permute.xlu2 %5076 }
 0x61e   : > { %5260 = vrot.lane.b32.xlu0 %v10481_v11, %s11917_s29 }
 0x61f   : > { %5262 = vrot.lane.b32.xlu1 %v5228_v4, %s11917_s29  ;;  %6459 = vmatpush.msrb.mxu1 %v10711_v30 }
 0x620   : > { %v4995_v52 = vpop.permute.xlu0 %4994 }
 0x621   : > { %v5015_v40 = vsel %vm11924_vm5, %v4993_v31, %v4995_v52  ;;  %v4997_v9 = vpop.permute.xlu1 %4996  ;;  %6460 = vmatpush.msrb.mxu1 %v10699_v47  ;;  %v5311_v31 = vmax.f32 %v5299_v12, 0.0  ;;  %vm11934_vm5 = vmmov %vm11932_vm1 }
 0x622   : > { %5031 = vst.msk [vmem:[#allocation3 + $0x3a0] sm:$0xff] %vm793_vm6, %v5015_v40  ;;  %v10827_v24 = vsel %vm11925_vm8, %v4997_v9, %v10765_v33  ;;  %vm11935_vm8 = vmmov %vm11932_vm1 }
 0x623   : > { %5032 = vst [vmem:[#allocation3 + $0x3d0] sm:$0xff] %v10827_v24  ;;  %6461 = vmatpush.msrb.mxu1 %v10687_v57  ;;  %5328 = vrot.lane.b32.xlu2 %v5219_v41, %s11926_s30  ;;  %v5292_v57 = vld [vmem:[#allocation2 + $0x28] sm:$0xff]  ;;  %v5768_v41 = vld [vmem:[#allocation2 + $0xf0] sm:$0xff] }
 0x624   : > { %v10906_v20 = vmax.f32 %v5768_v41, 0.0 }
 0x625   : > { %6462 = vmatpush.msrb.mxu1 %v10675_v62  ;;  %v10835_v11 = vpop.permute.xlu2 %5082  ;;  %v5293_v62 = vld [vmem:[#allocation2 + $0x58] sm:$0xff] }
 0x626   : > { %5264 = vrot.lane.b32.xlu0 %v10495_v50, %s11917_s29 }
 0x627   : > { %5326 = vrot.lane.b32.xlu1 %v10665_v32, %s11926_s30  ;;  %6463 = vmatpush.msrb.mxu1 %v10660_v21  ;;  %v10851_v21 = vmax.f32 %v5292_v57, 0.0  ;;  %v5305_v32 = vmax.f32 %v5293_v62, 0.0 }
 0x628   : > { %v5001_v47 = vpop.permute.xlu0 %5000 }
 0x629   : > { %v5017_v30 = vsel %vm11927_vm9, %v10765_v33, %v5001_v47  ;;  %v5003_v37 = vpop.permute.xlu1 %5002  ;;  %6464 = vmatpush.msrb.mxu1 %v10646_v13  ;;  %vm11936_vm9 = vmmov %vm11932_vm1 }
 0x62a   : > { %5033 = vst.msk [vmem:[#allocation3 + $0x3d8] sm:$0xff] %vm793_vm6, %v5017_v30  ;;  %v10846_v50 = vsel %vm11928_vm12, %v5003_v37, %v10778_v26  ;;  %vm11937_vm12 = vmmov %vm11932_vm1 }
 0x62b   : > { %5034 = vst [vmem:[#allocation3 + $0x408] sm:$0xff] %v10846_v50  ;;  %6465 = vmatpush.msrb.mxu1 %v10640_v23  ;;  %5334 = vrot.lane.b32.xlu2 %v5222_v48, %s11926_s30 }
 0x62d   : > { %6466 = vmatpush.msrb.mxu1 %v10625_v34  ;;  %v5089_v13 = vpop.permute.xlu2 %5088 }
 0x62e   : > { %5330 = vrot.lane.b32.xlu0 %v10851_v21, %s11926_s30 }
 0x62f   : > { %5332 = vrot.lane.b32.xlu1 %v5305_v32, %s11926_s30  ;;  %6467 = vmatpush.msrb.mxu1 %v10614_v55  ;;  %v10870_v55 = vmax.f32 %v5295_v63, 0.0  ;;  %v10994_v63 = vld [vmem:[#allocation7 + $0x70] sm:$0xff] }
 0x630   : > { %v5007_v15 = vpop.permute.xlu0 %5006  ;;  %7181 = vmatmul.msk.f32.vlgmr.msrb.gmra.mxu3 %vm1423_vm15, %v10994_v63 }
 0x631   : > { %v5019_v3 = vsel %vm11929_vm7, %v10778_v26, %v5007_v15  ;;  %v5009_v23 = vpop.permute.xlu1 %5008  ;;  %6468 = vmatpush.msrb.mxu1 %v10608_v25  ;;  %v5767_v25 = vld [vmem:[#allocation2 + $0xe8] sm:$0xff]  ;;  %vm11938_vm7 = vmmov %vm11932_vm1 }
 0x632   : > { %5035 = vst.msk [vmem:[#allocation3 + $0x410] sm:$0xff] %vm793_vm6, %v5019_v3  ;;  %v10864_v34 = vsel %vm11930_vm10, %v5009_v23, %v10796_v16  ;;  %v10884_v35 = vmax.f32 %v5767_v25, 0.0  ;;  %vm11940_vm10 = vmmov %vm11932_vm1 }
 0x633   : > { %5036 = vst [vmem:[#allocation3 + $0x440] sm:$0xff] %v10864_v34  ;;  %5340 = vrot.lane.b32.xlu2 %v5225_v5, %s11926_s30 }
 0x635   : > { %v5095_v17 = vpop.permute.xlu2 %5094 }
 0x636   : > { %5336 = vrot.lane.b32.xlu0 %v10870_v55, %s11926_s30 }
 0x637   : > { %5338 = vrot.lane.b32.xlu1 %v5224_v39, %s11926_s30  ;;  %v5759_v39 = vld [vmem:[#allocation2 + $0x30] sm:$0xff] }
 0x638   : > { %v5013_v54 = vpop.permute.xlu0 %5012 }
 0x639   : > { %v5021_v28 = vsel %vm11931_vm0, %v10796_v16, %v5013_v54  ;;  %v5075_v7 = vpop.permute.xlu1 %5074  ;;  %v10936_v16 = vmax.f32 %v5759_v39, 0.0  ;;  %vm3449_vm0 = vcmask 15360  }
 0x63a   : > { %5037 = vst.msk [vmem:[#allocation3 + $0x448] sm:$0xff] %vm793_vm6, %v5021_v28  ;;  %v10882_v61 = vsel %vm11932_vm1, %v5075_v7, %v10816_v44  ;;  %vm11942_vm1 = vcmask 244736  }
 0x63b   : > { %5114 = vst [vmem:[#allocation3 + $0x478] sm:$0xff] %v10882_v61  ;;  %5812 = vrot.lane.b32.xlu2 %v10884_v35, %s7509_s18 }
 0x63c   : > { %3453 = vst.msk [vmem:[#allocation2 + $0xf8] sm:$0xff] %vm3449_vm0, %v11848_v22 }
 0x63d   : > { %v5161_v58 = vpop.permute.xlu2 %5160  ;;  %3450 = vst.msk [vmem:[#allocation2 + $0x38] sm:$0xff] %vm3449_vm0, %v11848_v22 }
 0x63e   : > { %5342 = vrot.lane.b32.xlu0 %v10889_v6, %s11926_s30  ;;  %3451 = vst.msk [vmem:[#allocation2 + $0x78] sm:$0xff] %vm3449_vm0, %v11848_v22 }
 0x63f   : > { %5344 = vrot.lane.b32.xlu1 %v5311_v31, %s11926_s30  ;;  %3452 = vst.msk [vmem:[#allocation2 + $0xb8] sm:$0xff] %vm3449_vm0, %v11848_v22  ;;  %v11028_v31 = vld [vmem:[#allocation7 + $0x88] sm:$0xff]  ;;  %v11038_v22 = vld [vmem:[#allocation7 + $0x80] sm:$0xff] }
 0x640   : > { %v5079_v46 = vpop.permute.xlu0 %5078  ;;  %7182 = vmatmul.msk.f32.gmra.mxu3 %vm1423_vm15, %v11028_v31  ;;  %6240 = vmatmul.f32.gmra.mxu1 %v11038_v22 }
 0x641   : > { %v5099_v60 = vsel %vm11933_vm4, %v10816_v44, %v5079_v46  ;;  %v5081_v42 = vpop.permute.xlu1 %5080  ;;  %vm11943_vm4 = vmmov %vm11942_vm1 }
 0x642   : > { %5115 = vst.msk [vmem:[#allocation3 + $0x480] sm:$0xff] %vm793_vm6, %v5099_v60  ;;  %v10899_v33 = vsel %vm11934_vm5, %v5081_v42, %v10835_v11  ;;  %v11036_v42 = vld [vmem:[#allocation7 + $0x78] sm:$0xff]  ;;  %vm11944_vm5 = vmmov %vm11942_vm1 }
 0x643   : > { %5116 = vst [vmem:[#allocation3 + $0x4b0] sm:$0xff] %v10899_v33  ;;  %5808 = vrot.lane.b32.xlu2 %v10901_v1, %s7509_s18  ;;  %6211 = vmatmul.f32.gmra.mxu0 %v11036_v42 }
 0x644   : > { %6298 = vmatmul.f32.gmra.mxu2 %v11036_v42 }
 0x645   : > { %v5167_v27 = vpop.permute.xlu2 %5166 }
 0x646   : > { %5814 = vrot.lane.b32.xlu0 %v10906_v20, %s7509_s18 }
 0x647   : > { %5806 = vrot.lane.b32.xlu1 %v10889_v6, %s7509_s18 }
 0x648   : > { %v5085_v8 = vpop.permute.xlu0 %5084 }
 0x649   : > { %v5101_v14 = vsel %vm11935_vm8, %v10835_v11, %v5085_v8  ;;  %v5087_v48 = vpop.permute.xlu1 %5086  ;;  %vm11946_vm8 = vmmov %vm11942_vm1 }
 0x64a   : > { %5117 = vst.msk [vmem:[#allocation3 + $0x4b8] sm:$0xff] %vm793_vm6, %v5101_v14  ;;  %v10916_v26 = vsel %vm11936_vm9, %v5087_v48, %v5089_v13  ;;  %vm11947_vm9 = vmmov %vm11942_vm1 }
 0x64b   : > { %5118 = vst [vmem:[#allocation3 + $0x4e8] sm:$0xff] %v10916_v26  ;;  %5346 = vrot.lane.b32.xlu2 %v5228_v4, %s11926_s30 }
 0x64d   : > { %v5173_v2 = vpop.permute.xlu2 %5172 }
 0x64e   : > { %5800 = vrot.lane.b32.xlu0 %v10870_v55, %s7509_s18 }
 0x64f   : > { %5802 = vrot.lane.b32.xlu1 %v10922_v36, %s7509_s18 }
 0x650   : > { %v5091_v59 = vpop.permute.xlu0 %5090 }
 0x651   : > { %v5103_v51 = vsel %vm11937_vm12, %v5089_v13, %v5091_v59  ;;  %v5093_v5 = vpop.permute.xlu1 %5092  ;;  %v11061_v59 = vld [vmem:[#allocation7 + $0x98] sm:$0xff]  ;;  %vm11948_vm12 = vmmov %vm11942_vm1 }
 0x652   : > { %5119 = vst.msk [vmem:[#allocation3 + $0x4f0] sm:$0xff] %vm793_vm6, %v5103_v51  ;;  %v10931_v38 = vsel %vm11938_vm7, %v5093_v5, %v5095_v17  ;;  %6243 = vmatmul.f32.gmra.mxu1 %v11061_v59  ;;  %v11074_v5 = vld [vmem:[#allocation7 + $0xb8] sm:$0xff]  ;;  %vm11949_vm7 = vmmov %vm11942_vm1 }
 0x653   : > { %5120 = vst [vmem:[#allocation3 + $0x520] sm:$0xff] %v10931_v38  ;;  %5590 = vrot.lane.b32.xlu2 %v10884_v35, %s11939_s7 }
 0x655   : > { %v5179_v19 = vpop.permute.xlu2 %5178 }
 0x656   : > { %5794 = vrot.lane.b32.xlu0 %v10851_v21, %s7509_s18 }
 0x657   : > { %5796 = vrot.lane.b32.xlu1 %v10936_v16, %s7509_s18 }
 0x658   : > { %v5097_v53 = vpop.permute.xlu0 %5096 }
 0x659   : > { %v5105_v10 = vsel %vm11940_vm10, %v5095_v17, %v5097_v53  ;;  %v5159_v56 = vpop.permute.xlu1 %5158  ;;  %vm11950_vm10 = vcmask 130048  }
 0x65a   : > { %5121 = vst.msk [vmem:[#allocation3 + $0x528] sm:$0xff] %vm793_vm6, %v5105_v10  ;;  %v10945_v4 = vsel %vm1423_vm15, %v5159_v56, %v5161_v58  ;;  %v11079_v10 = vld [vmem:[#allocation7 + $0xa8] sm:$0xff]  ;;  %v11081_v56 = vld [vmem:[#allocation7 + $0xb0] sm:$0xff]  ;;  %vm11951_vm0 = vmmov %vm11950_vm10 }
 0x65b   : > { %5198 = vst [vmem:[#allocation3 + $0x558] sm:$0xff] %v10945_v4  ;;  %5592 = vrot.lane.b32.xlu2 %v10906_v20, %s11939_s7  ;;  %6246 = vmatmul.f32.gmra.mxu1 %v11081_v56 }
 0x65d   : > { %v5245_v44 = vpop.permute.xlu2 %5244 }
 0x65e   : > { %5586 = vrot.lane.b32.xlu0 %v10889_v6, %s11939_s7 }
 0x65f   : > { %5582 = vrot.lane.b32.xlu1 %v10870_v55, %s11939_s7 }
 0x660   : > { %v5163_v52 = vpop.permute.xlu0 %5162 }
 0x661   : > { %v5183_v40 = vsel %vm1423_vm15, %v5161_v58, %v5163_v52  ;;  %v5165_v9 = vpop.permute.xlu1 %5164 }
 0x662   : > { %5199 = vst.msk [vmem:[#allocation3 + $0x560] sm:$0xff] %vm793_vm6, %v5183_v40  ;;  %v10957_v11 = vsel %vm1423_vm15, %v5165_v9, %v5167_v27 }
 0x663   : > { %5750 = vst.msk [vmem:[#allocation3 + $0x560] sm:$0xff] %vm1420_vm11, %v10851_v21  ;;  %5588 = vrot.lane.b32.xlu2 %v10901_v1, %s11939_s7  ;;  %7185 = vmatmul.msk.f32.vlgmr.msra.gmra.mxu1 %vm1423_vm15, %v10994_v63 }
 0x664   : > { %5200 = vst [vmem:[#allocation3 + $0x590] sm:$0xff] %v10957_v11 }
 0x665   : > { %v10966_v47 = vpop.permute.xlu2 %5250 }
 0x666   : > { %5348 = vrot.lane.b32.xlu0 %v10884_v35, %s11926_s30 }
 0x667   : > { %5578 = vrot.lane.b32.xlu1 %v10851_v21, %s11939_s7 }
 0x668   : > { %v5169_v30 = vpop.permute.xlu0 %5168 }
 0x669   : > { %v5185_v37 = vsel %vm1423_vm15, %v5167_v27, %v5169_v30  ;;  %v5171_v57 = vpop.permute.xlu1 %5170  ;;  %v11051_v27 = vld [vmem:[#allocation7 + $0xa0] sm:$0xff] }
 0x66a   : > { %5201 = vst.msk [vmem:[#allocation3 + $0x598] sm:$0xff] %vm793_vm6, %v5185_v37  ;;  %v10973_v62 = vsel %vm1423_vm15, %v5171_v57, %v5173_v2  ;;  %7183 = vmatmul.msk.f32.gmra.mxu3 %vm1423_vm15, %v11051_v27 }
 0x66b   : > { %5752 = vst.msk [vmem:[#allocation3 + $0x598] sm:$0xff] %vm1420_vm11, %v10870_v55  ;;  %5530 = vrot.lane.b32.xlu2 %v10884_v35, %s11926_s30  ;;  %7186 = vmatmul.msk.f32.gmra.mxu1 %vm1423_vm15, %v11028_v31 }
 0x66c   : > { %5202 = vst [vmem:[#allocation3 + $0x5c8] sm:$0xff] %v10973_v62 }
 0x66d   : > { %v5257_v32 = vpop.permute.xlu2 %5256 }
 0x66e   : > { %5896 = vrot.lane.b32.xlu0 %v10884_v35, %s7510_s23 }
 0x66f   : > { %5898 = vrot.lane.b32.xlu1 %v10906_v20, %s7510_s23 }
 0x670   : > { %v5175_v13 = vpop.permute.xlu0 %5174 }
 0x671   : > { %v5187_v15 = vsel %vm1423_vm15, %v5173_v2, %v5175_v13  ;;  %v5177_v3 = vpop.permute.xlu1 %5176  ;;  %v11059_v2 = vld [vmem:[#allocation7 + $0x90] sm:$0xff] }
 0x672   : > { %5203 = vst.msk [vmem:[#allocation3 + $0x5d0] sm:$0xff] %vm793_vm6, %v5187_v15  ;;  %v10987_v23 = vsel %vm1423_vm15, %v5177_v3, %v5179_v19  ;;  %6214 = vmatmul.f32.gmra.mxu0 %v11059_v2  ;;  %6301 = vmatmul.f32.gmra.mxu2 %v11059_v2 }
 0x673   : > { %5754 = vst.msk [vmem:[#allocation3 + $0x5d0] sm:$0xff] %vm1420_vm11, %v10889_v6  ;;  %5890 = vrot.lane.b32.xlu2 %v10889_v6, %s7510_s23  ;;  %7184 = vmatmul.msk.f32.gmra.mxu3 %vm1423_vm15, %v11074_v5 }
 0x674   : > { %5204 = vst [vmem:[#allocation3 + $0x600] sm:$0xff] %v10987_v23  ;;  %7187 = vmatmul.msk.f32.gmra.mxu1 %vm1423_vm15, %v11051_v27 }
 0x675   : > { %v5259_v17 = vpop.permute.xlu2 %5258 }
 0x676   : > { %5710 = vrot.lane.b32.xlu0 %v10884_v35, %s11941_s8  ;;  %v5271_v25 = vsel %vm1885_vm13, %v5257_v32, %v5259_v17 }
 0x677   : > { %5584 = vrot.lane.b32.xlu1 %v10922_v36, %s11939_s7  ;;  %5287 = vst.msk [vmem:[#allocation3 + $0x6b0] sm:$0xff] %vm793_vm6, %v5271_v25 }
 0x678   : > { %v5181_v54 = vpop.permute.xlu0 %5180 }
 0x679   : > { %v5189_v28 = vsel %vm1423_vm15, %v5179_v19, %v5181_v54  ;;  %v5243_v7 = vpop.permute.xlu1 %5242 }
 0x67a   : > { %5205 = vst.msk [vmem:[#allocation3 + $0x608] sm:$0xff] %vm793_vm6, %v5189_v28  ;;  %v11011_v0 = vsel %vm1885_vm13, %v5243_v7, %v5245_v44  ;;  %6217 = vmatmul.f32.gmra.mxu0 %v11079_v10  ;;  %6304 = vmatmul.f32.gmra.mxu2 %v11079_v10 }
 0x67b   : > { %5756 = vst.msk [vmem:[#allocation3 + $0x608] sm:$0xff] %vm1420_vm11, %v10884_v35  ;;  %5706 = vrot.lane.b32.xlu2 %v10889_v6, %s11941_s8  ;;  %6382 = vmatmul.f32.vlgmr.msra.gmra.mxu3 %v10560_v43 }
 0x67c   : > { %5282 = vst [vmem:[#allocation3 + $0x638] sm:$0xff] %v11011_v0  ;;  %7188 = vmatmul.msk.f32.gmra.mxu1 %vm1423_vm15, %v11074_v5 }
 0x67d   : > { %v11022_v12 = vpop.permute.xlu2 %5328 }
 0x67e   : > { %5892 = vrot.lane.b32.xlu0 %v10901_v1, %s7510_s23 }
 0x67f   : > { %5526 = vrot.lane.b32.xlu1 %v10889_v6, %s11926_s30 }
 0x680   : > { %v5247_v58 = vpop.permute.xlu0 %5246 }
 0x681   : > { %v5267_v45 = vsel %vm1885_vm13, %v5245_v44, %v5247_v58  ;;  %v5249_v46 = vpop.permute.xlu1 %5248  ;;  %v11086_v44 = vld [vmem:[#allocation2 + $0xf8] sm:$0xff] }
 0x682   : > { %5283 = vst.msk [vmem:[#allocation3 + $0x640] sm:$0xff] %vm793_vm6, %v5267_v45  ;;  %v5268_v60 = vsel %vm1885_vm13, %v5249_v46, %v10966_v47  ;;  %v5781_v9 = vmax.f32 %v11086_v44, 0.0  ;;  %6324 = vmatmul.f32.vlgmr.msra.gmra.mxu0 %v10740_v18  ;;  %6411 = vmatmul.f32.vlgmr.msrb.gmra.mxu2 %v10740_v18  ;;  %v11359_v44 = vpop.f32.mrf.mxu1 }
 0x683   : > { %5284 = vst [vmem:[#allocation3 + $0x670] sm:$0xff] %v5268_v60  ;;  %5886 = vrot.lane.b32.xlu2 %v10922_v36, %s7510_s23  ;;  %6385 = vmatmul.f32.gmra.mxu3 %v11036_v42 }
 0x685   : > { %v11047_v41 = vpop.permute.xlu2 %5334 }
 0x686   : > { %5580 = vrot.lane.b32.xlu0 %v10936_v16, %s11939_s7 }
 0x687   : > { %5884 = vrot.lane.b32.xlu1 %v10870_v55, %s7510_s23 }
 0x688   : > { %v5253_v8 = vpop.permute.xlu0 %5252 }
 0x689   : > { %v5269_v14 = vsel %vm1885_vm13, %v10966_v47, %v5253_v8  ;;  %v5255_v48 = vpop.permute.xlu1 %5254 }
 0x68a   : > { %5285 = vst.msk [vmem:[#allocation3 + $0x678] sm:$0xff] %vm793_vm6, %v5269_v14  ;;  %v5270_v49 = vsel %vm1885_vm13, %v5255_v48, %v5257_v32  ;;  %6327 = vmatmul.f32.gmra.mxu0 %v11038_v22  ;;  %6414 = vmatmul.f32.gmra.mxu2 %v11038_v22 }
 0x68b   : > { %5286 = vst [vmem:[#allocation3 + $0x6a8] sm:$0xff] %v5270_v49  ;;  %5532 = vrot.lane.b32.xlu2 %v10906_v20, %s11926_s30  ;;  %6388 = vmatmul.f32.gmra.mxu3 %v11059_v2 }
 0x68d   : > { %v11070_v51 = vpop.permute.xlu2 %5340 }
 0x68e   : > { %5522 = vrot.lane.b32.xlu0 %v10870_v55, %s11926_s30 }
 0x68f   : > { %5702 = vrot.lane.b32.xlu1 %v10870_v55, %s11941_s8 }
 0x690   : > { %v5261_v39 = vpop.permute.xlu0 %5260 }
 0x691   : > { %v5263_v19 = vpop.permute.xlu1 %5262 }
 0x692   : > { %v5272_v53 = vsel %vm1885_vm13, %v5261_v39, %v5263_v19  ;;  %6330 = vmatmul.f32.gmra.mxu0 %v11061_v59  ;;  %6417 = vmatmul.f32.gmra.mxu2 %v11061_v59 }
 0x693   : > { %5288 = vst [vmem:[#allocation3 + $0x6e0] sm:$0xff] %v5272_v53  ;;  %6482 = vmatpush.msrb.mxu3 %v5272_v53  ;;  %5518 = vrot.lane.b32.xlu2 %v10851_v21, %s11926_s30 }
 0x694   : > { %6391 = vmatmul.f32.gmra.mxu3 %v11079_v10 }
 0x695   : > { %6483 = vmatpush.msrb.mxu3 %v5270_v49  ;;  %v11091_v52 = vpop.permute.xlu2 %5812 }
 0x696   : > { %5878 = vrot.lane.b32.xlu0 %v10851_v21, %s7510_s23 }
 0x697   : > { %5880 = vrot.lane.b32.xlu1 %v10936_v16, %s7510_s23  ;;  %6484 = vmatpush.msrb.mxu3 %v5268_v60 }
 0x698   : > { %v5265_v40 = vpop.permute.xlu0 %5264 }
 0x699   : > { %v5273_v47 = vsel %vm1885_vm13, %v5263_v19, %v5265_v40  ;;  %v5327_v30 = vpop.permute.xlu1 %5326  ;;  %6485 = vmatpush.msrb.mxu3 %v11011_v0 }
 0x69a   : > { %5289 = vst.msk [vmem:[#allocation3 + $0x6e8] sm:$0xff] %vm793_vm6, %v5273_v47  ;;  %v11103_v37 = vsel %vm11942_vm1, %v5327_v30, %v11022_v12  ;;  %6333 = vmatmul.f32.gmra.mxu0 %v11081_v56  ;;  %6420 = vmatmul.f32.gmra.mxu2 %v11081_v56 }
 0x69b   : > { %5366 = vst [vmem:[#allocation3 + $0x718] sm:$0xff] %v11103_v37  ;;  %6486 = vmatpush.msrb.mxu3 %v10987_v23  ;;  %5816 = vrot.lane.b32.xlu2 %v5781_v9, %s7509_s18 }
 0x69d   : > { %6487 = vmatpush.msrb.mxu3 %v10973_v62  ;;  %v11115_v43 = vpop.permute.xlu2 %5808 }
 0x69e   : > { %5698 = vrot.lane.b32.xlu0 %v10851_v21, %s11941_s8 }
 0x69f   : > { %5528 = vrot.lane.b32.xlu1 %v10901_v1, %s11926_s30  ;;  %6488 = vmatpush.msrb.mxu3 %v10957_v11 }
 0x6a0   : > { %v5331_v57 = vpop.permute.xlu0 %5330 }
 0x6a1   : > { %v5351_v62 = vsel %vm11943_vm4, %v11022_v12, %v5331_v57  ;;  %v5333_v32 = vpop.permute.xlu1 %5332  ;;  %6489 = vmatpush.msrb.mxu3 %v10945_v4  ;;  %v6099_v57 = vld [vmem:[#allocation3 + $0x5d0] sm:$0xff]  ;;  %vm11952_vm4 = vmmov %vm11942_vm1 }
 0x6a2   : > { %5367 = vst.msk [vmem:[#allocation3 + $0x720] sm:$0xff] %vm793_vm6, %v5351_v62  ;;  %v5352_v13 = vsel %vm11944_vm5, %v5333_v32, %v11047_v41  ;;  %7189 = vmatmul.msk.f32.vlgmr.msrb.gmra.mxu0 %vm1423_vm15, %v10994_v63  ;;  %vm11953_vm5 = vmmov %vm11951_vm0 }
 0x6a3   : > { %5368 = vst [vmem:[#allocation3 + $0x750] sm:$0xff] %v5352_v13  ;;  %6490 = vmatpush.msrb.mxu3 %v10931_v38  ;;  %5524 = vrot.lane.b32.xlu2 %v10922_v36, %s11926_s30  ;;  %v11143_v38 = vld [vmem:[#allocation2 + $0xb8] sm:$0xff] }
 0x6a4   : > { %v5778_v23 = vmax.f32 %v11143_v38, 0.0 }
 0x6a5   : > { %6491 = vmatpush.msrb.mxu3 %v10916_v26  ;;  %v11137_v4 = vpop.permute.xlu2 %5346 }
 0x6a6   : > { %5470 = vrot.lane.b32.xlu0 %v10884_v35, %s11917_s29 }
 0x6a7   : > { %5650 = vrot.lane.b32.xlu1 %v10884_v35, %s11945_s6  ;;  %6492 = vmatpush.msrb.mxu3 %v10899_v33  ;;  %v11169_v33 = vld [vmem:[#allocation2 + $0x78] sm:$0xff] }
 0x6a8   : > { %v5337_v11 = vpop.permute.xlu0 %5336  ;;  %v5775_v54 = vmax.f32 %v11169_v33, 0.0  ;;  %v7178_v33 = vld [vmem:[%s11784_s2 + $0x28] sm:$0xff] }
 0x6a9   : > { %v5353_v26 = vsel %vm11946_vm8, %v11047_v41, %v5337_v11  ;;  %v5339_v15 = vpop.permute.xlu1 %5338  ;;  %6493 = vmatpush.msrb.mxu3 %v10882_v61  ;;  %v11216_v41 = vld [vmem:[#allocation7 + $0x60] sm:$0xff]  ;;  %vm11954_vm8 = vmmov %vm11951_vm0 }
 0x6aa   : > { %5369 = vst.msk [vmem:[#allocation3 + $0x758] sm:$0xff] %vm793_vm6, %v5353_v26  ;;  %v5354_v3 = vsel %vm11947_vm9, %v5339_v15, %v11070_v51  ;;  %6469 = vmatmul.f32.vlgmr.msrb.gmra.mxu1 %v11216_v41  ;;  %7190 = vmatmul.msk.f32.gmra.mxu0 %vm1423_vm15, %v11028_v31  ;;  %vm11955_vm9 = vmmov %vm11942_vm1 }
 0x6ab   : > { %5370 = vst [vmem:[#allocation3 + $0x788] sm:$0xff] %v5354_v3  ;;  %6494 = vmatpush.msrb.mxu3 %v10864_v34  ;;  %5646 = vrot.lane.b32.xlu2 %v10889_v6, %s11945_s6 }
 0x6ad   : > { %6495 = vmatpush.msrb.mxu3 %v10846_v50  ;;  %v5591_v61 = vpop.permute.xlu2 %5590 }
 0x6ae   : > { %5810 = vrot.lane.b32.xlu0 %v5778_v23, %s7509_s18  ;;  %5612 = vst.msk [vmem:[#allocation3 + $0x368] sm:$0xff] %vm1420_vm11, %v5591_v61 }
 0x6af   : > { %5466 = vrot.lane.b32.xlu1 %v10889_v6, %s11917_s29  ;;  %6496 = vmatpush.msrb.mxu3 %v10827_v24  ;;  %v11182_v24 = vld [vmem:[#allocation2 + $0x38] sm:$0xff] }
 0x6b0   : > { %v5343_v34 = vpop.permute.xlu0 %5342  ;;  %v5772_v12 = vmax.f32 %v11182_v24, 0.0  ;;  %v7179_v24 = vld [vmem:[%s11784_s2 + $0x30] sm:$0xff] }
 0x6b1   : > { %v5355_v50 = vsel %vm11948_vm12, %v11070_v51, %v5343_v34  ;;  %v5345_v17 = vpop.permute.xlu1 %5344  ;;  %6497 = vmatpush.msrb.mxu3 %v10804_v29  ;;  %vm11956_vm12 = vmmov %vm11942_vm1 }
 0x6b2   : > { %5371 = vst.msk [vmem:[#allocation3 + $0x790] sm:$0xff] %vm793_vm6, %v5355_v50  ;;  %v5356_v25 = vsel %vm11949_vm7, %v5345_v17, %v11137_v4  ;;  %6498 = vmatmul.f32.vlgmr.msrb.gmra.mxu3 %v10740_v18  ;;  %6472 = vmatmul.f32.gmra.mxu1 %v11036_v42  ;;  %vm11958_vm7 = vmmov %vm11942_vm1 }
 0x6b3   : > { %5372 = vst [vmem:[#allocation3 + $0x7c0] sm:$0xff] %v5356_v25  ;;  %6523 = vmatpush.msra.mxu2 %v5356_v25  ;;  %5462 = vrot.lane.b32.xlu2 %v10870_v55, %s11917_s29  ;;  %v11366_v38 = vpop.f32.mrf.mxu3 }
 0x6b4   : > { %7191 = vmatmul.msk.f32.gmra.mxu0 %vm1423_vm15, %v11051_v27 }
 0x6b5   : > { %6524 = vmatpush.msra.mxu2 %v5354_v3  ;;  %v5593_v29 = vpop.permute.xlu2 %5592  ;;  %v6033_v28 = vld [vmem:[#allocation3 + $0x368] sm:$0xff]  ;;  %v6087_v3 = vld [vmem:[#allocation3 + $0x560] sm:$0xff] }
 0x6b6   : > { %5520 = vrot.lane.b32.xlu0 %v10936_v16, %s11926_s30  ;;  %v5597_v7 = vsel %vm11950_vm10, %v5591_v61, %v5593_v29  ;;  %6540 = vmatpush.msra.mxu0 %v6033_v28 }
 0x6b7   : > { %5804 = vrot.lane.b32.xlu1 %v5775_v54, %s7509_s18  ;;  %5613 = vst [vmem:[#allocation3 + $0x370] sm:$0xff] %v5597_v7  ;;  %6525 = vmatpush.msra.mxu2 %v5352_v13  ;;  %v6093_v13 = vld [vmem:[#allocation3 + $0x598] sm:$0xff] }
 0x6b8   : > { %v11191_v0 = vpop.permute.xlu0 %5814 }
 0x6b9   : > { %v5824_v58 = vsel %vm276_vm3, %v11091_v52, %v11191_v0  ;;  %v5807_v45 = vpop.permute.xlu1 %5806  ;;  %6526 = vmatpush.msra.mxu2 %v11103_v37  ;;  %v6105_v37 = vld [vmem:[#allocation3 + $0x608] sm:$0xff] }
 0x6ba   : > { %5840 = vst.msk [vmem:[#allocation3 + $0x6e8] sm:$0xff] %vm1420_vm11, %v5824_v58  ;;  %v5822_v46 = vsel %vm276_vm3, %v5807_v45, %v11115_v43  ;;  %7193 = vmatmul.msk.f32.vlgmr.msra.gmra.mxu2 %vm1423_vm15, %v10994_v63  ;;  %6501 = vmatmul.f32.gmra.mxu3 %v11038_v22 }
 0x6bb   : > { %5838 = vst.msk [vmem:[#allocation3 + $0x6b0] sm:$0xff] %vm1420_vm11, %v5822_v46  ;;  %6627 = vmatpush.msrb.mxu2 %v5597_v7  ;;  %5798 = vrot.lane.b32.xlu2 %v5772_v12, %s7509_s18 }
 0x6bc   : > { %6475 = vmatmul.f32.gmra.mxu1 %v11059_v2  ;;  %7192 = vmatmul.msk.f32.gmra.mxu0 %vm1423_vm15, %v11074_v5 }
 0x6bd   : > { %v5589_v18 = vpop.permute.xlu2 %5588 }
 0x6be   : > { %5642 = vrot.lane.b32.xlu0 %v10870_v55, %s11945_s6 }
 0x6bf   : > { %5472 = vrot.lane.b32.xlu1 %v10906_v20, %s11917_s29 }
 0x6c0   : > { %v5801_v60 = vpop.permute.xlu0 %5800 }
 0x6c1   : > { %v11219_v8 = vpop.permute.xlu1 %5802  ;;  %v6129_v14 = vld [vmem:[#allocation3 + $0x6e8] sm:$0xff] }
 0x6c2   : > { %v5820_v48 = vsel %vm276_vm3, %v5801_v60, %v11219_v8  ;;  %6569 = vmatpush.msra.mxu1 %v6129_v14  ;;  %v6123_v49 = vld [vmem:[#allocation3 + $0x6b0] sm:$0xff]  ;;  %7194 = vmatmul.msk.f32.gmra.mxu2 %vm1423_vm15, %v11028_v31 }
 0x6c3   : > { %5836 = vst.msk [vmem:[#allocation3 + $0x678] sm:$0xff] %vm1420_vm11, %v5820_v48  ;;  %5468 = vrot.lane.b32.xlu2 %v10901_v1, %s11917_s29  ;;  %6504 = vmatmul.f32.gmra.mxu3 %v11061_v59 }
 0x6c4   : > { %6570 = vmatpush.msra.mxu1 %v6123_v49 }
 0x6c5   : > { %v11231_v51 = vpop.permute.xlu2 %5530  ;;  %6478 = vmatmul.f32.gmra.mxu1 %v11079_v10 }
 0x6c6   : > { %5458 = vrot.lane.b32.xlu0 %v10851_v21, %s11917_s29  ;;  %5552 = vst.msk [vmem:[#allocation3 + $0x288] sm:$0xff] %vm1420_vm11, %v11231_v51 }
 0x6c7   : > { %5638 = vrot.lane.b32.xlu1 %v10851_v21, %s11945_s6 }
 0x6c8   : > { %v5795_v39 = vpop.permute.xlu0 %5794 }
 0x6c9   : > { %v11240_v19 = vpop.permute.xlu1 %5796 }
 0x6ca   : > { %v5818_v53 = vsel %vm276_vm3, %v5795_v39, %v11240_v19  ;;  %v6117_v52 = vld [vmem:[#allocation3 + $0x678] sm:$0xff]  ;;  %7195 = vmatmul.msk.f32.gmra.mxu2 %vm1423_vm15, %v11051_v27 }
 0x6cb   : > { %5834 = vst.msk [vmem:[#allocation3 + $0x640] sm:$0xff] %vm1420_vm11, %v5818_v53  ;;  %6571 = vmatpush.msra.mxu1 %v6117_v52  ;;  %5406 = vrot.lane.b32.xlu2 %v10889_v6, %s11908_s28 }
 0x6cc   : > { %6507 = vmatmul.f32.gmra.mxu3 %v11081_v56 }
 0x6cd   : > { %v11252_v40 = vpop.permute.xlu2 %5890  ;;  %v6009_v25 = vld [vmem:[#allocation3 + $0x288] sm:$0xff] }
 0x6ce   : > { %5410 = vrot.lane.b32.xlu0 %v10884_v35, %s11908_s28 }
 0x6cf   : > { %5464 = vrot.lane.b32.xlu1 %v10922_v36, %s11917_s29 }
 0x6d0   : > { %v5587_v47 = vpop.permute.xlu0 %5586 }
 0x6d1   : > { %v5596_v30 = vsel %vm11951_vm0, %v5587_v47, %v5589_v18  ;;  %5610 = vst.msk [vmem:[#allocation3 + $0x330] sm:$0xff] %vm1420_vm11, %v5587_v47  ;;  %v5583_v6 = vpop.permute.xlu1 %5582 }
 0x6d2   : > { %5611 = vst [vmem:[#allocation3 + $0x338] sm:$0xff] %v5596_v30  ;;  %v6111_v35 = vld [vmem:[#allocation3 + $0x640] sm:$0xff]  ;;  %6628 = vmatpush.msrb.mxu2 %v5596_v30 }
 0x6d3   : > { %5608 = vst.msk [vmem:[#allocation3 + $0x2f8] sm:$0xff] %vm1420_vm11, %v5583_v6  ;;  %6572 = vmatpush.msra.mxu1 %v6111_v35  ;;  %5412 = vrot.lane.b32.xlu2 %v10906_v20, %s11908_s28 }
 0x6d4   : > { %7196 = vmatmul.msk.f32.gmra.mxu2 %vm1423_vm15, %v11074_v5 }
 0x6d5   : > { %6573 = vmatpush.msra.mxu1 %v6105_v37  ;;  %v11269_v62 = vpop.permute.xlu2 %5706 }
 0x6d6   : > { %5460 = vrot.lane.b32.xlu0 %v10936_v16, %s11917_s29  ;;  %5730 = vst.msk [vmem:[#allocation3 + $0x4f0] sm:$0xff] %vm1420_vm11, %v11269_v62 }
 0x6d7   : > { %5402 = vrot.lane.b32.xlu1 %v10870_v55, %s11908_s28  ;;  %6574 = vmatpush.msra.mxu1 %v6099_v57 }
 0x6d8   : > { %v5349_v32 = vpop.permute.xlu0 %5348  ;;  %v6027_v11 = vld [vmem:[#allocation3 + $0x330] sm:$0xff] }
 0x6d9   : > { %v5357_v26 = vsel %vm11942_vm1, %v11137_v4, %v5349_v32  ;;  %6575 = vmatpush.msra.mxu1 %v6093_v13  ;;  %v5579_v15 = vpop.permute.xlu1 %5578  ;;  %6541 = vmatpush.msra.mxu0 %v6027_v11 }
 0x6da   : > { %5373 = vst.msk [vmem:[#allocation3 + $0x7c8] sm:$0xff] %vm793_vm6, %v5357_v26  ;;  %v6021_v61 = vld [vmem:[#allocation3 + $0x2f8] sm:$0xff]  ;;  %v11388_v26 = vpop.f32.mrf.mxu1 }
 0x6db   : > { %5606 = vst.msk [vmem:[#allocation3 + $0x2c0] sm:$0xff] %vm1420_vm11, %v5579_v15  ;;  %6576 = vmatpush.msra.mxu1 %v6087_v3  ;;  %6542 = vmatpush.msra.mxu0 %v6021_v61  ;;  %v11392_v3 = vpop.f32.mrf.mxu3 }
 0x6dc   : > { %5712 = vrot.lane.b32.xlu2 %v10906_v20, %s11941_s8 }
 0x6dd   : > { %v11286_v55 = vpop.permute.xlu2 %5886 }
 0x6de   : > { %5398 = vrot.lane.b32.xlu0 %v10851_v21, %s11908_s28 }
 0x6df   : > { %5408 = vrot.lane.b32.xlu1 %v10901_v1, %s11908_s28 }
 0x6e0   : > { %v5897_v4 = vpop.permute.xlu0 %5896 }
 0x6e1   : > { %v11290_v34 = vpop.permute.xlu1 %5898 }
 0x6e2   : > { %v5908_v50 = vsel %vm337_vm2, %v5897_v4, %v11290_v34  ;;  %v6015_v17 = vld [vmem:[#allocation3 + $0x2c0] sm:$0xff] }
 0x6e3   : > { %5924 = vst.msk [vmem:[#allocation3 + $0x7c8] sm:$0xff] %vm1420_vm11, %v5908_v50  ;;  %6543 = vmatpush.msra.mxu0 %v6015_v17 }
 0x6e4   : > { %5400 = vrot.lane.b32.xlu2 %v10936_v16, %s11908_s28 }
 0x6e5   : > { %6544 = vmatpush.msra.mxu0 %v6009_v25  ;;  %v5533_v21 = vpop.permute.xlu2 %5532 }
 0x6e6   : > { %5404 = vrot.lane.b32.xlu0 %v10922_v36, %s11908_s28  ;;  %v5537_v29 = vsel %vm11952_vm4, %v11231_v51, %v5533_v21  ;;  %s7238_s28 = sshll.u32 %s7576_s16, 8  ;;  %s6822_s16 = scalar_lea.sflag [#allocation6], %s7650_s10 }
 0x6e7   : > { %5708 = vrot.lane.b32.xlu1 %v10901_v1, %s11941_s8  ;;  %5553 = vst [vmem:[#allocation3 + $0x290] sm:$0xff] %v5537_v29  ;;  %s6834_s30 = scalar_lea.hbm %s11785_s3, %s7238_s28 }
 0x6e8   : > { %v11303_v28 = vpop.permute.xlu0 %5710 }
 0x6e9   : > { %5732 = vst.msk [vmem:[#allocation3 + $0x528] sm:$0xff] %vm1420_vm11, %v11303_v28  ;;  %v5585_v7 = vpop.permute.xlu1 %5584 }
 0x6ea   : > { %v5595_v58 = vsel %vm11953_vm5, %v5583_v6, %v5585_v7  ;;  %v6153_v45 = vld [vmem:[#allocation3 + $0x7c8] sm:$0xff]  ;;  %v11373_v6 = vpop.f32.mrf.mxu2 }
 0x6eb   : > { %5609 = vst [vmem:[#allocation3 + $0x300] sm:$0xff] %v5595_v58  ;;  %6610 = vmatpush.msra.mxu3 %v6153_v45  ;;  %6629 = vmatpush.msrb.mxu2 %v5595_v58 }
 0x6ec   : > { %5652 = vrot.lane.b32.xlu2 %v10906_v20, %s11945_s6  ;;  %v6075_v20 = vld [vmem:[#allocation3 + $0x4f0] sm:$0xff] }
 0x6ed   : > { %v11312_v46 = vpop.permute.xlu2 %5518 }
 0x6ee   : > { %5704 = vrot.lane.b32.xlu0 %v10922_v36, %s11941_s8  ;;  %5546 = vst.msk [vmem:[#allocation3 + $0x1e0] sm:$0xff] %vm1420_vm11, %v11312_v46 }
 0x6ef   : > { %5700 = vrot.lane.b32.xlu1 %v10936_v16, %s11941_s8  ;;  %s6835_s8 = sshll.u32 %s11587_s27, 4  ;;  %s6836_s8 = int_to_ptr.vmem [resolvable:$true] %s6835_s8 }
 0x6f0   : > { %v11318_v18 = vpop.permute.xlu0 %5892  ;;  %v6081_v60 = vld [vmem:[#allocation3 + $0x528] sm:$0xff] }
 0x6f1   : > { %v5906_v14 = vsel %vm337_vm2, %v11252_v40, %v11318_v18  ;;  %v11323_v48 = vpop.permute.xlu1 %5526  ;;  %6577 = vmatpush.msra.mxu1 %v6081_v60  ;;  %v11414_v60 = vpop.f32.mrf.mxu3 }
 0x6f2   : > { %5922 = vst.msk [vmem:[#allocation3 + $0x790] sm:$0xff] %vm1420_vm11, %v5906_v14  ;;  %v11398_v4 = vpop.f32.mrf.mxu2 }
 0x6f3   : > { %5550 = vst.msk [vmem:[#allocation3 + $0x250] sm:$0xff] %vm1420_vm11, %v11323_v48  ;;  %6578 = vmatpush.msra.mxu1 %v6075_v20 }
 0x6f4   : > { %5640 = vrot.lane.b32.xlu2 %v10936_v16, %s11945_s6 }
 0x6f5   : > { %v5817_v49 = vpop.permute.xlu2 %5816  ;;  %v5991_v11 = vld [vmem:[#allocation3 + $0x1e0] sm:$0xff] }
 0x6f6   : > { %5648 = vrot.lane.b32.xlu0 %v10901_v1, %s11945_s6  ;;  %v11336_v51 = vsel %vm276_vm3, %v11191_v0, %v5817_v49 }
 0x6f7   : > { %5644 = vrot.lane.b32.xlu1 %v10922_v36, %s11945_s6  ;;  %5841 = vst [vmem:[#allocation3 + $0x6f0] sm:$0xff] %v11336_v51  ;;  %s6837_s6 = sshll.u32 %s6834_s30, 4  ;;  %s6838_s6 = int_to_ptr.hbm [resolvable:$true] %s6837_s6 }
 0x6f8   : > { %v5581_v39 = vpop.permute.xlu0 %5580  ;;  %s7446_s18 = sshra.s32 %s6838_s6, 4  ;;  %s7447_s18 = int_to_ptr.hbm [resolvable:$true] %s7446_s18 }
 0x6f9   : > { %v5594_v53 = vsel %vm11954_vm8, %v5579_v15, %v5581_v39  ;;  %v5885_v52 = vpop.permute.xlu1 %5884  ;;  %v6147_v40 = vld [vmem:[#allocation3 + $0x790] sm:$0xff]  ;;  %s7448_s25 = scalar_lea.hbm %s7447_s18, 256  ;;  %p7453_p11 = scmp.lt.s32.totalorder %s7447_s18, %s11785_s3 }
 0x6fa   : > { %5607 = vst [vmem:[#allocation3 + $0x2c8] sm:$0xff] %v5594_v53  ;;  %v5904_v16 = vsel %vm337_vm2, %v5885_v52, %v11286_v55  ;;  %v6003_v1 = vld [vmem:[#allocation3 + $0x250] sm:$0xff]  ;;  %6611 = vmatpush.msra.mxu3 %v6147_v40  ;;  %6630 = vmatpush.msrb.mxu2 %v5594_v53  ;;  %p7449_p1 = scmp.ne.s32.totalorder %s7447_s18, %s7448_s25 }
 0x6fb   : > { %5920 = vst.msk [vmem:[#allocation3 + $0x758] sm:$0xff] %vm1420_vm11, %v5904_v16  ;;  %6545 = vmatpush.msra.mxu0 %v6003_v1 }
 0x6fc   : > { %5888 = vrot.lane.b32.xlu2 %v5775_v54, %s7510_s23  ;;  %6631 = vmatpush.msrb.mxu2 %v5537_v29  ;;  %v11407_v29 = vpop.f32.mrf.mxu1  ;;  %p7450_p4 = pnand %p7449_p1, %p7622_p7 }
 0x6fd   : > { %v5525_v36 = vpop.permute.xlu2 %5524 }
 0x6fe   : > { %5900 = vrot.lane.b32.xlu0 %v5781_v9, %s7510_s23  ;;  %v7177_v9 = vld [vmem:[%s11784_s2 + $0x20] sm:$0xff]  ;;  %p7451_p8 = pneg %p7450_p4 }
 0x6ff   : > { %5894 = vrot.lane.b32.xlu1 %v5778_v23, %s7510_s23 }
 0x700   : > { %v5523_v0 = vpop.permute.xlu0 %5522 }
 0x701   : > { %v5535_v47 = vsel %vm11955_vm9, %v5523_v0, %v5525_v36  ;;  %5548 = vst.msk [vmem:[#allocation3 + $0x218] sm:$0xff] %vm1420_vm11, %v5523_v0  ;;  %v11354_v30 = vpop.permute.xlu1 %5702 }
 0x702   : > { %5549 = vst [vmem:[#allocation3 + $0x220] sm:$0xff] %v5535_v47  ;;  %v6141_v54 = vld [vmem:[#allocation3 + $0x758] sm:$0xff] }
 0x703   : > { %5728 = vst.msk [vmem:[#allocation3 + $0x4b8] sm:$0xff] %vm1420_vm11, %v11354_v30  ;;  %6612 = vmatpush.msra.mxu3 %v6141_v54 }
 0x704   : > { %6167 = vperm.xlu2 %7346, %v7178_v33   ;;  %v11427_v39 = vpop.f32.mrf.mxu1 }
 0x705   : > { %v11371_v23 = vpop.permute.xlu2 %5646 }
 0x706   : > { %5882 = vrot.lane.b32.xlu0 %v5772_v12, %s7510_s23  ;;  %5670 = vst.msk [vmem:[#allocation3 + $0x410] sm:$0xff] %vm1420_vm11, %v11371_v23  ;;  %v7180_v12 = vld [vmem:[%s11784_s2 + $0x38] sm:$0xff]  ;;  %s7452_s23 = scalar_lea.hbm %s11785_s3, 512 }
 0x707   : > { %6162 = vperm.xlu1 %7348, %v7177_v9   ;;  %p7454_p9 = scmp.lt.s32.totalorder %s7452_s23, %s7448_s25 }
 0x708   : > { %v5879_v35 = vpop.permute.xlu0 %5878  ;;  %v5997_v37 = vld [vmem:[#allocation3 + $0x218] sm:$0xff] }
 0x709   : > { %v11377_v57 = vpop.permute.xlu1 %5880  ;;  %6546 = vmatpush.msra.mxu0 %v5997_v37  ;;  %p7455_p2 = por %p7454_p9, %p7453_p11 }
 0x70a   : > { %v5902_v32 = vsel %vm337_vm2, %v5879_v35, %v11377_v57  ;;  %v6069_v13 = vld [vmem:[#allocation3 + $0x4b8] sm:$0xff] }
 0x70b   : > { %5918 = vst.msk [vmem:[#allocation3 + $0x720] sm:$0xff] %vm1420_vm11, %v5902_v32  ;;  %6579 = vmatpush.msra.mxu1 %v6069_v13  ;;  %6547 = vmatpush.msra.mxu0 %v5991_v11  ;;  %v11462_v13 = vld [vmem:[#allocation3 + $0x610] sm:$0xff]  ;;  %p7456_p10 = pnand %p7455_p2, %p7451_p8 }
 0x70d   : > { %v11390_v15 = vpop.permute.xlu2 %5462  ;;  %v6051_v1 = vld [vmem:[#allocation3 + $0x410] sm:$0xff] }
 0x70e   : > { %6172 = vperm.xlu0 %7347, %v7179_v24   ;;  %5488 = vst.msk [vmem:[#allocation3 + $0x138] sm:$0xff] %vm1420_vm11, %v11390_v15  ;;  %v11471_v24 = vld [vmem:[#allocation3 + $0x5d8] sm:$0xff] }
 0x70f   : > { %6177 = vperm.xlu1 %7348, %v7180_v12  }
 0x710   : > { %v11396_v61 = vpop.permute.xlu0 %5698 }
 0x711   : > { %5726 = vst.msk [vmem:[#allocation3 + $0x480] sm:$0xff] %vm1420_vm11, %v11396_v61  ;;  %v5529_v50 = vpop.permute.xlu1 %5528 }
 0x712   : > { %v5536_v17 = vsel %vm11956_vm12, %v11323_v48, %v5529_v50  ;;  %v6135_v25 = vld [vmem:[#allocation3 + $0x720] sm:$0xff] }
 0x713   : > { %5551 = vst [vmem:[#allocation3 + $0x258] sm:$0xff] %v5536_v17  ;;  %6613 = vmatpush.msra.mxu3 %v6135_v25  ;;  %6632 = vmatpush.msrb.mxu2 %v5536_v17  ;;  %v11479_v25 = vld [vmem:[#allocation3 + $0x5a0] sm:$0xff] }
 0x714   : > { %7197 = vmatmul.msk.f32.vlgmr.msra.gmra.mxu3 %vm1423_vm15, %v10994_v63  ;;  %v11421_v63 = vpop.f32.mrf.mxu2 }
 0x715   : > { %7239 = vmatpush.msrb.mxu3 %v11336_v51  ;;  %6633 = vmatpush.msrb.mxu2 %v5535_v47  ;;  %v5799_v21 = vpop.permute.xlu2 %5798  ;;  %v5973_v37 = vld [vmem:[#allocation3 + $0x138] sm:$0xff] }
 0x716   : > { %v11411_v7 = vsel %vm276_vm3, %v11240_v19, %v5799_v21  ;;  %v11425_v19 = vpop.f32.mrf.mxu0 }
 0x717   : > { %5835 = vst [vmem:[#allocation3 + $0x648] sm:$0xff] %v11411_v7 }
 0x718   : > { %v5471_v58 = vpop.permute.xlu0 %5470  ;;  %v6063_v45 = vld [vmem:[#allocation3 + $0x480] sm:$0xff] }
 0x719   : > { %5492 = vst.msk [vmem:[#allocation3 + $0x1a8] sm:$0xff] %vm1420_vm11, %v5471_v58  ;;  %v11417_v14 = vpop.permute.xlu1 %5650  ;;  %6580 = vmatpush.msra.mxu1 %v6063_v45 }
 0x71a   : > { %5672 = vst.msk [vmem:[#allocation3 + $0x448] sm:$0xff] %vm1420_vm11, %v11417_v14 }
 0x71c   : > { %7198 = vmatmul.msk.f32.gmra.mxu3 %vm1423_vm15, %v11028_v31  ;;  %v11436_v31 = vpop.f32.mrf.mxu3  ;;  %v11439_v36 = vpop.f32.mrf.mxu2 }
 0x71d   : > { %v5469_v48 = vpop.permute.xlu2 %5468  ;;  %11957 = vst [vmem:[#allocation18_spill] sm:$0xff] %v11436_v31 }
 0x71e   : > { %v11447_v0 = vpop.f32.mrf.mxu0 }
 0x720   : > { %v5811_v20 = vpop.permute.xlu0 %5810  ;;  %v5985_v49 = vld [vmem:[#allocation3 + $0x1a8] sm:$0xff] }
 0x721   : > { %v11431_v53 = vsel %vm276_vm3, %v11115_v43, %v5811_v20  ;;  %v5467_v52 = vpop.permute.xlu1 %5466  ;;  %6548 = vmatpush.msra.mxu0 %v5985_v49  ;;  %v6057_v40 = vld [vmem:[#allocation3 + $0x448] sm:$0xff] }
 0x722   : > { %5839 = vst [vmem:[#allocation3 + $0x6b8] sm:$0xff] %v11431_v53  ;;  %v5476_v16 = vsel %vm1885_vm13, %v5467_v52, %v5469_v48  ;;  %6581 = vmatpush.msra.mxu1 %v6057_v40  ;;  %7240 = vmatpush.msrb.mxu3 %v11431_v53 }
 0x723   : > { %5490 = vst.msk [vmem:[#allocation3 + $0x170] sm:$0xff] %vm1420_vm11, %v5467_v52 }
 0x724   : > { %5491 = vst [vmem:[#allocation3 + $0x178] sm:$0xff] %v5476_v16  ;;  %6582 = vmatpush.msra.mxu1 %v6051_v1  ;;  %7199 = vmatmul.msk.f32.gmra.mxu3 %vm1423_vm15, %v11051_v27  ;;  %v11455_v27 = vpop.f32.mrf.mxu1  ;;  %v11459_v32 = vpop.f32.mrf.mxu3 }
 0x725   : > { %v11443_v43 = vpop.permute.xlu2 %5406 }
 0x726   : > { %5430 = vst.msk [vmem:[#allocation3 + $0x90] sm:$0xff] %vm1420_vm11, %v11443_v43  ;;  %v11476_v50 = vpop.f32.mrf.mxu0 }
 0x728   : > { %v5521_v47 = vpop.permute.xlu0 %5520 }
 0x729   : > { %v5534_v33 = vsel %vm11958_vm7, %v11312_v46, %v5521_v47  ;;  %v5805_v54 = vpop.permute.xlu1 %5804 }
 0x72a   : > { %5547 = vst [vmem:[#allocation3 + $0x1e8] sm:$0xff] %v5534_v33  ;;  %v11453_v9 = vsel %vm276_vm3, %v11219_v8, %v5805_v54  ;;  %v5979_v35 = vld [vmem:[#allocation3 + $0x170] sm:$0xff]  ;;  %6634 = vmatpush.msrb.mxu2 %v5534_v33  ;;  %v11464_v8 = vpop.f32.mrf.mxu2  ;;  %vm11961_vm3 = vcmask 121856  }
 0x72b   : > { %5837 = vst [vmem:[#allocation3 + $0x680] sm:$0xff] %v11453_v9  ;;  %6549 = vmatpush.msra.mxu0 %v5979_v35  ;;  %7241 = vmatpush.msrb.mxu3 %v11453_v9  ;;  %vm11965_vm10 = vmmov %vm11961_vm3 }
 0x72c   : > { %7200 = vmatmul.msk.f32.gmra.mxu3 %vm1423_vm15, %v11074_v5  ;;  %v11482_v5 = vld [vmem:[#allocation3 + $0x568] sm:$0xff]  ;;  %v11484_v21 = vpop.f32.mrf.mxu1  ;;  %v11487_v48 = vpop.f32.mrf.mxu3 }
 0x72d   : > { %6550 = vmatpush.msra.mxu0 %v5973_v37  ;;  %7242 = vmatpush.msrb.mxu3 %v11411_v7  ;;  %v5413_v46 = vpop.permute.xlu2 %5412 }
 0x72f   : > { %7243 = vmatpush.msrb.mxu3 %v11462_v13 }
 0x730   : > { %v11469_v11 = vpop.permute.xlu0 %5642 }
 0x731   : > { %5668 = vst.msk [vmem:[#allocation3 + $0x3d8] sm:$0xff] %vm1420_vm11, %v11469_v11  ;;  %v5473_v12 = vpop.permute.xlu1 %5472  ;;  %7244 = vmatpush.msrb.mxu3 %v11471_v24 }
 0x732   : > { %v5477_v17 = vsel %vm1885_vm13, %v5471_v58, %v5473_v12  ;;  %v11495_v52 = vpop.f32.mrf.mxu2 }
 0x733   : > { %5493 = vst [vmem:[#allocation3 + $0x1b0] sm:$0xff] %v5477_v17  ;;  %6635 = vmatpush.msrb.mxu2 %v5477_v17  ;;  %7245 = vmatpush.msrb.mxu3 %v11479_v25 }
 0x734   : > { %v11501_v47 = vpop.f32.mrf.mxu1  ;;  %v11503_v54 = vpop.f32.mrf.mxu3 }
 0x735   : > { %6636 = vmatpush.msrb.mxu2 %v5476_v16  ;;  %7246 = vmatpush.msrb.mxu3 %v11482_v5  ;;  %v11499_v16 = vpop.f32.mrf.mxu0  ;;  %11959 = vst [vmem:[#allocation19_spill] sm:$0xff] %v11501_v47 }
 0x736   : > { %v5713_v45 = vpop.permute.xlu2 %5712 }
 0x737   : > { %v11491_v20 = vsel %vm2337_vm14, %v11303_v28, %v5713_v45 }
 0x738   : > { %5733 = vst [vmem:[#allocation3 + $0x530] sm:$0xff] %v11491_v20  ;;  %v5459_v58 = vpop.permute.xlu0 %5458  ;;  %v6045_v49 = vld [vmem:[#allocation3 + $0x3d8] sm:$0xff]  ;;  %7247 = vmatpush.msrb.mxu3 %v11491_v20 }
 0x739   : > { %5486 = vst.msk [vmem:[#allocation3 + $0x100] sm:$0xff] %vm1420_vm11, %v5459_v58  ;;  %v5639_v40 = vpop.permute.xlu1 %5638  ;;  %6583 = vmatpush.msra.mxu1 %v6045_v49  ;;  %v11511_v49 = vld [vmem:[#allocation7 + $0x68] sm:$0xff] }
 0x73a   : > { %5666 = vst.msk [vmem:[#allocation3 + $0x3a0] sm:$0xff] %vm1420_vm11, %v5639_v40  ;;  %v11509_v45 = vpop.f32.mrf.mxu2 }
 0x73b   : > { %11960 = vst [vmem:[#allocation20_spill] sm:$0xff] %v11509_v45  ;;  %v5955_v45 = vld [vmem:[#allocation3 + $0x90] sm:$0xff] }
 0x73c   : > { %v11524_v47 = vpop.f32.mrf.mxu3 }
 0x73d   : > { %v11514_v31 = vpop.f32.mrf.mxu0  ;;  %11963 = vst [vmem:[#allocation13_spill] sm:$0xff] %v11524_v47 }
 0x73e   : > { %v5401_v1 = vpop.permute.xlu2 %5400 }
 0x740   : > { %v5411_v28 = vpop.permute.xlu0 %5410  ;;  %v5967_v33 = vld [vmem:[#allocation3 + $0x100] sm:$0xff] }
 0x741   : > { %v5417_v35 = vsel %vm1423_vm15, %v5411_v28, %v5413_v46  ;;  %5432 = vst.msk [vmem:[#allocation3 + $0xc8] sm:$0xff] %vm1420_vm11, %v5411_v28  ;;  %v5465_v37 = vpop.permute.xlu1 %5464  ;;  %6551 = vmatpush.msra.mxu0 %v5967_v33  ;;  %v6039_v12 = vld [vmem:[#allocation3 + $0x3a0] sm:$0xff] }
 0x742   : > { %5433 = vst [vmem:[#allocation3 + $0xd0] sm:$0xff] %v5417_v35  ;;  %v5475_v17 = vsel %vm1885_vm13, %v11390_v15, %v5465_v37  ;;  %6584 = vmatpush.msra.mxu1 %v6039_v12  ;;  %v11521_v37 = vpop.f32.mrf.mxu1 }
 0x743   : > { %5489 = vst [vmem:[#allocation3 + $0x140] sm:$0xff] %v5475_v17  ;;  %6637 = vmatpush.msrb.mxu2 %v5475_v17  ;;  %6585 = vmatmul.f32.vlgmr.msra.gmra.mxu1 %v11511_v49 }
 0x744   : > { %11962 = vst [vmem:[#allocation17_spill] sm:$0xff] %v11521_v37 }
 0x746   : > { %v5653_v46 = vpop.permute.xlu2 %5652 }
 0x747   : > { %v11518_v28 = vsel %vm11961_vm3, %v11417_v14, %v5653_v46  ;;  %v11528_v14 = vpop.f32.mrf.mxu2 }
 0x748   : > { %5673 = vst [vmem:[#allocation3 + $0x450] sm:$0xff] %v11518_v28  ;;  %v5461_v33 = vpop.permute.xlu0 %5460  ;;  %v5961_v15 = vld [vmem:[#allocation3 + $0xc8] sm:$0xff] }
 0x749   : > { %v5474_v12 = vsel %vm1885_vm13, %v5459_v58, %v5461_v33  ;;  %v5403_v17 = vpop.permute.xlu1 %5402  ;;  %6552 = vmatpush.msra.mxu0 %v5961_v15  ;;  %11964 = vst [vmem:[#allocation14_spill] sm:$0xff] %v11528_v14  ;;  %v6328_v58 = vpop.f32.mrf.mxu0  ;;  %vm11968_vm13 = vmmov %vm11961_vm3 }
 0x74a   : > { %5487 = vst [vmem:[#allocation3 + $0x108] sm:$0xff] %v5474_v12  ;;  %6638 = vmatpush.msrb.mxu2 %v5474_v12  ;;  %v11538_v14 = vpop.f32.mrf.mxu1 }
 0x74b   : > { %5428 = vst.msk [vmem:[#allocation3 + $0x58] sm:$0xff] %vm1420_vm11, %v5403_v17  ;;  %6553 = vmatpush.msra.mxu0 %v5955_v45  ;;  %6588 = vmatmul.f32.gmra.mxu1 %v11038_v22 }
 0x74c   : > { %6639 = vmatpush.msrb.mxu2 %v5417_v35 }
 0x74e   : > { %v5641_v46 = vpop.permute.xlu2 %5640 }
 0x74f   : > { %v11531_v37 = vsel %vm11965_vm10, %v5639_v40, %v5641_v46  ;;  %v11540_v40 = vpop.f32.mrf.mxu3  ;;  %v11543_v46 = vpop.f32.mrf.mxu2 }
 0x750   : > { %5667 = vst [vmem:[#allocation3 + $0x3a8] sm:$0xff] %v11531_v37  ;;  %v5399_v33 = vpop.permute.xlu0 %5398 }
 0x751   : > { %v5414_v15 = vsel %vm1423_vm15, %v5399_v33, %v5401_v1  ;;  %5426 = vst.msk [vmem:[#allocation3 + $0x20] sm:$0xff] %vm1420_vm11, %v5399_v33  ;;  %v5409_v12 = vpop.permute.xlu1 %5408  ;;  %vm11967_vm11 = vmmov %vm11961_vm3 }
 0x752   : > { %5427 = vst [vmem:[#allocation3 + $0x28] sm:$0xff] %v5414_v15  ;;  %v5416_v22 = vsel %vm1423_vm15, %v11443_v43, %v5409_v12  ;;  %v5949_v45 = vld [vmem:[#allocation3 + $0x58] sm:$0xff] }
 0x753   : > { %5431 = vst [vmem:[#allocation3 + $0x98] sm:$0xff] %v5416_v22  ;;  %6554 = vmatpush.msra.mxu0 %v5949_v45  ;;  %6640 = vmatpush.msrb.mxu2 %v5416_v22  ;;  %v11551_v22 = vpop.f32.mrf.mxu0 }
 0x754   : > { %6591 = vmatmul.f32.gmra.mxu1 %v11061_v59 }
 0x756   : > { %v5889_v35 = vpop.permute.xlu2 %5888 }
 0x757   : > { %v11547_v1 = vsel %vm337_vm2, %v11286_v55, %v5889_v35  ;;  %v6473_v55 = vpop.f32.mrf.mxu1  ;;  %v6502_v45 = vpop.f32.mrf.mxu3 }
 0x758   : > { %5921 = vst [vmem:[#allocation3 + $0x760] sm:$0xff] %v11547_v1  ;;  %v5405_v43 = vpop.permute.xlu0 %5404  ;;  %v5943_v33 = vld [vmem:[#allocation3 + $0x20] sm:$0xff] }
 0x759   : > { %v5415_v12 = vsel %vm1423_vm15, %v5403_v17, %v5405_v43  ;;  %v5709_v47 = vpop.permute.xlu1 %5708  ;;  %6555 = vmatpush.msra.mxu0 %v5943_v33 }
 0x75a   : > { %5429 = vst [vmem:[#allocation3 + $0x60] sm:$0xff] %v5415_v12  ;;  %v5716_v59 = vsel %vm2337_vm14, %v11269_v62, %v5709_v47  ;;  %6556 = vmatmul.f32.vlgmr.msra.gmra.mxu0 %v11216_v41  ;;  %6641 = vmatpush.msrb.mxu2 %v5415_v12 }
 0x75b   : > { %5731 = vst [vmem:[#allocation3 + $0x4f8] sm:$0xff] %v5716_v59  ;;  %6656 = vmatpush.msrb.mxu0 %v11336_v51  ;;  %7248 = vmatpush.msrb.mxu3 %v5716_v59  ;;  %v11582_v33 = vpop.f32.mrf.mxu0 }
 0x75c   : > { %6642 = vmatpush.msrb.mxu2 %v5414_v15  ;;  %6594 = vmatmul.f32.gmra.mxu1 %v11081_v56 }
 0x75d   : > { %6657 = vmatpush.msrb.mxu0 %v11431_v53  ;;  %6643 = vmatmul.f32.vlgmr.msrb.gmra.mxu2 %v11216_v41  ;;  %v6531_v53 = vpop.f32.mrf.mxu2 }
 0x75e   : > { %v11560_v17 = vpop.permute.xlu2 %6167 }
 0x75f   : > { %6658 = vmatpush.msrb.mxu0 %v11453_v9  ;;  %v6213_v62 = vadd.f32 %v11447_v0, %v11560_v17  ;;  %v6474_v47 = vadd.f32 %v6473_v55, %v11560_v17  ;;  %v6387_v51 = vadd.f32 %v11487_v48, %v11560_v17  ;;  %v6300_v56 = vadd.f32 %v11398_v4, %v11560_v17 }
 0x760   : > { %v5705_v15 = vpop.permute.xlu0 %5704 }
 0x761   : > { %v6242_v41 = vadd.f32 %v11388_v26, %v6213_v62  ;;  %v5715_v35 = vsel %vm2337_vm14, %v11354_v30, %v5705_v15  ;;  %v5701_v43 = vpop.permute.xlu1 %5700  ;;  %6659 = vmatpush.msrb.mxu0 %v11411_v7  ;;  %v6503_v0 = vadd.f32 %v6502_v45, %v6474_v47  ;;  %v11575_v9 = vadd.f32 %v11495_v52, %v6387_v51  ;;  %v7366_v52 = vld [vmem:[#allocation7 + $0x98] sm:$0xff] }
 0x762   : > { %5729 = vst [vmem:[#allocation3 + $0x4c0] sm:$0xff] %v5715_v35  ;;  %v5714_v48 = vsel %vm2337_vm14, %v11396_v61, %v5701_v43  ;;  %6559 = vmatmul.f32.gmra.mxu0 %v11036_v42  ;;  %v6329_v4 = vadd.f32 %v6328_v58, %v6300_v56  ;;  %7249 = vmatpush.msrb.mxu3 %v5715_v35 }
 0x763   : > { %v6271_v26 = vadd.f32 %v11392_v3, %v6242_v41  ;;  %5727 = vst [vmem:[#allocation3 + $0x488] sm:$0xff] %v5714_v48  ;;  %6660 = vmatpush.msrb.mxu0 %v11462_v13  ;;  %v6532_v30 = vadd.f32 %v6531_v53, %v6503_v0  ;;  %v7369_v41 = vld [vmem:[#allocation7 + $0x70] sm:$0xff] }
 0x764   : > { %v6358_v7 = vadd.f32 %v11484_v21, %v6329_v4  ;;  %7250 = vmatpush.msrb.mxu3 %v5714_v48 }
 0x765   : > { %6716 = vst [vmem:[%s11587_s27 + $0x10] sm:$0xff] %v6271_v26  ;;  %6661 = vmatpush.msrb.mxu0 %v11471_v24  ;;  %6646 = vmatmul.f32.gmra.mxu2 %v11036_v42  ;;  %v6441_v24 = vpop.f32.mrf.mxu0 }
 0x766   : > { %7215 = vst [vmem:[%s11587_s27 + $0x90] sm:$0xff] %v6532_v30  ;;  %6734 = vrot.lane.b32.xlu1 %v6358_v7, %s11861_s11  ;;  %7251 = vmatpush.msrb.mxu3 %v11518_v28 }
 0x767   : > { %6662 = vmatpush.msrb.mxu0 %v11479_v25  ;;  %6717 = vst.msk [vmem:[%s11587_s27 + $0x18] sm:$0xff] %vm793_vm6, %v6358_v7  ;;  %v11969_v7 = vld [vmem:[#allocation19_spill] sm:$0xff] }
 0x768   : > { %v5649_v3 = vpop.permute.xlu0 %5648 }
 0x769   : > { %v5656_v61 = vsel %vm11967_vm11, %v11371_v23, %v5649_v3  ;;  %v5645_v13 = vpop.permute.xlu1 %5644  ;;  %6663 = vmatpush.msrb.mxu0 %v11482_v5  ;;  %v7364_v23 = vld [vmem:[#allocation7 + $0x80] sm:$0xff]  ;;  %v11970_v3 = vld [vmem:[#allocation20_spill] sm:$0xff] }
 0x76a   : > { %5671 = vst [vmem:[#allocation3 + $0x418] sm:$0xff] %v5656_v61  ;;  %v5655_v42 = vsel %vm11968_vm13, %v11469_v11, %v5645_v13  ;;  %6562 = vmatmul.f32.gmra.mxu0 %v11059_v2  ;;  %7252 = vmatpush.msrb.mxu3 %v5656_v61 }
 0x76b   : > { %5669 = vst [vmem:[#allocation3 + $0x3e0] sm:$0xff] %v5655_v42  ;;  %6664 = vmatpush.msrb.mxu0 %v11491_v20  ;;  %v7365_v20 = vld [vmem:[#allocation7 + $0xa8] sm:$0xff] }
 0x76c   : > { %7253 = vmatpush.msrb.mxu3 %v5655_v42 }
 0x76d   : > { %6665 = vmatpush.msrb.mxu0 %v5716_v59  ;;  %6649 = vmatmul.f32.gmra.mxu2 %v11059_v2  ;;  %v6476_v2 = vpop.f32.mrf.mxu1  ;;  %v11614_v58 = vpop.f32.mrf.mxu0 }
 0x76e   : > { %7254 = vmatpush.msrb.mxu3 %v11531_v37 }
 0x76f   : > { %6666 = vmatpush.msrb.mxu0 %v5715_v35  ;;  %6675 = vmatmul.f32.vlgmr.msrb.gmra.mxu3 %v7364_v23 }
 0x770   : > { %v5901_v25 = vpop.permute.xlu0 %5900 }
 0x771   : > { %v5909_v11 = vsel %vm337_vm2, %v11290_v34, %v5901_v25  ;;  %v5895_v5 = vpop.permute.xlu1 %5894  ;;  %6667 = vmatpush.msrb.mxu0 %v5714_v48  ;;  %v6505_v34 = vpop.f32.mrf.mxu3  ;;  %v7370_v48 = vld [vmem:[#allocation7 + $0xa0] sm:$0xff] }
 0x772   : > { %5925 = vst [vmem:[#allocation3 + $0x7d0] sm:$0xff] %v5909_v11  ;;  %v5907_v21 = vsel %vm337_vm2, %v11318_v18, %v5895_v5  ;;  %6565 = vmatmul.f32.gmra.mxu0 %v11079_v10  ;;  %7255 = vmatpush.msrb.mxu1 %v5909_v11  ;;  %v11973_v25 = vld [vmem:[#allocation17_spill] sm:$0xff]  ;;  %v11974_v5 = vld [vmem:[#allocation14_spill] sm:$0xff] }
 0x773   : > { %5923 = vst [vmem:[#allocation3 + $0x798] sm:$0xff] %v5907_v21  ;;  %6668 = vmatpush.msrb.mxu0 %v11518_v28  ;;  %v6534_v28 = vpop.f32.mrf.mxu2 }
 0x774   : > { %7256 = vmatpush.msrb.mxu1 %v5907_v21 }
 0x775   : > { %6669 = vmatpush.msrb.mxu0 %v5656_v61  ;;  %6652 = vmatmul.f32.gmra.mxu2 %v7365_v20  ;;  %v6479_v56 = vpop.f32.mrf.mxu1 }
 0x776   : > { %7257 = vmatpush.msrb.mxu1 %v11547_v1 }
 0x777   : > { %6670 = vmatpush.msrb.mxu0 %v5655_v42  ;;  %6678 = vmatmul.f32.gmra.mxu3 %v7366_v52  ;;  %v11972_v42 = vld [vmem:[#allocation13_spill] sm:$0xff] }
 0x778   : > { %v5883_v18 = vpop.permute.xlu0 %5882 }
 0x779   : > { %v5903_v10 = vsel %vm337_vm2, %v11377_v57, %v5883_v18  ;;  %v11618_v12 = vpop.permute.xlu1 %6162  ;;  %6671 = vmatpush.msrb.mxu0 %v11531_v37  ;;  %v7367_v37 = vld [vmem:[#allocation7 + $0x88] sm:$0xff] }
 0x77a   : > { %5919 = vst [vmem:[#allocation3 + $0x728] sm:$0xff] %v5903_v10  ;;  %v6210_v59 = vadd.f32 %v11425_v19, %v11618_v12  ;;  %v6471_v55 = vadd.f32 %v11538_v14, %v11618_v12  ;;  %6672 = vmatmul.f32.vlgmr.msrb.gmra.mxu0 %v11511_v49  ;;  %v6384_v45 = vadd.f32 %v11459_v32, %v11618_v12 }
 0x77b   : > { %7258 = vmatpush.msrb.mxu1 %v5903_v10  ;;  %6697 = vmatpush.msra.mxu0 %v5909_v11  ;;  %v6297_v57 = vadd.f32 %v11373_v6, %v11618_v12  ;;  %v6537_v43 = vpop.f32.mrf.mxu2 }
 0x77c   : > { %7202 = vmatmul.msk.f32.vlgmr.msrb.gmra.mxu1 %vm1423_vm15, %v7367_v37  ;;  %v6239_v62 = vadd.f32 %v11359_v44, %v6210_v59  ;;  %v6500_v19 = vadd.f32 %v11540_v40, %v6471_v55  ;;  %v6413_v14 = vadd.f32 %v11464_v8, %v6384_v45  ;;  %v7368_v44 = vld [vmem:[#allocation7 + $0xb0] sm:$0xff]  ;;  %v6447_v40 = vpop.f32.mrf.mxu0 }
 0x77d   : > { %6698 = vmatpush.msra.mxu0 %v5907_v21  ;;  %v6326_v49 = vadd.f32 %v11514_v31, %v6297_v57 }
 0x77e   : > { %v6268_v32 = vadd.f32 %v11366_v38, %v6239_v62  ;;  %v6529_v47 = vadd.f32 %v11543_v46, %v6500_v19  ;;  %v6442_v51 = vadd.f32 %v6441_v24, %v6413_v14 }
 0x77f   : > { %6699 = vmatpush.msra.mxu0 %v11547_v1  ;;  %v6355_v6 = vadd.f32 %v11455_v27, %v6326_v49  ;;  %6681 = vmatmul.f32.gmra.mxu3 %v7368_v44  ;;  %v6508_v27 = vpop.f32.mrf.mxu3 }
 0x780   : > { %6714 = vst [vmem:[%s11587_s27] sm:$0xff] %v6268_v32  ;;  %6732 = vrot.lane.b32.xlu0 %v6442_v51, %s11861_s11  ;;  %v11641_v8 = vpop.permute.xlu0 %6172 }
 0x781   : > { %7213 = vst [vmem:[%s11587_s27 + $0x80] sm:$0xff] %v6529_v47  ;;  %6730 = vrot.lane.b32.xlu2 %v6355_v6, %s11861_s11  ;;  %v6216_v38 = vadd.f32 %v11476_v50, %v11641_v8  ;;  %v6477_v31 = vadd.f32 %v6476_v2, %v11641_v8  ;;  %v11648_v46 = vpop.permute.xlu1 %6177  ;;  %6700 = vmatpush.msra.mxu0 %v5903_v10 }
 0x782   : > { %v6303_v1 = vadd.f32 %v11421_v63, %v11641_v8  ;;  %6715 = vst.msk [vmem:[%s11587_s27 + $0x8] sm:$0xff] %vm793_vm6, %v6355_v6  ;;  %v6219_v15 = vadd.f32 %v11499_v16, %v11648_v46  ;;  %v6480_v53 = vadd.f32 %v6479_v56, %v11648_v46  ;;  %7201 = vmatmul.msk.f32.vlgmr.msra.gmra.mxu0 %vm1423_vm15, %v7369_v41 }
 0x783   : > { %v6245_v50 = vadd.f32 %v11407_v29, %v6216_v38  ;;  %v6506_v35 = vadd.f32 %v6505_v34, %v6477_v31  ;;  %v6390_v63 = vadd.f32 %v11503_v54, %v11641_v8  ;;  %v6306_v26 = vadd.f32 %v11439_v36, %v11648_v46  ;;  %v11971_v54 = vld [vmem:[#allocation18_spill] sm:$0xff] }
 0x784   : > { %v6332_v0 = vadd.f32 %v11551_v22, %v6303_v1  ;;  %7203 = vmatmul.msk.f32.gmra.mxu1 %vm1423_vm15, %v7370_v48  ;;  %v6248_v16 = vadd.f32 %v11427_v39, %v6219_v15  ;;  %v6509_v4 = vadd.f32 %v6508_v27, %v6480_v53  ;;  %v6393_v24 = vadd.f32 %v11972_v42, %v11648_v46 }
 0x785   : > { %v6274_v29 = vadd.f32 %v11414_v60, %v6245_v50  ;;  %v6535_v30 = vadd.f32 %v6534_v28, %v6506_v35  ;;  %v6419_v61 = vadd.f32 %v11970_v3, %v6390_v63  ;;  %v6335_v23 = vadd.f32 %v11582_v33, %v6306_v26  ;;  %v6450_v33 = vpop.f32.mrf.mxu0 }
 0x786   : > { %v6361_v22 = vadd.f32 %v11969_v7, %v6332_v0  ;;  %v6277_v13 = vadd.f32 %v11971_v54, %v6248_v16  ;;  %v6538_v39 = vadd.f32 %v6537_v43, %v6509_v4  ;;  %v6445_v36 = vadd.f32 %v11614_v58, %v11575_v9  ;;  %v7371_v9 = vld [vmem:[#allocation7 + $0xb8] sm:$0xff] }
 0x787   : > { %6718 = vst [vmem:[%s11587_s27 + $0x20] sm:$0xff] %v6274_v29  ;;  %v6448_v60 = vadd.f32 %v6447_v40, %v6419_v61  ;;  %v6364_v11 = vadd.f32 %v11973_v25, %v6335_v23  ;;  %v6422_v21 = vadd.f32 %v11974_v5, %v6393_v24 }
 0x788   : > { %7217 = vst [vmem:[%s11587_s27 + $0xa0] sm:$0xff] %v6535_v30  ;;  %6738 = vrot.lane.b32.xlu0 %v6361_v22, %s11861_s11 }
 0x789   : > { %6720 = vst [vmem:[%s11587_s27 + $0x30] sm:$0xff] %v6277_v13  ;;  %6740 = vrot.lane.b32.xlu1 %v6448_v60, %s11861_s11  ;;  %6736 = vrot.lane.b32.xlu2 %v6445_v36, %s11861_s11  ;;  %v6451_v2 = vadd.f32 %v6450_v33, %v6422_v21 }
 0x78a   : > { %7219 = vst [vmem:[%s11587_s27 + $0xb0] sm:$0xff] %v6538_v39 }
 0x78b   : > { %6719 = vst.msk [vmem:[%s11587_s27 + $0x28] sm:$0xff] %vm793_vm6, %v6361_v22 }
 0x78c   : > { %7204 = vmatmul.msk.f32.gmra.mxu1 %vm1423_vm15, %v7371_v9  ;;  %6721 = vst.msk [vmem:[%s11587_s27 + $0x38] sm:$0xff] %vm793_vm6, %v6364_v11 }
 0x790   : > { %6744 = vrot.lane.b32.xlu0 %v6451_v2, %s11861_s11 }
 0x791   : > { %6742 = vrot.lane.b32.xlu2 %v6364_v11, %s11861_s11 }
 0x797   : > { %v6615_v20 = vpop.f32.mrf.mxu3 }
 0x79f   : > { %v6618_v52 = vpop.f32.mrf.mxu3 }
 0x7a7   : > { %v6621_v45 = vpop.f32.mrf.mxu3 }
 0x7af   : > { %v6624_v44 = vpop.f32.mrf.mxu3 }
 0x7c0   : > { %v6586_v34 = vpop.f32.mrf.mxu1 }
 0x7c8   : > { %v6589_v28 = vpop.f32.mrf.mxu1 }
 0x7d1   : > { %v6592_v47 = vpop.f32.mrf.mxu1 }
 0x7d7   : > { %v6557_v58 = vpop.f32.mrf.mxu0 }
 0x7d8   : > { %v6558_v18 = vadd.f32 %v6557_v58, %v11618_v12  ;;  %v6735_v19 = vpop.permute.xlu1 %6734 }
 0x7d9   : > { %v6595_v31 = vpop.f32.mrf.mxu1 }
 0x7da   : > { %v6587_v10 = vadd.f32 %v6586_v34, %v6558_v18 }
 0x7db   : > { %v6731_v59 = vpop.permute.xlu2 %6730 }
 0x7dc   : > { %v6616_v55 = vadd.f32 %v6615_v20, %v6587_v10 }
 0x7de   : > { %7214 = vst.msk [vmem:[%s11587_s27 + $0x88] sm:$0xff] %vm793_vm6, %v6616_v55  ;;  %6784 = vrot.lane.b32.xlu1 %v6616_v55, %s11861_s11 }
 0x7df   : > { %v6560_v57 = vpop.f32.mrf.mxu0 }
 0x7e0   : > { %v6561_v37 = vadd.f32 %v6560_v57, %v11560_v17  ;;  %v6644_v51 = vpop.f32.mrf.mxu2 }
 0x7e1   : > { %v6645_v7 = vadd.f32 %v6644_v51, %v11618_v12 }
 0x7e2   : > { %v6590_v62 = vadd.f32 %v6589_v28, %v6561_v37 }
 0x7e3   : > { %v6737_v14 = vpop.permute.xlu2 %6736 }
 0x7e4   : > { %v6747_v49 = vsel %vm793_vm6, %v6735_v19, %v6737_v14  ;;  %7208 = vst.msk [vmem:[%s11587_s27 + $0x58] sm:$0xff] %vm793_vm6, %v6737_v14  ;;  %v6619_v32 = vadd.f32 %v6618_v52, %v6590_v62 }
 0x7e5   : > { %7207 = vst [vmem:[%s11587_s27 + $0x50] sm:$0xff] %v6747_v49 }
 0x7e6   : > { %7216 = vst.msk [vmem:[%s11587_s27 + $0x98] sm:$0xff] %vm793_vm6, %v6619_v32  ;;  %6788 = vrot.lane.b32.xlu0 %v6619_v32, %s11861_s11 }
 0x7e7   : > { %v6563_v6 = vpop.f32.mrf.mxu0 }
 0x7e8   : > { %v6564_v56 = vadd.f32 %v6563_v6, %v11641_v8  ;;  %v6647_v15 = vpop.f32.mrf.mxu2 }
 0x7e9   : > { %v6648_v0 = vadd.f32 %v6647_v15, %v11560_v17 }
 0x7ea   : > { %v6593_v40 = vadd.f32 %v6592_v47, %v6564_v56 }
 0x7eb   : > { %v6743_v23 = vpop.permute.xlu2 %6742 }
 0x7ec   : > { %v6622_v38 = vadd.f32 %v6621_v45, %v6593_v40 }
 0x7ee   : > { %7218 = vst.msk [vmem:[%s11587_s27 + $0xa8] sm:$0xff] %vm793_vm6, %v6622_v38 }
 0x7ef   : > { %v6566_v27 = vpop.f32.mrf.mxu0 }
 0x7f0   : > { %v6567_v1 = vadd.f32 %v6566_v27, %v11648_v46  ;;  %v6650_v26 = vpop.f32.mrf.mxu2 }
 0x7f1   : > { %v6651_v17 = vadd.f32 %v6650_v26, %v11641_v8 }
 0x7f2   : > { %v6596_v53 = vadd.f32 %v6595_v31, %v6567_v1  ;;  %v6733_v41 = vpop.permute.xlu0 %6732  ;;  %v6676_v50 = vpop.f32.mrf.mxu3 }
 0x7f3   : > { %v6746_v35 = vsel %vm793_vm6, %v6731_v59, %v6733_v41  ;;  %7206 = vst.msk [vmem:[%s11587_s27 + $0x48] sm:$0xff] %vm793_vm6, %v6733_v41  ;;  %v6677_v48 = vadd.f32 %v6676_v50, %v6648_v0 }
 0x7f4   : > { %7205 = vst [vmem:[%s11587_s27 + $0x40] sm:$0xff] %v6746_v35  ;;  %v6625_v43 = vadd.f32 %v6624_v44, %v6596_v53 }
 0x7f6   : > { %7220 = vst.msk [vmem:[%s11587_s27 + $0xb8] sm:$0xff] %vm793_vm6, %v6625_v43 }
 0x7f7   : > { %v6673_v63 = vpop.f32.mrf.mxu0 }
 0x7f8   : > { %v6674_v61 = vadd.f32 %v6673_v63, %v6645_v7  ;;  %v6653_v8 = vpop.f32.mrf.mxu2 }
 0x7f9   : > { %v6705_v16 = vpop.f32.mrf.mxu1  ;;  %v6654_v25 = vadd.f32 %v6653_v8, %v11648_v46 }
 0x7fa   : > { %v6706_v4 = vadd.f32 %v6705_v16, %v6677_v48  ;;  %v6739_v29 = vpop.permute.xlu0 %6738  ;;  %v6679_v3 = vpop.f32.mrf.mxu3 }
 0x7fb   : > { %v6741_v30 = vpop.permute.xlu1 %6740  ;;  %v6680_v13 = vadd.f32 %v6679_v3, %v6651_v17 }
 0x7fc   : > { %6790 = vrot.lane.b32.xlu1 %v6706_v4, %s11861_s11  ;;  %v6748_v22 = vsel %vm793_vm6, %v6739_v29, %v6741_v30  ;;  %7210 = vst.msk [vmem:[%s11587_s27 + $0x68] sm:$0xff] %vm793_vm6, %v6741_v30 }
 0x7fd   : > { %7209 = vst [vmem:[%s11587_s27 + $0x60] sm:$0xff] %v6748_v22 }
 0x7ff   : > { %v6702_v54 = vpop.f32.mrf.mxu0 }
 0x800   : > { %v6703_v42 = vadd.f32 %v6702_v54, %v6674_v61 }
 0x801   : > { %v6708_v24 = vpop.f32.mrf.mxu1 }
 0x802   : > { %v6709_v39 = vadd.f32 %v6708_v24, %v6680_v13  ;;  %v6745_v36 = vpop.permute.xlu0 %6744  ;;  %6786 = vrot.lane.b32.xlu2 %v6703_v42, %s11861_s11  ;;  %v6682_v60 = vpop.f32.mrf.mxu3 }
 0x803   : > { %v6749_v12 = vsel %vm793_vm6, %v6743_v23, %v6745_v36  ;;  %7212 = vst.msk [vmem:[%s11587_s27 + $0x78] sm:$0xff] %vm793_vm6, %v6745_v36  ;;  %v6683_v5 = vadd.f32 %v6682_v60, %v6654_v25 }
 0x804   : > { %6794 = vrot.lane.b32.xlu0 %v6709_v39, %s11861_s11  ;;  %6796 = vrot.lane.b32.xlu1 %v6625_v43, %s11861_s11  ;;  %7211 = vst [vmem:[%s11587_s27 + $0x70] sm:$0xff] %v6749_v12 }
 0x809   : > { %v6711_v11 = vpop.f32.mrf.mxu1 }
 0x80a   : > { %6792 = vrot.lane.b32.xlu2 %v6622_v38, %s11861_s11  ;;  %v6712_v21 = vadd.f32 %v6711_v11, %v6683_v5 }
 0x812   : > { %6798 = vrot.lane.b32.xlu2 %v6712_v21, %s11861_s11 }
 0x850   : > { %v6785_v33 = vpop.permute.xlu1 %6784 }
 0x858   : > { %v6789_v52 = vpop.permute.xlu0 %6788 }
 0x85c   : > { %v6787_v9 = vpop.permute.xlu2 %6786 }
 0x85d   : > { %v6800_v2 = vsel %vm793_vm6, %v6785_v33, %v6787_v9  ;;  %7222 = vst.msk [vmem:[%s11587_s27 + $0xc8] sm:$0xff] %vm793_vm6, %v6787_v9 }
 0x85e   : > { %7221 = vst [vmem:[%s11587_s27 + $0xc0] sm:$0xff] %v6800_v2 }
 0x864   : > { %v6793_v20 = vpop.permute.xlu2 %6792 }
 0x86c   : > { %v6799_v34 = vpop.permute.xlu2 %6798 }
 0x86d   : > { %7228 = vst.msk [vmem:[%s11587_s27 + $0xf8] sm:$0xff] %vm793_vm6, %v6799_v34 }
 0x86e   : > { %v6791_v46 = vpop.permute.xlu1 %6790 }
 0x86f   : > { %v6801_v58 = vsel %vm793_vm6, %v6789_v52, %v6791_v46  ;;  %7224 = vst.msk [vmem:[%s11587_s27 + $0xd8] sm:$0xff] %vm793_vm6, %v6791_v46 }
 0x870   : > { %7223 = vst [vmem:[%s11587_s27 + $0xd0] sm:$0xff] %v6801_v58 }
 0x876   : > { %v6795_v18 = vpop.permute.xlu0 %6794  ;;  %v6797_v10 = vpop.permute.xlu1 %6796 }
 0x877   : > { %v6802_v28 = vsel %vm793_vm6, %v6793_v20, %v6795_v18  ;;  %7226 = vst.msk [vmem:[%s11587_s27 + $0xe8] sm:$0xff] %vm793_vm6, %v6795_v18  ;;  %v6803_v59 = vsel %vm793_vm6, %v6797_v10, %v6799_v34 }
 0x878   : > { %7225 = vst [vmem:[%s11587_s27 + $0xe0] sm:$0xff] %v6802_v28 }
 0x879   : > { %7227 = vst [vmem:[%s11587_s27 + $0xf0] sm:$0xff] %v6803_v59 }
 0x87a   : > { %7459 = shalt.err (!%p7456_p10)
}
 0x87b   : > { %s7534_s10 = smov 256  }
 0x87c   : > { %7265 = dma.vmem_to_hbm [thread:$0]  (%p7622_p7), %s6836_s8, 4096, %s6838_s6, %s6822_s16, %s7534_s10, %s7534_s10, %s11939_s7  }
 0x87d PF: > { %s6852_s22 = sand.u32 1, %s7490_s12   ;;  %p11975_p12 = scmp.ge.s32.totalorder %s7502_s15, 2 }
 0x87e   : > { %s6853_s24 = scalar_lea.sflag [#allocation6], %s6852_s22 }
 0x87f   : > { %p7276_p13 = pnand %p11975_p12, %p7590_p6 }
 0x881   : > { %p7277_p0 = pneg %p7276_p13 }
 0x883   : > { %7485 = dma.done.wait (%p7277_p0), %s6853_s24, 4096  }
 0x884   : > { %7487 = vsyncadd (%p7277_p0), %s6853_s24, 4294963200  ;;  %p17_p3 = scmp.ge.s32.totalorder %s7608_s26, 4   ;;  %s11976_s12 = smov %s7494_s13 }
 0x885   : > { %s11977_s13 = smov %s7498_s14  ;;  %s11978_s14 = smov %s7618_s4 }
 0x886   : > { %s11979_s15 = smov %s7608_s26  ;;  %19 = sbr.rel (!%p17_p3) target bundleno = 6 (0x6), region = 89 }
 0x88b   :  { %6859 = vsyncpa [#allocation5], 1 }
 0x88c   :  { %6861 = vsyncpa [#allocation5 + $0x1], 1 }
 0x88d   :  { %6862 = vsyncpa [#allocation8], 1 }
 0x88e   :  { %6863 = vsyncpa [#allocation6], 1 }
 0x88f   :  { %6865 = vsyncpa [#allocation6 + $0x1], 1 }

</bundles_post_ra>
